<compile_context>
chip_gen: v7x
topology: tpu7x:2x2x1
jax: 0.10.0
libtpu: 0.0.40
codegen_flags: <defaults>
</compile_context>

<pallas_src>
import math
from functools import partial

import jax
import jax.numpy as jnp
from jax import lax
from jax.experimental import pallas as pl
from jax.experimental.pallas import tpu as pltpu

_NEG = -1e30


def _erf(x):
    # Abramowitz & Stegun 7.1.26 (|err| < 1.5e-7, i.e. f32-exact in practice);
    # avoids relying on a Mosaic lowering for lax.erf while keeping exact-GELU
    # semantics (F.gelu default).
    p = 0.3275911
    a1, a2, a3, a4, a5 = (0.254829592, -0.284496736, 1.421413741,
                          -1.453152027, 1.061405429)
    z = jnp.abs(x)
    t = 1.0 / (1.0 + p * z)
    poly = ((((a5 * t + a4) * t + a3) * t + a2) * t + a1) * t
    y = 1.0 - poly * jnp.exp(-z * z)
    return jnp.where(x < 0.0, -y, y)


def _gelu(x):
    return 0.5 * x * (1.0 + _erf(x * (1.0 / math.sqrt(2.0))))


# ----------------------------- Pallas kernels ------------------------------ #

def _linear_kernel(x_ref, w_ref, b_ref, o_ref):
    o_ref[...] = (jnp.dot(x_ref[...], w_ref[...],
                          preferred_element_type=jnp.float32) + b_ref[...])


def _gat_proj_kernel(x_ref, w_ref, att_ref, xl_ref, xr_ref, alT_ref, ar_ref):
    # Hoisted GATv2 projections for one row block: xl = x@Wl, xr = x@Wr plus
    # the rank-1 linear leaky term coefficients 0.2 * (att . x{l,r}).
    x = x_ref[...]                                        # [TI, hid]
    att = att_ref[...]                                    # [1, C]
    xl = jnp.dot(x, w_ref[0], preferred_element_type=jnp.float32)   # [TI, C]
    xr = jnp.dot(x, w_ref[1], preferred_element_type=jnp.float32)   # [TI, C]
    xl_ref[...] = xl
    xr_ref[...] = xr
    alT_ref[...] = 0.2 * jnp.sum(xl * att, axis=-1, keepdims=True)  # [TI, 1]
    ar_ref[...] = 0.2 * jnp.sum(xr * att, axis=-1, keepdims=True)   # [TI, 1]


def _gat_attn_kernel(x_ref, xr_ref, ar_ref, xlT_ref, al_ref, xl_ref, adj_ref,
                     att_ref, g_ref, b_ref, o_ref):
    # Fused GATv2 attention (heads=1, bias=False, no self loops) + residual +
    # GELU + LayerNorm for one block of destination rows.  Lane-dense: every
    # big intermediate is [TI, N] with N (multiple of 128) on lanes.
    c = xlT_ref.shape[0]
    # leaky_relu(z) = 0.2*z + 0.8*relu(z); the linear part of
    # sum_c att_c * z_c is a rank-1 outer sum, precomputed as ar/al (x0.2).
    e = ar_ref[...] + al_ref[...]                         # [TI, N]
    for cc in range(c):                                   # C is small & static
        zc = xr_ref[:, cc:cc + 1] + xlT_ref[cc:cc + 1, :]  # [TI, N]
        e = e + jnp.maximum(zc, 0.0) * att_ref[0:1, cc:cc + 1]   # att_ref = 0.8*att
    adjf = adj_ref[...].astype(jnp.float32)               # bf16 0/1 mask -> f32
    e = jnp.where(adjf > 0.0, e, _NEG)
    rowmax = jnp.max(e, axis=-1, keepdims=True)
    rowmax = jnp.where(rowmax <= 0.5 * _NEG, 0.0, rowmax)
    p = jnp.exp(e - rowmax) * adjf
    denom = jnp.sum(p, axis=-1, keepdims=True)
    alpha = p * pl.reciprocal(jnp.where(denom > 0.0, denom, 1.0), approx=True)
    msg = jnp.dot(alpha, xl_ref[...], preferred_element_type=jnp.float32)  # [TI, C]

    y = x_ref[...] + _gelu(msg)                           # residual (conv bias=False)
    mean = jnp.mean(y, axis=-1, keepdims=True)
    cen = y - mean
    var = jnp.mean(cen * cen, axis=-1, keepdims=True)
    o_ref[...] = cen * lax.rsqrt(var + 1e-5) * g_ref[...] + b_ref[...]


def _sag_attn_kernel(xr_ref, xlrow_ref, adj_ref, sc_ref, o_ref):
    # SAGPooling scorer: GATv2Conv(hid -> 1, bias=True, self loops in adj)
    # + tanh, row-tiled; e is 2-D [TI, N] (lane-dense), no 1-wide matmuls.
    z = xr_ref[...] + xlrow_ref[...]                      # [TI, N]
    e = (0.2 * z + 0.8 * jnp.maximum(z, 0.0)) * sc_ref[0:1, 0:1]   # att*leaky
    adjf = adj_ref[...].astype(jnp.float32)
    e = jnp.where(adjf > 0.0, e, _NEG)
    rowmax = jnp.max(e, axis=-1, keepdims=True)
    rowmax = jnp.where(rowmax <= 0.5 * _NEG, 0.0, rowmax)
    p = jnp.exp(e - rowmax) * adjf
    denom = jnp.sum(p, axis=-1, keepdims=True)
    alpha = p * pl.reciprocal(jnp.where(denom > 0.0, denom, 1.0), approx=True)
    out = (jnp.sum(alpha * xlrow_ref[...], axis=-1, keepdims=True)
           + sc_ref[0:1, 1:2])                            # + output bias
    o_ref[...] = jnp.tanh(out)                            # [TI, 1]


def _global_max_kernel(x_ref, ohT_ref, o_ref):
    # Masked per-graph max pool; ohT[i, b] = 1 iff node i is a valid member of
    # graph b.  B is small & static; each iteration re-reads x from VMEM so
    # temporaries die at the row store.
    # TODO(synk): for large B move graphs onto a grid axis (needs lane-padded
    #             ohT / output blocks to stay (8,128)-aligned).
    ohT = ohT_ref[...]                                    # [N, B]
    for b in range(ohT_ref.shape[-1]):
        col = ohT[:, b:b + 1]                             # [N, 1]
        o_ref[b:b + 1, :] = jnp.max(jnp.where(col > 0.0, x_ref[...], _NEG),
                                    axis=0, keepdims=True)


def _final_head_kernel(s_ref, wf_ref, bf_ref, w0_ref, b0_ref, w1_ref, b1_ref,
                       o_ref):
    # final_embedding -> gelu -> head0 -> gelu -> head1, fused in one call.
    emb = jnp.dot(s_ref[...], wf_ref[...],
                  preferred_element_type=jnp.float32) + bf_ref[...]
    h = jnp.dot(_gelu(emb), w0_ref[...],
                preferred_element_type=jnp.float32) + b0_ref[...]
    o_ref[...] = jnp.dot(_gelu(h), w1_ref[...],
                         preferred_element_type=jnp.float32) + b1_ref[...]


# ----------------------------- kernel wrappers ------------------------------ #

def _full_spec(shape):
    return pl.BlockSpec(shape, lambda *_: (0,) * len(shape))


def _vmem_capacity():
    # Generation-aware budget (v5e/v6e: 128 MiB, v7x: 64 MiB per TC).
    try:
        return int(pltpu.get_tpu_info().vmem_capacity_bytes)
    except Exception:
        return 64 * 1024 * 1024


def _mosaic_params(dims, vmem_cap):
    return pltpu.CompilerParams(
        dimension_semantics=dims,
        vmem_limit_bytes=min((vmem_cap * 3) // 4, 112 * 1024 * 1024))


def _pick_row_tile(n, vmem_cap):
    # n is padded to a multiple of 128.  Pick the largest destination-row tile
    # (multiple of 16, dividing n, and <= n//2 so the grid has >= 2 steps for
    # v7x megacore) whose [TI, N] f32 score intermediates plus the bf16 adj
    # double-buffer fit in ~1/8 of VMEM.
    budget = vmem_cap // 8
    per_row = 16 * n + 2048          # ~3x [1,n] f32 live + 2x [1,n] bf16 adj
    ti = min(512, n // 2, max(16, budget // per_row))
    ti = max(16, (ti // 16) * 16)
    while n % ti:
        ti -= 16
    return max(ti, 16)


def pallas_linear(x, wt, b2d):
    # x: [M, K], wt: [K, O] (pre-transposed), b2d: [1, O].
    m, k = x.shape
    o = wt.shape[1]
    return pl.pallas_call(
        _linear_kernel,
        out_shape=jax.ShapeDtypeStruct((m, o), jnp.float32),
        in_specs=[_full_spec((m, k)), _full_spec((k, o)), _full_spec((1, o))],
        out_specs=_full_spec((m, o)),
    )(x, wt, b2d)


def pallas_gat_proj(x, w, att, ti, vmem_cap):
    n, hid = x.shape
    c = w.shape[-1]
    return pl.pallas_call(
        _gat_proj_kernel,
        out_shape=(jax.ShapeDtypeStruct((n, c), jnp.float32),
                   jax.ShapeDtypeStruct((n, c), jnp.float32),
                   jax.ShapeDtypeStruct((n, 1), jnp.float32),
                   jax.ShapeDtypeStruct((n, 1), jnp.float32)),
        grid=(n // ti,),
        in_specs=[pl.BlockSpec((ti, hid), lambda i: (i, 0)),
                  pl.BlockSpec((2, hid, c), lambda i: (0, 0, 0)),
                  pl.BlockSpec((1, c), lambda i: (0, 0))],
        out_specs=(pl.BlockSpec((ti, c), lambda i: (i, 0)),
                   pl.BlockSpec((ti, c), lambda i: (i, 0)),
                   pl.BlockSpec((ti, 1), lambda i: (i, 0)),
                   pl.BlockSpec((ti, 1), lambda i: (i, 0))),
        compiler_params=_mosaic_params(("parallel",), vmem_cap),
    )(x, w, att)


def pallas_gat_attn(x, xr, ar, xlT, al, xl, adj, att08, ln_g, ln_b, ti,
                    vmem_cap):
    n, hid = x.shape
    c = xlT.shape[0]
    return pl.pallas_call(
        _gat_attn_kernel,
        out_shape=jax.ShapeDtypeStruct((n, hid), jnp.float32),
        grid=(n // ti,),
        in_specs=[
            pl.BlockSpec((ti, hid), lambda i: (i, 0)),    # x block (residual)
            pl.BlockSpec((ti, c), lambda i: (i, 0)),      # xr block
            pl.BlockSpec((ti, 1), lambda i: (i, 0)),      # 0.2*att.xr block
            pl.BlockSpec((c, n), lambda i: (0, 0)),       # xl^T (resident)
            pl.BlockSpec((1, n), lambda i: (0, 0)),       # 0.2*att.xl row
            pl.BlockSpec((n, c), lambda i: (0, 0)),       # xl (resident)
            pl.BlockSpec((ti, n), lambda i: (i, 0)),      # adj row block (bf16)
            pl.BlockSpec((1, c), lambda i: (0, 0)),       # 0.8*att
            pl.BlockSpec((1, hid), lambda i: (0, 0)),     # LN gamma
            pl.BlockSpec((1, hid), lambda i: (0, 0)),     # LN beta
        ],
        out_specs=pl.BlockSpec((ti, hid), lambda i: (i, 0)),
        compiler_params=_mosaic_params(("parallel",), vmem_cap),
    )(x, xr, ar, xlT, al, xl, adj, att08, ln_g, ln_b)


def pallas_sag_attn(xr_col, xl_row, adj_sl, sc, ti, vmem_cap):
    n = xr_col.shape[0]
    return pl.pallas_call(
        _sag_attn_kernel,
        out_shape=jax.ShapeDtypeStruct((n, 1), jnp.float32),
        grid=(n // ti,),
        in_specs=[pl.BlockSpec((ti, 1), lambda i: (i, 0)),
                  pl.BlockSpec((1, n), lambda i: (0, 0)),
                  pl.BlockSpec((ti, n), lambda i: (i, 0)),
                  pl.BlockSpec((1, 2), lambda i: (0, 0))],
        out_specs=pl.BlockSpec((ti, 1), lambda i: (i, 0)),
        compiler_params=_mosaic_params(("parallel",), vmem_cap),
    )(xr_col, xl_row, adj_sl, sc)


def pallas_global_max_pool(x, ohT):
    n, f = x.shape
    b = ohT.shape[1]
    return pl.pallas_call(
        _global_max_kernel,
        out_shape=jax.ShapeDtypeStruct((b, f), jnp.float32),
        in_specs=[_full_spec((n, f)), _full_spec((n, b))],
        out_specs=_full_spec((b, f)),
    )(x, ohT)


def pallas_final_head(s, p):
    b = s.shape[0]
    o = p["head1_w"].shape[1]
    return pl.pallas_call(
        _final_head_kernel,
        out_shape=jax.ShapeDtypeStruct((b, o), jnp.float32),
        in_specs=[_full_spec(s.shape),
                  _full_spec(p["final_w"].shape), _full_spec(p["final_b"].shape),
                  _full_spec(p["head0_w"].shape), _full_spec(p["head0_b"].shape),
                  _full_spec(p["head1_w"].shape), _full_spec(p["head1_b"].shape)],
        out_specs=_full_spec((b, o)),
    )(s, p["final_w"], p["final_b"], p["head0_w"], p["head0_b"],
      p["head1_w"], p["head1_b"])


# --------------------------- model building blocks -------------------------- #

def gat_layer(x, adj, p, ln_g, ln_b, ti, vmem_cap):
    # Hoisted projection (one pass over x), then row-tiled attention.
    xl, xr, alT, ar = pallas_gat_proj(x, p["w"], p["att"], ti, vmem_cap)
    xlT = xl.T                        # one small [N, C] transpose per layer
    al = alT.T                        # [1, N]
    return pallas_gat_attn(x, xr, ar, xlT, al, xl, adj, p["att08"],
                           ln_g, ln_b, ti, vmem_cap)


def sag_pool(x, adj, batch, valid, p, ti, vmem_cap):
    # SAGPooling(ratio=0.5, GNN=GATv2Conv(heads=1, out=1), nonlinearity=tanh).
    n = x.shape[0]
    validb = valid.astype(jnp.bfloat16)
    adj_sl = jnp.maximum(adj, jnp.diag(validb))           # scorer adds self loops
    xlxr = pallas_linear(x, p["w2c"], p["b2"])            # [N, 2] = [xl | xr]
    xl_row = xlxr[:, 0].reshape(1, n)
    xr_col = xlxr[:, 1].reshape(n, 1)
    score = pallas_sag_attn(xr_col, xl_row, adj_sl, p["sc"], ti, vmem_cap)[:, 0]

    # TODO(synk): per-graph top-k selection + edge filtering kept as masked JAX
    # glue (dynamic node-count reduction is not expressible as a static kernel).
    idx = jnp.arange(n)
    same = batch[:, None] == batch[None, :]
    n_g = jnp.sum(same & valid[None, :], axis=1)          # graph size per node
    k_g = (n_g + 1) // 2                                  # ceil(0.5 * n_g)
    better = (same & valid[None, :]
              & ((score[None, :] > score[:, None])
                 | ((score[None, :] == score[:, None])
                    & (idx[None, :] < idx[:, None]))))
    rank = jnp.sum(better, axis=1)
    keep = valid & (rank < k_g)
    keepf = keep.astype(jnp.float32)
    keepb = keep.astype(jnp.bfloat16)

    x_new = x * (score * keepf)[:, None]                  # x[perm] * score[perm]
    adj_new = adj * keepb[:, None] * keepb[None, :]       # filter_adj (bf16)
    return x_new, adj_new, keep


def math_model_embedding(x, adj, batch, params, num_graphs):
    vmem_cap = _vmem_capacity()
    n = x.shape[0]
    ti = _pick_row_tile(n, vmem_cap)
    x = pallas_linear(x, params["init_w"], params["init_b"])
    hid = x.shape[1]
    valid = batch < num_graphs                            # padded rows excluded
    graph_ids = jnp.arange(num_graphs)
    out = jnp.zeros((num_graphs, hid), jnp.float32)
    for ip in range(3):                                   # n_pool
        for ic in range(3):                               # n_conv
            x = gat_layer(x, adj, params["conv"][ip][ic],
                          params["ln_g"], params["ln_b"], ti, vmem_cap)
        ohT = ((batch[:, None] == graph_ids[None, :])
               & valid[:, None]).astype(jnp.float32)      # [N, B]
        out = out + pallas_global_max_pool(x, ohT)
        x, adj, valid = sag_pool(x, adj, batch, valid, params["pool"][ip],
                                 ti, vmem_cap)
    return out


def math_model_forward(x, adj, batch, params, num_graphs):
    n = x.shape[0]
    n_pad = max(128, ((n + 127) // 128) * 128)            # lane-align N, mask pad
    if n_pad != n:
        pad = n_pad - n
        x = jnp.pad(x, ((0, pad), (0, 0)))
        adj = jnp.pad(adj, ((0, pad), (0, pad)))
        batch = jnp.pad(batch, (0, pad), constant_values=num_graphs)
    adj = adj.astype(jnp.bfloat16)                        # exact 0/1 mask, 2x less DMA
    pooled = math_model_embedding(x, adj, batch, params, num_graphs)
    return pallas_final_head(pooled, params)              # final emb + head


# ------------------------------- parameters --------------------------------- #

def init_params(key, in_channels, emb_channels, hidden_channels, out_channels,
                heads=1):
    assert heads == 1, "this kernel implementation supports heads=1"
    hid = hidden_channels * heads
    keys = iter(jax.random.split(key, 128))

    def lin_t(i, o, bias=True):
        # Weight stored pre-transposed as [in, out]; bias pre-reshaped [1, out].
        w = jax.random.normal(next(keys), (i, o), jnp.float32) / math.sqrt(i)
        b = (jax.random.normal(next(keys), (1, o), jnp.float32) * 0.01
             if bias else jnp.zeros((1, o), jnp.float32))
        return w, b

    params = {}
    params["init_w"], params["init_b"] = lin_t(in_channels, hid)

    conv = []
    for _ in range(3):
        layer = []
        for _ in range(3):
            wl, _ = lin_t(hid, hidden_channels, bias=False)   # conv bias=False
            wr, _ = lin_t(hid, hidden_channels, bias=False)
            att = (jax.random.normal(next(keys), (1, hidden_channels),
                                     jnp.float32) / math.sqrt(hidden_channels))
            layer.append(dict(w=jnp.stack([wl, wr], axis=0),  # [2, hid, C]
                              att=att, att08=0.8 * att))
        conv.append(layer)
    params["conv"] = conv

    pools = []
    for _ in range(3):
        w2c, b2 = lin_t(hid, 2)                               # cols: [w_l | w_r]
        att = jax.random.normal(next(keys), ())
        bias = jnp.zeros(())                                  # GATv2 output bias
        sc = jnp.stack([att, bias]).reshape(1, 2).astype(jnp.float32)
        pools.append(dict(w2c=w2c, b2=b2, sc=sc))
    params["pool"] = pools

    params["ln_g"] = jnp.ones((1, hid), jnp.float32)
    params["ln_b"] = jnp.zeros((1, hid), jnp.float32)
    params["final_w"], params["final_b"] = lin_t(hid, emb_channels)
    params["head0_w"], params["head0_b"] = lin_t(emb_channels, emb_channels)
    params["head1_w"], params["head1_b"] = lin_t(emb_channels, out_channels)
    return params


# ----------------------------------- main ----------------------------------- #

if __name__ == "__main__":
    key = jax.random.PRNGKey(0)
    k_param, k_x, k_adj = jax.random.split(key, 3)

    num_graphs = 2
    nodes_per_graph = 8
    n_nodes = num_graphs * nodes_per_graph
    in_channels, hidden_channels, emb_channels, out_channels = 8, 32, 16, 4

    batch = jnp.repeat(jnp.arange(num_graphs, dtype=jnp.int32), nodes_per_graph)
    x = jax.random.normal(k_x, (n_nodes, in_channels), jnp.float32)

    # Random intra-graph edges, no self loops; adj[i, j] = 1 for edge j -> i.
    same_graph = batch[:, None] == batch[None, :]
    rnd = jax.random.uniform(k_adj, (n_nodes, n_nodes))
    adj = ((rnd < 0.4) & same_graph & ~jnp.eye(n_nodes, dtype=bool)
           ).astype(jnp.float32)

    params = init_params(k_param, in_channels, emb_channels, hidden_channels,
                         out_channels, heads=1)

    fwd = jax.jit(partial(math_model_forward, num_graphs=num_graphs))
    y = fwd(x, adj, batch, params)
    jax.block_until_ready(y)
    assert y.shape == (num_graphs, out_channels)
    assert bool(jnp.all(jnp.isfinite(y)))
    print("KERNEL_OK")
</pallas_src>

<mosaic_0001>
module attributes {stable_mosaic.version = 11 : i64} {
  func.func @_gat_proj_kernel(%arg0: i32, %arg1: memref<64x32xf32, #tpu.memory_space<vmem>>, %arg2: memref<2x32x32xf32, #tpu.memory_space<vmem>>, %arg3: memref<1x32xf32, #tpu.memory_space<vmem>>, %arg4: memref<64x32xf32, #tpu.memory_space<vmem>>, %arg5: memref<64x32xf32, #tpu.memory_space<vmem>>, %arg6: memref<64x1xf32, #tpu.memory_space<vmem>>, %arg7: memref<64x1xf32, #tpu.memory_space<vmem>>) attributes {dimension_semantics = [#tpu.dimension_semantics<parallel>], iteration_bounds = array<i64: 2>, scalar_prefetch = 0 : i64, scratch_operands = 0 : i64, tpu.core_type = #tpu.core_type<tc>, window_params = [{transform_indices = @transform_0, window_bounds = array<i64: 64, 32>}, {pipeline_mode = #tpu.pipeline_mode<synchronous>, transform_indices = @transform_1, window_bounds = array<i64: 2, 32, 32>}, {pipeline_mode = #tpu.pipeline_mode<synchronous>, transform_indices = @transform_2, window_bounds = array<i64: 1, 32>}, {transform_indices = @transform_3, window_bounds = array<i64: 64, 32>}, {transform_indices = @transform_4, window_bounds = array<i64: 64, 32>}, {transform_indices = @transform_5, window_bounds = array<i64: 64, 1>}, {transform_indices = @transform_6, window_bounds = array<i64: 64, 1>}]} {
    %c0 = arith.constant 0 : index
    %c0_0 = arith.constant 0 : index
    %0 = vector.load %arg1[%c0, %c0_0] : memref<64x32xf32, #tpu.memory_space<vmem>>, vector<64x32xf32>
    %c0_1 = arith.constant 0 : index
    %c0_2 = arith.constant 0 : index
    %1 = vector.load %arg3[%c0_1, %c0_2] : memref<1x32xf32, #tpu.memory_space<vmem>>, vector<1x32xf32>
    %c0_3 = arith.constant 0 : index
    %c0_4 = arith.constant 0 : index
    %c0_5 = arith.constant 0 : index
    %2 = vector.load %arg2[%c0_3, %c0_4, %c0_5] : memref<2x32x32xf32, #tpu.memory_space<vmem>>, vector<1x32x32xf32>
    %3 = vector.shape_cast %2 : vector<1x32x32xf32> to vector<32x32xf32>
    %cst = arith.constant dense<0.000000e+00> : vector<64x32xf32>
    %4 = tpu.matmul %0, %3, %cst {dimension_numbers = #tpu.dot_dimension_numbers<[1], [0], [0], [1], [0, 0, 1, 1], [], []>} : vector<64x32xf32>, vector<32x32xf32>, vector<64x32xf32> -> vector<64x32xf32>
    %c1 = arith.constant 1 : index
    %c0_6 = arith.constant 0 : index
    %c0_7 = arith.constant 0 : index
    %5 = vector.load %arg2[%c1, %c0_6, %c0_7] : memref<2x32x32xf32, #tpu.memory_space<vmem>>, vector<1x32x32xf32>
    %6 = vector.shape_cast %5 : vector<1x32x32xf32> to vector<32x32xf32>
    %cst_8 = arith.constant dense<0.000000e+00> : vector<64x32xf32>
    %7 = tpu.matmul %0, %6, %cst_8 {dimension_numbers = #tpu.dot_dimension_numbers<[1], [0], [0], [1], [0, 0, 1, 1], [], []>} : vector<64x32xf32>, vector<32x32xf32>, vector<64x32xf32> -> vector<64x32xf32>
    %c0_9 = arith.constant 0 : index
    %c0_10 = arith.constant 0 : index
    %8 = vector.load %arg4[%c0_9, %c0_10] : memref<64x32xf32, #tpu.memory_space<vmem>>, vector<64x32xf32>
    tpu.vector_store %arg4[%c0_9, %c0_10], %4 {strides = array<i32>} : memref<64x32xf32, #tpu.memory_space<vmem>>, vector<64x32xf32>,
    %c0_11 = arith.constant 0 : index
    %c0_12 = arith.constant 0 : index
    %9 = vector.load %arg5[%c0_11, %c0_12] : memref<64x32xf32, #tpu.memory_space<vmem>>, vector<64x32xf32>
    tpu.vector_store %arg5[%c0_11, %c0_12], %7 {strides = array<i32>} : memref<64x32xf32, #tpu.memory_space<vmem>>, vector<64x32xf32>,
    %10 = vector.broadcast %1 : vector<1x32xf32> to vector<64x32xf32>
    %11 = arith.mulf %4, %10 : vector<64x32xf32>
    %cst_13 = arith.constant dense<0.000000e+00> : vector<64xf32>
    %12 = vector.multi_reduction <add>, %11, %cst_13 [1] : vector<64x32xf32> to vector<64xf32>
    %13 = vector.shape_cast %12 : vector<64xf32> to vector<64x1xf32>
    %cst_14 = arith.constant 2.000000e-01 : f32
    %14 = vector.broadcast %cst_14 : f32 to vector<64x1xf32>
    %15 = arith.mulf %14, %13 : vector<64x1xf32>
    %c0_15 = arith.constant 0 : index
    %c0_16 = arith.constant 0 : index
    %16 = vector.load %arg6[%c0_15, %c0_16] : memref<64x1xf32, #tpu.memory_space<vmem>>, vector<64x1xf32>
    tpu.vector_store %arg6[%c0_15, %c0_16], %15 {strides = array<i32>} : memref<64x1xf32, #tpu.memory_space<vmem>>, vector<64x1xf32>,
    %17 = vector.broadcast %1 : vector<1x32xf32> to vector<64x32xf32>
    %18 = arith.mulf %7, %17 : vector<64x32xf32>
    %cst_17 = arith.constant dense<0.000000e+00> : vector<64xf32>
    %19 = vector.multi_reduction <add>, %18, %cst_17 [1] : vector<64x32xf32> to vector<64xf32>
    %20 = vector.shape_cast %19 : vector<64xf32> to vector<64x1xf32>
    %cst_18 = arith.constant 2.000000e-01 : f32
    %21 = vector.broadcast %cst_18 : f32 to vector<64x1xf32>
    %22 = arith.mulf %21, %20 : vector<64x1xf32>
    %c0_19 = arith.constant 0 : index
    %c0_20 = arith.constant 0 : index
    %23 = vector.load %arg7[%c0_19, %c0_20] : memref<64x1xf32, #tpu.memory_space<vmem>>, vector<64x1xf32>
    tpu.vector_store %arg7[%c0_19, %c0_20], %22 {strides = array<i32>} : memref<64x1xf32, #tpu.memory_space<vmem>>, vector<64x1xf32>,
    return
  }
  func.func @transform_0(%arg0: i32) -> (i32, i32) {
    %c0_i32 = arith.constant 0 : i32
    %c0_i32_0 = arith.constant 0 : i32
    return %arg0, %c0_i32 : i32, i32
  }
  func.func @transform_1(%arg0: i32) -> (i32, i32, i32) {
    %c0_i32 = arith.constant 0 : i32
    %c0_i32_0 = arith.constant 0 : i32
    %c0_i32_1 = arith.constant 0 : i32
    %c0_i32_2 = arith.constant 0 : i32
    return %c0_i32, %c0_i32_0, %c0_i32_1 : i32, i32, i32
  }
  func.func @transform_2(%arg0: i32) -> (i32, i32) {
    %c0_i32 = arith.constant 0 : i32
    %c0_i32_0 = arith.constant 0 : i32
    %c0_i32_1 = arith.constant 0 : i32
    return %c0_i32, %c0_i32_0 : i32, i32
  }
  func.func @transform_3(%arg0: i32) -> (i32, i32) {
    %c0_i32 = arith.constant 0 : i32
    %c0_i32_0 = arith.constant 0 : i32
    return %arg0, %c0_i32 : i32, i32
  }
  func.func @transform_4(%arg0: i32) -> (i32, i32) {
    %c0_i32 = arith.constant 0 : i32
    %c0_i32_0 = arith.constant 0 : i32
    return %arg0, %c0_i32 : i32, i32
  }
  func.func @transform_5(%arg0: i32) -> (i32, i32) {
    %c0_i32 = arith.constant 0 : i32
    %c0_i32_0 = arith.constant 0 : i32
    return %arg0, %c0_i32 : i32, i32
  }
  func.func @transform_6(%arg0: i32) -> (i32, i32) {
    %c0_i32 = arith.constant 0 : i32
    %c0_i32_0 = arith.constant 0 : i32
    return %arg0, %c0_i32 : i32, i32
  }
}

module attributes {stable_mosaic.version = 11 : i64} {
  func.func @_linear_kernel(%arg0: memref<128x8xf32, #tpu.memory_space<vmem>>, %arg1: memref<8x32xf32, #tpu.memory_space<vmem>>, %arg2: memref<1x32xf32, #tpu.memory_space<vmem>>, %arg3: memref<128x32xf32, #tpu.memory_space<vmem>>) attributes {dimension_semantics = [], scalar_prefetch = 0 : i64, scratch_operands = 0 : i64, tpu.core_type = #tpu.core_type<tc>} {
    %c0 = arith.constant 0 : index
    %c0_0 = arith.constant 0 : index
    %0 = vector.load %arg0[%c0, %c0_0] : memref<128x8xf32, #tpu.memory_space<vmem>>, vector<128x8xf32>
    %c0_1 = arith.constant 0 : index
    %c0_2 = arith.constant 0 : index
    %1 = vector.load %arg1[%c0_1, %c0_2] : memref<8x32xf32, #tpu.memory_space<vmem>>, vector<8x32xf32>
    %cst = arith.constant dense<0.000000e+00> : vector<128x32xf32>
    %2 = tpu.matmul %0, %1, %cst {dimension_numbers = #tpu.dot_dimension_numbers<[1], [0], [0], [1], [0, 0, 1, 1], [], []>} : vector<128x8xf32>, vector<8x32xf32>, vector<128x32xf32> -> vector<128x32xf32>
    %c0_3 = arith.constant 0 : index
    %c0_4 = arith.constant 0 : index
    %3 = vector.load %arg2[%c0_3, %c0_4] : memref<1x32xf32, #tpu.memory_space<vmem>>, vector<1x32xf32>
    %4 = vector.broadcast %3 : vector<1x32xf32> to vector<128x32xf32>
    %5 = arith.addf %2, %4 : vector<128x32xf32>
    %c0_5 = arith.constant 0 : index
    %c0_6 = arith.constant 0 : index
    %6 = vector.load %arg3[%c0_5, %c0_6] : memref<128x32xf32, #tpu.memory_space<vmem>>, vector<128x32xf32>
    tpu.vector_store %arg3[%c0_5, %c0_6], %5 {strides = array<i32>} : memref<128x32xf32, #tpu.memory_space<vmem>>, vector<128x32xf32>,
    return
  }
}

module attributes {stable_mosaic.version = 11 : i64} {
  func.func @_gat_attn_kernel(%arg0: i32, %arg1: memref<64x32xf32, #tpu.memory_space<vmem>>, %arg2: memref<64x32xf32, #tpu.memory_space<vmem>>, %arg3: memref<64x1xf32, #tpu.memory_space<vmem>>, %arg4: memref<32x128xf32, #tpu.memory_space<vmem>>, %arg5: memref<1x128xf32, #tpu.memory_space<vmem>>, %arg6: memref<128x32xf32, #tpu.memory_space<vmem>>, %arg7: memref<64x128xbf16, #tpu.memory_space<vmem>>, %arg8: memref<1x32xf32, #tpu.memory_space<vmem>>, %arg9: memref<1x32xf32, #tpu.memory_space<vmem>>, %arg10: memref<1x32xf32, #tpu.memory_space<vmem>>, %arg11: memref<64x32xf32, #tpu.memory_space<vmem>>) attributes {dimension_semantics = [#tpu.dimension_semantics<parallel>], iteration_bounds = array<i64: 2>, scalar_prefetch = 0 : i64, scratch_operands = 0 : i64, tpu.core_type = #tpu.core_type<tc>, window_params = [{transform_indices = @transform_0, window_bounds = array<i64: 64, 32>}, {transform_indices = @transform_1, window_bounds = array<i64: 64, 32>}, {transform_indices = @transform_2, window_bounds = array<i64: 64, 1>}, {pipeline_mode = #tpu.pipeline_mode<synchronous>, transform_indices = @transform_3, window_bounds = array<i64: 32, 128>}, {pipeline_mode = #tpu.pipeline_mode<synchronous>, transform_indices = @transform_4, window_bounds = array<i64: 1, 128>}, {pipeline_mode = #tpu.pipeline_mode<synchronous>, transform_indices = @transform_5, window_bounds = array<i64: 128, 32>}, {transform_indices = @transform_6, window_bounds = array<i64: 64, 128>}, {pipeline_mode = #tpu.pipeline_mode<synchronous>, transform_indices = @transform_7, window_bounds = array<i64: 1, 32>}, {pipeline_mode = #tpu.pipeline_mode<synchronous>, transform_indices = @transform_8, window_bounds = array<i64: 1, 32>}, {pipeline_mode = #tpu.pipeline_mode<synchronous>, transform_indices = @transform_9, window_bounds = array<i64: 1, 32>}, {transform_indices = @transform_10, window_bounds = array<i64: 64, 32>}]} {
    %c0 = arith.constant 0 : index
    %c0_0 = arith.constant 0 : index
    %0 = vector.load %arg3[%c0, %c0_0] : memref<64x1xf32, #tpu.memory_space<vmem>>, vector<64x1xf32>
    %c0_1 = arith.constant 0 : index
    %c0_2 = arith.constant 0 : index
    %1 = vector.load %arg5[%c0_1, %c0_2] : memref<1x128xf32, #tpu.memory_space<vmem>>, vector<1x128xf32>
    %2 = vector.broadcast %0 : vector<64x1xf32> to vector<64x128xf32>
    %3 = vector.broadcast %1 : vector<1x128xf32> to vector<64x128xf32>
    %4 = arith.addf %2, %3 : vector<64x128xf32>
    %c0_3 = arith.constant 0 : index
    %c0_4 = arith.constant 0 : index
    %5 = vector.load %arg2[%c0_3, %c0_4] : memref<64x32xf32, #tpu.memory_space<vmem>>, vector<64x1xf32>
    %c0_5 = arith.constant 0 : index
    %c0_6 = arith.constant 0 : index
    %6 = vector.load %arg4[%c0_5, %c0_6] : memref<32x128xf32, #tpu.memory_space<vmem>>, vector<1x128xf32>
    %7 = vector.broadcast %5 : vector<64x1xf32> to vector<64x128xf32>
    %8 = vector.broadcast %6 : vector<1x128xf32> to vector<64x128xf32>
    %9 = arith.addf %7, %8 : vector<64x128xf32>
    %cst = arith.constant 0.000000e+00 : f32
    %10 = vector.broadcast %cst : f32 to vector<64x128xf32>
    %11 = arith.maximumf %9, %10 : vector<64x128xf32>
    %c0_7 = arith.constant 0 : index
    %c0_8 = arith.constant 0 : index
    %12 = vector.load %arg8[%c0_7, %c0_8] : memref<1x32xf32, #tpu.memory_space<vmem>>, vector<1x1xf32>
    %13 = vector.broadcast %12 : vector<1x1xf32> to vector<64x128xf32>
    %14 = arith.mulf %11, %13 : vector<64x128xf32>
    %15 = arith.addf %4, %14 : vector<64x128xf32>
    %c0_9 = arith.constant 0 : index
    %c1 = arith.constant 1 : index
    %16 = vector.load %arg2[%c0_9, %c1] : memref<64x32xf32, #tpu.memory_space<vmem>>, vector<64x1xf32>
    %c1_10 = arith.constant 1 : index
    %c0_11 = arith.constant 0 : index
    %17 = vector.load %arg4[%c1_10, %c0_11] : memref<32x128xf32, #tpu.memory_space<vmem>>, vector<1x128xf32>
    %18 = vector.broadcast %16 : vector<64x1xf32> to vector<64x128xf32>
    %19 = vector.broadcast %17 : vector<1x128xf32> to vector<64x128xf32>
    %20 = arith.addf %18, %19 : vector<64x128xf32>
    %cst_12 = arith.constant 0.000000e+00 : f32
    %21 = vector.broadcast %cst_12 : f32 to vector<64x128xf32>
    %22 = arith.maximumf %20, %21 : vector<64x128xf32>
    %c0_13 = arith.constant 0 : index
    %c1_14 = arith.constant 1 : index
    %23 = vector.load %arg8[%c0_13, %c1_14] : memref<1x32xf32, #tpu.memory_space<vmem>>, vector<1x1xf32>
    %24 = vector.broadcast %23 : vector<1x1xf32> to vector<64x128xf32>
    %25 = arith.mulf %22, %24 : vector<64x128xf32>
    %26 = arith.addf %15, %25 : vector<64x128xf32>
    %c0_15 = arith.constant 0 : index
    %c2 = arith.constant 2 : index
    %27 = vector.load %arg2[%c0_15, %c2] : memref<64x32xf32, #tpu.memory_space<vmem>>, vector<64x1xf32>
    %c2_16 = arith.constant 2 : index
    %c0_17 = arith.constant 0 : index
    %28 = vector.load %arg4[%c2_16, %c0_17] : memref<32x128xf32, #tpu.memory_space<vmem>>, vector<1x128xf32>
    %29 = vector.broadcast %27 : vector<64x1xf32> to vector<64x128xf32>
    %30 = vector.broadcast %28 : vector<1x128xf32> to vector<64x128xf32>
    %31 = arith.addf %29, %30 : vector<64x128xf32>
    %cst_18 = arith.constant 0.000000e+00 : f32
    %32 = vector.broadcast %cst_18 : f32 to vector<64x128xf32>
    %33 = arith.maximumf %31, %32 : vector<64x128xf32>
    %c0_19 = arith.constant 0 : index
    %c2_20 = arith.constant 2 : index
    %34 = vector.load %arg8[%c0_19, %c2_20] : memref<1x32xf32, #tpu.memory_space<vmem>>, vector<1x1xf32>
    %35 = vector.broadcast %34 : vector<1x1xf32> to vector<64x128xf32>
    %36 = arith.mulf %33, %35 : vector<64x128xf32>
    %37 = arith.addf %26, %36 : vector<64x128xf32>
    %c0_21 = arith.constant 0 : index
    %c3 = arith.constant 3 : index
    %38 = vector.load %arg2[%c0_21, %c3] : memref<64x32xf32, #tpu.memory_space<vmem>>, vector<64x1xf32>
    %c3_22 = arith.constant 3 : index
    %c0_23 = arith.constant 0 : index
    %39 = vector.load %arg4[%c3_22, %c0_23] : memref<32x128xf32, #tpu.memory_space<vmem>>, vector<1x128xf32>
    %40 = vector.broadcast %38 : vector<64x1xf32> to vector<64x128xf32>
    %41 = vector.broadcast %39 : vector<1x128xf32> to vector<64x128xf32>
    %42 = arith.addf %40, %41 : vector<64x128xf32>
    %cst_24 = arith.constant 0.000000e+00 : f32
    %43 = vector.broadcast %cst_24 : f32 to vector<64x128xf32>
    %44 = arith.maximumf %42, %43 : vector<64x128xf32>
    %c0_25 = arith.constant 0 : index
    %c3_26 = arith.constant 3 : index
    %45 = vector.load %arg8[%c0_25, %c3_26] : memref<1x32xf32, #tpu.memory_space<vmem>>, vector<1x1xf32>
    %46 = vector.broadcast %45 : vector<1x1xf32> to vector<64x128xf32>
    %47 = arith.mulf %44, %46 : vector<64x128xf32>
    %48 = arith.addf %37, %47 : vector<64x128xf32>
    %c0_27 = arith.constant 0 : index
    %c4 = arith.constant 4 : index
    %49 = vector.load %arg2[%c0_27, %c4] : memref<64x32xf32, #tpu.memory_space<vmem>>, vector<64x1xf32>
    %c4_28 = arith.constant 4 : index
    %c0_29 = arith.constant 0 : index
    %50 = vector.load %arg4[%c4_28, %c0_29] : memref<32x128xf32, #tpu.memory_space<vmem>>, vector<1x128xf32>
    %51 = vector.broadcast %49 : vector<64x1xf32> to vector<64x128xf32>
    %52 = vector.broadcast %50 : vector<1x128xf32> to vector<64x128xf32>
    %53 = arith.addf %51, %52 : vector<64x128xf32>
    %cst_30 = arith.constant 0.000000e+00 : f32
    %54 = vector.broadcast %cst_30 : f32 to vector<64x128xf32>
    %55 = arith.maximumf %53, %54 : vector<64x128xf32>
    %c0_31 = arith.constant 0 : index
    %c4_32 = arith.constant 4 : index
    %56 = vector.load %arg8[%c0_31, %c4_32] : memref<1x32xf32, #tpu.memory_space<vmem>>, vector<1x1xf32>
    %57 = vector.broadcast %56 : vector<1x1xf32> to vector<64x128xf32>
    %58 = arith.mulf %55, %57 : vector<64x128xf32>
    %59 = arith.addf %48, %58 : vector<64x128xf32>
    %c0_33 = arith.constant 0 : index
    %c5 = arith.constant 5 : index
    %60 = vector.load %arg2[%c0_33, %c5] : memref<64x32xf32, #tpu.memory_space<vmem>>, vector<64x1xf32>
    %c5_34 = arith.constant 5 : index
    %c0_35 = arith.constant 0 : index
    %61 = vector.load %arg4[%c5_34, %c0_35] : memref<32x128xf32, #tpu.memory_space<vmem>>, vector<1x128xf32>
    %62 = vector.broadcast %60 : vector<64x1xf32> to vector<64x128xf32>
    %63 = vector.broadcast %61 : vector<1x128xf32> to vector<64x128xf32>
    %64 = arith.addf %62, %63 : vector<64x128xf32>
    %cst_36 = arith.constant 0.000000e+00 : f32
    %65 = vector.broadcast %cst_36 : f32 to vector<64x128xf32>
    %66 = arith.maximumf %64, %65 : vector<64x128xf32>
    %c0_37 = arith.constant 0 : index
    %c5_38 = arith.constant 5 : index
    %67 = vector.load %arg8[%c0_37, %c5_38] : memref<1x32xf32, #tpu.memory_space<vmem>>, vector<1x1xf32>
    %68 = vector.broadcast %67 : vector<1x1xf32> to vector<64x128xf32>
    %69 = arith.mulf %66, %68 : vector<64x128xf32>
    %70 = arith.addf %59, %69 : vector<64x128xf32>
    %c0_39 = arith.constant 0 : index
    %c6 = arith.constant 6 : index
    %71 = vector.load %arg2[%c0_39, %c6] : memref<64x32xf32, #tpu.memory_space<vmem>>, vector<64x1xf32>
    %c6_40 = arith.constant 6 : index
    %c0_41 = arith.constant 0 : index
    %72 = vector.load %arg4[%c6_40, %c0_41] : memref<32x128xf32, #tpu.memory_space<vmem>>, vector<1x128xf32>
    %73 = vector.broadcast %71 : vector<64x1xf32> to vector<64x128xf32>
    %74 = vector.broadcast %72 : vector<1x128xf32> to vector<64x128xf32>
    %75 = arith.addf %73, %74 : vector<64x128xf32>
    %cst_42 = arith.constant 0.000000e+00 : f32
    %76 = vector.broadcast %cst_42 : f32 to vector<64x128xf32>
    %77 = arith.maximumf %75, %76 : vector<64x128xf32>
    %c0_43 = arith.constant 0 : index
    %c6_44 = arith.constant 6 : index
    %78 = vector.load %arg8[%c0_43, %c6_44] : memref<1x32xf32, #tpu.memory_space<vmem>>, vector<1x1xf32>
    %79 = vector.broadcast %78 : vector<1x1xf32> to vector<64x128xf32>
    %80 = arith.mulf %77, %79 : vector<64x128xf32>
    %81 = arith.addf %70, %80 : vector<64x128xf32>
    %c0_45 = arith.constant 0 : index
    %c7 = arith.constant 7 : index
    %82 = vector.load %arg2[%c0_45, %c7] : memref<64x32xf32, #tpu.memory_space<vmem>>, vector<64x1xf32>
    %c7_46 = arith.constant 7 : index
    %c0_47 = arith.constant 0 : index
    %83 = vector.load %arg4[%c7_46, %c0_47] : memref<32x128xf32, #tpu.memory_space<vmem>>, vector<1x128xf32>
    %84 = vector.broadcast %82 : vector<64x1xf32> to vector<64x128xf32>
    %85 = vector.broadcast %83 : vector<1x128xf32> to vector<64x128xf32>
    %86 = arith.addf %84, %85 : vector<64x128xf32>
    %cst_48 = arith.constant 0.000000e+00 : f32
    %87 = vector.broadcast %cst_48 : f32 to vector<64x128xf32>
    %88 = arith.maximumf %86, %87 : vector<64x128xf32>
    %c0_49 = arith.constant 0 : index
    %c7_50 = arith.constant 7 : index
    %89 = vector.load %arg8[%c0_49, %c7_50] : memref<1x32xf32, #tpu.memory_space<vmem>>, vector<1x1xf32>
    %90 = vector.broadcast %89 : vector<1x1xf32> to vector<64x128xf32>
    %91 = arith.mulf %88, %90 : vector<64x128xf32>
    %92 = arith.addf %81, %91 : vector<64x128xf32>
    %c0_51 = arith.constant 0 : index
    %c8 = arith.constant 8 : index
    %93 = vector.load %arg2[%c0_51, %c8] : memref<64x32xf32, #tpu.memory_space<vmem>>, vector<64x1xf32>
    %c8_52 = arith.constant 8 : index
    %c0_53 = arith.constant 0 : index
    %94 = vector.load %arg4[%c8_52, %c0_53] : memref<32x128xf32, #tpu.memory_space<vmem>>, vector<1x128xf32>
    %95 = vector.broadcast %93 : vector<64x1xf32> to vector<64x128xf32>
    %96 = vector.broadcast %94 : vector<1x128xf32> to vector<64x128xf32>
    %97 = arith.addf %95, %96 : vector<64x128xf32>
    %cst_54 = arith.constant 0.000000e+00 : f32
    %98 = vector.broadcast %cst_54 : f32 to vector<64x128xf32>
    %99 = arith.maximumf %97, %98 : vector<64x128xf32>
    %c0_55 = arith.constant 0 : index
    %c8_56 = arith.constant 8 : index
    %100 = vector.load %arg8[%c0_55, %c8_56] : memref<1x32xf32, #tpu.memory_space<vmem>>, vector<1x1xf32>
    %101 = vector.broadcast %100 : vector<1x1xf32> to vector<64x128xf32>
    %102 = arith.mulf %99, %101 : vector<64x128xf32>
    %103 = arith.addf %92, %102 : vector<64x128xf32>
    %c0_57 = arith.constant 0 : index
    %c9 = arith.constant 9 : index
    %104 = vector.load %arg2[%c0_57, %c9] : memref<64x32xf32, #tpu.memory_space<vmem>>, vector<64x1xf32>
    %c9_58 = arith.constant 9 : index
    %c0_59 = arith.constant 0 : index
    %105 = vector.load %arg4[%c9_58, %c0_59] : memref<32x128xf32, #tpu.memory_space<vmem>>, vector<1x128xf32>
    %106 = vector.broadcast %104 : vector<64x1xf32> to vector<64x128xf32>
    %107 = vector.broadcast %105 : vector<1x128xf32> to vector<64x128xf32>
    %108 = arith.addf %106, %107 : vector<64x128xf32>
    %cst_60 = arith.constant 0.000000e+00 : f32
    %109 = vector.broadcast %cst_60 : f32 to vector<64x128xf32>
    %110 = arith.maximumf %108, %109 : vector<64x128xf32>
    %c0_61 = arith.constant 0 : index
    %c9_62 = arith.constant 9 : index
    %111 = vector.load %arg8[%c0_61, %c9_62] : memref<1x32xf32, #tpu.memory_space<vmem>>, vector<1x1xf32>
    %112 = vector.broadcast %111 : vector<1x1xf32> to vector<64x128xf32>
    %113 = arith.mulf %110, %112 : vector<64x128xf32>
    %114 = arith.addf %103, %113 : vector<64x128xf32>
    %c0_63 = arith.constant 0 : index
    %c10 = arith.constant 10 : index
    %115 = vector.load %arg2[%c0_63, %c10] : memref<64x32xf32, #tpu.memory_space<vmem>>, vector<64x1xf32>
    %c10_64 = arith.constant 10 : index
    %c0_65 = arith.constant 0 : index
    %116 = vector.load %arg4[%c10_64, %c0_65] : memref<32x128xf32, #tpu.memory_space<vmem>>, vector<1x128xf32>
    %117 = vector.broadcast %115 : vector<64x1xf32> to vector<64x128xf32>
    %118 = vector.broadcast %116 : vector<1x128xf32> to vector<64x128xf32>
    %119 = arith.addf %117, %118 : vector<64x128xf32>
    %cst_66 = arith.constant 0.000000e+00 : f32
    %120 = vector.broadcast %cst_66 : f32 to vector<64x128xf32>
    %121 = arith.maximumf %119, %120 : vector<64x128xf32>
    %c0_67 = arith.constant 0 : index
    %c10_68 = arith.constant 10 : index
    %122 = vector.load %arg8[%c0_67, %c10_68] : memref<1x32xf32, #tpu.memory_space<vmem>>, vector<1x1xf32>
    %123 = vector.broadcast %122 : vector<1x1xf32> to vector<64x128xf32>
    %124 = arith.mulf %121, %123 : vector<64x128xf32>
    %125 = arith.addf %114, %124 : vector<64x128xf32>
    %c0_69 = arith.constant 0 : index
    %c11 = arith.constant 11 : index
    %126 = vector.load %arg2[%c0_69, %c11] : memref<64x32xf32, #tpu.memory_space<vmem>>, vector<64x1xf32>
    %c11_70 = arith.constant 11 : index
    %c0_71 = arith.constant 0 : index
    %127 = vector.load %arg4[%c11_70, %c0_71] : memref<32x128xf32, #tpu.memory_space<vmem>>, vector<1x128xf32>
    %128 = vector.broadcast %126 : vector<64x1xf32> to vector<64x128xf32>
    %129 = vector.broadcast %127 : vector<1x128xf32> to vector<64x128xf32>
    %130 = arith.addf %128, %129 : vector<64x128xf32>
    %cst_72 = arith.constant 0.000000e+00 : f32
    %131 = vector.broadcast %cst_72 : f32 to vector<64x128xf32>
    %132 = arith.maximumf %130, %131 : vector<64x128xf32>
    %c0_73 = arith.constant 0 : index
    %c11_74 = arith.constant 11 : index
    %133 = vector.load %arg8[%c0_73, %c11_74] : memref<1x32xf32, #tpu.memory_space<vmem>>, vector<1x1xf32>
    %134 = vector.broadcast %133 : vector<1x1xf32> to vector<64x128xf32>
    %135 = arith.mulf %132, %134 : vector<64x128xf32>
    %136 = arith.addf %125, %135 : vector<64x128xf32>
    %c0_75 = arith.constant 0 : index
    %c12 = arith.constant 12 : index
    %137 = vector.load %arg2[%c0_75, %c12] : memref<64x32xf32, #tpu.memory_space<vmem>>, vector<64x1xf32>
    %c12_76 = arith.constant 12 : index
    %c0_77 = arith.constant 0 : index
    %138 = vector.load %arg4[%c12_76, %c0_77] : memref<32x128xf32, #tpu.memory_space<vmem>>, vector<1x128xf32>
    %139 = vector.broadcast %137 : vector<64x1xf32> to vector<64x128xf32>
    %140 = vector.broadcast %138 : vector<1x128xf32> to vector<64x128xf32>
    %141 = arith.addf %139, %140 : vector<64x128xf32>
    %cst_78 = arith.constant 0.000000e+00 : f32
    %142 = vector.broadcast %cst_78 : f32 to vector<64x128xf32>
    %143 = arith.maximumf %141, %142 : vector<64x128xf32>
    %c0_79 = arith.constant 0 : index
    %c12_80 = arith.constant 12 : index
    %144 = vector.load %arg8[%c0_79, %c12_80] : memref<1x32xf32, #tpu.memory_space<vmem>>, vector<1x1xf32>
    %145 = vector.broadcast %144 : vector<1x1xf32> to vector<64x128xf32>
    %146 = arith.mulf %143, %145 : vector<64x128xf32>
    %147 = arith.addf %136, %146 : vector<64x128xf32>
    %c0_81 = arith.constant 0 : index
    %c13 = arith.constant 13 : index
    %148 = vector.load %arg2[%c0_81, %c13] : memref<64x32xf32, #tpu.memory_space<vmem>>, vector<64x1xf32>
    %c13_82 = arith.constant 13 : index
    %c0_83 = arith.constant 0 : index
    %149 = vector.load %arg4[%c13_82, %c0_83] : memref<32x128xf32, #tpu.memory_space<vmem>>, vector<1x128xf32>
    %150 = vector.broadcast %148 : vector<64x1xf32> to vector<64x128xf32>
    %151 = vector.broadcast %149 : vector<1x128xf32> to vector<64x128xf32>
    %152 = arith.addf %150, %151 : vector<64x128xf32>
    %cst_84 = arith.constant 0.000000e+00 : f32
    %153 = vector.broadcast %cst_84 : f32 to vector<64x128xf32>
    %154 = arith.maximumf %152, %153 : vector<64x128xf32>
    %c0_85 = arith.constant 0 : index
    %c13_86 = arith.constant 13 : index
    %155 = vector.load %arg8[%c0_85, %c13_86] : memref<1x32xf32, #tpu.memory_space<vmem>>, vector<1x1xf32>
    %156 = vector.broadcast %155 : vector<1x1xf32> to vector<64x128xf32>
    %157 = arith.mulf %154, %156 : vector<64x128xf32>
    %158 = arith.addf %147, %157 : vector<64x128xf32>
    %c0_87 = arith.constant 0 : index
    %c14 = arith.constant 14 : index
    %159 = vector.load %arg2[%c0_87, %c14] : memref<64x32xf32, #tpu.memory_space<vmem>>, vector<64x1xf32>
    %c14_88 = arith.constant 14 : index
    %c0_89 = arith.constant 0 : index
    %160 = vector.load %arg4[%c14_88, %c0_89] : memref<32x128xf32, #tpu.memory_space<vmem>>, vector<1x128xf32>
    %161 = vector.broadcast %159 : vector<64x1xf32> to vector<64x128xf32>
    %162 = vector.broadcast %160 : vector<1x128xf32> to vector<64x128xf32>
    %163 = arith.addf %161, %162 : vector<64x128xf32>
    %cst_90 = arith.constant 0.000000e+00 : f32
    %164 = vector.broadcast %cst_90 : f32 to vector<64x128xf32>
    %165 = arith.maximumf %163, %164 : vector<64x128xf32>
    %c0_91 = arith.constant 0 : index
    %c14_92 = arith.constant 14 : index
    %166 = vector.load %arg8[%c0_91, %c14_92] : memref<1x32xf32, #tpu.memory_space<vmem>>, vector<1x1xf32>
    %167 = vector.broadcast %166 : vector<1x1xf32> to vector<64x128xf32>
    %168 = arith.mulf %165, %167 : vector<64x128xf32>
    %169 = arith.addf %158, %168 : vector<64x128xf32>
    %c0_93 = arith.constant 0 : index
    %c15 = arith.constant 15 : index
    %170 = vector.load %arg2[%c0_93, %c15] : memref<64x32xf32, #tpu.memory_space<vmem>>, vector<64x1xf32>
    %c15_94 = arith.constant 15 : index
    %c0_95 = arith.constant 0 : index
    %171 = vector.load %arg4[%c15_94, %c0_95] : memref<32x128xf32, #tpu.memory_space<vmem>>, vector<1x128xf32>
    %172 = vector.broadcast %170 : vector<64x1xf32> to vector<64x128xf32>
    %173 = vector.broadcast %171 : vector<1x128xf32> to vector<64x128xf32>
    %174 = arith.addf %172, %173 : vector<64x128xf32>
    %cst_96 = arith.constant 0.000000e+00 : f32
    %175 = vector.broadcast %cst_96 : f32 to vector<64x128xf32>
    %176 = arith.maximumf %174, %175 : vector<64x128xf32>
    %c0_97 = arith.constant 0 : index
    %c15_98 = arith.constant 15 : index
    %177 = vector.load %arg8[%c0_97, %c15_98] : memref<1x32xf32, #tpu.memory_space<vmem>>, vector<1x1xf32>
    %178 = vector.broadcast %177 : vector<1x1xf32> to vector<64x128xf32>
    %179 = arith.mulf %176, %178 : vector<64x128xf32>
    %180 = arith.addf %169, %179 : vector<64x128xf32>
    %c0_99 = arith.constant 0 : index
    %c16 = arith.constant 16 : index
    %181 = vector.load %arg2[%c0_99, %c16] : memref<64x32xf32, #tpu.memory_space<vmem>>, vector<64x1xf32>
    %c16_100 = arith.constant 16 : index
    %c0_101 = arith.constant 0 : index
    %182 = vector.load %arg4[%c16_100, %c0_101] : memref<32x128xf32, #tpu.memory_space<vmem>>, vector<1x128xf32>
    %183 = vector.broadcast %181 : vector<64x1xf32> to vector<64x128xf32>
    %184 = vector.broadcast %182 : vector<1x128xf32> to vector<64x128xf32>
    %185 = arith.addf %183, %184 : vector<64x128xf32>
    %cst_102 = arith.constant 0.000000e+00 : f32
    %186 = vector.broadcast %cst_102 : f32 to vector<64x128xf32>
    %187 = arith.maximumf %185, %186 : vector<64x128xf32>
    %c0_103 = arith.constant 0 : index
    %c16_104 = arith.constant 16 : index
    %188 = vector.load %arg8[%c0_103, %c16_104] : memref<1x32xf32, #tpu.memory_space<vmem>>, vector<1x1xf32>
    %189 = vector.broadcast %188 : vector<1x1xf32> to vector<64x128xf32>
    %190 = arith.mulf %187, %189 : vector<64x128xf32>
    %191 = arith.addf %180, %190 : vector<64x128xf32>
    %c0_105 = arith.constant 0 : index
    %c17 = arith.constant 17 : index
    %192 = vector.load %arg2[%c0_105, %c17] : memref<64x32xf32, #tpu.memory_space<vmem>>, vector<64x1xf32>
    %c17_106 = arith.constant 17 : index
    %c0_107 = arith.constant 0 : index
    %193 = vector.load %arg4[%c17_106, %c0_107] : memref<32x128xf32, #tpu.memory_space<vmem>>, vector<1x128xf32>
    %194 = vector.broadcast %192 : vector<64x1xf32> to vector<64x128xf32>
    %195 = vector.broadcast %193 : vector<1x128xf32> to vector<64x128xf32>
    %196 = arith.addf %194, %195 : vector<64x128xf32>
    %cst_108 = arith.constant 0.000000e+00 : f32
    %197 = vector.broadcast %cst_108 : f32 to vector<64x128xf32>
    %198 = arith.maximumf %196, %197 : vector<64x128xf32>
    %c0_109 = arith.constant 0 : index
    %c17_110 = arith.constant 17 : index
    %199 = vector.load %arg8[%c0_109, %c17_110] : memref<1x32xf32, #tpu.memory_space<vmem>>, vector<1x1xf32>
    %200 = vector.broadcast %199 : vector<1x1xf32> to vector<64x128xf32>
    %201 = arith.mulf %198, %200 : vector<64x128xf32>
    %202 = arith.addf %191, %201 : vector<64x128xf32>
    %c0_111 = arith.constant 0 : index
    %c18 = arith.constant 18 : index
    %203 = vector.load %arg2[%c0_111, %c18] : memref<64x32xf32, #tpu.memory_space<vmem>>, vector<64x1xf32>
    %c18_112 = arith.constant 18 : index
    %c0_113 = arith.constant 0 : index
    %204 = vector.load %arg4[%c18_112, %c0_113] : memref<32x128xf32, #tpu.memory_space<vmem>>, vector<1x128xf32>
    %205 = vector.broadcast %203 : vector<64x1xf32> to vector<64x128xf32>
    %206 = vector.broadcast %204 : vector<1x128xf32> to vector<64x128xf32>
    %207 = arith.addf %205, %206 : vector<64x128xf32>
    %cst_114 = arith.constant 0.000000e+00 : f32
    %208 = vector.broadcast %cst_114 : f32 to vector<64x128xf32>
    %209 = arith.maximumf %207, %208 : vector<64x128xf32>
    %c0_115 = arith.constant 0 : index
    %c18_116 = arith.constant 18 : index
    %210 = vector.load %arg8[%c0_115, %c18_116] : memref<1x32xf32, #tpu.memory_space<vmem>>, vector<1x1xf32>
    %211 = vector.broadcast %210 : vector<1x1xf32> to vector<64x128xf32>
    %212 = arith.mulf %209, %211 : vector<64x128xf32>
    %213 = arith.addf %202, %212 : vector<64x128xf32>
    %c0_117 = arith.constant 0 : index
    %c19 = arith.constant 19 : index
    %214 = vector.load %arg2[%c0_117, %c19] : memref<64x32xf32, #tpu.memory_space<vmem>>, vector<64x1xf32>
    %c19_118 = arith.constant 19 : index
    %c0_119 = arith.constant 0 : index
    %215 = vector.load %arg4[%c19_118, %c0_119] : memref<32x128xf32, #tpu.memory_space<vmem>>, vector<1x128xf32>
    %216 = vector.broadcast %214 : vector<64x1xf32> to vector<64x128xf32>
    %217 = vector.broadcast %215 : vector<1x128xf32> to vector<64x128xf32>
    %218 = arith.addf %216, %217 : vector<64x128xf32>
    %cst_120 = arith.constant 0.000000e+00 : f32
    %219 = vector.broadcast %cst_120 : f32 to vector<64x128xf32>
    %220 = arith.maximumf %218, %219 : vector<64x128xf32>
    %c0_121 = arith.constant 0 : index
    %c19_122 = arith.constant 19 : index
    %221 = vector.load %arg8[%c0_121, %c19_122] : memref<1x32xf32, #tpu.memory_space<vmem>>, vector<1x1xf32>
    %222 = vector.broadcast %221 : vector<1x1xf32> to vector<64x128xf32>
    %223 = arith.mulf %220, %222 : vector<64x128xf32>
    %224 = arith.addf %213, %223 : vector<64x128xf32>
    %c0_123 = arith.constant 0 : index
    %c20 = arith.constant 20 : index
    %225 = vector.load %arg2[%c0_123, %c20] : memref<64x32xf32, #tpu.memory_space<vmem>>, vector<64x1xf32>
    %c20_124 = arith.constant 20 : index
    %c0_125 = arith.constant 0 : index
    %226 = vector.load %arg4[%c20_124, %c0_125] : memref<32x128xf32, #tpu.memory_space<vmem>>, vector<1x128xf32>
    %227 = vector.broadcast %225 : vector<64x1xf32> to vector<64x128xf32>
    %228 = vector.broadcast %226 : vector<1x128xf32> to vector<64x128xf32>
    %229 = arith.addf %227, %228 : vector<64x128xf32>
    %cst_126 = arith.constant 0.000000e+00 : f32
    %230 = vector.broadcast %cst_126 : f32 to vector<64x128xf32>
    %231 = arith.maximumf %229, %230 : vector<64x128xf32>
    %c0_127 = arith.constant 0 : index
    %c20_128 = arith.constant 20 : index
    %232 = vector.load %arg8[%c0_127, %c20_128] : memref<1x32xf32, #tpu.memory_space<vmem>>, vector<1x1xf32>
    %233 = vector.broadcast %232 : vector<1x1xf32> to vector<64x128xf32>
    %234 = arith.mulf %231, %233 : vector<64x128xf32>
    %235 = arith.addf %224, %234 : vector<64x128xf32>
    %c0_129 = arith.constant 0 : index
    %c21 = arith.constant 21 : index
    %236 = vector.load %arg2[%c0_129, %c21] : memref<64x32xf32, #tpu.memory_space<vmem>>, vector<64x1xf32>
    %c21_130 = arith.constant 21 : index
    %c0_131 = arith.constant 0 : index
    %237 = vector.load %arg4[%c21_130, %c0_131] : memref<32x128xf32, #tpu.memory_space<vmem>>, vector<1x128xf32>
    %238 = vector.broadcast %236 : vector<64x1xf32> to vector<64x128xf32>
    %239 = vector.broadcast %237 : vector<1x128xf32> to vector<64x128xf32>
    %240 = arith.addf %238, %239 : vector<64x128xf32>
    %cst_132 = arith.constant 0.000000e+00 : f32
    %241 = vector.broadcast %cst_132 : f32 to vector<64x128xf32>
    %242 = arith.maximumf %240, %241 : vector<64x128xf32>
    %c0_133 = arith.constant 0 : index
    %c21_134 = arith.constant 21 : index
    %243 = vector.load %arg8[%c0_133, %c21_134] : memref<1x32xf32, #tpu.memory_space<vmem>>, vector<1x1xf32>
    %244 = vector.broadcast %243 : vector<1x1xf32> to vector<64x128xf32>
    %245 = arith.mulf %242, %244 : vector<64x128xf32>
    %246 = arith.addf %235, %245 : vector<64x128xf32>
    %c0_135 = arith.constant 0 : index
    %c22 = arith.constant 22 : index
    %247 = vector.load %arg2[%c0_135, %c22] : memref<64x32xf32, #tpu.memory_space<vmem>>, vector<64x1xf32>
    %c22_136 = arith.constant 22 : index
    %c0_137 = arith.constant 0 : index
    %248 = vector.load %arg4[%c22_136, %c0_137] : memref<32x128xf32, #tpu.memory_space<vmem>>, vector<1x128xf32>
    %249 = vector.broadcast %247 : vector<64x1xf32> to vector<64x128xf32>
    %250 = vector.broadcast %248 : vector<1x128xf32> to vector<64x128xf32>
    %251 = arith.addf %249, %250 : vector<64x128xf32>
    %cst_138 = arith.constant 0.000000e+00 : f32
    %252 = vector.broadcast %cst_138 : f32 to vector<64x128xf32>
    %253 = arith.maximumf %251, %252 : vector<64x128xf32>
    %c0_139 = arith.constant 0 : index
    %c22_140 = arith.constant 22 : index
    %254 = vector.load %arg8[%c0_139, %c22_140] : memref<1x32xf32, #tpu.memory_space<vmem>>, vector<1x1xf32>
    %255 = vector.broadcast %254 : vector<1x1xf32> to vector<64x128xf32>
    %256 = arith.mulf %253, %255 : vector<64x128xf32>
    %257 = arith.addf %246, %256 : vector<64x128xf32>
    %c0_141 = arith.constant 0 : index
    %c23 = arith.constant 23 : index
    %258 = vector.load %arg2[%c0_141, %c23] : memref<64x32xf32, #tpu.memory_space<vmem>>, vector<64x1xf32>
    %c23_142 = arith.constant 23 : index
    %c0_143 = arith.constant 0 : index
    %259 = vector.load %arg4[%c23_142, %c0_143] : memref<32x128xf32, #tpu.memory_space<vmem>>, vector<1x128xf32>
    %260 = vector.broadcast %258 : vector<64x1xf32> to vector<64x128xf32>
    %261 = vector.broadcast %259 : vector<1x128xf32> to vector<64x128xf32>
    %262 = arith.addf %260, %261 : vector<64x128xf32>
    %cst_144 = arith.constant 0.000000e+00 : f32
    %263 = vector.broadcast %cst_144 : f32 to vector<64x128xf32>
    %264 = arith.maximumf %262, %263 : vector<64x128xf32>
    %c0_145 = arith.constant 0 : index
    %c23_146 = arith.constant 23 : index
    %265 = vector.load %arg8[%c0_145, %c23_146] : memref<1x32xf32, #tpu.memory_space<vmem>>, vector<1x1xf32>
    %266 = vector.broadcast %265 : vector<1x1xf32> to vector<64x128xf32>
    %267 = arith.mulf %264, %266 : vector<64x128xf32>
    %268 = arith.addf %257, %267 : vector<64x128xf32>
    %c0_147 = arith.constant 0 : index
    %c24 = arith.constant 24 : index
    %269 = vector.load %arg2[%c0_147, %c24] : memref<64x32xf32, #tpu.memory_space<vmem>>, vector<64x1xf32>
    %c24_148 = arith.constant 24 : index
    %c0_149 = arith.constant 0 : index
    %270 = vector.load %arg4[%c24_148, %c0_149] : memref<32x128xf32, #tpu.memory_space<vmem>>, vector<1x128xf32>
    %271 = vector.broadcast %269 : vector<64x1xf32> to vector<64x128xf32>
    %272 = vector.broadcast %270 : vector<1x128xf32> to vector<64x128xf32>
    %273 = arith.addf %271, %272 : vector<64x128xf32>
    %cst_150 = arith.constant 0.000000e+00 : f32
    %274 = vector.broadcast %cst_150 : f32 to vector<64x128xf32>
    %275 = arith.maximumf %273, %274 : vector<64x128xf32>
    %c0_151 = arith.constant 0 : index
    %c24_152 = arith.constant 24 : index
    %276 = vector.load %arg8[%c0_151, %c24_152] : memref<1x32xf32, #tpu.memory_space<vmem>>, vector<1x1xf32>
    %277 = vector.broadcast %276 : vector<1x1xf32> to vector<64x128xf32>
    %278 = arith.mulf %275, %277 : vector<64x128xf32>
    %279 = arith.addf %268, %278 : vector<64x128xf32>
    %c0_153 = arith.constant 0 : index
    %c25 = arith.constant 25 : index
    %280 = vector.load %arg2[%c0_153, %c25] : memref<64x32xf32, #tpu.memory_space<vmem>>, vector<64x1xf32>
    %c25_154 = arith.constant 25 : index
    %c0_155 = arith.constant 0 : index
    %281 = vector.load %arg4[%c25_154, %c0_155] : memref<32x128xf32, #tpu.memory_space<vmem>>, vector<1x128xf32>
    %282 = vector.broadcast %280 : vector<64x1xf32> to vector<64x128xf32>
    %283 = vector.broadcast %281 : vector<1x128xf32> to vector<64x128xf32>
    %284 = arith.addf %282, %283 : vector<64x128xf32>
    %cst_156 = arith.constant 0.000000e+00 : f32
    %285 = vector.broadcast %cst_156 : f32 to vector<64x128xf32>
    %286 = arith.maximumf %284, %285 : vector<64x128xf32>
    %c0_157 = arith.constant 0 : index
    %c25_158 = arith.constant 25 : index
    %287 = vector.load %arg8[%c0_157, %c25_158] : memref<1x32xf32, #tpu.memory_space<vmem>>, vector<1x1xf32>
    %288 = vector.broadcast %287 : vector<1x1xf32> to vector<64x128xf32>
    %289 = arith.mulf %286, %288 : vector<64x128xf32>
    %290 = arith.addf %279, %289 : vector<64x128xf32>
    %c0_159 = arith.constant 0 : index
    %c26 = arith.constant 26 : index
    %291 = vector.load %arg2[%c0_159, %c26] : memref<64x32xf32, #tpu.memory_space<vmem>>, vector<64x1xf32>
    %c26_160 = arith.constant 26 : index
    %c0_161 = arith.constant 0 : index
    %292 = vector.load %arg4[%c26_160, %c0_161] : memref<32x128xf32, #tpu.memory_space<vmem>>, vector<1x128xf32>
    %293 = vector.broadcast %291 : vector<64x1xf32> to vector<64x128xf32>
    %294 = vector.broadcast %292 : vector<1x128xf32> to vector<64x128xf32>
    %295 = arith.addf %293, %294 : vector<64x128xf32>
    %cst_162 = arith.constant 0.000000e+00 : f32
    %296 = vector.broadcast %cst_162 : f32 to vector<64x128xf32>
    %297 = arith.maximumf %295, %296 : vector<64x128xf32>
    %c0_163 = arith.constant 0 : index
    %c26_164 = arith.constant 26 : index
    %298 = vector.load %arg8[%c0_163, %c26_164] : memref<1x32xf32, #tpu.memory_space<vmem>>, vector<1x1xf32>
    %299 = vector.broadcast %298 : vector<1x1xf32> to vector<64x128xf32>
    %300 = arith.mulf %297, %299 : vector<64x128xf32>
    %301 = arith.addf %290, %300 : vector<64x128xf32>
    %c0_165 = arith.constant 0 : index
    %c27 = arith.constant 27 : index
    %302 = vector.load %arg2[%c0_165, %c27] : memref<64x32xf32, #tpu.memory_space<vmem>>, vector<64x1xf32>
    %c27_166 = arith.constant 27 : index
    %c0_167 = arith.constant 0 : index
    %303 = vector.load %arg4[%c27_166, %c0_167] : memref<32x128xf32, #tpu.memory_space<vmem>>, vector<1x128xf32>
    %304 = vector.broadcast %302 : vector<64x1xf32> to vector<64x128xf32>
    %305 = vector.broadcast %303 : vector<1x128xf32> to vector<64x128xf32>
    %306 = arith.addf %304, %305 : vector<64x128xf32>
    %cst_168 = arith.constant 0.000000e+00 : f32
    %307 = vector.broadcast %cst_168 : f32 to vector<64x128xf32>
    %308 = arith.maximumf %306, %307 : vector<64x128xf32>
    %c0_169 = arith.constant 0 : index
    %c27_170 = arith.constant 27 : index
    %309 = vector.load %arg8[%c0_169, %c27_170] : memref<1x32xf32, #tpu.memory_space<vmem>>, vector<1x1xf32>
    %310 = vector.broadcast %309 : vector<1x1xf32> to vector<64x128xf32>
    %311 = arith.mulf %308, %310 : vector<64x128xf32>
    %312 = arith.addf %301, %311 : vector<64x128xf32>
    %c0_171 = arith.constant 0 : index
    %c28 = arith.constant 28 : index
    %313 = vector.load %arg2[%c0_171, %c28] : memref<64x32xf32, #tpu.memory_space<vmem>>, vector<64x1xf32>
    %c28_172 = arith.constant 28 : index
    %c0_173 = arith.constant 0 : index
    %314 = vector.load %arg4[%c28_172, %c0_173] : memref<32x128xf32, #tpu.memory_space<vmem>>, vector<1x128xf32>
    %315 = vector.broadcast %313 : vector<64x1xf32> to vector<64x128xf32>
    %316 = vector.broadcast %314 : vector<1x128xf32> to vector<64x128xf32>
    %317 = arith.addf %315, %316 : vector<64x128xf32>
    %cst_174 = arith.constant 0.000000e+00 : f32
    %318 = vector.broadcast %cst_174 : f32 to vector<64x128xf32>
    %319 = arith.maximumf %317, %318 : vector<64x128xf32>
    %c0_175 = arith.constant 0 : index
    %c28_176 = arith.constant 28 : index
    %320 = vector.load %arg8[%c0_175, %c28_176] : memref<1x32xf32, #tpu.memory_space<vmem>>, vector<1x1xf32>
    %321 = vector.broadcast %320 : vector<1x1xf32> to vector<64x128xf32>
    %322 = arith.mulf %319, %321 : vector<64x128xf32>
    %323 = arith.addf %312, %322 : vector<64x128xf32>
    %c0_177 = arith.constant 0 : index
    %c29 = arith.constant 29 : index
    %324 = vector.load %arg2[%c0_177, %c29] : memref<64x32xf32, #tpu.memory_space<vmem>>, vector<64x1xf32>
    %c29_178 = arith.constant 29 : index
    %c0_179 = arith.constant 0 : index
    %325 = vector.load %arg4[%c29_178, %c0_179] : memref<32x128xf32, #tpu.memory_space<vmem>>, vector<1x128xf32>
    %326 = vector.broadcast %324 : vector<64x1xf32> to vector<64x128xf32>
    %327 = vector.broadcast %325 : vector<1x128xf32> to vector<64x128xf32>
    %328 = arith.addf %326, %327 : vector<64x128xf32>
    %cst_180 = arith.constant 0.000000e+00 : f32
    %329 = vector.broadcast %cst_180 : f32 to vector<64x128xf32>
    %330 = arith.maximumf %328, %329 : vector<64x128xf32>
    %c0_181 = arith.constant 0 : index
    %c29_182 = arith.constant 29 : index
    %331 = vector.load %arg8[%c0_181, %c29_182] : memref<1x32xf32, #tpu.memory_space<vmem>>, vector<1x1xf32>
    %332 = vector.broadcast %331 : vector<1x1xf32> to vector<64x128xf32>
    %333 = arith.mulf %330, %332 : vector<64x128xf32>
    %334 = arith.addf %323, %333 : vector<64x128xf32>
    %c0_183 = arith.constant 0 : index
    %c30 = arith.constant 30 : index
    %335 = vector.load %arg2[%c0_183, %c30] : memref<64x32xf32, #tpu.memory_space<vmem>>, vector<64x1xf32>
    %c30_184 = arith.constant 30 : index
    %c0_185 = arith.constant 0 : index
    %336 = vector.load %arg4[%c30_184, %c0_185] : memref<32x128xf32, #tpu.memory_space<vmem>>, vector<1x128xf32>
    %337 = vector.broadcast %335 : vector<64x1xf32> to vector<64x128xf32>
    %338 = vector.broadcast %336 : vector<1x128xf32> to vector<64x128xf32>
    %339 = arith.addf %337, %338 : vector<64x128xf32>
    %cst_186 = arith.constant 0.000000e+00 : f32
    %340 = vector.broadcast %cst_186 : f32 to vector<64x128xf32>
    %341 = arith.maximumf %339, %340 : vector<64x128xf32>
    %c0_187 = arith.constant 0 : index
    %c30_188 = arith.constant 30 : index
    %342 = vector.load %arg8[%c0_187, %c30_188] : memref<1x32xf32, #tpu.memory_space<vmem>>, vector<1x1xf32>
    %343 = vector.broadcast %342 : vector<1x1xf32> to vector<64x128xf32>
    %344 = arith.mulf %341, %343 : vector<64x128xf32>
    %345 = arith.addf %334, %344 : vector<64x128xf32>
    %c0_189 = arith.constant 0 : index
    %c31 = arith.constant 31 : index
    %346 = vector.load %arg2[%c0_189, %c31] : memref<64x32xf32, #tpu.memory_space<vmem>>, vector<64x1xf32>
    %c31_190 = arith.constant 31 : index
    %c0_191 = arith.constant 0 : index
    %347 = vector.load %arg4[%c31_190, %c0_191] : memref<32x128xf32, #tpu.memory_space<vmem>>, vector<1x128xf32>
    %348 = vector.broadcast %346 : vector<64x1xf32> to vector<64x128xf32>
    %349 = vector.broadcast %347 : vector<1x128xf32> to vector<64x128xf32>
    %350 = arith.addf %348, %349 : vector<64x128xf32>
    %cst_192 = arith.constant 0.000000e+00 : f32
    %351 = vector.broadcast %cst_192 : f32 to vector<64x128xf32>
    %352 = arith.maximumf %350, %351 : vector<64x128xf32>
    %c0_193 = arith.constant 0 : index
    %c31_194 = arith.constant 31 : index
    %353 = vector.load %arg8[%c0_193, %c31_194] : memref<1x32xf32, #tpu.memory_space<vmem>>, vector<1x1xf32>
    %354 = vector.broadcast %353 : vector<1x1xf32> to vector<64x128xf32>
    %355 = arith.mulf %352, %354 : vector<64x128xf32>
    %356 = arith.addf %345, %355 : vector<64x128xf32>
    %c0_195 = arith.constant 0 : index
    %c0_196 = arith.constant 0 : index
    %357 = vector.load %arg7[%c0_195, %c0_196] : memref<64x128xbf16, #tpu.memory_space<vmem>>, vector<64x128xbf16>
    %358 = arith.extf %357 : vector<64x128xbf16> to vector<64x128xf32>
    %cst_197 = arith.constant 0.000000e+00 : f32
    %359 = vector.broadcast %cst_197 : f32 to vector<64x128xf32>
    %360 = arith.cmpf ogt, %358, %359 : vector<64x128xf32>
    %cst_198 = arith.constant -1.000000e+30 : f32
    %361 = vector.broadcast %cst_198 : f32 to vector<64x128xf32>
    %362 = arith.select %360, %356, %361 : vector<64x128xi1>, vector<64x128xf32>
    %cst_199 = arith.constant dense<0xFF800000> : vector<64xf32>
    %363 = vector.multi_reduction <maximumf>, %362, %cst_199 [1] : vector<64x128xf32> to vector<64xf32>
    %364 = vector.shape_cast %363 : vector<64xf32> to vector<64x1xf32>
    %cst_200 = arith.constant -5.000000e+29 : f32
    %365 = vector.broadcast %cst_200 : f32 to vector<64x1xf32>
    %366 = arith.cmpf ole, %364, %365 : vector<64x1xf32>
    %cst_201 = arith.constant 0.000000e+00 : f32
    %367 = vector.broadcast %cst_201 : f32 to vector<64x1xf32>
    %368 = arith.select %366, %367, %364 : vector<64x1xi1>, vector<64x1xf32>
    %369 = vector.broadcast %368 : vector<64x1xf32> to vector<64x128xf32>
    %370 = arith.subf %362, %369 : vector<64x128xf32>
    %371 = math.exp %370 : vector<64x128xf32>
    %372 = arith.mulf %371, %358 : vector<64x128xf32>
    %cst_202 = arith.constant dense<0.000000e+00> : vector<64xf32>
    %373 = vector.multi_reduction <add>, %372, %cst_202 [1] : vector<64x128xf32> to vector<64xf32>
    %374 = vector.shape_cast %373 : vector<64xf32> to vector<64x1xf32>
    %cst_203 = arith.constant 0.000000e+00 : f32
    %375 = vector.broadcast %cst_203 : f32 to vector<64x1xf32>
    %376 = arith.cmpf ogt, %374, %375 : vector<64x1xf32>
    %cst_204 = arith.constant 1.000000e+00 : f32
    %377 = vector.broadcast %cst_204 : f32 to vector<64x1xf32>
    %378 = arith.select %376, %374, %377 : vector<64x1xi1>, vector<64x1xf32>
    %379 = tpu.reciprocal %378 {approx = true} : vector<64x1xf32> -> vector<64x1xf32>
    %380 = vector.broadcast %379 : vector<64x1xf32> to vector<64x128xf32>
    %381 = arith.mulf %372, %380 : vector<64x128xf32>
    %c0_205 = arith.constant 0 : index
    %c0_206 = arith.constant 0 : index
    %382 = vector.load %arg6[%c0_205, %c0_206] : memref<128x32xf32, #tpu.memory_space<vmem>>, vector<128x32xf32>
    %cst_207 = arith.constant dense<0.000000e+00> : vector<64x32xf32>
    %383 = tpu.matmul %381, %382, %cst_207 {dimension_numbers = #tpu.dot_dimension_numbers<[1], [0], [0], [1], [0, 0, 1, 1], [], []>} : vector<64x128xf32>, vector<128x32xf32>, vector<64x32xf32> -> vector<64x32xf32>
    %c0_208 = arith.constant 0 : index
    %c0_209 = arith.constant 0 : index
    %384 = vector.load %arg1[%c0_208, %c0_209] : memref<64x32xf32, #tpu.memory_space<vmem>>, vector<64x32xf32>
    %cst_210 = arith.constant 5.000000e-01 : f32
    %385 = vector.broadcast %cst_210 : f32 to vector<64x32xf32>
    %386 = arith.mulf %385, %383 : vector<64x32xf32>
    %cst_211 = arith.constant 0.707106769 : f32
    %387 = vector.broadcast %cst_211 : f32 to vector<64x32xf32>
    %388 = arith.mulf %383, %387 : vector<64x32xf32>
    %389 = math.absf %388 : vector<64x32xf32>
    %cst_212 = arith.constant 0.327591091 : f32
    %390 = vector.broadcast %cst_212 : f32 to vector<64x32xf32>
    %391 = arith.mulf %390, %389 : vector<64x32xf32>
    %cst_213 = arith.constant 1.000000e+00 : f32
    %392 = vector.broadcast %cst_213 : f32 to vector<64x32xf32>
    %393 = arith.addf %392, %391 : vector<64x32xf32>
    %cst_214 = arith.constant 1.000000e+00 : f32
    %394 = vector.broadcast %cst_214 : f32 to vector<64x32xf32>
    %395 = arith.divf %394, %393 : vector<64x32xf32>
    %cst_215 = arith.constant 1.06140542 : f32
    %396 = vector.broadcast %cst_215 : f32 to vector<64x32xf32>
    %397 = arith.mulf %396, %395 : vector<64x32xf32>
    %cst_216 = arith.constant -1.45315206 : f32
    %398 = vector.broadcast %cst_216 : f32 to vector<64x32xf32>
    %399 = arith.addf %397, %398 : vector<64x32xf32>
    %400 = arith.mulf %399, %395 : vector<64x32xf32>
    %cst_217 = arith.constant 1.42141378 : f32
    %401 = vector.broadcast %cst_217 : f32 to vector<64x32xf32>
    %402 = arith.addf %400, %401 : vector<64x32xf32>
    %403 = arith.mulf %402, %395 : vector<64x32xf32>
    %cst_218 = arith.constant -0.284496725 : f32
    %404 = vector.broadcast %cst_218 : f32 to vector<64x32xf32>
    %405 = arith.addf %403, %404 : vector<64x32xf32>
    %406 = arith.mulf %405, %395 : vector<64x32xf32>
    %cst_219 = arith.constant 0.254829586 : f32
    %407 = vector.broadcast %cst_219 : f32 to vector<64x32xf32>
    %408 = arith.addf %406, %407 : vector<64x32xf32>
    %409 = arith.mulf %408, %395 : vector<64x32xf32>
    %cst_220 = arith.constant 0.000000e+00 : f32
    %410 = vector.broadcast %cst_220 : f32 to vector<64x32xf32>
    %411 = arith.subf %410, %389 : vector<64x32xf32>
    %412 = arith.mulf %411, %389 : vector<64x32xf32>
    %413 = math.exp %412 : vector<64x32xf32>
    %414 = arith.mulf %409, %413 : vector<64x32xf32>
    %cst_221 = arith.constant 1.000000e+00 : f32
    %415 = vector.broadcast %cst_221 : f32 to vector<64x32xf32>
    %416 = arith.subf %415, %414 : vector<64x32xf32>
    %cst_222 = arith.constant 0.000000e+00 : f32
    %417 = vector.broadcast %cst_222 : f32 to vector<64x32xf32>
    %418 = arith.cmpf olt, %388, %417 : vector<64x32xf32>
    %cst_223 = arith.constant 0.000000e+00 : f32
    %419 = vector.broadcast %cst_223 : f32 to vector<64x32xf32>
    %420 = arith.subf %419, %416 : vector<64x32xf32>
    %421 = arith.select %418, %420, %416 : vector<64x32xi1>, vector<64x32xf32>
    %cst_224 = arith.constant 1.000000e+00 : f32
    %422 = vector.broadcast %cst_224 : f32 to vector<64x32xf32>
    %423 = arith.addf %422, %421 : vector<64x32xf32>
    %424 = arith.mulf %386, %423 : vector<64x32xf32>
    %425 = arith.addf %384, %424 : vector<64x32xf32>
    %cst_225 = arith.constant dense<0.000000e+00> : vector<64xf32>
    %426 = vector.multi_reduction <add>, %425, %cst_225 [1] : vector<64x32xf32> to vector<64xf32>
    %427 = vector.shape_cast %426 : vector<64xf32> to vector<64x1xf32>
    %cst_226 = arith.constant 3.200000e+01 : f32
    %428 = vector.broadcast %cst_226 : f32 to vector<64x1xf32>
    %429 = arith.divf %427, %428 : vector<64x1xf32>
    %430 = vector.broadcast %429 : vector<64x1xf32> to vector<64x32xf32>
    %431 = arith.subf %425, %430 : vector<64x32xf32>
    %432 = arith.mulf %431, %431 : vector<64x32xf32>
    %cst_227 = arith.constant dense<0.000000e+00> : vector<64xf32>
    %433 = vector.multi_reduction <add>, %432, %cst_227 [1] : vector<64x32xf32> to vector<64xf32>
    %434 = vector.shape_cast %433 : vector<64xf32> to vector<64x1xf32>
    %cst_228 = arith.constant 3.200000e+01 : f32
    %435 = vector.broadcast %cst_228 : f32 to vector<64x1xf32>
    %436 = arith.divf %434, %435 : vector<64x1xf32>
    %cst_229 = arith.constant 9.99999974E-6 : f32
    %437 = vector.broadcast %cst_229 : f32 to vector<64x1xf32>
    %438 = arith.addf %436, %437 : vector<64x1xf32>
    %439 = math.rsqrt %438 : vector<64x1xf32>
    %440 = vector.broadcast %439 : vector<64x1xf32> to vector<64x32xf32>
    %441 = arith.mulf %431, %440 : vector<64x32xf32>
    %c0_230 = arith.constant 0 : index
    %c0_231 = arith.constant 0 : index
    %442 = vector.load %arg9[%c0_230, %c0_231] : memref<1x32xf32, #tpu.memory_space<vmem>>, vector<1x32xf32>
    %443 = vector.broadcast %442 : vector<1x32xf32> to vector<64x32xf32>
    %444 = arith.mulf %441, %443 : vector<64x32xf32>
    %c0_232 = arith.constant 0 : index
    %c0_233 = arith.constant 0 : index
    %445 = vector.load %arg10[%c0_232, %c0_233] : memref<1x32xf32, #tpu.memory_space<vmem>>, vector<1x32xf32>
    %446 = vector.broadcast %445 : vector<1x32xf32> to vector<64x32xf32>
    %447 = arith.addf %444, %446 : vector<64x32xf32>
    %c0_234 = arith.constant 0 : index
    %c0_235 = arith.constant 0 : index
    %448 = vector.load %arg11[%c0_234, %c0_235] : memref<64x32xf32, #tpu.memory_space<vmem>>, vector<64x32xf32>
    tpu.vector_store %arg11[%c0_234, %c0_235], %447 {strides = array<i32>} : memref<64x32xf32, #tpu.memory_space<vmem>>, vector<64x32xf32>,
    return
  }
  func.func @transform_0(%arg0: i32) -> (i32, i32) {
    %c0_i32 = arith.constant 0 : i32
    %c0_i32_0 = arith.constant 0 : i32
    return %arg0, %c0_i32 : i32, i32
  }
  func.func @transform_1(%arg0: i32) -> (i32, i32) {
    %c0_i32 = arith.constant 0 : i32
    %c0_i32_0 = arith.constant 0 : i32
    return %arg0, %c0_i32 : i32, i32
  }
  func.func @transform_2(%arg0: i32) -> (i32, i32) {
    %c0_i32 = arith.constant 0 : i32
    %c0_i32_0 = arith.constant 0 : i32
    return %arg0, %c0_i32 : i32, i32
  }
  func.func @transform_3(%arg0: i32) -> (i32, i32) {
    %c0_i32 = arith.constant 0 : i32
    %c0_i32_0 = arith.constant 0 : i32
    %c0_i32_1 = arith.constant 0 : i32
    return %c0_i32, %c0_i32_0 : i32, i32
  }
  func.func @transform_4(%arg0: i32) -> (i32, i32) {
    %c0_i32 = arith.constant 0 : i32
    %c0_i32_0 = arith.constant 0 : i32
    %c0_i32_1 = arith.constant 0 : i32
    return %c0_i32, %c0_i32_0 : i32, i32
  }
  func.func @transform_5(%arg0: i32) -> (i32, i32) {
    %c0_i32 = arith.constant 0 : i32
    %c0_i32_0 = arith.constant 0 : i32
    %c0_i32_1 = arith.constant 0 : i32
    return %c0_i32, %c0_i32_0 : i32, i32
  }
  func.func @transform_6(%arg0: i32) -> (i32, i32) {
    %c0_i32 = arith.constant 0 : i32
    %c0_i32_0 = arith.constant 0 : i32
    return %arg0, %c0_i32 : i32, i32
  }
  func.func @transform_7(%arg0: i32) -> (i32, i32) {
    %c0_i32 = arith.constant 0 : i32
    %c0_i32_0 = arith.constant 0 : i32
    %c0_i32_1 = arith.constant 0 : i32
    return %c0_i32, %c0_i32_0 : i32, i32
  }
  func.func @transform_8(%arg0: i32) -> (i32, i32) {
    %c0_i32 = arith.constant 0 : i32
    %c0_i32_0 = arith.constant 0 : i32
    %c0_i32_1 = arith.constant 0 : i32
    return %c0_i32, %c0_i32_0 : i32, i32
  }
  func.func @transform_9(%arg0: i32) -> (i32, i32) {
    %c0_i32 = arith.constant 0 : i32
    %c0_i32_0 = arith.constant 0 : i32
    %c0_i32_1 = arith.constant 0 : i32
    return %c0_i32, %c0_i32_0 : i32, i32
  }
  func.func @transform_10(%arg0: i32) -> (i32, i32) {
    %c0_i32 = arith.constant 0 : i32
    %c0_i32_0 = arith.constant 0 : i32
    return %arg0, %c0_i32 : i32, i32
  }
}

module attributes {stable_mosaic.version = 11 : i64} {
  func.func @_linear_kernel(%arg0: memref<128x32xf32, #tpu.memory_space<vmem>>, %arg1: memref<32x2xf32, #tpu.memory_space<vmem>>, %arg2: memref<1x2xf32, #tpu.memory_space<vmem>>, %arg3: memref<128x2xf32, #tpu.memory_space<vmem>>) attributes {dimension_semantics = [], scalar_prefetch = 0 : i64, scratch_operands = 0 : i64, tpu.core_type = #tpu.core_type<tc>} {
    %c0 = arith.constant 0 : index
    %c0_0 = arith.constant 0 : index
    %0 = vector.load %arg0[%c0, %c0_0] : memref<128x32xf32, #tpu.memory_space<vmem>>, vector<128x32xf32>
    %c0_1 = arith.constant 0 : index
    %c0_2 = arith.constant 0 : index
    %1 = vector.load %arg1[%c0_1, %c0_2] : memref<32x2xf32, #tpu.memory_space<vmem>>, vector<32x2xf32>
    %cst = arith.constant dense<0.000000e+00> : vector<128x2xf32>
    %2 = tpu.matmul %0, %1, %cst {dimension_numbers = #tpu.dot_dimension_numbers<[1], [0], [0], [1], [0, 0, 1, 1], [], []>} : vector<128x32xf32>, vector<32x2xf32>, vector<128x2xf32> -> vector<128x2xf32>
    %c0_3 = arith.constant 0 : index
    %c0_4 = arith.constant 0 : index
    %3 = vector.load %arg2[%c0_3, %c0_4] : memref<1x2xf32, #tpu.memory_space<vmem>>, vector<1x2xf32>
    %4 = vector.broadcast %3 : vector<1x2xf32> to vector<128x2xf32>
    %5 = arith.addf %2, %4 : vector<128x2xf32>
    %c0_5 = arith.constant 0 : index
    %c0_6 = arith.constant 0 : index
    %6 = vector.load %arg3[%c0_5, %c0_6] : memref<128x2xf32, #tpu.memory_space<vmem>>, vector<128x2xf32>
    tpu.vector_store %arg3[%c0_5, %c0_6], %5 {strides = array<i32>} : memref<128x2xf32, #tpu.memory_space<vmem>>, vector<128x2xf32>,
    return
  }
}

module attributes {stable_mosaic.version = 11 : i64} {
  func.func @_sag_attn_kernel(%arg0: i32, %arg1: memref<64x1xf32, #tpu.memory_space<vmem>>, %arg2: memref<1x128xf32, #tpu.memory_space<vmem>>, %arg3: memref<64x128xbf16, #tpu.memory_space<vmem>>, %arg4: memref<1x2xf32, #tpu.memory_space<vmem>>, %arg5: memref<64x1xf32, #tpu.memory_space<vmem>>) attributes {dimension_semantics = [#tpu.dimension_semantics<parallel>], iteration_bounds = array<i64: 2>, scalar_prefetch = 0 : i64, scratch_operands = 0 : i64, tpu.core_type = #tpu.core_type<tc>, window_params = [{transform_indices = @transform_0, window_bounds = array<i64: 64, 1>}, {pipeline_mode = #tpu.pipeline_mode<synchronous>, transform_indices = @transform_1, window_bounds = array<i64: 1, 128>}, {transform_indices = @transform_2, window_bounds = array<i64: 64, 128>}, {pipeline_mode = #tpu.pipeline_mode<synchronous>, transform_indices = @transform_3, window_bounds = array<i64: 1, 2>}, {transform_indices = @transform_4, window_bounds = array<i64: 64, 1>}]} {
    %c0 = arith.constant 0 : index
    %c0_0 = arith.constant 0 : index
    %0 = vector.load %arg1[%c0, %c0_0] : memref<64x1xf32, #tpu.memory_space<vmem>>, vector<64x1xf32>
    %c0_1 = arith.constant 0 : index
    %c0_2 = arith.constant 0 : index
    %1 = vector.load %arg2[%c0_1, %c0_2] : memref<1x128xf32, #tpu.memory_space<vmem>>, vector<1x128xf32>
    %2 = vector.broadcast %0 : vector<64x1xf32> to vector<64x128xf32>
    %3 = vector.broadcast %1 : vector<1x128xf32> to vector<64x128xf32>
    %4 = arith.addf %2, %3 : vector<64x128xf32>
    %cst = arith.constant 2.000000e-01 : f32
    %5 = vector.broadcast %cst : f32 to vector<64x128xf32>
    %6 = arith.mulf %5, %4 : vector<64x128xf32>
    %cst_3 = arith.constant 0.000000e+00 : f32
    %7 = vector.broadcast %cst_3 : f32 to vector<64x128xf32>
    %8 = arith.maximumf %4, %7 : vector<64x128xf32>
    %cst_4 = arith.constant 8.000000e-01 : f32
    %9 = vector.broadcast %cst_4 : f32 to vector<64x128xf32>
    %10 = arith.mulf %9, %8 : vector<64x128xf32>
    %11 = arith.addf %6, %10 : vector<64x128xf32>
    %c0_5 = arith.constant 0 : index
    %c0_6 = arith.constant 0 : index
    %12 = vector.load %arg4[%c0_5, %c0_6] : memref<1x2xf32, #tpu.memory_space<vmem>>, vector<1x1xf32>
    %13 = vector.broadcast %12 : vector<1x1xf32> to vector<64x128xf32>
    %14 = arith.mulf %11, %13 : vector<64x128xf32>
    %c0_7 = arith.constant 0 : index
    %c0_8 = arith.constant 0 : index
    %15 = vector.load %arg3[%c0_7, %c0_8] : memref<64x128xbf16, #tpu.memory_space<vmem>>, vector<64x128xbf16>
    %16 = arith.extf %15 : vector<64x128xbf16> to vector<64x128xf32>
    %cst_9 = arith.constant 0.000000e+00 : f32
    %17 = vector.broadcast %cst_9 : f32 to vector<64x128xf32>
    %18 = arith.cmpf ogt, %16, %17 : vector<64x128xf32>
    %cst_10 = arith.constant -1.000000e+30 : f32
    %19 = vector.broadcast %cst_10 : f32 to vector<64x128xf32>
    %20 = arith.select %18, %14, %19 : vector<64x128xi1>, vector<64x128xf32>
    %cst_11 = arith.constant dense<0xFF800000> : vector<64xf32>
    %21 = vector.multi_reduction <maximumf>, %20, %cst_11 [1] : vector<64x128xf32> to vector<64xf32>
    %22 = vector.shape_cast %21 : vector<64xf32> to vector<64x1xf32>
    %cst_12 = arith.constant -5.000000e+29 : f32
    %23 = vector.broadcast %cst_12 : f32 to vector<64x1xf32>
    %24 = arith.cmpf ole, %22, %23 : vector<64x1xf32>
    %cst_13 = arith.constant 0.000000e+00 : f32
    %25 = vector.broadcast %cst_13 : f32 to vector<64x1xf32>
    %26 = arith.select %24, %25, %22 : vector<64x1xi1>, vector<64x1xf32>
    %27 = vector.broadcast %26 : vector<64x1xf32> to vector<64x128xf32>
    %28 = arith.subf %20, %27 : vector<64x128xf32>
    %29 = math.exp %28 : vector<64x128xf32>
    %30 = arith.mulf %29, %16 : vector<64x128xf32>
    %cst_14 = arith.constant dense<0.000000e+00> : vector<64xf32>
    %31 = vector.multi_reduction <add>, %30, %cst_14 [1] : vector<64x128xf32> to vector<64xf32>
    %32 = vector.shape_cast %31 : vector<64xf32> to vector<64x1xf32>
    %cst_15 = arith.constant 0.000000e+00 : f32
    %33 = vector.broadcast %cst_15 : f32 to vector<64x1xf32>
    %34 = arith.cmpf ogt, %32, %33 : vector<64x1xf32>
    %cst_16 = arith.constant 1.000000e+00 : f32
    %35 = vector.broadcast %cst_16 : f32 to vector<64x1xf32>
    %36 = arith.select %34, %32, %35 : vector<64x1xi1>, vector<64x1xf32>
    %37 = tpu.reciprocal %36 {approx = true} : vector<64x1xf32> -> vector<64x1xf32>
    %38 = vector.broadcast %37 : vector<64x1xf32> to vector<64x128xf32>
    %39 = arith.mulf %30, %38 : vector<64x128xf32>
    %c0_17 = arith.constant 0 : index
    %c0_18 = arith.constant 0 : index
    %40 = vector.load %arg2[%c0_17, %c0_18] : memref<1x128xf32, #tpu.memory_space<vmem>>, vector<1x128xf32>
    %41 = vector.broadcast %40 : vector<1x128xf32> to vector<64x128xf32>
    %42 = arith.mulf %39, %41 : vector<64x128xf32>
    %cst_19 = arith.constant dense<0.000000e+00> : vector<64xf32>
    %43 = vector.multi_reduction <add>, %42, %cst_19 [1] : vector<64x128xf32> to vector<64xf32>
    %44 = vector.shape_cast %43 : vector<64xf32> to vector<64x1xf32>
    %c0_20 = arith.constant 0 : index
    %c1 = arith.constant 1 : index
    %45 = vector.load %arg4[%c0_20, %c1] : memref<1x2xf32, #tpu.memory_space<vmem>>, vector<1x1xf32>
    %46 = vector.broadcast %45 : vector<1x1xf32> to vector<64x1xf32>
    %47 = arith.addf %44, %46 : vector<64x1xf32>
    %48 = math.tanh %47 : vector<64x1xf32>
    %c0_21 = arith.constant 0 : index
    %c0_22 = arith.constant 0 : index
    %49 = vector.load %arg5[%c0_21, %c0_22] : memref<64x1xf32, #tpu.memory_space<vmem>>, vector<64x1xf32>
    tpu.vector_store %arg5[%c0_21, %c0_22], %48 {strides = array<i32>} : memref<64x1xf32, #tpu.memory_space<vmem>>, vector<64x1xf32>,
    return
  }
  func.func @transform_0(%arg0: i32) -> (i32, i32) {
    %c0_i32 = arith.constant 0 : i32
    %c0_i32_0 = arith.constant 0 : i32
    return %arg0, %c0_i32 : i32, i32
  }
  func.func @transform_1(%arg0: i32) -> (i32, i32) {
    %c0_i32 = arith.constant 0 : i32
    %c0_i32_0 = arith.constant 0 : i32
    %c0_i32_1 = arith.constant 0 : i32
    return %c0_i32, %c0_i32_0 : i32, i32
  }
  func.func @transform_2(%arg0: i32) -> (i32, i32) {
    %c0_i32 = arith.constant 0 : i32
    %c0_i32_0 = arith.constant 0 : i32
    return %arg0, %c0_i32 : i32, i32
  }
  func.func @transform_3(%arg0: i32) -> (i32, i32) {
    %c0_i32 = arith.constant 0 : i32
    %c0_i32_0 = arith.constant 0 : i32
    %c0_i32_1 = arith.constant 0 : i32
    return %c0_i32, %c0_i32_0 : i32, i32
  }
  func.func @transform_4(%arg0: i32) -> (i32, i32) {
    %c0_i32 = arith.constant 0 : i32
    %c0_i32_0 = arith.constant 0 : i32
    return %arg0, %c0_i32 : i32, i32
  }
}

module attributes {stable_mosaic.version = 11 : i64} {
  func.func @_global_max_kernel(%arg0: memref<128x32xf32, #tpu.memory_space<vmem>>, %arg1: memref<128x2xf32, #tpu.memory_space<vmem>>, %arg2: memref<2x32xf32, #tpu.memory_space<vmem>>) attributes {dimension_semantics = [], scalar_prefetch = 0 : i64, scratch_operands = 0 : i64, tpu.core_type = #tpu.core_type<tc>} {
    %c0 = arith.constant 0 : index
    %c0_0 = arith.constant 0 : index
    %0 = vector.load %arg1[%c0, %c0_0] : memref<128x2xf32, #tpu.memory_space<vmem>>, vector<128x2xf32>
    %1 = vector.extract_strided_slice %0 {offsets = [0, 0], sizes = [128, 1], strides = [1, 1]} : vector<128x2xf32> to vector<128x1xf32>
    %cst = arith.constant 0.000000e+00 : f32
    %2 = vector.broadcast %cst : f32 to vector<128x1xf32>
    %3 = arith.cmpf ogt, %1, %2 : vector<128x1xf32>
    %c0_1 = arith.constant 0 : index
    %c0_2 = arith.constant 0 : index
    %4 = vector.load %arg0[%c0_1, %c0_2] : memref<128x32xf32, #tpu.memory_space<vmem>>, vector<128x32xf32>
    %cst_3 = arith.constant -1.000000e+30 : f32
    %5 = vector.shape_cast %3 : vector<128x1xi1> to vector<128x1xi1>
    %6 = vector.broadcast %5 : vector<128x1xi1> to vector<128x32xi1>
    %7 = vector.broadcast %cst_3 : f32 to vector<128x32xf32>
    %8 = arith.select %6, %4, %7 : vector<128x32xi1>, vector<128x32xf32>
    %cst_4 = arith.constant dense<0xFF800000> : vector<32xf32>
    %9 = vector.multi_reduction <maximumf>, %8, %cst_4 [0] : vector<128x32xf32> to vector<32xf32>
    %10 = vector.shape_cast %9 : vector<32xf32> to vector<1x32xf32>
    %c0_5 = arith.constant 0 : index
    %c0_6 = arith.constant 0 : index
    %11 = vector.load %arg2[%c0_5, %c0_6] : memref<2x32xf32, #tpu.memory_space<vmem>>, vector<1x32xf32>
    tpu.vector_store %arg2[%c0_5, %c0_6], %10 {strides = array<i32>} : memref<2x32xf32, #tpu.memory_space<vmem>>, vector<1x32xf32>,
    %12 = vector.extract_strided_slice %0 {offsets = [0, 1], sizes = [128, 1], strides = [1, 1]} : vector<128x2xf32> to vector<128x1xf32>
    %cst_7 = arith.constant 0.000000e+00 : f32
    %13 = vector.broadcast %cst_7 : f32 to vector<128x1xf32>
    %14 = arith.cmpf ogt, %12, %13 : vector<128x1xf32>
    %c0_8 = arith.constant 0 : index
    %c0_9 = arith.constant 0 : index
    %15 = vector.load %arg0[%c0_8, %c0_9] : memref<128x32xf32, #tpu.memory_space<vmem>>, vector<128x32xf32>
    %cst_10 = arith.constant -1.000000e+30 : f32
    %16 = vector.shape_cast %14 : vector<128x1xi1> to vector<128x1xi1>
    %17 = vector.broadcast %16 : vector<128x1xi1> to vector<128x32xi1>
    %18 = vector.broadcast %cst_10 : f32 to vector<128x32xf32>
    %19 = arith.select %17, %15, %18 : vector<128x32xi1>, vector<128x32xf32>
    %cst_11 = arith.constant dense<0xFF800000> : vector<32xf32>
    %20 = vector.multi_reduction <maximumf>, %19, %cst_11 [0] : vector<128x32xf32> to vector<32xf32>
    %21 = vector.shape_cast %20 : vector<32xf32> to vector<1x32xf32>
    %c1 = arith.constant 1 : index
    %c0_12 = arith.constant 0 : index
    %22 = vector.load %arg2[%c1, %c0_12] : memref<2x32xf32, #tpu.memory_space<vmem>>, vector<1x32xf32>
    tpu.vector_store %arg2[%c1, %c0_12], %21 {strides = array<i32>} : memref<2x32xf32, #tpu.memory_space<vmem>>, vector<1x32xf32>,
    return
  }
}

module attributes {stable_mosaic.version = 11 : i64} {
  func.func @_final_head_kernel(%arg0: memref<2x32xf32, #tpu.memory_space<vmem>>, %arg1: memref<32x16xf32, #tpu.memory_space<vmem>>, %arg2: memref<1x16xf32, #tpu.memory_space<vmem>>, %arg3: memref<16x16xf32, #tpu.memory_space<vmem>>, %arg4: memref<1x16xf32, #tpu.memory_space<vmem>>, %arg5: memref<16x4xf32, #tpu.memory_space<vmem>>, %arg6: memref<1x4xf32, #tpu.memory_space<vmem>>, %arg7: memref<2x4xf32, #tpu.memory_space<vmem>>) attributes {dimension_semantics = [], scalar_prefetch = 0 : i64, scratch_operands = 0 : i64, tpu.core_type = #tpu.core_type<tc>} {
    %c0 = arith.constant 0 : index
    %c0_0 = arith.constant 0 : index
    %0 = vector.load %arg0[%c0, %c0_0] : memref<2x32xf32, #tpu.memory_space<vmem>>, vector<2x32xf32>
    %c0_1 = arith.constant 0 : index
    %c0_2 = arith.constant 0 : index
    %1 = vector.load %arg1[%c0_1, %c0_2] : memref<32x16xf32, #tpu.memory_space<vmem>>, vector<32x16xf32>
    %cst = arith.constant dense<0.000000e+00> : vector<2x16xf32>
    %2 = tpu.matmul %0, %1, %cst {dimension_numbers = #tpu.dot_dimension_numbers<[1], [0], [0], [1], [0, 0, 1, 1], [], []>} : vector<2x32xf32>, vector<32x16xf32>, vector<2x16xf32> -> vector<2x16xf32>
    %c0_3 = arith.constant 0 : index
    %c0_4 = arith.constant 0 : index
    %3 = vector.load %arg2[%c0_3, %c0_4] : memref<1x16xf32, #tpu.memory_space<vmem>>, vector<1x16xf32>
    %4 = vector.broadcast %3 : vector<1x16xf32> to vector<2x16xf32>
    %5 = arith.addf %2, %4 : vector<2x16xf32>
    %cst_5 = arith.constant 5.000000e-01 : f32
    %6 = vector.broadcast %cst_5 : f32 to vector<2x16xf32>
    %7 = arith.mulf %6, %5 : vector<2x16xf32>
    %cst_6 = arith.constant 0.707106769 : f32
    %8 = vector.broadcast %cst_6 : f32 to vector<2x16xf32>
    %9 = arith.mulf %5, %8 : vector<2x16xf32>
    %10 = math.absf %9 : vector<2x16xf32>
    %cst_7 = arith.constant 0.327591091 : f32
    %11 = vector.broadcast %cst_7 : f32 to vector<2x16xf32>
    %12 = arith.mulf %11, %10 : vector<2x16xf32>
    %cst_8 = arith.constant 1.000000e+00 : f32
    %13 = vector.broadcast %cst_8 : f32 to vector<2x16xf32>
    %14 = arith.addf %13, %12 : vector<2x16xf32>
    %cst_9 = arith.constant 1.000000e+00 : f32
    %15 = vector.broadcast %cst_9 : f32 to vector<2x16xf32>
    %16 = arith.divf %15, %14 : vector<2x16xf32>
    %cst_10 = arith.constant 1.06140542 : f32
    %17 = vector.broadcast %cst_10 : f32 to vector<2x16xf32>
    %18 = arith.mulf %17, %16 : vector<2x16xf32>
    %cst_11 = arith.constant -1.45315206 : f32
    %19 = vector.broadcast %cst_11 : f32 to vector<2x16xf32>
    %20 = arith.addf %18, %19 : vector<2x16xf32>
    %21 = arith.mulf %20, %16 : vector<2x16xf32>
    %cst_12 = arith.constant 1.42141378 : f32
    %22 = vector.broadcast %cst_12 : f32 to vector<2x16xf32>
    %23 = arith.addf %21, %22 : vector<2x16xf32>
    %24 = arith.mulf %23, %16 : vector<2x16xf32>
    %cst_13 = arith.constant -0.284496725 : f32
    %25 = vector.broadcast %cst_13 : f32 to vector<2x16xf32>
    %26 = arith.addf %24, %25 : vector<2x16xf32>
    %27 = arith.mulf %26, %16 : vector<2x16xf32>
    %cst_14 = arith.constant 0.254829586 : f32
    %28 = vector.broadcast %cst_14 : f32 to vector<2x16xf32>
    %29 = arith.addf %27, %28 : vector<2x16xf32>
    %30 = arith.mulf %29, %16 : vector<2x16xf32>
    %cst_15 = arith.constant 0.000000e+00 : f32
    %31 = vector.broadcast %cst_15 : f32 to vector<2x16xf32>
    %32 = arith.subf %31, %10 : vector<2x16xf32>
    %33 = arith.mulf %32, %10 : vector<2x16xf32>
    %34 = math.exp %33 : vector<2x16xf32>
    %35 = arith.mulf %30, %34 : vector<2x16xf32>
    %cst_16 = arith.constant 1.000000e+00 : f32
    %36 = vector.broadcast %cst_16 : f32 to vector<2x16xf32>
    %37 = arith.subf %36, %35 : vector<2x16xf32>
    %cst_17 = arith.constant 0.000000e+00 : f32
    %38 = vector.broadcast %cst_17 : f32 to vector<2x16xf32>
    %39 = arith.cmpf olt, %9, %38 : vector<2x16xf32>
    %cst_18 = arith.constant 0.000000e+00 : f32
    %40 = vector.broadcast %cst_18 : f32 to vector<2x16xf32>
    %41 = arith.subf %40, %37 : vector<2x16xf32>
    %42 = arith.select %39, %41, %37 : vector<2x16xi1>, vector<2x16xf32>
    %cst_19 = arith.constant 1.000000e+00 : f32
    %43 = vector.broadcast %cst_19 : f32 to vector<2x16xf32>
    %44 = arith.addf %43, %42 : vector<2x16xf32>
    %45 = arith.mulf %7, %44 : vector<2x16xf32>
    %c0_20 = arith.constant 0 : index
    %c0_21 = arith.constant 0 : index
    %46 = vector.load %arg3[%c0_20, %c0_21] : memref<16x16xf32, #tpu.memory_space<vmem>>, vector<16x16xf32>
    %cst_22 = arith.constant dense<0.000000e+00> : vector<2x16xf32>
    %47 = tpu.matmul %45, %46, %cst_22 {dimension_numbers = #tpu.dot_dimension_numbers<[1], [0], [0], [1], [0, 0, 1, 1], [], []>} : vector<2x16xf32>, vector<16x16xf32>, vector<2x16xf32> -> vector<2x16xf32>
    %c0_23 = arith.constant 0 : index
    %c0_24 = arith.constant 0 : index
    %48 = vector.load %arg4[%c0_23, %c0_24] : memref<1x16xf32, #tpu.memory_space<vmem>>, vector<1x16xf32>
    %49 = vector.broadcast %48 : vector<1x16xf32> to vector<2x16xf32>
    %50 = arith.addf %47, %49 : vector<2x16xf32>
    %cst_25 = arith.constant 5.000000e-01 : f32
    %51 = vector.broadcast %cst_25 : f32 to vector<2x16xf32>
    %52 = arith.mulf %51, %50 : vector<2x16xf32>
    %cst_26 = arith.constant 0.707106769 : f32
    %53 = vector.broadcast %cst_26 : f32 to vector<2x16xf32>
    %54 = arith.mulf %50, %53 : vector<2x16xf32>
    %55 = math.absf %54 : vector<2x16xf32>
    %cst_27 = arith.constant 0.327591091 : f32
    %56 = vector.broadcast %cst_27 : f32 to vector<2x16xf32>
    %57 = arith.mulf %56, %55 : vector<2x16xf32>
    %cst_28 = arith.constant 1.000000e+00 : f32
    %58 = vector.broadcast %cst_28 : f32 to vector<2x16xf32>
    %59 = arith.addf %58, %57 : vector<2x16xf32>
    %cst_29 = arith.constant 1.000000e+00 : f32
    %60 = vector.broadcast %cst_29 : f32 to vector<2x16xf32>
    %61 = arith.divf %60, %59 : vector<2x16xf32>
    %cst_30 = arith.constant 1.06140542 : f32
    %62 = vector.broadcast %cst_30 : f32 to vector<2x16xf32>
    %63 = arith.mulf %62, %61 : vector<2x16xf32>
    %cst_31 = arith.constant -1.45315206 : f32
    %64 = vector.broadcast %cst_31 : f32 to vector<2x16xf32>
    %65 = arith.addf %63, %64 : vector<2x16xf32>
    %66 = arith.mulf %65, %61 : vector<2x16xf32>
    %cst_32 = arith.constant 1.42141378 : f32
    %67 = vector.broadcast %cst_32 : f32 to vector<2x16xf32>
    %68 = arith.addf %66, %67 : vector<2x16xf32>
    %69 = arith.mulf %68, %61 : vector<2x16xf32>
    %cst_33 = arith.constant -0.284496725 : f32
    %70 = vector.broadcast %cst_33 : f32 to vector<2x16xf32>
    %71 = arith.addf %69, %70 : vector<2x16xf32>
    %72 = arith.mulf %71, %61 : vector<2x16xf32>
    %cst_34 = arith.constant 0.254829586 : f32
    %73 = vector.broadcast %cst_34 : f32 to vector<2x16xf32>
    %74 = arith.addf %72, %73 : vector<2x16xf32>
    %75 = arith.mulf %74, %61 : vector<2x16xf32>
    %cst_35 = arith.constant 0.000000e+00 : f32
    %76 = vector.broadcast %cst_35 : f32 to vector<2x16xf32>
    %77 = arith.subf %76, %55 : vector<2x16xf32>
    %78 = arith.mulf %77, %55 : vector<2x16xf32>
    %79 = math.exp %78 : vector<2x16xf32>
    %80 = arith.mulf %75, %79 : vector<2x16xf32>
    %cst_36 = arith.constant 1.000000e+00 : f32
    %81 = vector.broadcast %cst_36 : f32 to vector<2x16xf32>
    %82 = arith.subf %81, %80 : vector<2x16xf32>
    %cst_37 = arith.constant 0.000000e+00 : f32
    %83 = vector.broadcast %cst_37 : f32 to vector<2x16xf32>
    %84 = arith.cmpf olt, %54, %83 : vector<2x16xf32>
    %cst_38 = arith.constant 0.000000e+00 : f32
    %85 = vector.broadcast %cst_38 : f32 to vector<2x16xf32>
    %86 = arith.subf %85, %82 : vector<2x16xf32>
    %87 = arith.select %84, %86, %82 : vector<2x16xi1>, vector<2x16xf32>
    %cst_39 = arith.constant 1.000000e+00 : f32
    %88 = vector.broadcast %cst_39 : f32 to vector<2x16xf32>
    %89 = arith.addf %88, %87 : vector<2x16xf32>
    %90 = arith.mulf %52, %89 : vector<2x16xf32>
    %c0_40 = arith.constant 0 : index
    %c0_41 = arith.constant 0 : index
    %91 = vector.load %arg5[%c0_40, %c0_41] : memref<16x4xf32, #tpu.memory_space<vmem>>, vector<16x4xf32>
    %cst_42 = arith.constant dense<0.000000e+00> : vector<2x4xf32>
    %92 = tpu.matmul %90, %91, %cst_42 {dimension_numbers = #tpu.dot_dimension_numbers<[1], [0], [0], [1], [0, 0, 1, 1], [], []>} : vector<2x16xf32>, vector<16x4xf32>, vector<2x4xf32> -> vector<2x4xf32>
    %c0_43 = arith.constant 0 : index
    %c0_44 = arith.constant 0 : index
    %93 = vector.load %arg6[%c0_43, %c0_44] : memref<1x4xf32, #tpu.memory_space<vmem>>, vector<1x4xf32>
    %94 = vector.broadcast %93 : vector<1x4xf32> to vector<2x4xf32>
    %95 = arith.addf %92, %94 : vector<2x4xf32>
    %c0_45 = arith.constant 0 : index
    %c0_46 = arith.constant 0 : index
    %96 = vector.load %arg7[%c0_45, %c0_46] : memref<2x4xf32, #tpu.memory_space<vmem>>, vector<2x4xf32>
    tpu.vector_store %arg7[%c0_45, %c0_46], %95 {strides = array<i32>} : memref<2x4xf32, #tpu.memory_space<vmem>>, vector<2x4xf32>,
    return
  }
}

</mosaic_0001>

<bundles_post_ra>
// kernel: math_model_forward.35
= control target key start
LH: loop header
LB: loop body
LE: loop exit
PB: predicated region body
PF: predicated region fallthrough
CT: control target
= control target key end

     0   :  { %vm41_vm0 = vcmask 261120   ;;  %vm235_vm1 = vcmask 15360   ;;  %s500_s1 = inlined_call_operand.vmem [shape: f32[32,2], index: 1, kind: input, shape index: {}]   ;;  %s501_s0 = inlined_call_operand.vmem [shape: f32[128,32], index: 0, kind: input, shape index: {}]   ;;  %s502_s2 = inlined_call_operand.vmem [shape: f32[1,2], index: 2, kind: input, shape index: {}]   ;;  %s503_s3 = inlined_call_operand.vmem [shape: f32[128,2], index: 3, kind: output, shape index: {}]  }
   0x1   :  { %v30_v0 = vld [vmem:[%s500_s1] sm:$0xff]  ;;  %v31_v1 = vld [vmem:[%s500_s1 + $0x8] sm:$0xff]  ;;  %v32_v2 = vld [vmem:[%s500_s1 + $0x10] sm:$0xff] }
   0x2   :  { %v325_v3 = vpack.c.bf16 %v31_v1, %v30_v0  ;;  %v33_v4 = vld [vmem:[%s500_s1 + $0x18] sm:$0xff]  ;;  %v14_v5 = vld [vmem:[%s501_s0] sm:$0xff]  ;;  %v15_v8 = vld [vmem:[%s501_s0 + $0x8] sm:$0xff] }
   0x3   :  { %v22_v6 = vld [vmem:[%s501_s0 + $0x40] sm:$0xff]  ;;  %v329_v7 = vpack.c.bf16 %v33_v4, %v32_v2  ;;  %301 = vmatprep.mubr.msk.f32.mxu0 %vm41_vm0, %v14_v5  ;;  %v23_v9 = vld [vmem:[%s501_s0 + $0x48] sm:$0xff]  ;;  %v16_v10 = vld [vmem:[%s501_s0 + $0x10] sm:$0xff] }
   0x4   :  { %313 = vmatprep.mubr.msk.f32.mxu1 %vm41_vm0, %v22_v6  ;;  %326 = vmatprep.subr.bf16.mxu0 %v325_v3  ;;  %v24_v11 = vld [vmem:[%s501_s0 + $0x50] sm:$0xff]  ;;  %v17_v12 = vld [vmem:[%s501_s0 + $0x18] sm:$0xff]  ;;  %v18_v14 = vld [vmem:[%s501_s0 + $0x20] sm:$0xff] }
   0x5   :  { %333 = vmatprep.subr.bf16.mxu1 %v325_v3  ;;  %328 = vmatpush3.bf16.msra.mxu0 %v325_v3  ;;  %v25_v13 = vld [vmem:[%s501_s0 + $0x58] sm:$0xff]  ;;  %v26_v15 = vld [vmem:[%s501_s0 + $0x60] sm:$0xff]  ;;  %v19_v16 = vld [vmem:[%s501_s0 + $0x28] sm:$0xff] }
   0x6   :  { %335 = vmatpush3.bf16.msra.mxu1 %v325_v3  ;;  %330 = vmatprep.subr.bf16.mxu0 %v329_v7  ;;  %v27_v17 = vld [vmem:[%s501_s0 + $0x68] sm:$0xff]  ;;  %v20_v18 = vld [vmem:[%s501_s0 + $0x30] sm:$0xff]  ;;  %v21_v20 = vld [vmem:[%s501_s0 + $0x38] sm:$0xff] }
   0x7   :  { %334 = vmatprep.subr.bf16.mxu1 %v329_v7  ;;  %v28_v19 = vld [vmem:[%s501_s0 + $0x70] sm:$0xff]  ;;  %v29_v21 = vld [vmem:[%s501_s0 + $0x78] sm:$0xff]  ;;  %v256_v22 = vld [vmem:[%s502_s2] ss:$0 sm:$0xff] }
   0x9   :  { %332 = vmatpush3.bf16.msra.mxu0 %v329_v7 }
   0xa   :  { %336 = vmatpush3.bf16.msra.mxu1 %v329_v7 }
   0xc   :  { %302 = vmatmul.mubr.msk.f32.vlgmr.msra.gmra.mrb[0].mxu0 %vm41_vm0, %v15_v8 }
   0xd   :  { %314 = vmatmul.mubr.msk.f32.vlgmr.msra.gmra.mrb[0].mxu1 %vm41_vm0, %v23_v9  ;;  %304 = vmatprep.mubr.msk.f32.mxu0 %vm41_vm0, %v16_v10 }
   0xe   :  { %316 = vmatprep.mubr.msk.f32.mxu1 %vm41_vm0, %v24_v11 }
  0x10   :  { %305 = vmatmul.mubr.msk.f32.gmra.mrb[2].mxu0 %vm41_vm0, %v17_v12 }
  0x11   :  { %317 = vmatmul.mubr.msk.f32.gmra.mrb[2].mxu1 %vm41_vm0, %v25_v13  ;;  %307 = vmatprep.mubr.msk.f32.mxu0 %vm41_vm0, %v18_v14 }
  0x12   :  { %319 = vmatprep.mubr.msk.f32.mxu1 %vm41_vm0, %v26_v15 }
  0x14   :  { %308 = vmatmul.mubr.msk.f32.gmra.mrb[4].mxu0 %vm41_vm0, %v19_v16 }
  0x15   :  { %320 = vmatmul.mubr.msk.f32.gmra.mrb[4].mxu1 %vm41_vm0, %v27_v17  ;;  %310 = vmatprep.mubr.msk.f32.mxu0 %vm41_vm0, %v20_v18 }
  0x16   :  { %322 = vmatprep.mubr.msk.f32.mxu1 %vm41_vm0, %v28_v19 }
  0x18   :  { %311 = vmatmul.mubr.msk.f32.gmra.mrb[6].mxu0 %vm41_vm0, %v21_v20 }
  0x19   :  { %323 = vmatmul.mubr.msk.f32.gmra.mrb[6].mxu1 %vm41_vm0, %v29_v21 }
  0xdf   :  { %v303_v23 = vpop.f32.mrb[0].mxu0 }
  0xe0   :  { %v315_v24 = vpop.f32.mrb[0].mxu1  ;;  %v162_v25 = vadd.f32 %v303_v23, %v256_v22  ;;  %v156_v27 = vpop.f32.mrb[1].mxu0 }
  0xe1   :  { %v202_v26 = vadd.f32 %v315_v24, %v256_v22  ;;  %v196_v28 = vpop.f32.mrb[1].mxu1  ;;  %v157_v29 = vadd.f32 %v256_v22, %v156_v27 }
  0xe2   :  { %v197_v30 = vadd.f32 %v256_v22, %v196_v28  ;;  %237 = vst.msk [vmem:[%s503_s3 + $0x8] sm:$0xff] %vm235_vm1, %v162_v25 }
  0xe3   :  { %245 = vst.msk [vmem:[%s503_s3 + $0x48] sm:$0xff] %vm235_vm1, %v202_v26  ;;  %236 = vst.msk [vmem:[%s503_s3] sm:$0xff] %vm235_vm1, %v157_v29  ;;  %v306_v31 = vpop.f32.mrb[2].mxu0 }
  0xe4   :  { %244 = vst.msk [vmem:[%s503_s3 + $0x40] sm:$0xff] %vm235_vm1, %v197_v30  ;;  %v318_v32 = vpop.f32.mrb[2].mxu1  ;;  %v172_v33 = vadd.f32 %v306_v31, %v256_v22  ;;  %v166_v35 = vpop.f32.mrb[3].mxu0 }
  0xe5   :  { %v212_v34 = vadd.f32 %v318_v32, %v256_v22  ;;  %v206_v36 = vpop.f32.mrb[3].mxu1  ;;  %v167_v37 = vadd.f32 %v256_v22, %v166_v35 }
  0xe6   :  { %v207_v38 = vadd.f32 %v256_v22, %v206_v36  ;;  %239 = vst.msk [vmem:[%s503_s3 + $0x18] sm:$0xff] %vm235_vm1, %v172_v33 }
  0xe7   :  { %247 = vst.msk [vmem:[%s503_s3 + $0x58] sm:$0xff] %vm235_vm1, %v212_v34  ;;  %238 = vst.msk [vmem:[%s503_s3 + $0x10] sm:$0xff] %vm235_vm1, %v167_v37  ;;  %v309_v39 = vpop.f32.mrb[4].mxu0 }
  0xe8   :  { %246 = vst.msk [vmem:[%s503_s3 + $0x50] sm:$0xff] %vm235_vm1, %v207_v38  ;;  %v321_v40 = vpop.f32.mrb[4].mxu1  ;;  %v182_v41 = vadd.f32 %v309_v39, %v256_v22  ;;  %v176_v43 = vpop.f32.mrb[5].mxu0 }
  0xe9   :  { %v222_v42 = vadd.f32 %v321_v40, %v256_v22  ;;  %v216_v44 = vpop.f32.mrb[5].mxu1  ;;  %v177_v45 = vadd.f32 %v256_v22, %v176_v43 }
  0xea   :  { %v217_v46 = vadd.f32 %v256_v22, %v216_v44  ;;  %241 = vst.msk [vmem:[%s503_s3 + $0x28] sm:$0xff] %vm235_vm1, %v182_v41 }
  0xeb   :  { %249 = vst.msk [vmem:[%s503_s3 + $0x68] sm:$0xff] %vm235_vm1, %v222_v42  ;;  %240 = vst.msk [vmem:[%s503_s3 + $0x20] sm:$0xff] %vm235_vm1, %v177_v45  ;;  %v312_v47 = vpop.f32.mrb[6].mxu0 }
  0xec   :  { %248 = vst.msk [vmem:[%s503_s3 + $0x60] sm:$0xff] %vm235_vm1, %v217_v46  ;;  %v324_v48 = vpop.f32.mrb[6].mxu1  ;;  %v192_v49 = vadd.f32 %v312_v47, %v256_v22  ;;  %v186_v51 = vpop.f32.mrb[7].mxu0 }
  0xed   :  { %v232_v50 = vadd.f32 %v324_v48, %v256_v22  ;;  %v226_v52 = vpop.f32.mrb[7].mxu1  ;;  %v187_v53 = vadd.f32 %v256_v22, %v186_v51 }
  0xee   :  { %v227_v54 = vadd.f32 %v256_v22, %v226_v52  ;;  %243 = vst.msk [vmem:[%s503_s3 + $0x38] sm:$0xff] %vm235_vm1, %v192_v49 }
  0xef   :  { %251 = vst.msk [vmem:[%s503_s3 + $0x78] sm:$0xff] %vm235_vm1, %v232_v50  ;;  %242 = vst.msk [vmem:[%s503_s3 + $0x30] sm:$0xff] %vm235_vm1, %v187_v53 }
  0xf0   :  { %250 = vst.msk [vmem:[%s503_s3 + $0x70] sm:$0xff] %vm235_vm1, %v227_v54 }

// kernel: math_model_forward.27
= control target key start
LH: loop header
LB: loop body
LE: loop exit
PB: predicated region body
PF: predicated region fallthrough
CT: control target
= control target key end

     0   :  { %vm38_vm0 = vcmask 64512   ;;  %vm232_vm1 = vcmask 261120   ;;  %s469_s1 = inlined_call_operand.vmem [shape: f32[8,32], index: 1, kind: input, shape index: {}]   ;;  %s470_s0 = inlined_call_operand.vmem [shape: f32[128,8], index: 0, kind: input, shape index: {}]   ;;  %s471_s2 = inlined_call_operand.vmem [shape: f32[1,32], index: 2, kind: input, shape index: {}]   ;;  %s472_s3 = inlined_call_operand.vmem [shape: f32[128,32], index: 3, kind: output, shape index: {}]  }
   0x1   :  { %v30_v0 = vld [vmem:[%s469_s1] sm:$0xff]  ;;  %v15_v3 = vld [vmem:[%s470_s0 + $0x8] sm:$0xff]  ;;  %v16_v5 = vld [vmem:[%s470_s0 + $0x10] sm:$0xff] }
   0x2   :  { %v14_v1 = vld [vmem:[%s470_s0] sm:$0xff]  ;;  %287 = vmatprep.subr.mxu0 %v30_v0  ;;  %313 = vmatprep.subr.mxu1 %v30_v0  ;;  %v23_v4 = vld [vmem:[%s470_s0 + $0x48] sm:$0xff]  ;;  %v24_v6 = vld [vmem:[%s470_s0 + $0x50] sm:$0xff] }
   0x3   :  { %v22_v2 = vld [vmem:[%s470_s0 + $0x40] sm:$0xff]  ;;  %288 = vmatpush3.msra.mxu0 %v30_v0  ;;  %314 = vmatpush3.msra.mxu1 %v30_v0  ;;  %v17_v7 = vld [vmem:[%s470_s0 + $0x18] sm:$0xff]  ;;  %v19_v11 = vld [vmem:[%s470_s0 + $0x28] sm:$0xff] }
   0x4   :  { %289 = vmatprep.mubr.msk.f32.mxu0 %vm38_vm0, %v14_v1  ;;  %301 = vmatprep.mubr.msk.f32.mxu1 %vm38_vm0, %v22_v2  ;;  %v25_v8 = vld [vmem:[%s470_s0 + $0x58] sm:$0xff]  ;;  %v18_v9 = vld [vmem:[%s470_s0 + $0x20] sm:$0xff]  ;;  %v27_v12 = vld [vmem:[%s470_s0 + $0x68] sm:$0xff] }
   0x5   :  { %290 = vmatmul.mubr.msk.f32.vlgmr.msra.gmra.mrb[0].mxu0 %vm38_vm0, %v15_v3  ;;  %302 = vmatmul.mubr.msk.f32.vlgmr.msra.gmra.mrb[0].mxu1 %vm38_vm0, %v23_v4  ;;  %v26_v10 = vld [vmem:[%s470_s0 + $0x60] sm:$0xff]  ;;  %v20_v13 = vld [vmem:[%s470_s0 + $0x30] sm:$0xff]  ;;  %v21_v15 = vld [vmem:[%s470_s0 + $0x38] sm:$0xff] }
   0x6   :  { %292 = vmatprep.mubr.msk.f32.mxu0 %vm38_vm0, %v16_v5  ;;  %304 = vmatprep.mubr.msk.f32.mxu1 %vm38_vm0, %v24_v6  ;;  %v28_v14 = vld [vmem:[%s470_s0 + $0x70] sm:$0xff]  ;;  %v29_v16 = vld [vmem:[%s470_s0 + $0x78] sm:$0xff]  ;;  %v253_v17 = vld [vmem:[%s471_s2] ss:$0 sm:$0xff] }
   0x9   :  { %293 = vmatmul.mubr.msk.f32.gmra.mrb[2].mxu0 %vm38_vm0, %v17_v7  ;;  %305 = vmatmul.mubr.msk.f32.gmra.mrb[2].mxu1 %vm38_vm0, %v25_v8 }
   0xa   :  { %295 = vmatprep.mubr.msk.f32.mxu0 %vm38_vm0, %v18_v9  ;;  %307 = vmatprep.mubr.msk.f32.mxu1 %vm38_vm0, %v26_v10 }
   0xd   :  { %296 = vmatmul.mubr.msk.f32.gmra.mrb[4].mxu0 %vm38_vm0, %v19_v11  ;;  %308 = vmatmul.mubr.msk.f32.gmra.mrb[4].mxu1 %vm38_vm0, %v27_v12 }
   0xe   :  { %298 = vmatprep.mubr.msk.f32.mxu0 %vm38_vm0, %v20_v13  ;;  %310 = vmatprep.mubr.msk.f32.mxu1 %vm38_vm0, %v28_v14 }
  0x11   :  { %299 = vmatmul.mubr.msk.f32.gmra.mrb[6].mxu0 %vm38_vm0, %v21_v15  ;;  %311 = vmatmul.mubr.msk.f32.gmra.mrb[6].mxu1 %vm38_vm0, %v29_v16 }
  0xd8   :  { %v291_v18 = vpop.f32.mrb[0].mxu0  ;;  %v303_v19 = vpop.f32.mrb[0].mxu1 }
  0xd9   :  { %v159_v20 = vadd.f32 %v291_v18, %v253_v17  ;;  %v199_v21 = vadd.f32 %v303_v19, %v253_v17  ;;  %v153_v22 = vpop.f32.mrb[1].mxu0  ;;  %v193_v23 = vpop.f32.mrb[1].mxu1 }
  0xda   :  { %v154_v24 = vadd.f32 %v253_v17, %v153_v22  ;;  %v194_v25 = vadd.f32 %v253_v17, %v193_v23 }
  0xdb   :  { %234 = vst.msk [vmem:[%s472_s3 + $0x8] sm:$0xff] %vm232_vm1, %v159_v20  ;;  %242 = vst.msk [vmem:[%s472_s3 + $0x48] sm:$0xff] %vm232_vm1, %v199_v21 }
  0xdc   :  { %233 = vst.msk [vmem:[%s472_s3] sm:$0xff] %vm232_vm1, %v154_v24  ;;  %241 = vst.msk [vmem:[%s472_s3 + $0x40] sm:$0xff] %vm232_vm1, %v194_v25  ;;  %v294_v26 = vpop.f32.mrb[2].mxu0  ;;  %v306_v27 = vpop.f32.mrb[2].mxu1 }
  0xdd   :  { %v169_v28 = vadd.f32 %v294_v26, %v253_v17  ;;  %v209_v29 = vadd.f32 %v306_v27, %v253_v17  ;;  %v163_v30 = vpop.f32.mrb[3].mxu0  ;;  %v203_v31 = vpop.f32.mrb[3].mxu1 }
  0xde   :  { %v164_v32 = vadd.f32 %v253_v17, %v163_v30  ;;  %v204_v33 = vadd.f32 %v253_v17, %v203_v31 }
  0xdf   :  { %236 = vst.msk [vmem:[%s472_s3 + $0x18] sm:$0xff] %vm232_vm1, %v169_v28  ;;  %244 = vst.msk [vmem:[%s472_s3 + $0x58] sm:$0xff] %vm232_vm1, %v209_v29 }
  0xe0   :  { %235 = vst.msk [vmem:[%s472_s3 + $0x10] sm:$0xff] %vm232_vm1, %v164_v32  ;;  %243 = vst.msk [vmem:[%s472_s3 + $0x50] sm:$0xff] %vm232_vm1, %v204_v33  ;;  %v297_v34 = vpop.f32.mrb[4].mxu0  ;;  %v309_v35 = vpop.f32.mrb[4].mxu1 }
  0xe1   :  { %v179_v36 = vadd.f32 %v297_v34, %v253_v17  ;;  %v219_v37 = vadd.f32 %v309_v35, %v253_v17  ;;  %v173_v38 = vpop.f32.mrb[5].mxu0  ;;  %v213_v39 = vpop.f32.mrb[5].mxu1 }
  0xe2   :  { %v174_v40 = vadd.f32 %v253_v17, %v173_v38  ;;  %v214_v41 = vadd.f32 %v253_v17, %v213_v39 }
  0xe3   :  { %238 = vst.msk [vmem:[%s472_s3 + $0x28] sm:$0xff] %vm232_vm1, %v179_v36  ;;  %246 = vst.msk [vmem:[%s472_s3 + $0x68] sm:$0xff] %vm232_vm1, %v219_v37 }
  0xe4   :  { %237 = vst.msk [vmem:[%s472_s3 + $0x20] sm:$0xff] %vm232_vm1, %v174_v40  ;;  %245 = vst.msk [vmem:[%s472_s3 + $0x60] sm:$0xff] %vm232_vm1, %v214_v41  ;;  %v300_v42 = vpop.f32.mrb[6].mxu0  ;;  %v312_v43 = vpop.f32.mrb[6].mxu1 }
  0xe5   :  { %v189_v44 = vadd.f32 %v300_v42, %v253_v17  ;;  %v229_v45 = vadd.f32 %v312_v43, %v253_v17  ;;  %v183_v46 = vpop.f32.mrb[7].mxu0  ;;  %v223_v47 = vpop.f32.mrb[7].mxu1 }
  0xe6   :  { %v184_v48 = vadd.f32 %v253_v17, %v183_v46  ;;  %v224_v49 = vadd.f32 %v253_v17, %v223_v47 }
  0xe7   :  { %240 = vst.msk [vmem:[%s472_s3 + $0x38] sm:$0xff] %vm232_vm1, %v189_v44  ;;  %248 = vst.msk [vmem:[%s472_s3 + $0x78] sm:$0xff] %vm232_vm1, %v229_v45 }
  0xe8   :  { %239 = vst.msk [vmem:[%s472_s3 + $0x30] sm:$0xff] %vm232_vm1, %v184_v48  ;;  %247 = vst.msk [vmem:[%s472_s3 + $0x70] sm:$0xff] %vm232_vm1, %v224_v49 }

// kernel: math_model_forward.28
= control target key start
LH: loop header
LB: loop body
LE: loop exit
PB: predicated region body
PF: predicated region fallthrough
CT: control target
= control target key end

     0   :  { %s994_s21 = smov 0   ;;  %s1176_s0 = inlined_call_operand.vmem [shape: f32[128,32], index: 0, kind: input, shape index: {}]   ;;  %s1177_s1 = inlined_call_operand.vmem [shape: f32[2,32,32], index: 1, kind: input, shape index: {}]   ;;  %s1178_s2 = inlined_call_operand.vmem [shape: f32[1,32], index: 2, kind: input, shape index: {}]   ;;  %s1179_s3 = inlined_call_operand.vmem [shape: f32[128,32], index: 3, kind: output, shape index: {0}]   ;;  %s1180_s4 = inlined_call_operand.vmem [shape: f32[128,32], index: 4, kind: output, shape index: {1}]   ;;  %s1181_s5 = inlined_call_operand.vmem [shape: f32[128,1], index: 5, kind: output, shape index: {2}]   ;;  %s1182_s6 = inlined_call_operand.vmem [shape: f32[128,1], index: 6, kind: output, shape index: {3}]  }
   0x1 LB: > { %s825_s22 = sadd.s32 4294967295, %s957_s21   ;;  %p829_p0 = scmp.ge.s32.totalorder %s957_s21, 1  ;;  %s957_s21 = sphi %s994_s21, %s17_s21  }
   0x2   : > { %p220_p1 = scmp.lt.s32.totalorder %s957_s21, 3 }
   0x4   : > { %p221_p2 = pnand %p829_p0, %p220_p1 }
   0x5   : > { %v304_v0 = vld [vmem:[%s1177_s1] sm:$0xff] (!%p221_p2)  ;;  %v305_v1 = vld [vmem:[%s1177_s1 + $0x8] sm:$0xff] (!%p221_p2)  ;;  %s830_s29 = sshll.u32 (!%p221_p2), %s825_s22, 3  ;;  %v306_v5 = vld [vmem:[%s1177_s1 + $0x10] sm:$0xff] (!%p221_p2)  ;;  %vm308_vm0 = vcmask (!%p221_p2), 261120   ;;  %vm610_vm1 = vcmask (!%p221_p2), 7168  }
   0x6   : > { %224 = sbr.rel (%p221_p2) target bundleno = 406 (0x196), region = 32  ;;  %v848_v2 = vld [vmem:[%s1177_s1 + $0x20] sm:$0xff] (!%p221_p2)  ;;  %v927_v3 = vpack.c.bf16 (!%p221_p2), %v305_v1, %v304_v0  ;;  %v849_v4 = vld [vmem:[%s1177_s1 + $0x28] sm:$0xff] (!%p221_p2)  ;;  %v307_v6 = vld [vmem:[%s1177_s1 + $0x18] sm:$0xff] (!%p221_p2)  ;;  %p266_p3 = scmp.lt.s32.totalorder (!%p221_p2), %s830_s29, 15 }
   0x7   : > { %v935_v7 = vpack.c.bf16 (!%p221_p2), %v849_v4, %v848_v2  ;;  %v931_v8 = vpack.c.bf16 (!%p221_p2), %v307_v6, %v306_v5  ;;  %v850_v9 = vld [vmem:[%s1177_s1 + $0x30] sm:$0xff] (!%p221_p2)  ;;  %v851_v10 = vld [vmem:[%s1177_s1 + $0x38] sm:$0xff] (!%p221_p2)  ;;  %v1057_v20 = vld [vmem:[%s1178_s2] ss:$0 sm:$0xff] (!%p221_p2) }
   0x8   : > { %928 = vmatprep.subr.bf16.mxu0 (!%p221_p2), %v927_v3  ;;  %v939_v11 = vpack.c.bf16 (!%p221_p2), %v851_v10, %v850_v9 }
   0x9   : > { %936 = vmatprep.subr.bf16.mxu1 (!%p221_p2), %v935_v7  ;;  %930 = vmatpush3.bf16.msra.mxu0 (!%p221_p2), %v927_v3 }
   0xa   : > { %938 = vmatpush3.bf16.msra.mxu1 (!%p221_p2), %v935_v7  ;;  %932 = vmatprep.subr.bf16.mxu0 (!%p221_p2), %v931_v8 }
   0xb   : > { %940 = vmatprep.subr.bf16.mxu1 (!%p221_p2), %v939_v11 }
   0xd   : > { %s1184_s29 = smov (!%p266_p3, %s830_s29), 15  ;;  %934 = vmatpush3.bf16.msra.mxu0 %v931_v8 }
   0xe   : > { %s1026_s16 = sshll.u32 %s1184_s29, 3  ;;  %942 = vmatpush3.bf16.msra.mxu1 %v939_v11 }
   0xf   : > { %s269_s19 = scalar_lea.vmem %s1176_s0, %s1026_s16  ;;  %s1052_s23 = scalar_lea.vmem %s1179_s3, %s1026_s16 }
  0x10   : > { %v295_v12 = vld [vmem:[%s269_s19] sm:$0xff]  ;;  %v296_v13 = vld [vmem:[%s269_s19 + $0x8] sm:$0xff]  ;;  %v297_v14 = vld [vmem:[%s269_s19 + $0x10] sm:$0xff]  ;;  %s1063_s28 = scalar_lea.vmem %s1180_s4, %s1026_s16  ;;  %s1133_s7 = scalar_lea.vmem %s1181_s5, %s1026_s16 }
  0x11   : > { %895 = vmatprep.mubr.msk.f32.mxu0 %vm308_vm0, %v295_v12  ;;  %915 = vmatprep.mubr.msk.f32.mxu1 %vm308_vm0, %v295_v12  ;;  %v298_v15 = vld [vmem:[%s269_s19 + $0x18] sm:$0xff]  ;;  %v299_v16 = vld [vmem:[%s269_s19 + $0x20] sm:$0xff]  ;;  %v300_v17 = vld [vmem:[%s269_s19 + $0x28] sm:$0xff]  ;;  %s1139_s10 = scalar_lea.vmem %s1182_s6, %s1026_s16 }
  0x12   : > { %896 = vmatmul.mubr.msk.f32.vlgmr.msra.gmra.mrb[0].mxu0 %vm308_vm0, %v296_v13  ;;  %916 = vmatmul.mubr.msk.f32.vlgmr.msra.gmra.mrb[0].mxu1 %vm308_vm0, %v296_v13  ;;  %v301_v18 = vld [vmem:[%s269_s19 + $0x30] sm:$0xff]  ;;  %v302_v19 = vld [vmem:[%s269_s19 + $0x38] sm:$0xff] }
  0x13   : > { %898 = vmatprep.mubr.msk.f32.mxu0 %vm308_vm0, %v297_v14  ;;  %918 = vmatprep.mubr.msk.f32.mxu1 %vm308_vm0, %v297_v14 }
  0x16   : > { %899 = vmatmul.mubr.msk.f32.gmra.mrb[2].mxu0 %vm308_vm0, %v298_v15  ;;  %919 = vmatmul.mubr.msk.f32.gmra.mrb[2].mxu1 %vm308_vm0, %v298_v15 }
  0x17   : > { %901 = vmatprep.mubr.msk.f32.mxu0 %vm308_vm0, %v299_v16  ;;  %921 = vmatprep.mubr.msk.f32.mxu1 %vm308_vm0, %v299_v16 }
  0x1a   : > { %902 = vmatmul.mubr.msk.f32.gmra.mrb[4].mxu0 %vm308_vm0, %v300_v17  ;;  %922 = vmatmul.mubr.msk.f32.gmra.mrb[4].mxu1 %vm308_vm0, %v300_v17 }
  0x1b   : > { %904 = vmatprep.mubr.msk.f32.mxu0 %vm308_vm0, %v301_v18  ;;  %924 = vmatprep.mubr.msk.f32.mxu1 %vm308_vm0, %v301_v18 }
  0x1e   : > { %905 = vmatmul.mubr.msk.f32.gmra.mrb[6].mxu0 %vm308_vm0, %v302_v19  ;;  %925 = vmatmul.mubr.msk.f32.gmra.mrb[6].mxu1 %vm308_vm0, %v302_v19 }
  0xe5   : > { %v897_v21 = vpop.f32.mrb[0].mxu0  ;;  %v917_v22 = vpop.f32.mrb[0].mxu1 }
  0xe6   : > { %549 = vst.msk [vmem:[%s1052_s23 + $0x8] sm:$0xff] %vm308_vm0, %v897_v21  ;;  %v399_v23 = vpop.f32.mrb[1].mxu0  ;;  %v571_v24 = vmul.f32 %v897_v21, %v1057_v20  ;;  %557 = vst.msk [vmem:[%s1063_s28 + $0x8] sm:$0xff] %vm308_vm0, %v917_v22  ;;  %v509_v25 = vpop.f32.mrb[1].mxu1  ;;  %v620_v26 = vmul.f32 %v917_v22, %v1057_v20 }
  0xe7   : > { %548 = vst.msk [vmem:[%s1052_s23] sm:$0xff] %vm308_vm0, %v399_v23  ;;  %v570_v27 = vmul.f32 %v1057_v20, %v399_v23  ;;  %556 = vst.msk [vmem:[%s1063_s28] sm:$0xff] %vm308_vm0, %v509_v25  ;;  %v619_v36 = vmul.f32 %v1057_v20, %v509_v25 }
  0xe8   : > { %v581_v28 = vsel %vm308_vm0, %v571_v24, 0.0  ;;  %v630_v29 = vsel %vm308_vm0, %v620_v26, 0.0 }
  0xe9   : > { %582 = vadd.xlane.f32.xlu0 %v581_v28  ;;  %v900_v30 = vpop.f32.mrb[2].mxu0  ;;  %631 = vadd.xlane.f32.xlu1 %v630_v29  ;;  %v920_v33 = vpop.f32.mrb[2].mxu1  ;;  %v578_v37 = vsel %vm308_vm0, %v570_v27, 0.0  ;;  %v627_v45 = vsel %vm308_vm0, %v619_v36, 0.0 }
  0xea   : > { %551 = vst.msk [vmem:[%s1052_s23 + $0x18] sm:$0xff] %vm308_vm0, %v900_v30  ;;  %v573_v31 = vmul.f32 %v900_v30, %v1057_v20  ;;  %v409_v32 = vpop.f32.mrb[3].mxu0  ;;  %559 = vst.msk [vmem:[%s1063_s28 + $0x18] sm:$0xff] %vm308_vm0, %v920_v33  ;;  %v622_v34 = vmul.f32 %v920_v33, %v1057_v20  ;;  %v519_v35 = vpop.f32.mrb[3].mxu1 }
  0xeb   : > { %550 = vst.msk [vmem:[%s1052_s23 + $0x10] sm:$0xff] %vm308_vm0, %v409_v32  ;;  %558 = vst.msk [vmem:[%s1063_s28 + $0x10] sm:$0xff] %vm308_vm0, %v519_v35  ;;  %v621_v44 = vmul.f32 %v1057_v20, %v519_v35  ;;  %v572_v46 = vmul.f32 %v1057_v20, %v409_v32 }
  0xec   : > { %v587_v38 = vsel %vm308_vm0, %v573_v31, 0.0  ;;  %v636_v42 = vsel %vm308_vm0, %v622_v34, 0.0 }
  0xed   : > { %579 = vadd.xlane.f32.xlu0 %v578_v37  ;;  %v903_v39 = vpop.f32.mrb[4].mxu0  ;;  %588 = vadd.xlane.f32.xlu1 %v587_v38  ;;  %v923_v41 = vpop.f32.mrb[4].mxu1  ;;  %v633_v53 = vsel %vm308_vm0, %v621_v44, 0.0  ;;  %v584_v54 = vsel %vm308_vm0, %v572_v46, 0.0 }
  0xee   : > { %553 = vst.msk [vmem:[%s1052_s23 + $0x28] sm:$0xff] %vm308_vm0, %v903_v39  ;;  %v419_v40 = vpop.f32.mrb[5].mxu0  ;;  %561 = vst.msk [vmem:[%s1063_s28 + $0x28] sm:$0xff] %vm308_vm0, %v923_v41  ;;  %v529_v43 = vpop.f32.mrb[5].mxu1  ;;  %v575_v51 = vmul.f32 %v903_v39, %v1057_v20  ;;  %v624_v57 = vmul.f32 %v923_v41, %v1057_v20 }
  0xef   : > { %552 = vst.msk [vmem:[%s1052_s23 + $0x20] sm:$0xff] %vm308_vm0, %v419_v40  ;;  %560 = vst.msk [vmem:[%s1063_s28 + $0x20] sm:$0xff] %vm308_vm0, %v529_v43  ;;  %v574_v48 = vmul.f32 %v1057_v20, %v419_v40  ;;  %v623_v55 = vmul.f32 %v1057_v20, %v529_v43 }
  0xf0   : > { %v593_v58 = vsel %vm308_vm0, %v575_v51, 0.0  ;;  %v642_v62 = vsel %vm308_vm0, %v624_v57, 0.0 }
  0xf1   : > { %628 = vadd.xlane.f32.xlu0 %v627_v45  ;;  %v906_v47 = vpop.f32.mrb[6].mxu0  ;;  %637 = vadd.xlane.f32.xlu1 %v636_v42  ;;  %v926_v50 = vpop.f32.mrb[6].mxu1  ;;  %v590_v56 = vsel %vm308_vm0, %v574_v48, 0.0  ;;  %v639_v60 = vsel %vm308_vm0, %v623_v55, 0.0 }
  0xf2   : > { %555 = vst.msk [vmem:[%s1052_s23 + $0x38] sm:$0xff] %vm308_vm0, %v906_v47  ;;  %v429_v49 = vpop.f32.mrb[7].mxu0  ;;  %563 = vst.msk [vmem:[%s1063_s28 + $0x38] sm:$0xff] %vm308_vm0, %v926_v50  ;;  %v539_v52 = vpop.f32.mrb[7].mxu1  ;;  %v577_v61 = vmul.f32 %v906_v47, %v1057_v20  ;;  %v626_v1 = vmul.f32 %v926_v50, %v1057_v20 }
  0xf3   : > { %554 = vst.msk [vmem:[%s1052_s23 + $0x30] sm:$0xff] %vm308_vm0, %v429_v49  ;;  %562 = vst.msk [vmem:[%s1063_s28 + $0x30] sm:$0xff] %vm308_vm0, %v539_v52  ;;  %v576_v59 = vmul.f32 %v1057_v20, %v429_v49  ;;  %v625_v63 = vmul.f32 %v1057_v20, %v539_v52 }
  0xf4   : > { %v599_v2 = vsel %vm308_vm0, %v577_v61, 0.0  ;;  %v648_v4 = vsel %vm308_vm0, %v626_v1, 0.0 }
  0xf5   : > { %634 = vadd.xlane.f32.xlu0 %v633_v53  ;;  %585 = vadd.xlane.f32.xlu1 %v584_v54  ;;  %v596_v0 = vsel %vm308_vm0, %v576_v59, 0.0  ;;  %v645_v3 = vsel %vm308_vm0, %v625_v63, 0.0 }
  0xf9   : > { %591 = vadd.xlane.f32.xlu0 %v590_v56  ;;  %594 = vadd.xlane.f32.xlu1 %v593_v58 }
  0xfd   : > { %640 = vadd.xlane.f32.xlu0 %v639_v60  ;;  %643 = vadd.xlane.f32.xlu1 %v642_v62 }
 0x101   : > { %597 = vadd.xlane.f32.xlu0 %v596_v0  ;;  %600 = vadd.xlane.f32.xlu1 %v599_v2 }
 0x105   : > { %646 = vadd.xlane.f32.xlu0 %v645_v3  ;;  %649 = vadd.xlane.f32.xlu1 %v648_v4 }
 0x176   : > { %v583_v5 = vpop.xlane.xlu0 %582  ;;  %v632_v6 = vpop.xlane.xlu1 %631 }
 0x177   : > { %v603_v7 = vmul.f32 0.2, %v583_v5  ;;  %v652_v8 = vmul.f32 0.2, %v632_v6 }
 0x179   : > { %612 = vst.msk [vmem:[%s1133_s7 + $0x8] sm:$0xff] %vm610_vm1, %v603_v7  ;;  %660 = vst.msk [vmem:[%s1139_s10 + $0x8] sm:$0xff] %vm610_vm1, %v652_v8 }
 0x17a   : > { %v580_v9 = vpop.xlane.xlu0 %579  ;;  %v589_v11 = vpop.xlane.xlu1 %588 }
 0x17b   : > { %v602_v10 = vmul.f32 0.2, %v580_v9  ;;  %v605_v12 = vmul.f32 0.2, %v589_v11 }
 0x17d   : > { %611 = vst.msk [vmem:[%s1133_s7] sm:$0xff] %vm610_vm1, %v602_v10  ;;  %614 = vst.msk [vmem:[%s1133_s7 + $0x18] sm:$0xff] %vm610_vm1, %v605_v12 }
 0x17e   : > { %v629_v13 = vpop.xlane.xlu0 %628  ;;  %v638_v15 = vpop.xlane.xlu1 %637 }
 0x17f   : > { %v651_v14 = vmul.f32 0.2, %v629_v13  ;;  %v654_v16 = vmul.f32 0.2, %v638_v15 }
 0x181   : > { %659 = vst.msk [vmem:[%s1139_s10] sm:$0xff] %vm610_vm1, %v651_v14  ;;  %662 = vst.msk [vmem:[%s1139_s10 + $0x18] sm:$0xff] %vm610_vm1, %v654_v16 }
 0x182   : > { %v635_v17 = vpop.xlane.xlu0 %634  ;;  %v586_v19 = vpop.xlane.xlu1 %585 }
 0x183   : > { %v653_v18 = vmul.f32 0.2, %v635_v17  ;;  %v604_v20 = vmul.f32 0.2, %v586_v19 }
 0x185   : > { %661 = vst.msk [vmem:[%s1139_s10 + $0x10] sm:$0xff] %vm610_vm1, %v653_v18  ;;  %613 = vst.msk [vmem:[%s1133_s7 + $0x10] sm:$0xff] %vm610_vm1, %v604_v20 }
 0x186   : > { %v592_v21 = vpop.xlane.xlu0 %591  ;;  %v595_v22 = vpop.xlane.xlu1 %594 }
 0x187   : > { %v606_v23 = vmul.f32 0.2, %v592_v21  ;;  %v607_v24 = vmul.f32 0.2, %v595_v22 }
 0x189   : > { %615 = vst.msk [vmem:[%s1133_s7 + $0x20] sm:$0xff] %vm610_vm1, %v606_v23  ;;  %616 = vst.msk [vmem:[%s1133_s7 + $0x28] sm:$0xff] %vm610_vm1, %v607_v24 }
 0x18a   : > { %v641_v25 = vpop.xlane.xlu0 %640  ;;  %v644_v26 = vpop.xlane.xlu1 %643 }
 0x18b   : > { %v655_v27 = vmul.f32 0.2, %v641_v25  ;;  %v656_v28 = vmul.f32 0.2, %v644_v26 }
 0x18d   : > { %663 = vst.msk [vmem:[%s1139_s10 + $0x20] sm:$0xff] %vm610_vm1, %v655_v27  ;;  %664 = vst.msk [vmem:[%s1139_s10 + $0x28] sm:$0xff] %vm610_vm1, %v656_v28 }
 0x18e   : > { %v598_v29 = vpop.xlane.xlu0 %597  ;;  %v601_v30 = vpop.xlane.xlu1 %600 }
 0x18f   : > { %v608_v31 = vmul.f32 0.2, %v598_v29  ;;  %v609_v32 = vmul.f32 0.2, %v601_v30 }
 0x191   : > { %617 = vst.msk [vmem:[%s1133_s7 + $0x30] sm:$0xff] %vm610_vm1, %v608_v31  ;;  %618 = vst.msk [vmem:[%s1133_s7 + $0x38] sm:$0xff] %vm610_vm1, %v609_v32 }
 0x192   : > { %v647_v33 = vpop.xlane.xlu0 %646  ;;  %v650_v34 = vpop.xlane.xlu1 %649 }
 0x193   : > { %v657_v35 = vmul.f32 0.2, %v647_v33  ;;  %v658_v36 = vmul.f32 0.2, %v650_v34 }
 0x195   : > { %665 = vst.msk [vmem:[%s1139_s10 + $0x30] sm:$0xff] %vm610_vm1, %v657_v35  ;;  %666 = vst.msk [vmem:[%s1139_s10 + $0x38] sm:$0xff] %vm610_vm1, %v658_v36 }
 0x196 PF: > { %s17_s21 = sadd.s32 1, %s957_s21  }
 0x197   : > { %p14_p4 = scmp.ge.s32.totalorder %s17_s21, 4  }
 0x199   :  { %16 = sbr.rel (!%p14_p4) target bundleno = 1 (0x1), region = 99 }

// kernel: math_model_forward.36
= control target key start
LH: loop header
LB: loop body
LE: loop exit
PB: predicated region body
PF: predicated region fallthrough
CT: control target
= control target key end

     0   :  { %s759_s15 = smov 0   ;;  %s884_s0 = inlined_call_operand.vmem [shape: f32[128,1], index: 0, kind: input, shape index: {}]   ;;  %s885_s1 = inlined_call_operand.vmem [shape: f32[1,128], index: 1, kind: input, shape index: {}]   ;;  %s886_s2 = inlined_call_operand.vmem [shape: bf16[128,128], index: 2, kind: input, shape index: {}]   ;;  %s887_s3 = inlined_call_operand.vmem [shape: f32[1,2], index: 3, kind: input, shape index: {}]   ;;  %s888_s4 = inlined_call_operand.vmem [shape: f32[128,1], index: 4, kind: output, shape index: {}]  }
   0x1 LB: > { %s630_s16 = sadd.s32 4294967295, %s730_s15   ;;  %p634_p0 = scmp.ge.s32.totalorder %s730_s15, 1  ;;  %s730_s15 = sphi %s759_s15, %s14_s15  }
   0x2   : > { %p174_p1 = scmp.lt.s32.totalorder %s730_s15, 3 }
   0x4   : > { %p175_p2 = pnand %p634_p0, %p174_p1 }
   0x5   : > { %s635_s17 = sshll.u32 (!%p175_p2), %s630_s16, 3  ;;  %v732_v0 = vmov (!%p175_p2), 0   ;;  %v778_v9 = vld [vmem:[%s887_s3] ss:$0 sm:$0xff] (!%p175_p2)  ;;  %s733_s30 = smov (!%p175_p2), 127  }
   0x6   : > { %178 = sbr.rel (%p175_p2) target bundleno = 769 (0x301), region = 36  ;;  %675 = vset.pattern.permute.xlu1 (!%p175_p2), %v732_v0  ;;  %674 = vset.pattern.permute.xlu0 (!%p175_p2), %v732_v0  ;;  %p206_p3 = scmp.lt.s32.totalorder (!%p175_p2), %s635_s17, 15  ;;  %v784_v10 = vld [vmem:[%s885_s1] ss:$0 sm:$0xff] (!%p175_p2) }
   0xd   : > { %s890_s17 = smov (!%p206_p3, %s635_s17), 15 }
   0xe   : > { %s636_s18 = sshll.u32 %s890_s17, 3  ;;  %s638_s26 = sshll.u32 %s890_s17, 2 }
   0xf   : > { %s209_s21 = scalar_lea.vmem %s884_s0, %s636_s18  ;;  %s792_s29 = scalar_lea.vmem %s886_s2, %s638_s26 }
  0x10   : > { %v225_v1 = vld [vmem:[%s209_s21 + $0x10] sm:$0xff]  ;;  %v223_v2 = vld [vmem:[%s209_s21] sm:$0xff]  ;;  %v226_v3 = vld [vmem:[%s209_s21 + $0x18] sm:$0xff]  ;;  %s221_s7 = scalar_lea.vmem %s888_s4, %s636_s18 }
  0x11   : > { %244 = vperm.xlu1 %675, %v225_v1   ;;  %234 = vperm.xlu0 %674, %v223_v2   ;;  %v224_v4 = vld [vmem:[%s209_s21 + $0x8] sm:$0xff]  ;;  %v227_v6 = vld [vmem:[%s209_s21 + $0x20] sm:$0xff]  ;;  %v230_v7 = vld [vmem:[%s209_s21 + $0x38] sm:$0xff] }
  0x12   : > { %v228_v5 = vld [vmem:[%s209_s21 + $0x28] sm:$0xff]  ;;  %v229_v8 = vld [vmem:[%s209_s21 + $0x30] sm:$0xff]  ;;  %v797_v21 = vld [vmem:[%s792_s29] sm:$0xff]  }
  0x13   : > { %v648_v29 = vunpack.c.h.bf16 %v797_v21  ;;  %v803_v30 = vld [vmem:[%s792_s29 + $0x8] sm:$0xff]   ;;  %v647_v40 = vunpack.c.l.bf16 %v797_v21  ;;  %v815_v60 = vld [vmem:[%s792_s29 + $0x10] sm:$0xff]  }
  0x14   : > { %v651_v47 = vunpack.c.l.bf16 %v803_v30  ;;  %v652_v48 = vunpack.c.h.bf16 %v803_v30 }
  0x15   : > { %249 = vperm.xlu1 %675, %v226_v3   ;;  %239 = vperm.xlu0 %674, %v224_v4   ;;  %vm353_vm0 = vcmp.gt.f32.partialorder %v648_v29, 0.0  ;;  %vm352_vm1 = vcmp.gt.f32.partialorder %v647_v40, 0.0 }
  0x16   : > { %vm354_vm2 = vcmp.gt.f32.partialorder %v651_v47, 0.0  ;;  %vm355_vm3 = vcmp.gt.f32.partialorder %v652_v48, 0.0 }
  0x19   : > { %259 = vperm.xlu1 %675, %v228_v5   ;;  %254 = vperm.xlu0 %674, %v227_v6   ;;  %v655_v5 = vunpack.c.l.bf16 %v815_v60  ;;  %v656_v6 = vunpack.c.h.bf16 %v815_v60 }
  0x1b   : > { %vm356_vm4 = vcmp.gt.f32.partialorder %v655_v5, 0.0  ;;  %vm357_vm5 = vcmp.gt.f32.partialorder %v656_v6, 0.0 }
  0x1d   : > { %269 = vperm.xlu1 %675, %v230_v7   ;;  %264 = vperm.xlu0 %674, %v229_v8  }
  0x21   : > { %325 = vperm.xlu0 %674, %v778_v9  }
  0x90   : > { %v245_v11 = vpop.permute.xlu1 %244  ;;  %v235_v12 = vpop.permute.xlu0 %234 }
  0x91   : > { %v278_v13 = vadd.f32 %v784_v10, %v235_v12  ;;  %v280_v14 = vadd.f32 %v784_v10, %v245_v11  ;;  %v824_v11 = vld [vmem:[%s792_s29 + $0x18] sm:$0xff]  }
  0x93   : > { %v294_v19 = vmax.f32 %v278_v13, 0.0  ;;  %v296_v22 = vmax.f32 %v280_v14, 0.0  ;;  %v288_v28 = vmul.f32 0.2, %v280_v14  ;;  %v286_v36 = vmul.f32 0.2, %v278_v13 }
  0x94   : > { %v250_v15 = vpop.permute.xlu1 %249  ;;  %v240_v16 = vpop.permute.xlu0 %239 }
  0x95   : > { %v281_v17 = vadd.f32 %v784_v10, %v250_v15  ;;  %v279_v18 = vadd.f32 %v784_v10, %v240_v16  ;;  %v302_v31 = vmul.f32 0.8, %v294_v19  ;;  %v304_v35 = vmul.f32 0.8, %v296_v22 }
  0x96   : > { %v660_v19 = vunpack.c.h.bf16 %v824_v11 }
  0x97   : > { %v295_v20 = vmax.f32 %v279_v18, 0.0  ;;  %v297_v25 = vmax.f32 %v281_v17, 0.0  ;;  %v289_v37 = vmul.f32 0.2, %v281_v17  ;;  %v287_v42 = vmul.f32 0.2, %v279_v18 }
  0x98   : > { %v260_v23 = vpop.permute.xlu1 %259  ;;  %v255_v24 = vpop.permute.xlu0 %254  ;;  %v310_v52 = vadd.f32 %v302_v31, %v286_v36  ;;  %v312_v58 = vadd.f32 %v304_v35, %v288_v28  ;;  %v659_v18 = vunpack.c.l.bf16 %v824_v11  ;;  %vm359_vm7 = vcmp.gt.f32.partialorder %v660_v19, 0.0 }
  0x99   : > { %v283_v26 = vadd.f32 %v784_v10, %v260_v23  ;;  %v282_v27 = vadd.f32 %v784_v10, %v255_v24  ;;  %v303_v32 = vmul.f32 0.8, %v295_v20  ;;  %v305_v41 = vmul.f32 0.8, %v297_v25 }
  0x9a   : > { %vm358_vm6 = vcmp.gt.f32.partialorder %v659_v18, 0.0 }
  0x9b   : > { %v299_v33 = vmax.f32 %v283_v26, 0.0  ;;  %v298_v34 = vmax.f32 %v282_v27, 0.0  ;;  %v311_v51 = vadd.f32 %v303_v32, %v287_v42  ;;  %v291_v53 = vmul.f32 0.2, %v283_v26 }
  0x9c   : > { %v270_v38 = vpop.permute.xlu1 %269  ;;  %v265_v39 = vpop.permute.xlu0 %264  ;;  %v290_v54 = vmul.f32 0.2, %v282_v27  ;;  %v313_v59 = vadd.f32 %v305_v41, %v289_v37 }
  0x9d   : > { %v285_v43 = vadd.f32 %v784_v10, %v270_v38  ;;  %v284_v44 = vadd.f32 %v784_v10, %v265_v39  ;;  %v307_v45 = vmul.f32 0.8, %v299_v33  ;;  %v306_v46 = vmul.f32 0.8, %v298_v34 }
  0x9f   : > { %v301_v49 = vmax.f32 %v285_v43, 0.0  ;;  %v300_v50 = vmax.f32 %v284_v44, 0.0  ;;  %v314_v63 = vadd.f32 %v306_v46, %v290_v54  ;;  %v315_v0 = vadd.f32 %v307_v45, %v291_v53 }
  0xa0   : > { %v326_v55 = vpop.permute.xlu0 %325  ;;  %v293_v7 = vmul.f32 0.2, %v285_v43  ;;  %v292_v8 = vmul.f32 0.2, %v284_v44 }
  0xa1   : > { %v329_v56 = vmul.f32 %v326_v55, %v311_v51  ;;  %v328_v57 = vmul.f32 %v326_v55, %v310_v52  ;;  %v309_v61 = vmul.f32 0.8, %v301_v49  ;;  %v308_v62 = vmul.f32 0.8, %v300_v50 }
  0xa2   : > { %v330_v3 = vmul.f32 %v326_v55, %v312_v58  ;;  %v331_v4 = vmul.f32 %v326_v55, %v313_v59  ;;  %v332_v12 = vmul.f32 %v326_v55, %v314_v63  ;;  %v333_v13 = vmul.f32 %v326_v55, %v315_v0 }
  0xa3   : > { %v361_v1 = vsel %vm353_vm0, %v329_v56, -1e+30  ;;  %v360_v2 = vsel %vm352_vm1, %v328_v57, -1e+30  ;;  %v316_v16 = vadd.f32 %v308_v62, %v292_v8  ;;  %v317_v17 = vadd.f32 %v309_v61, %v293_v7 }
  0xa4   : > { %370 = vmax.xlane.f32.xlu0 %v361_v1  ;;  %368 = vmax.xlane.f32.xlu1 %v360_v2  ;;  %v362_v14 = vsel %vm354_vm2, %v330_v3, -1e+30  ;;  %v363_v15 = vsel %vm355_vm3, %v331_v4, -1e+30  ;;  %v364_v20 = vsel %vm356_vm4, %v332_v12, -1e+30 }
  0xa5   : > { %v365_v22 = vsel %vm357_vm5, %v333_v13, -1e+30  ;;  %v334_v23 = vmul.f32 %v326_v55, %v316_v16  ;;  %v335_v24 = vmul.f32 %v326_v55, %v317_v17 }
  0xa7   : > { %v366_v25 = vsel %vm358_vm6, %v334_v23, -1e+30  ;;  %v367_v26 = vsel %vm359_vm7, %v335_v24, -1e+30 }
  0xa8   : > { %372 = vmax.xlane.f32.xlu0 %v362_v14  ;;  %374 = vmax.xlane.f32.xlu1 %v363_v15 }
  0xac   : > { %376 = vmax.xlane.f32.xlu0 %v364_v20  ;;  %378 = vmax.xlane.f32.xlu1 %v365_v22 }
  0xb0   : > { %380 = vmax.xlane.f32.xlu0 %v366_v25  ;;  %382 = vmax.xlane.f32.xlu1 %v367_v26 }
 0x131   : > { %v371_v27 = vpop.xlane.xlu0 %370  ;;  %v369_v28 = vpop.xlane.xlu1 %368 }
 0x132   : > { %vm385_vm8 = vcmp.le.f32.partialorder %v371_v27, -5e+29  ;;  %vm384_vm9 = vcmp.le.f32.partialorder %v369_v28, -5e+29 }
 0x133   : > { %v393_v31 = vsel %vm385_vm8, 0.0, %v371_v27  ;;  %v392_v32 = vsel %vm384_vm9, 0.0, %v369_v28  ;;  %vm553_vm8 = vcmask 7168  }
 0x134   : > { %v401_v33 = vsub.f32 %v361_v1, %v393_v31  ;;  %v400_v34 = vsub.f32 %v360_v2, %v392_v32 }
 0x135   : > { %v373_v35 = vpop.xlane.xlu0 %372  ;;  %v375_v36 = vpop.xlane.xlu1 %374 }
 0x136   : > { %v410_v37 = vmul.f32 1.442695, %v401_v33  ;;  %v408_v38 = vmul.f32 1.442695, %v400_v34  ;;  %vm386_vm10 = vcmp.le.f32.partialorder %v373_v35, -5e+29 }
 0x137   : > { %v394_v39 = vsel %vm386_vm10, 0.0, %v373_v35  ;;  %vm387_vm11 = vcmp.le.f32.partialorder %v375_v36, -5e+29 }
 0x138   : > { %676 = vpow2.f32 %v410_v37  ;;  %v402_v41 = vsub.f32 %v362_v14, %v394_v39  ;;  %v395_v42 = vsel %vm387_vm11, 0.0, %v375_v36 }
 0x139   : > { %678 = vpow2.f32 %v408_v38  ;;  %v403_v43 = vsub.f32 %v363_v15, %v395_v42  ;;  %v377_v44 = vpop.xlane.xlu0 %376  ;;  %v379_v45 = vpop.xlane.xlu1 %378 }
 0x13a   : > { %v412_v46 = vmul.f32 1.442695, %v402_v41  ;;  %vm388_vm12 = vcmp.le.f32.partialorder %v377_v44, -5e+29  ;;  %vm389_vm13 = vcmp.le.f32.partialorder %v379_v45, -5e+29 }
 0x13b   : > { %v414_v49 = vmul.f32 1.442695, %v403_v43  ;;  %v396_v50 = vsel %vm388_vm12, 0.0, %v377_v44  ;;  %v397_v51 = vsel %vm389_vm13, 0.0, %v379_v45 }
 0x13c   : > { %680 = vpow2.f32 %v412_v46  ;;  %v404_v52 = vsub.f32 %v364_v20, %v396_v50  ;;  %v405_v53 = vsub.f32 %v365_v22, %v397_v51 }
 0x13d   : > { %682 = vpow2.f32 %v414_v49  ;;  %v381_v54 = vpop.xlane.xlu0 %380  ;;  %v383_v55 = vpop.xlane.xlu1 %382 }
 0x13e   : > { %v416_v56 = vmul.f32 1.442695, %v404_v52  ;;  %v418_v57 = vmul.f32 1.442695, %v405_v53  ;;  %vm390_vm14 = vcmp.le.f32.partialorder %v381_v54, -5e+29 }
 0x13f   : > { %v398_v58 = vsel %vm390_vm14, 0.0, %v381_v54  ;;  %vm391_vm15 = vcmp.le.f32.partialorder %v383_v55, -5e+29 }
 0x140   : > { %684 = vpow2.f32 %v416_v56  ;;  %v406_v59 = vsub.f32 %v366_v25, %v398_v58  ;;  %v399_v61 = vsel %vm391_vm15, 0.0, %v383_v55 }
 0x141   : > { %686 = vpow2.f32 %v418_v57  ;;  %v407_v62 = vsub.f32 %v367_v26, %v399_v61 }
 0x142   : > { %v677_v63 = vpop.eup %676  ;;  %v420_v0 = vmul.f32 1.442695, %v406_v59 }
 0x143   : > { %v679_v1 = vpop.eup %678  ;;  %v422_v2 = vmul.f32 1.442695, %v407_v62  ;;  %v425_v3 = vmul.f32 %v677_v63, %v648_v29 }
 0x144   : > { %688 = vpow2.f32 %v420_v0  ;;  %v424_v4 = vmul.f32 %v679_v1, %v647_v40 }
 0x145   : > { %690 = vpow2.f32 %v422_v2  ;;  %434 = vadd.xlane.f32.xlu1 %v425_v3 }
 0x146   : > { %v681_v7 = vpop.eup %680  ;;  %432 = vadd.xlane.f32.xlu0 %v424_v4 }
 0x147   : > { %v683_v8 = vpop.eup %682  ;;  %v426_v12 = vmul.f32 %v681_v7, %v651_v47 }
 0x148   : > { %v427_v13 = vmul.f32 %v683_v8, %v652_v48 }
 0x14a   : > { %v685_v14 = vpop.eup %684  ;;  %436 = vadd.xlane.f32.xlu0 %v426_v12  ;;  %438 = vadd.xlane.f32.xlu1 %v427_v13 }
 0x14b   : > { %v687_v15 = vpop.eup %686  ;;  %v428_v29 = vmul.f32 %v685_v14, %v655_v5 }
 0x14c   : > { %v429_v21 = vmul.f32 %v687_v15, %v656_v6 }
 0x14e   : > { %v689_v40 = vpop.eup %688  ;;  %440 = vadd.xlane.f32.xlu0 %v428_v29  ;;  %442 = vadd.xlane.f32.xlu1 %v429_v21 }
 0x14f   : > { %v691_v16 = vpop.eup %690  ;;  %v430_v47 = vmul.f32 %v689_v40, %v659_v18 }
 0x150   : > { %v431_v30 = vmul.f32 %v691_v16, %v660_v19 }
 0x152   : > { %444 = vadd.xlane.f32.xlu0 %v430_v47  ;;  %446 = vadd.xlane.f32.xlu1 %v431_v30 }
 0x1d2   : > { %v435_v48 = vpop.xlane.xlu1 %434 }
 0x1d3   : > { %v433_v17 = vpop.xlane.xlu0 %432  ;;  %vm449_vm0 = vcmp.gt.f32.partialorder %v435_v48, 0.0 }
 0x1d4   : > { %vm448_vm1 = vcmp.gt.f32.partialorder %v433_v17, 0.0  ;;  %v457_v5 = vsel %vm449_vm0, %v435_v48, 1.0 }
 0x1d5   : > { %v456_v20 = vsel %vm448_vm1, %v433_v17, 1.0  ;;  %692 = vrcp.f32 %v457_v5 }
 0x1d6   : > { %694 = vrcp.f32 %v456_v20 }
 0x1d7   : > { %v437_v60 = vpop.xlane.xlu0 %436  ;;  %v439_v6 = vpop.xlane.xlu1 %438 }
 0x1d8   : > { %vm450_vm2 = vcmp.gt.f32.partialorder %v437_v60, 0.0  ;;  %vm451_vm3 = vcmp.gt.f32.partialorder %v439_v6, 0.0 }
 0x1d9   : > { %v458_v22 = vsel %vm450_vm2, %v437_v60, 1.0  ;;  %v459_v23 = vsel %vm451_vm3, %v439_v6, 1.0 }
 0x1da   : > { %696 = vrcp.f32 %v458_v22 }
 0x1db   : > { %698 = vrcp.f32 %v459_v23  ;;  %v441_v11 = vpop.xlane.xlu0 %440  ;;  %v443_v18 = vpop.xlane.xlu1 %442 }
 0x1dc   : > { %vm452_vm4 = vcmp.gt.f32.partialorder %v441_v11, 0.0  ;;  %vm453_vm5 = vcmp.gt.f32.partialorder %v443_v18, 0.0 }
 0x1dd   : > { %v460_v19 = vsel %vm452_vm4, %v441_v11, 1.0  ;;  %v461_v24 = vsel %vm453_vm5, %v443_v18, 1.0 }
 0x1de   : > { %700 = vrcp.f32 %v460_v19 }
 0x1df   : > { %v693_v25 = vpop.eup %692  ;;  %702 = vrcp.f32 %v461_v24  ;;  %v445_v26 = vpop.xlane.xlu0 %444 }
 0x1e0   : > { %v447_v27 = vpop.xlane.xlu1 %446  ;;  %v695_v28 = vpop.eup %694  ;;  %vm454_vm6 = vcmp.gt.f32.partialorder %v445_v26, 0.0  ;;  %v473_v31 = vmul.f32 %v693_v25, %v425_v3 }
 0x1e1   : > { %vm455_vm7 = vcmp.gt.f32.partialorder %v447_v27, 0.0  ;;  %v462_v32 = vsel %vm454_vm6, %v445_v26, 1.0  ;;  %v472_v34 = vmul.f32 %v695_v28, %v424_v4 }
 0x1e2   : > { %v463_v33 = vsel %vm455_vm7, %v447_v27, 1.0  ;;  %704 = vrcp.f32 %v462_v32  ;;  %v481_v35 = vmul.f32 %v784_v10, %v473_v31 }
 0x1e3   : > { %706 = vrcp.f32 %v463_v33  ;;  %v480_v36 = vmul.f32 %v784_v10, %v472_v34 }
 0x1e4   : > { %v697_v37 = vpop.eup %696  ;;  %490 = vadd.xlane.f32.xlu1 %v481_v35 }
 0x1e5   : > { %v699_v38 = vpop.eup %698  ;;  %488 = vadd.xlane.f32.xlu0 %v480_v36  ;;  %v474_v39 = vmul.f32 %v697_v37, %v426_v12 }
 0x1e6   : > { %v475_v41 = vmul.f32 %v699_v38, %v427_v13 }
 0x1e7   : > { %v482_v42 = vmul.f32 %v784_v10, %v474_v39 }
 0x1e8   : > { %v701_v43 = vpop.eup %700  ;;  %v483_v44 = vmul.f32 %v784_v10, %v475_v41 }
 0x1e9   : > { %v703_v45 = vpop.eup %702  ;;  %492 = vadd.xlane.f32.xlu0 %v482_v42  ;;  %v476_v46 = vmul.f32 %v701_v43, %v428_v29 }
 0x1ea   : > { %494 = vadd.xlane.f32.xlu1 %v483_v44  ;;  %v477_v49 = vmul.f32 %v703_v45, %v429_v21 }
 0x1eb   : > { %v484_v50 = vmul.f32 %v784_v10, %v476_v46 }
 0x1ec   : > { %v705_v51 = vpop.eup %704  ;;  %v485_v52 = vmul.f32 %v784_v10, %v477_v49 }
 0x1ed   : > { %v707_v53 = vpop.eup %706  ;;  %496 = vadd.xlane.f32.xlu0 %v484_v50  ;;  %v478_v54 = vmul.f32 %v705_v51, %v430_v47 }
 0x1ee   : > { %498 = vadd.xlane.f32.xlu1 %v485_v52  ;;  %v479_v55 = vmul.f32 %v707_v53, %v431_v30 }
 0x1ef   : > { %v486_v56 = vmul.f32 %v784_v10, %v478_v54 }
 0x1f0   : > { %v487_v57 = vmul.f32 %v784_v10, %v479_v55 }
 0x1f1   : > { %500 = vadd.xlane.f32.xlu0 %v486_v56 }
 0x1f2   : > { %502 = vadd.xlane.f32.xlu1 %v487_v57 }
 0x271   : > { %v491_v58 = vpop.xlane.xlu1 %490 }
 0x272   : > { %v489_v59 = vpop.xlane.xlu0 %488  ;;  %v506_v61 = vadd.f32 %v778_v9, %v491_v58 }
 0x273   : > { %v505_v62 = vadd.f32 %v778_v9, %v489_v59 }
 0x274   : > { %708 = vtanh.f32 %v506_v61 }
 0x275   : > { %710 = vtanh.f32 %v505_v62 }
 0x276   : > { %v493_v63 = vpop.xlane.xlu0 %492 }
 0x277   : > { %v507_v0 = vadd.f32 %v778_v9, %v493_v63  ;;  %v495_v1 = vpop.xlane.xlu1 %494 }
 0x278   : > { %v508_v2 = vadd.f32 %v778_v9, %v495_v1 }
 0x279   : > { %712 = vtanh.f32 %v507_v0 }
 0x27a   : > { %714 = vtanh.f32 %v508_v2  ;;  %v497_v3 = vpop.xlane.xlu0 %496 }
 0x27b   : > { %v509_v10 = vadd.f32 %v778_v9, %v497_v3  ;;  %v499_v4 = vpop.xlane.xlu1 %498 }
 0x27c   : > { %v510_v7 = vadd.f32 %v778_v9, %v499_v4 }
 0x27d   : > { %716 = vtanh.f32 %v509_v10 }
 0x27e   : > { %v709_v8 = vpop.eup %708  ;;  %718 = vtanh.f32 %v510_v7  ;;  %v501_v12 = vpop.xlane.xlu0 %500 }
 0x27f   : > { %v711_v13 = vpop.eup %710  ;;  %v511_v14 = vadd.f32 %v778_v9, %v501_v12  ;;  %v503_v15 = vpop.xlane.xlu1 %502  ;;  %531 = vrot.lane.b32.xlu1 %v709_v8, %s733_s30 }
 0x280   : > { %v512_v29 = vadd.f32 %v778_v9, %v503_v15  ;;  %529 = vrot.lane.b32.xlu0 %v711_v13, %s733_s30 }
 0x281   : > { %720 = vtanh.f32 %v511_v14 }
 0x282   : > { %722 = vtanh.f32 %v512_v29 }
 0x283   : > { %v713_v21 = vpop.eup %712 }
 0x284   : > { %v715_v40 = vpop.eup %714  ;;  %533 = vrot.lane.b32.xlu1 %v713_v21, %s733_s30 }
 0x285   : > { %535 = vrot.lane.b32.xlu0 %v715_v40, %s733_s30 }
 0x287   : > { %v717_v16 = vpop.eup %716 }
 0x288   : > { %v719_v47 = vpop.eup %718  ;;  %537 = vrot.lane.b32.xlu1 %v717_v16, %s733_s30 }
 0x289   : > { %539 = vrot.lane.b32.xlu0 %v719_v47, %s733_s30 }
 0x28b   : > { %v721_v30 = vpop.eup %720 }
 0x28c   : > { %v723_v48 = vpop.eup %722  ;;  %541 = vrot.lane.b32.xlu1 %v721_v30, %s733_s30 }
 0x28d   : > { %543 = vrot.lane.b32.xlu0 %v723_v48, %s733_s30 }
 0x2f1   : > { %v532_v9 = vpop.permute.xlu1 %531 }
 0x2f2   : > { %v530_v17 = vpop.permute.xlu0 %529  ;;  %555 = vst.msk [vmem:[%s221_s7 + $0x8] sm:$0xff] %vm553_vm8, %v532_v9 }
 0x2f3   : > { %554 = vst.msk [vmem:[%s221_s7] sm:$0xff] %vm553_vm8, %v530_v17 }
 0x2f6   : > { %v534_v5 = vpop.permute.xlu1 %533 }
 0x2f7   : > { %v536_v20 = vpop.permute.xlu0 %535  ;;  %556 = vst.msk [vmem:[%s221_s7 + $0x10] sm:$0xff] %vm553_vm8, %v534_v5 }
 0x2f8   : > { %557 = vst.msk [vmem:[%s221_s7 + $0x18] sm:$0xff] %vm553_vm8, %v536_v20 }
 0x2fa   : > { %v538_v60 = vpop.permute.xlu1 %537 }
 0x2fb   : > { %v540_v6 = vpop.permute.xlu0 %539  ;;  %558 = vst.msk [vmem:[%s221_s7 + $0x20] sm:$0xff] %vm553_vm8, %v538_v60 }
 0x2fc   : > { %559 = vst.msk [vmem:[%s221_s7 + $0x28] sm:$0xff] %vm553_vm8, %v540_v6 }
 0x2fe   : > { %v542_v22 = vpop.permute.xlu1 %541 }
 0x2ff   : > { %v544_v23 = vpop.permute.xlu0 %543  ;;  %560 = vst.msk [vmem:[%s221_s7 + $0x30] sm:$0xff] %vm553_vm8, %v542_v22 }
 0x300   : > { %561 = vst.msk [vmem:[%s221_s7 + $0x38] sm:$0xff] %vm553_vm8, %v544_v23 }
 0x301 PF: > { %s14_s15 = sadd.s32 1, %s730_s15  }
 0x302   : > { %p11_p4 = scmp.ge.s32.totalorder %s14_s15, 4  }
 0x304   :  { %13 = sbr.rel (!%p11_p4) target bundleno = 1 (0x1), region = 69 }

// kernel: math_model_forward.43
= control target key start
LH: loop header
LB: loop body
LE: loop exit
PB: predicated region body
PF: predicated region fallthrough
CT: control target
= control target key end

     0   :  { %v343_v0 = vmov 0   ;;  %v344_v24 = vmov 1   ;;  %s615_s1 = inlined_call_operand.vmem [shape: f32[128,2], index: 1, kind: input, shape index: {}]   ;;  %s616_s0 = inlined_call_operand.vmem [shape: f32[128,32], index: 0, kind: input, shape index: {}]   ;;  %s617_s2 = inlined_call_operand.vmem [shape: f32[2,32], index: 2, kind: output, shape index: {}]  }
   0x1   :  { %336 = vset.pattern.permute.xlu1 %v343_v0  ;;  %335 = vset.pattern.permute.xlu0 %v343_v0  ;;  %v13_v1 = vld [vmem:[%s615_s1 + $0x10] sm:$0xff]  ;;  %v11_v2 = vld [vmem:[%s615_s1] sm:$0xff]  ;;  %v14_v3 = vld [vmem:[%s615_s1 + $0x18] sm:$0xff] }
   0x2   :  { %vm29_vm0 = vcmp.gt.f32.partialorder %v13_v1, 0.0  ;;  %vm27_vm1 = vcmp.gt.f32.partialorder %v11_v2, 0.0  ;;  %vm30_vm2 = vcmp.gt.f32.partialorder %v14_v3, 0.0  ;;  %v12_v4 = vld [vmem:[%s615_s1 + $0x8] sm:$0xff]  ;;  %v15_v8 = vld [vmem:[%s615_s1 + $0x20] sm:$0xff]  ;;  %v18_v11 = vld [vmem:[%s615_s1 + $0x38] sm:$0xff] }
   0x3   :  { %v61_v5 = vsel %vm29_vm0, 1, %v343_v0  ;;  %v59_v6 = vsel %vm27_vm1, 1, %v343_v0  ;;  %vm28_vm3 = vcmp.gt.f32.partialorder %v12_v4, 0.0  ;;  %v16_v7 = vld [vmem:[%s615_s1 + $0x28] sm:$0xff]  ;;  %v62_v9 = vsel %vm30_vm2, 1, %v343_v0  ;;  %v17_v12 = vld [vmem:[%s615_s1 + $0x30] sm:$0xff] }
   0x4   :  { %82 = vperm.xlu1 %336, %v61_v5   ;;  %76 = vperm.xlu0 %335, %v59_v6   ;;  %v60_v10 = vsel %vm28_vm3, 1, %v343_v0  ;;  %vm32_vm4 = vcmp.gt.f32.partialorder %v16_v7, 0.0  ;;  %vm31_vm5 = vcmp.gt.f32.partialorder %v15_v8, 0.0  ;;  %vm34_vm6 = vcmp.gt.f32.partialorder %v18_v11, 0.0  ;;  %v20_v15 = vld [vmem:[%s615_s1 + $0x48] sm:$0xff]  ;;  %v19_v16 = vld [vmem:[%s615_s1 + $0x40] sm:$0xff] }
   0x5   :  { %v64_v13 = vsel %vm32_vm4, 1, %v343_v0  ;;  %v63_v14 = vsel %vm31_vm5, 1, %v343_v0  ;;  %vm33_vm7 = vcmp.gt.f32.partialorder %v17_v12, 0.0  ;;  %v66_v17 = vsel %vm34_vm6, 1, %v343_v0  ;;  %v22_v19 = vld [vmem:[%s615_s1 + $0x58] sm:$0xff]  ;;  %v24_v22 = vld [vmem:[%s615_s1 + $0x68] sm:$0xff] }
   0x6   :  { %v65_v18 = vsel %vm33_vm7, 1, %v343_v0  ;;  %vm36_vm8 = vcmp.gt.f32.partialorder %v20_v15, 0.0  ;;  %vm35_vm9 = vcmp.gt.f32.partialorder %v19_v16, 0.0  ;;  %vm38_vm10 = vcmp.gt.f32.partialorder %v22_v19, 0.0  ;;  %v21_v26 = vld [vmem:[%s615_s1 + $0x50] sm:$0xff]  ;;  %v23_v28 = vld [vmem:[%s615_s1 + $0x60] sm:$0xff] }
   0x7   :  { %v68_v20 = vsel %vm36_vm8, 1, %v343_v0  ;;  %v67_v21 = vsel %vm35_vm9, 1, %v343_v0  ;;  %v70_v23 = vsel %vm38_vm10, 1, %v343_v0  ;;  %vm40_vm11 = vcmp.gt.f32.partialorder %v24_v22, 0.0  ;;  %v26_v29 = vld [vmem:[%s615_s1 + $0x78] sm:$0xff]  ;;  %v25_v32 = vld [vmem:[%s615_s1 + $0x70] sm:$0xff] }
   0x8   :  { %85 = vperm.xlu1 %336, %v62_v9   ;;  %79 = vperm.xlu0 %335, %v60_v10   ;;  %v72_v25 = vsel %vm40_vm11, 1, %v343_v0  ;;  %vm37_vm12 = vcmp.gt.f32.partialorder %v21_v26, 0.0  ;;  %vm39_vm13 = vcmp.gt.f32.partialorder %v23_v28, 0.0  ;;  %vm42_vm14 = vcmp.gt.f32.partialorder %v26_v29, 0.0  ;;  %v451_v55 = vld [vmem:[%s616_s0 + $0x10] sm:$0xff]  ;;  %v456_v56 = vld [vmem:[%s616_s0] sm:$0xff] }
   0x9   :  { %v69_v27 = vsel %vm37_vm12, 1, %v343_v0  ;;  %v71_v30 = vsel %vm39_vm13, 1, %v343_v0  ;;  %v74_v31 = vsel %vm42_vm14, 1, %v343_v0  ;;  %vm41_vm15 = vcmp.gt.f32.partialorder %v25_v32, 0.0  ;;  %v44_v57 = vld [vmem:[%s616_s0 + $0x8] sm:$0xff]  ;;  %v464_v58 = vld [vmem:[%s616_s0 + $0x18] sm:$0xff] }
   0xa   :  { %v73_v33 = vsel %vm41_vm15, 1, %v343_v0  ;;  %v469_v59 = vld [vmem:[%s616_s0 + $0x28] sm:$0xff]  ;;  %v474_v60 = vld [vmem:[%s616_s0 + $0x20] sm:$0xff]  ;;  %vm155_vm4 = vcmask 261120   ;;  %v479_v61 = vld [vmem:[%s616_s0 + $0x38] sm:$0xff] }
   0xb   :  { %v484_v62 = vld [vmem:[%s616_s0 + $0x30] sm:$0xff]  ;;  %v489_v63 = vld [vmem:[%s616_s0 + $0x48] sm:$0xff]  ;;  %v495_v2 = vld [vmem:[%s616_s0 + $0x40] sm:$0xff] }
   0xc   :  { %91 = vperm.xlu1 %336, %v64_v13   ;;  %88 = vperm.xlu0 %335, %v63_v14   ;;  %v507_v7 = vld [vmem:[%s616_s0 + $0x58] sm:$0xff] }
  0x10   :  { %97 = vperm.xlu1 %336, %v66_v17   ;;  %94 = vperm.xlu0 %335, %v65_v18  }
  0x14   :  { %103 = vperm.xlu1 %336, %v68_v20   ;;  %100 = vperm.xlu0 %335, %v67_v21  }
  0x18   :  { %337 = vset.pattern.permute.xlu1 %v344_v24  ;;  %109 = vperm.xlu0 %335, %v70_v23  }
  0x19   :  { %215 = vperm.xlu1 %337, %v60_v10  }
  0x1c   :  { %115 = vperm.xlu0 %335, %v72_v25  }
  0x1d   :  { %218 = vperm.xlu1 %337, %v61_v5  }
  0x20   :  { %341 = vset.pattern.permute.xlu0 %v344_v24 }
  0x21   :  { %224 = vperm.xlu1 %337, %v63_v14   ;;  %212 = vperm.xlu0 %341, %v59_v6  }
  0x25   :  { %230 = vperm.xlu1 %337, %v65_v18   ;;  %221 = vperm.xlu0 %341, %v62_v9  }
  0x29   :  { %338 = vset.pattern.permute.xlu1 %v343_v0  ;;  %227 = vperm.xlu0 %341, %v64_v13  }
  0x2a   :  { %106 = vperm.xlu1 %338, %v69_v27  }
  0x2d   :  { %233 = vperm.xlu0 %341, %v66_v17   ;;  %v522_v17 = vld [vmem:[%s616_s0 + $0x68] sm:$0xff] }
  0x2e   :  { %339 = vset.pattern.permute.xlu1 %v344_v24 }
  0x2f   :  { %236 = vperm.xlu1 %339, %v67_v21  }
  0x31   :  { %242 = vperm.xlu0 %341, %v69_v27  }
  0x33   :  { %239 = vperm.xlu1 %339, %v68_v20  }
  0x35   :  { %248 = vperm.xlu0 %341, %v71_v30  }
  0x37   :  { %245 = vperm.xlu1 %339, %v70_v23  }
  0x39   :  { %257 = vperm.xlu0 %341, %v74_v31  }
  0x3b   :  { %340 = vset.pattern.permute.xlu1 %v343_v0 }
  0x3c   :  { %112 = vperm.xlu1 %340, %v71_v30  }
  0x40   :  { %118 = vperm.xlu1 %340, %v73_v33  }
  0x44   :  { %121 = vperm.xlu1 %340, %v74_v31  }
  0x48   :  { %342 = vset.pattern.permute.xlu1 %v344_v24 }
  0x49   :  { %251 = vperm.xlu1 %342, %v72_v25  }
  0x4d   :  { %254 = vperm.xlu1 %342, %v73_v33   ;;  %v543_v33 = vld [vmem:[%s616_s0 + $0x50] sm:$0xff] }
  0x83   :  { %v83_v34 = vpop.permute.xlu1 %82  ;;  %v77_v35 = vpop.permute.xlu0 %76 }
  0x84   :  { %vm123_vm0 = vcmp.eq.s32.totalorder %v77_v35, 1  ;;  %vm125_vm5 = vcmp.eq.s32.totalorder %v83_v34, 1 }
  0x85   :  { %v139_v0 = vsel %vm123_vm0, %v456_v56, -1e+30  ;;  %v141_v8 = vsel %vm125_vm5, %v451_v55, -1e+30 }
  0x86   :  { %v156_v10 = vsel %vm155_vm4, %v139_v0, -inf  ;;  %v158_v22 = vsel %vm155_vm4, %v141_v8, -inf }
  0x87   :  { %v86_v36 = vpop.permute.xlu1 %85  ;;  %v80_v37 = vpop.permute.xlu0 %79 }
  0x88   :  { %vm124_vm1 = vcmp.eq.s32.totalorder %v80_v37, 1  ;;  %vm126_vm7 = vcmp.eq.s32.totalorder %v86_v36, 1 }
  0x89   :  { %v140_v1 = vsel %vm124_vm1, %v44_v57, -1e+30  ;;  %v142_v11 = vsel %vm126_vm7, %v464_v58, -1e+30 }
  0x8a   :  { %v157_v12 = vsel %vm155_vm4, %v140_v1, -inf  ;;  %v159_v23 = vsel %vm155_vm4, %v142_v11, -inf }
  0x8b   :  { %v92_v38 = vpop.permute.xlu1 %91  ;;  %v89_v39 = vpop.permute.xlu0 %88 }
  0x8c   :  { %vm128_vm2 = vcmp.eq.s32.totalorder %v92_v38, 1  ;;  %vm127_vm3 = vcmp.eq.s32.totalorder %v89_v39, 1 }
  0x8d   :  { %v144_v5 = vsel %vm128_vm2, %v469_v59, -1e+30  ;;  %v143_v6 = vsel %vm127_vm3, %v474_v60, -1e+30 }
  0x8e   :  { %v162_v14 = vsel %vm155_vm4, %v144_v5, -inf  ;;  %v160_v15 = vsel %vm155_vm4, %v143_v6, -inf }
  0x8f   :  { %v98_v40 = vpop.permute.xlu1 %97  ;;  %v95_v41 = vpop.permute.xlu0 %94  ;;  %v163_v26 = vmax.f32 %v157_v12, %v162_v14  ;;  %v161_v27 = vmax.f32 %v156_v10, %v160_v15 }
  0x90   :  { %vm130_vm6 = vcmp.eq.s32.totalorder %v98_v40, 1  ;;  %vm129_vm8 = vcmp.eq.s32.totalorder %v95_v41, 1 }
  0x91   :  { %v146_v9 = vsel %vm130_vm6, %v479_v61, -1e+30  ;;  %v145_v13 = vsel %vm129_vm8, %v484_v62, -1e+30 }
  0x92   :  { %v166_v19 = vsel %vm155_vm4, %v146_v9, -inf  ;;  %v164_v24 = vsel %vm155_vm4, %v145_v13, -inf }
  0x93   :  { %v104_v42 = vpop.permute.xlu1 %103  ;;  %v101_v43 = vpop.permute.xlu0 %100  ;;  %v167_v30 = vmax.f32 %v159_v23, %v166_v19  ;;  %v165_v34 = vmax.f32 %v158_v22, %v164_v24 }
  0x94   :  { %vm132_vm9 = vcmp.eq.s32.totalorder %v104_v42, 1  ;;  %vm131_vm10 = vcmp.eq.s32.totalorder %v101_v43, 1  ;;  %v207_v42 = vld [vmem:[%s616_s0 + $0x60] sm:$0xff]  ;;  %v558_v43 = vld [vmem:[%s616_s0 + $0x70] sm:$0xff] }
  0x95   :  { %v148_v16 = vsel %vm132_vm9, %v489_v63, -1e+30  ;;  %v147_v20 = vsel %vm131_vm10, %v495_v2, -1e+30 }
  0x96   :  { %v170_v28 = vsel %vm155_vm4, %v148_v16, -inf  ;;  %v168_v31 = vsel %vm155_vm4, %v147_v20, -inf }
  0x97   :  { %v110_v44 = vpop.permute.xlu0 %109  ;;  %v171_v37 = vmax.f32 %v163_v26, %v170_v28  ;;  %v169_v39 = vmax.f32 %v161_v27, %v168_v31 }
  0x98   :  { %v428_v45 = vpop.permute.xlu1 %215  ;;  %vm134_vm11 = vcmp.eq.s32.totalorder %v110_v44, 1 }
  0x99   :  { %v150_v21 = vsel %vm134_vm11, %v507_v7, -1e+30  ;;  %vm260_vm13 = vcmp.eq.s32.totalorder %v428_v45, 1 }
  0x9a   :  { %v174_v32 = vsel %vm155_vm4, %v150_v21, -inf  ;;  %v276_v35 = vsel %vm260_vm13, %v44_v57, -1e+30 }
  0x9b   :  { %v430_v46 = vpop.permute.xlu0 %115  ;;  %v175_v40 = vmax.f32 %v167_v30, %v174_v32  ;;  %v561_v44 = vsel %vm155_vm4, %v276_v35, -inf }
  0x9c   :  { %v432_v47 = vpop.permute.xlu1 %218  ;;  %vm136_vm12 = vcmp.eq.s32.totalorder %v430_v46, 1 }
  0x9d   :  { %v152_v29 = vsel %vm136_vm12, %v522_v17, -1e+30  ;;  %vm261_vm15 = vcmp.eq.s32.totalorder %v432_v47, 1 }
  0x9e   :  { %v178_v38 = vsel %vm155_vm4, %v152_v29, -inf  ;;  %v277_v45 = vsel %vm261_vm15, %v451_v55, -1e+30 }
  0x9f   :  { %v293_v55 = vsel %vm155_vm4, %v277_v45, -inf }
  0xa0   :  { %v434_v48 = vpop.permute.xlu1 %224  ;;  %v436_v49 = vpop.permute.xlu0 %212 }
  0xa1   :  { %vm263_vm0 = vcmp.eq.s32.totalorder %v434_v48, 1  ;;  %vm259_vm1 = vcmp.eq.s32.totalorder %v436_v49, 1  ;;  %v179_v48 = vmax.f32 %v171_v37, %v178_v38 }
  0xa2   :  { %v279_v46 = vsel %vm263_vm0, %v474_v60, -1e+30  ;;  %v275_v49 = vsel %vm259_vm1, %v456_v56, -1e+30 }
  0xa3   :  { %v295_v60 = vsel %vm155_vm4, %v279_v46, -inf  ;;  %v291_v56 = vsel %vm155_vm4, %v275_v49, -inf }
  0xa4   :  { %v438_v50 = vpop.permute.xlu1 %230  ;;  %v440_v51 = vpop.permute.xlu0 %221  ;;  %v296_v31 = vmax.f32 %v291_v56, %v295_v60 }
  0xa5   :  { %vm262_vm3 = vcmp.eq.s32.totalorder %v440_v51, 1  ;;  %vm265_vm6 = vcmp.eq.s32.totalorder %v438_v50, 1 }
  0xa6   :  { %v278_v57 = vsel %vm262_vm3, %v464_v58, -1e+30  ;;  %v281_v50 = vsel %vm265_vm6, %v484_v62, -1e+30  ;;  %v210_v62 = vld [vmem:[%s616_s0 + $0x78] sm:$0xff] }
  0xa7   :  { %v299_v12 = vsel %vm155_vm4, %v281_v50, -inf }
  0xa8   :  { %v444_v53 = vpop.permute.xlu0 %227  ;;  %v300_v32 = vmax.f32 %v293_v55, %v299_v12 }
  0xa9   :  { %v442_v52 = vpop.permute.xlu1 %106  ;;  %vm264_vm7 = vcmp.eq.s32.totalorder %v444_v53, 1  ;;  %v294_v53 = vsel %vm155_vm4, %v278_v57, -inf }
  0xaa   :  { %vm133_vm14 = vcmp.eq.s32.totalorder %v442_v52, 1  ;;  %v280_v5 = vsel %vm264_vm7, %v469_v59, -1e+30 }
  0xab   :  { %v149_v41 = vsel %vm133_vm14, %v543_v33, -1e+30  ;;  %v297_v13 = vsel %vm155_vm4, %v280_v5, -inf }
  0xac   :  { %v497_v3 = vpop.permute.xlu0 %233  ;;  %v172_v0 = vsel %vm155_vm4, %v149_v41, -inf }
  0xad   :  { %vm266_vm5 = vcmp.eq.s32.totalorder %v497_v3, 1  ;;  %v173_v6 = vmax.f32 %v165_v34, %v172_v0 }
  0xae   :  { %v446_v54 = vpop.permute.xlu1 %236  ;;  %v282_v1 = vsel %vm266_vm5, %v479_v61, -1e+30 }
  0xaf   :  { %v301_v61 = vsel %vm155_vm4, %v282_v1, -inf  ;;  %vm267_vm11 = vcmp.eq.s32.totalorder %v446_v54, 1 }
  0xb0   :  { %v534_v25 = vpop.permute.xlu0 %242  ;;  %v302_v19 = vmax.f32 %v294_v53, %v301_v61  ;;  %v283_v20 = vsel %vm267_vm11, %v495_v2, -1e+30 }
  0xb1   :  { %vm269_vm13 = vcmp.eq.s32.totalorder %v534_v25, 1  ;;  %v298_v25 = vmax.f32 %v561_v44, %v297_v13  ;;  %v303_v29 = vsel %vm155_vm4, %v283_v20, -inf }
  0xb2   :  { %v499_v4 = vpop.permute.xlu1 %239 }
  0xb3   :  { %vm268_vm9 = vcmp.eq.s32.totalorder %v499_v4, 1 }
  0xb4   :  { %v249_v47 = vpop.permute.xlu0 %248  ;;  %v284_v59 = vsel %vm268_vm9, %v489_v63, -1e+30  ;;  %v285_v63 = vsel %vm269_vm13, %v543_v33, -1e+30 }
  0xb5   :  { %vm271_vm14 = vcmp.eq.s32.totalorder %v249_v47, 1  ;;  %v305_v21 = vsel %vm155_vm4, %v284_v59, -inf  ;;  %v307_v54 = vsel %vm155_vm4, %v285_v63, -inf }
  0xb6   :  { %v525_v18 = vpop.permute.xlu1 %245  ;;  %v287_v26 = vsel %vm271_vm14, %v207_v42, -1e+30  ;;  %v306_v33 = vmax.f32 %v298_v25, %v305_v21 }
  0xb7   :  { %vm270_vm10 = vcmp.eq.s32.totalorder %v525_v18, 1 }
  0xb8   :  { %v258_v9 = vpop.permute.xlu0 %257  ;;  %v286_v14 = vsel %vm270_vm10, %v507_v7, -1e+30 }
  0xb9   :  { %vm274_vm15 = vcmp.eq.s32.totalorder %v258_v9, 1  ;;  %v309_v23 = vsel %vm155_vm4, %v286_v14, -inf }
  0xba   :  { %v290_v27 = vsel %vm274_vm15, %v210_v62, -1e+30  ;;  %v310_v34 = vmax.f32 %v302_v19, %v309_v23 }
  0xbb   :  { %v113_v36 = vpop.permute.xlu1 %112  ;;  %v317_v37 = vsel %vm155_vm4, %v290_v27, -inf }
  0xbc   :  { %vm135_vm2 = vcmp.eq.s32.totalorder %v113_v36, 1  ;;  %v311_v36 = vsel %vm155_vm4, %v287_v26, -inf  ;;  %v318_v46 = vmax.f32 %v310_v34, %v317_v37 }
  0xbd   :  { %v151_v51 = vsel %vm135_vm2, %v207_v42, -1e+30  ;;  %vm193_vm2 = vcmask 253952  }
  0xbe   :  { %v176_v58 = vsel %vm155_vm4, %v151_v51, -inf }
  0xbf   :  { %v119_v52 = vpop.permute.xlu1 %118  ;;  %v177_v10 = vmax.f32 %v169_v39, %v176_v58  ;;  %v304_v39 = vmax.f32 %v296_v31, %v303_v29 }
  0xc0   :  { %vm137_vm8 = vcmp.eq.s32.totalorder %v119_v52, 1 }
  0xc1   :  { %v153_v3 = vsel %vm137_vm8, %v558_v43, -1e+30  ;;  %v184_v24 = vmax.f32 %v177_v10, %v179_v48  ;;  %v312_v45 = vmax.f32 %v304_v39, %v311_v36 }
  0xc2   :  { %v180_v4 = vsel %vm155_vm4, %v153_v3, -inf }
  0xc3   :  { %v122_v8 = vpop.permute.xlu1 %121  ;;  %v181_v16 = vmax.f32 %v173_v6, %v180_v4 }
  0xc4   :  { %vm138_vm12 = vcmp.eq.s32.totalorder %v122_v8, 1 }
  0xc5   :  { %v154_v11 = vsel %vm138_vm12, %v210_v62, -1e+30 }
  0xc6   :  { %v182_v15 = vsel %vm155_vm4, %v154_v11, -inf }
  0xc7   :  { %v183_v18 = vmax.f32 %v175_v40, %v182_v15 }
  0xc8   :  { %v252_v22 = vpop.permute.xlu1 %251 }
  0xc9   :  { %v185_v7 = vmax.f32 %v181_v16, %v183_v18  ;;  %vm272_vm0 = vcmp.eq.s32.totalorder %v252_v22, 1 }
  0xca   :  { %v288_v28 = vsel %vm272_vm0, %v522_v17, -1e+30  ;;  %v308_v17 = vmax.f32 %v300_v32, %v307_v54 }
  0xcb   :  { %v186_v2 = vmax.f32 %v184_v24, %v185_v7  ;;  %v313_v30 = vsel %vm155_vm4, %v288_v28, -inf }
  0xcc   :  { %v255_v35 = vpop.permute.xlu1 %254  ;;  %v314_v40 = vmax.f32 %v306_v33, %v313_v30 }
  0xcd   :  { %v187_v38 = vrot.slane %v186_v2, 4  ;;  %vm273_vm1 = vcmp.eq.s32.totalorder %v255_v35, 1 }
  0xce   :  { %v289_v41 = vsel %vm273_vm1, %v558_v43, -1e+30  ;;  %v319_v49 = vmax.f32 %v312_v45, %v314_v40 }
  0xcf   :  { %v188_v42 = vmax.f32 %v186_v2, %v187_v38  ;;  %v315_v44 = vsel %vm155_vm4, %v289_v41, -inf }
  0xd0   :  { %v316_v47 = vmax.f32 %v308_v17, %v315_v44 }
  0xd1   :  { %v189_v48 = vrot.slane %v188_v42, 2 }
  0xd2   :  { %v320_v51 = vmax.f32 %v316_v47, %v318_v46 }
  0xd3   :  { %v190_v52 = vmax.f32 %v188_v42, %v189_v48 }
  0xd4   :  { %v321_v57 = vmax.f32 %v319_v49, %v320_v51 }
  0xd5   :  { %v191_v0 = vrot.slane %v190_v52, 1 }
  0xd6   :  { %v322_v55 = vrot.slane %v321_v57, 4 }
  0xd7   :  { %v192_v60 = vmax.f32 %v190_v52, %v191_v0 }
  0xd8   :  { %v323_v1 = vmax.f32 %v321_v57, %v322_v55 }
  0xd9   :  { %194 = vst.msk [vmem:[%s617_s2] sm:$0x1] %vm193_vm2, %v192_v60 }
  0xda   :  { %v324_v43 = vrot.slane %v323_v1, 2 }
  0xdc   :  { %v325_v3 = vmax.f32 %v323_v1, %v324_v43 }
  0xde   :  { %v326_v56 = vrot.slane %v325_v3, 1 }
  0xe0   :  { %v327_v50 = vmax.f32 %v325_v3, %v326_v56 }
  0xe2   :  { %328 = vst.msk [vmem:[%s617_s2 + $0x1] sm:$0x1] %vm193_vm2, %v327_v50 }

// kernel: math_model_forward.29
= control target key start
LH: loop header
LB: loop body
LE: loop exit
PB: predicated region body
PF: predicated region fallthrough
CT: control target
= control target key end

     0   :  { %s4119_s13 = smov 0   ;;  %s6526_s0 = inlined_call_operand.vmem [shape: f32[128,32], index: 0, kind: input, shape index: {}]   ;;  %s6527_s1 = inlined_call_operand.vmem [shape: f32[128,32], index: 1, kind: input, shape index: {}]   ;;  %s6528_s2 = inlined_call_operand.vmem [shape: f32[128,1], index: 2, kind: input, shape index: {}]   ;;  %s6529_s3 = inlined_call_operand.vmem [shape: f32[32,128], index: 3, kind: input, shape index: {}]   ;;  %s6530_s4 = inlined_call_operand.vmem [shape: f32[1,128], index: 4, kind: input, shape index: {}]   ;;  %s6531_s5 = inlined_call_operand.vmem [shape: f32[128,32], index: 5, kind: input, shape index: {}]   ;;  %s6532_s6 = inlined_call_operand.vmem [shape: bf16[128,128], index: 6, kind: input, shape index: {}]   ;;  %s6533_s7 = inlined_call_operand.vmem [shape: f32[1,32], index: 7, kind: input, shape index: {}]   ;;  %s6534_s8 = inlined_call_operand.vmem [shape: f32[1,32], index: 8, kind: input, shape index: {}]   ;;  %s6535_s9 = inlined_call_operand.vmem [shape: f32[1,32], index: 9, kind: input, shape index: {}]   ;;  %s6536_s10 = inlined_call_operand.vmem [shape: f32[128,32], index: 10, kind: output, shape index: {}]  }
   0x1 LB: > { %s3583_s14 = sadd.s32 4294967295, %s4030_s13   ;;  %p3587_p0 = scmp.ge.s32.totalorder %s4030_s13, 1  ;;  %s4030_s13 = sphi %s4119_s13, %s20_s13  }
   0x2   : > { %p346_p1 = scmp.lt.s32.totalorder %s4030_s13, 3 }
   0x4   : > { %p347_p2 = pnand %p3587_p0, %p346_p1 }
   0x6   : > { %350 = sbr.rel (%p347_p2) target bundleno = 1866 (0x74a), region = 60 }
   0xd   : > { %s3588_s15 = sshll.u32 %s3583_s14, 3  ;;  %v4032_v0 = vmov 0   ;;  %v4177_v17 = vld [vmem:[%s6533_s7] ss:$0 sm:$0xff]  ;;  %v4033_v18 = vmov 1   ;;  %v4034_v19 = vmov 2  }
   0xe   : > { %3812 = vset.pattern.permute.xlu1 %v4032_v0  ;;  %3811 = vset.pattern.permute.xlu0 %v4032_v0  ;;  %p400_p3 = scmp.lt.s32.totalorder %s3588_s15, 15  ;;  %v4035_v20 = vmov 3   ;;  %v4036_v21 = vmov 4   ;;  %v4037_v22 = vmov 5   ;;  %v4038_v23 = vmov 6  }
   0xf   : > { %v4039_v27 = vmov 7   ;;  %v4040_v35 = vmov 8   ;;  %v4041_v43 = vmov 9   ;;  %v4042_v51 = vmov 10  }
  0x10   : > { %s7061_s15 = smov (!%p400_p3, %s3588_s15), 15  ;;  %v4043_v59 = vmov 11  }
  0x11   : > { %s4130_s16 = sshll.u32 %s7061_s15, 3  ;;  %s3595_s12 = sshll.u32 %s7061_s15, 2 }
  0x12   : > { %s415_s19 = scalar_lea.vmem %s6528_s2, %s4130_s16  ;;  %s4140_s22 = scalar_lea.vmem %s6527_s1, %s4130_s16 }
  0x13   : > { %v431_v1 = vld [vmem:[%s415_s19 + $0x10] sm:$0xff]  ;;  %v429_v2 = vld [vmem:[%s415_s19] sm:$0xff]  ;;  %v432_v3 = vld [vmem:[%s415_s19 + $0x18] sm:$0xff]  ;;  %s6041_s15 = scalar_lea.vmem %s6532_s6, %s3595_s12  ;;  %s6390_s20 = scalar_lea.vmem %s6526_s0, %s4130_s16 }
  0x14   : > { %450 = vperm.xlu1 %3812, %v431_v1   ;;  %440 = vperm.xlu0 %3811, %v429_v2   ;;  %v430_v4 = vld [vmem:[%s415_s19 + $0x8] sm:$0xff]  ;;  %v433_v6 = vld [vmem:[%s415_s19 + $0x20] sm:$0xff]  ;;  %v436_v7 = vld [vmem:[%s415_s19 + $0x38] sm:$0xff]  ;;  %s6499_s27 = scalar_lea.vmem %s6536_s10, %s4130_s16 }
  0x15   : > { %v434_v5 = vld [vmem:[%s415_s19 + $0x28] sm:$0xff]  ;;  %v435_v8 = vld [vmem:[%s415_s19 + $0x30] sm:$0xff]  ;;  %v4143_v9 = vld [vmem:[%s4140_s22] sm:$0xff] }
  0x16   : > { %v4146_v10 = vld [vmem:[%s4140_s22 + $0x8] sm:$0xff]  ;;  %v4151_v11 = vld [vmem:[%s4140_s22 + $0x10] sm:$0xff]  ;;  %v4154_v12 = vld [vmem:[%s4140_s22 + $0x18] sm:$0xff] }
  0x17   : > { %v4159_v13 = vld [vmem:[%s4140_s22 + $0x20] sm:$0xff]  ;;  %v4162_v14 = vld [vmem:[%s4140_s22 + $0x28] sm:$0xff]  ;;  %v4167_v15 = vld [vmem:[%s4140_s22 + $0x30] sm:$0xff] }
  0x18   : > { %455 = vperm.xlu1 %3812, %v432_v3   ;;  %445 = vperm.xlu0 %3811, %v430_v4   ;;  %v4170_v16 = vld [vmem:[%s4140_s22 + $0x38] sm:$0xff]  ;;  %v4044_v3 = vmov 12  }
  0x1c   : > { %465 = vperm.xlu1 %3812, %v434_v5   ;;  %460 = vperm.xlu0 %3811, %v433_v6  }
  0x20   : > { %475 = vperm.xlu1 %3812, %v436_v7   ;;  %470 = vperm.xlu0 %3811, %v435_v8  }
  0x24   : > { %508 = vperm.xlu1 %3812, %v4146_v10   ;;  %503 = vperm.xlu0 %3811, %v4143_v9  }
  0x28   : > { %518 = vperm.xlu1 %3812, %v4154_v12   ;;  %513 = vperm.xlu0 %3811, %v4151_v11  }
  0x2c   : > { %528 = vperm.xlu1 %3812, %v4162_v14   ;;  %523 = vperm.xlu0 %3811, %v4159_v13  }
  0x30   : > { %538 = vperm.xlu1 %3812, %v4170_v16   ;;  %533 = vperm.xlu0 %3811, %v4167_v15  }
  0x34   : > { %3813 = vset.pattern.permute.xlu1 %v4033_v18  ;;  %568 = vperm.xlu0 %3811, %v4177_v17  }
  0x35   : > { %589 = vperm.xlu1 %3813, %v4143_v9  }
  0x38   : > { %3814 = vset.pattern.permute.xlu0 %v4033_v18 }
  0x39   : > { %597 = vperm.xlu1 %3813, %v4151_v11   ;;  %593 = vperm.xlu0 %3814, %v4146_v10  }
  0x3d   : > { %601 = vperm.xlu1 %3813, %v4154_v12   ;;  %605 = vperm.xlu0 %3814, %v4159_v13  }
  0x41   : > { %609 = vperm.xlu1 %3813, %v4162_v14   ;;  %613 = vperm.xlu0 %3814, %v4167_v15  }
  0x45   : > { %617 = vperm.xlu1 %3813, %v4170_v16   ;;  %641 = vperm.xlu0 %3814, %v4177_v17  }
  0x49   : > { %3815 = vset.pattern.permute.xlu1 %v4034_v19  ;;  %3816 = vset.pattern.permute.xlu0 %v4034_v19  ;;  %v4045_v19 = vmov 13  }
  0x4a   : > { %662 = vperm.xlu1 %3815, %v4143_v9   ;;  %666 = vperm.xlu0 %3816, %v4146_v10  }
  0x4e   : > { %670 = vperm.xlu1 %3815, %v4151_v11   ;;  %678 = vperm.xlu0 %3816, %v4159_v13  }
  0x52   : > { %674 = vperm.xlu1 %3815, %v4154_v12   ;;  %686 = vperm.xlu0 %3816, %v4167_v15  }
  0x56   : > { %682 = vperm.xlu1 %3815, %v4162_v14   ;;  %714 = vperm.xlu0 %3816, %v4177_v17  }
  0x5a   : > { %690 = vperm.xlu1 %3815, %v4170_v16   ;;  %3818 = vset.pattern.permute.xlu0 %v4035_v20 }
  0x5b   : > { %739 = vperm.xlu0 %3818, %v4146_v10  }
  0x5e   : > { %3817 = vset.pattern.permute.xlu1 %v4035_v20 }
  0x5f   : > { %735 = vperm.xlu1 %3817, %v4143_v9   ;;  %751 = vperm.xlu0 %3818, %v4159_v13  }
  0x63   : > { %743 = vperm.xlu1 %3817, %v4151_v11   ;;  %759 = vperm.xlu0 %3818, %v4167_v15  }
  0x67   : > { %747 = vperm.xlu1 %3817, %v4154_v12   ;;  %787 = vperm.xlu0 %3818, %v4177_v17  }
  0x6b   : > { %755 = vperm.xlu1 %3817, %v4162_v14   ;;  %3820 = vset.pattern.permute.xlu0 %v4036_v21 }
  0x6c   : > { %812 = vperm.xlu0 %3820, %v4146_v10  }
  0x6f   : > { %763 = vperm.xlu1 %3817, %v4170_v16  }
  0x70   : > { %824 = vperm.xlu0 %3820, %v4159_v13  }
  0x73   : > { %3819 = vset.pattern.permute.xlu1 %v4036_v21 }
  0x74   : > { %808 = vperm.xlu1 %3819, %v4143_v9   ;;  %832 = vperm.xlu0 %3820, %v4167_v15  }
  0x78   : > { %816 = vperm.xlu1 %3819, %v4151_v11   ;;  %860 = vperm.xlu0 %3820, %v4177_v17  }
  0x7c   : > { %820 = vperm.xlu1 %3819, %v4154_v12   ;;  %3822 = vset.pattern.permute.xlu0 %v4037_v22 }
  0x7d   : > { %885 = vperm.xlu0 %3822, %v4146_v10  }
  0x80   : > { %828 = vperm.xlu1 %3819, %v4162_v14  }
  0x81   : > { %897 = vperm.xlu0 %3822, %v4159_v13  }
  0x84   : > { %836 = vperm.xlu1 %3819, %v4170_v16  }
  0x85   : > { %905 = vperm.xlu0 %3822, %v4167_v15  }
  0x88   : > { %3821 = vset.pattern.permute.xlu1 %v4037_v22 }
  0x89   : > { %881 = vperm.xlu1 %3821, %v4143_v9   ;;  %933 = vperm.xlu0 %3822, %v4177_v17  }
  0x8d   : > { %889 = vperm.xlu1 %3821, %v4151_v11   ;;  %3824 = vset.pattern.permute.xlu0 %v4038_v23 }
  0x8e   : > { %958 = vperm.xlu0 %3824, %v4146_v10  }
  0x91   : > { %893 = vperm.xlu1 %3821, %v4154_v12  }
  0x92   : > { %970 = vperm.xlu0 %3824, %v4159_v13  }
  0x93   : > { %v4225_v24 = vpop.permute.xlu1 %450  ;;  %v4243_v30 = vpop.permute.xlu0 %440 }
  0x95   : > { %901 = vperm.xlu1 %3821, %v4162_v14  }
  0x96   : > { %978 = vperm.xlu0 %3824, %v4167_v15  }
  0x97   : > { %v4229_v25 = vpop.permute.xlu1 %455  ;;  %v4250_v32 = vpop.permute.xlu0 %445 }
  0x99   : > { %909 = vperm.xlu1 %3821, %v4170_v16  }
  0x9a   : > { %1006 = vperm.xlu0 %3824, %v4177_v17  }
  0x9b   : > { %v4233_v26 = vpop.permute.xlu1 %465  ;;  %v4259_v36 = vpop.permute.xlu0 %460 }
  0x9d   : > { %3823 = vset.pattern.permute.xlu1 %v4038_v23 }
  0x9e   : > { %954 = vperm.xlu1 %3823, %v4143_v9   ;;  %3826 = vset.pattern.permute.xlu0 %v4039_v27 }
  0x9f   : > { %v4236_v28 = vpop.permute.xlu1 %475  ;;  %1031 = vperm.xlu0 %3826, %v4146_v10   ;;  %v4265_v38 = vpop.permute.xlu0 %470 }
  0xa2   : > { %962 = vperm.xlu1 %3823, %v4151_v11  }
  0xa3   : > { %v4240_v29 = vpop.permute.xlu1 %508  ;;  %1043 = vperm.xlu0 %3826, %v4159_v13   ;;  %v4275_v41 = vpop.permute.xlu0 %503 }
  0xa6   : > { %966 = vperm.xlu1 %3823, %v4154_v12  }
  0xa7   : > { %v4246_v31 = vpop.permute.xlu1 %518  ;;  %1051 = vperm.xlu0 %3826, %v4167_v15   ;;  %v4281_v44 = vpop.permute.xlu0 %513 }
  0xaa   : > { %974 = vperm.xlu1 %3823, %v4162_v14  }
  0xab   : > { %v4252_v33 = vpop.permute.xlu1 %528  ;;  %1079 = vperm.xlu0 %3826, %v4177_v17   ;;  %v4288_v46 = vpop.permute.xlu0 %523 }
  0xae   : > { %982 = vperm.xlu1 %3823, %v4170_v16  }
  0xaf   : > { %v4256_v34 = vpop.permute.xlu1 %538  ;;  %3828 = vset.pattern.permute.xlu0 %v4040_v35  ;;  %v4297_v49 = vpop.permute.xlu0 %533 }
  0xb0   : > { %1104 = vperm.xlu0 %3828, %v4146_v10  }
  0xb2   : > { %3825 = vset.pattern.permute.xlu1 %v4039_v27 }
  0xb3   : > { %1027 = vperm.xlu1 %3825, %v4143_v9   ;;  %v4304_v52 = vpop.permute.xlu0 %568 }
  0xb4   : > { %v4262_v37 = vpop.permute.xlu1 %589  ;;  %1116 = vperm.xlu0 %3828, %v4159_v13  }
  0xb7   : > { %1035 = vperm.xlu1 %3825, %v4151_v11  }
  0xb8   : > { %v4268_v39 = vpop.permute.xlu1 %597  ;;  %1124 = vperm.xlu0 %3828, %v4167_v15   ;;  %v4313_v55 = vpop.permute.xlu0 %593 }
  0xbb   : > { %1039 = vperm.xlu1 %3825, %v4154_v12  }
  0xbc   : > { %v4272_v40 = vpop.permute.xlu1 %601  ;;  %1152 = vperm.xlu0 %3828, %v4177_v17   ;;  %v4319_v57 = vpop.permute.xlu0 %605 }
  0xbf   : > { %1047 = vperm.xlu1 %3825, %v4162_v14  }
  0xc0   : > { %v4278_v42 = vpop.permute.xlu1 %609  ;;  %3830 = vset.pattern.permute.xlu0 %v4041_v43  ;;  %v4328_v61 = vpop.permute.xlu0 %613 }
  0xc1   : > { %1177 = vperm.xlu0 %3830, %v4146_v10  }
  0xc3   : > { %1055 = vperm.xlu1 %3825, %v4170_v16  }
  0xc4   : > { %v4284_v45 = vpop.permute.xlu1 %617  ;;  %v4335_v63 = vpop.permute.xlu0 %641 }
  0xc5   : > { %1189 = vperm.xlu0 %3830, %v4159_v13  }
  0xc7   : > { %3827 = vset.pattern.permute.xlu1 %v4040_v35 }
  0xc8   : > { %1100 = vperm.xlu1 %3827, %v4143_v9  }
  0xc9   : > { %v4290_v47 = vpop.permute.xlu1 %662  ;;  %1197 = vperm.xlu0 %3830, %v4167_v15   ;;  %v4342_v1 = vpop.permute.xlu0 %666 }
  0xcc   : > { %1108 = vperm.xlu1 %3827, %v4151_v11  }
  0xcd   : > { %v4294_v48 = vpop.permute.xlu1 %670  ;;  %1225 = vperm.xlu0 %3830, %v4177_v17   ;;  %v4351_v5 = vpop.permute.xlu0 %678 }
  0xd0   : > { %1112 = vperm.xlu1 %3827, %v4154_v12  }
  0xd1   : > { %v4300_v50 = vpop.permute.xlu1 %674  ;;  %3832 = vset.pattern.permute.xlu0 %v4042_v51  ;;  %v4358_v7 = vpop.permute.xlu0 %686 }
  0xd2   : > { %1250 = vperm.xlu0 %3832, %v4146_v10  }
  0xd4   : > { %1120 = vperm.xlu1 %3827, %v4162_v14  }
  0xd5   : > { %v4306_v53 = vpop.permute.xlu1 %682  ;;  %v4366_v20 = vpop.permute.xlu0 %714 }
  0xd6   : > { %1262 = vperm.xlu0 %3832, %v4159_v13  }
  0xd8   : > { %1128 = vperm.xlu1 %3827, %v4170_v16  }
  0xd9   : > { %v4310_v54 = vpop.permute.xlu1 %690 }
  0xda   : > { %1270 = vperm.xlu0 %3832, %v4167_v15   ;;  %v4373_v22 = vpop.permute.xlu0 %739 }
  0xdc   : > { %3829 = vset.pattern.permute.xlu1 %v4041_v43 }
  0xdd   : > { %1173 = vperm.xlu1 %3829, %v4143_v9  }
  0xde   : > { %v4316_v56 = vpop.permute.xlu1 %735  ;;  %1298 = vperm.xlu0 %3832, %v4177_v17   ;;  %v4382_v35 = vpop.permute.xlu0 %751 }
  0xe1   : > { %1181 = vperm.xlu1 %3829, %v4151_v11  }
  0xe2   : > { %v4322_v58 = vpop.permute.xlu1 %743  ;;  %3834 = vset.pattern.permute.xlu0 %v4043_v59 }
  0xe3   : > { %1323 = vperm.xlu0 %3834, %v4146_v10  }
  0xe5   : > { %1185 = vperm.xlu1 %3829, %v4154_v12  }
  0xe6   : > { %v4326_v60 = vpop.permute.xlu1 %747 }
  0xe7   : > { %1335 = vperm.xlu0 %3834, %v4159_v13  }
  0xe9   : > { %1193 = vperm.xlu1 %3829, %v4162_v14  }
  0xea   : > { %v4332_v62 = vpop.permute.xlu1 %755 }
  0xeb   : > { %6632 = vst [vmem:[#allocation2_spill] sm:$0xff] %v4332_v62  ;;  %1343 = vperm.xlu0 %3834, %v4167_v15   ;;  %v6586_v62 = vmov 30  }
  0xed   : > { %1201 = vperm.xlu1 %3829, %v4170_v16  }
  0xee   : > { %v4338_v0 = vpop.permute.xlu1 %763 }
  0xef   : > { %1371 = vperm.xlu0 %3834, %v4177_v17  }
  0xf1   : > { %3831 = vset.pattern.permute.xlu1 %v4042_v51  ;;  %v6537_v51 = vmov 14  }
  0xf2   : > { %1246 = vperm.xlu1 %3831, %v4143_v9  }
  0xf3   : > { %v4344_v2 = vpop.permute.xlu1 %808  ;;  %3836 = vset.pattern.permute.xlu0 %v4044_v3 }
  0xf4   : > { %6633 = vst [vmem:[#allocation3_spill] sm:$0xff] %v4344_v2  ;;  %1396 = vperm.xlu0 %3836, %v4146_v10  }
  0xf6   : > { %1254 = vperm.xlu1 %3831, %v4151_v11  }
  0xf7   : > { %v4348_v4 = vpop.permute.xlu1 %816 }
  0xf8   : > { %6634 = vst [vmem:[#allocation4_spill] sm:$0xff] %v4348_v4  ;;  %1408 = vperm.xlu0 %3836, %v4159_v13   ;;  %v6551_v4 = vmov 20  }
  0xfa   : > { %1258 = vperm.xlu1 %3831, %v4154_v12  }
  0xfb   : > { %v4354_v6 = vpop.permute.xlu1 %820 }
  0xfc   : > { %6635 = vst [vmem:[#allocation5_spill] sm:$0xff] %v4354_v6  ;;  %1416 = vperm.xlu0 %3836, %v4167_v15  }
  0xfe   : > { %1266 = vperm.xlu1 %3831, %v4162_v14  }
  0xff   : > { %v4360_v8 = vpop.permute.xlu1 %828 }
 0x100   : > { %6636 = vst [vmem:[#allocation6_spill] sm:$0xff] %v4360_v8  ;;  %1444 = vperm.xlu0 %3836, %v4177_v17  }
 0x102   : > { %1274 = vperm.xlu1 %3831, %v4170_v16  }
 0x103   : > { %v4364_v18 = vpop.permute.xlu1 %836 }
 0x104   : > { %6637 = vst [vmem:[#allocation7_spill] sm:$0xff] %v4364_v18  ;;  %3838 = vset.pattern.permute.xlu0 %v4045_v19 }
 0x105   : > { %1469 = vperm.xlu0 %3838, %v4146_v10  }
 0x106   : > { %3833 = vset.pattern.permute.xlu1 %v4043_v59  ;;  %v4390_v59 = vpop.permute.xlu0 %759 }
 0x107   : > { %1319 = vperm.xlu1 %3833, %v4143_v9  }
 0x108   : > { %v4370_v21 = vpop.permute.xlu1 %881 }
 0x109   : > { %6638 = vst [vmem:[#allocation8_spill] sm:$0xff] %v4370_v21  ;;  %1481 = vperm.xlu0 %3838, %v4159_v13   ;;  %v6541_v21 = vmov 16  }
 0x10b   : > { %1327 = vperm.xlu1 %3833, %v4151_v11  }
 0x10c   : > { %v4376_v23 = vpop.permute.xlu1 %889 }
 0x10d   : > { %6639 = vst [vmem:[#allocation9_spill] sm:$0xff] %v4376_v23  ;;  %1489 = vperm.xlu0 %3838, %v4167_v15  }
 0x10f   : > { %1331 = vperm.xlu1 %3833, %v4154_v12  }
 0x110   : > { %v4380_v27 = vpop.permute.xlu1 %893 }
 0x111   : > { %6640 = vst [vmem:[#allocation10_spill] sm:$0xff] %v4380_v27  ;;  %1517 = vperm.xlu0 %3838, %v4177_v17   ;;  %v4397_v27 = vpop.permute.xlu0 %787 }
 0x113   : > { %1339 = vperm.xlu1 %3833, %v4162_v14  }
 0x114   : > { %v4386_v43 = vpop.permute.xlu1 %901 }
 0x115   : > { %6641 = vst [vmem:[#allocation11_spill] sm:$0xff] %v4386_v43  ;;  %3840 = vset.pattern.permute.xlu0 %v6537_v51  ;;  %v6539_v43 = vmov 15   ;;  %v4406_v23 = vpop.permute.xlu0 %812 }
 0x116   : > { %1554 = vperm.xlu0 %3840, %v4159_v13   ;;  %6645 = vst [vmem:[#allocation15_spill] sm:$0xff] %v4406_v23 }
 0x117   : > { %1347 = vperm.xlu1 %3833, %v4170_v16  }
 0x118   : > { %v4393_v8 = vpop.permute.xlu1 %909 }
 0x119   : > { %6642 = vst [vmem:[#allocation12_spill] sm:$0xff] %v4393_v8 }
 0x11a   : > { %1562 = vperm.xlu0 %3840, %v4167_v15  }
 0x11b   : > { %3835 = vset.pattern.permute.xlu1 %v4044_v3 }
 0x11c   : > { %1392 = vperm.xlu1 %3835, %v4143_v9  }
 0x11d   : > { %v4399_v6 = vpop.permute.xlu1 %954 }
 0x11e   : > { %6643 = vst [vmem:[#allocation13_spill] sm:$0xff] %v4399_v6  ;;  %3843 = vset.pattern.permute.xlu0 %v6539_v43  ;;  %v4414_v6 = vpop.permute.xlu0 %824 }
 0x11f   : > { %1611 = vperm.xlu0 %3843, %v4143_v9   ;;  %6647 = vst [vmem:[#allocation17_spill] sm:$0xff] %v4414_v6  ;;  %v6549_v6 = vmov 19  }
 0x120   : > { %1400 = vperm.xlu1 %3835, %v4151_v11  }
 0x121   : > { %v4404_v51 = vpop.permute.xlu1 %962 }
 0x122   : > { %6644 = vst [vmem:[#allocation14_spill] sm:$0xff] %v4404_v51  ;;  %v4422_v8 = vpop.permute.xlu0 %832 }
 0x123   : > { %1631 = vperm.xlu0 %3843, %v4162_v14   ;;  %6650 = vst [vmem:[#allocation20_spill] sm:$0xff] %v4422_v8  ;;  %v6546_v8 = vmov 18  }
 0x124   : > { %1404 = vperm.xlu1 %3835, %v4154_v12  }
 0x125   : > { %v4410_v3 = vpop.permute.xlu1 %966 }
 0x126   : > { %6646 = vst [vmem:[#allocation16_spill] sm:$0xff] %v4410_v3 }
 0x127   : > { %1619 = vperm.xlu0 %3843, %v4151_v11  }
 0x128   : > { %1412 = vperm.xlu1 %3835, %v4162_v14  }
 0x129   : > { %v4416_v43 = vpop.permute.xlu1 %974 }
 0x12a   : > { %6648 = vst [vmem:[#allocation18_spill] sm:$0xff] %v4416_v43  ;;  %v4430_v43 = vpop.permute.xlu0 %860 }
 0x12b   : > { %1639 = vperm.xlu0 %3843, %v4170_v16   ;;  %6652 = vst [vmem:[#allocation22_spill] sm:$0xff] %v4430_v43 }
 0x12c   : > { %1420 = vperm.xlu1 %3835, %v4170_v16  }
 0x12d   : > { %v4420_v51 = vpop.permute.xlu1 %982 }
 0x12e   : > { %6649 = vst [vmem:[#allocation19_spill] sm:$0xff] %v4420_v51  ;;  %v6544_v51 = vmov 17  }
 0x12f   : > { %3850 = vset.pattern.permute.xlu0 %v6541_v21 }
 0x130   : > { %3837 = vset.pattern.permute.xlu1 %v4045_v19  ;;  %1700 = vperm.xlu0 %3850, %v4159_v13   ;;  %v4439_v19 = vpop.permute.xlu0 %885 }
 0x131   : > { %1465 = vperm.xlu1 %3837, %v4143_v9   ;;  %6655 = vst [vmem:[#allocation25_spill] sm:$0xff] %v4439_v19 }
 0x132   : > { %v4427_v3 = vpop.permute.xlu1 %1027 }
 0x133   : > { %6651 = vst [vmem:[#allocation21_spill] sm:$0xff] %v4427_v3 }
 0x134   : > { %1688 = vperm.xlu0 %3850, %v4146_v10   ;;  %v4446_v43 = vpop.permute.xlu0 %897 }
 0x135   : > { %1473 = vperm.xlu1 %3837, %v4151_v11   ;;  %6657 = vst [vmem:[#allocation27_spill] sm:$0xff] %v4446_v43 }
 0x136   : > { %v4433_v18 = vpop.permute.xlu1 %1035 }
 0x137   : > { %6653 = vst [vmem:[#allocation23_spill] sm:$0xff] %v4433_v18 }
 0x138   : > { %1692 = vperm.xlu0 %3850, %v4151_v11   ;;  %v4455_v19 = vpop.permute.xlu0 %905 }
 0x139   : > { %1477 = vperm.xlu1 %3837, %v4154_v12   ;;  %6660 = vst [vmem:[#allocation29_spill] sm:$0xff] %v4455_v19  ;;  %v6665_v19 = vmov 15  }
 0x13a   : > { %v4437_v21 = vpop.permute.xlu1 %1039 }
 0x13b   : > { %6654 = vst [vmem:[#allocation24_spill] sm:$0xff] %v4437_v21  ;;  %v6659_v21 = vmov 14  }
 0x13c   : > { %1712 = vperm.xlu0 %3850, %v4170_v16   ;;  %v4463_v43 = vpop.permute.xlu0 %933 }
 0x13d   : > { %1485 = vperm.xlu1 %3837, %v4162_v14   ;;  %6663 = vst [vmem:[#allocation32_spill] sm:$0xff] %v4463_v43 }
 0x13e   : > { %v4443_v3 = vpop.permute.xlu1 %1047 }
 0x13f   : > { %6656 = vst [vmem:[#allocation26_spill] sm:$0xff] %v4443_v3 }
 0x140   : > { %3855 = vset.pattern.permute.xlu0 %v6544_v51 }
 0x141   : > { %1493 = vperm.xlu1 %3837, %v4170_v16   ;;  %1757 = vperm.xlu0 %3855, %v4143_v9  }
 0x142   : > { %v4450_v18 = vpop.permute.xlu1 %1055 }
 0x143   : > { %6658 = vst [vmem:[#allocation28_spill] sm:$0xff] %v4450_v18 }
 0x145   : > { %3839 = vset.pattern.permute.xlu1 %v6659_v21  ;;  %1765 = vperm.xlu0 %3855, %v4151_v11  }
 0x146   : > { %1538 = vperm.xlu1 %3839, %v4143_v9  }
 0x147   : > { %v4457_v3 = vpop.permute.xlu1 %1100 }
 0x148   : > { %6661 = vst [vmem:[#allocation30_spill] sm:$0xff] %v4457_v3  ;;  %v4472_v3 = vpop.permute.xlu0 %958 }
 0x149   : > { %1785 = vperm.xlu0 %3855, %v4170_v16   ;;  %6666 = vst [vmem:[#allocation34_spill] sm:$0xff] %v4472_v3 }
 0x14a   : > { %1542 = vperm.xlu1 %3839, %v4146_v10  }
 0x14b   : > { %v4461_v51 = vpop.permute.xlu1 %1108 }
 0x14c   : > { %6662 = vst [vmem:[#allocation31_spill] sm:$0xff] %v4461_v51  ;;  %v4481_v43 = vpop.permute.xlu0 %970 }
 0x14d   : > { %3860 = vset.pattern.permute.xlu0 %v6546_v8  ;;  %6669 = vst [vmem:[#allocation37_spill] sm:$0xff] %v4481_v43  ;;  %v6673_v43 = vmov 16  }
 0x14e   : > { %1558 = vperm.xlu1 %3839, %v4162_v14   ;;  %1830 = vperm.xlu0 %3860, %v4143_v9  }
 0x14f   : > { %v4468_v18 = vpop.permute.xlu1 %1112 }
 0x150   : > { %6664 = vst [vmem:[#allocation33_spill] sm:$0xff] %v4468_v18 }
 0x152   : > { %3841 = vset.pattern.permute.xlu1 %v6665_v19  ;;  %1838 = vperm.xlu0 %3860, %v4151_v11  }
 0x153   : > { %1627 = vperm.xlu1 %3841, %v4159_v13   ;;  %v4475_v51 = vpop.permute.xlu1 %1120 }
 0x154   : > { %6667 = vst [vmem:[#allocation35_spill] sm:$0xff] %v4475_v51  ;;  %v4489_v51 = vpop.permute.xlu0 %978 }
 0x155   : > { %6671 = vst [vmem:[#allocation39_spill] sm:$0xff] %v4489_v51 }
 0x156   : > { %1858 = vperm.xlu0 %3860, %v4170_v16  }
 0x157   : > { %1615 = vperm.xlu1 %3841, %v4146_v10   ;;  %v4479_v8 = vpop.permute.xlu1 %1128 }
 0x158   : > { %6668 = vst [vmem:[#allocation36_spill] sm:$0xff] %v4479_v8  ;;  %v4499_v8 = vpop.permute.xlu0 %1006 }
 0x159   : > { %6675 = vst [vmem:[#allocation42_spill] sm:$0xff] %v4499_v8 }
 0x15a   : > { %3865 = vset.pattern.permute.xlu0 %v6549_v6 }
 0x15b   : > { %3842 = vset.pattern.permute.xlu1 %v6659_v21  ;;  %1903 = vperm.xlu0 %3865, %v4143_v9  }
 0x15c   : > { %1546 = vperm.xlu1 %3842, %v4151_v11   ;;  %v4487_v18 = vpop.permute.xlu1 %1173 }
 0x15d   : > { %6670 = vst [vmem:[#allocation38_spill] sm:$0xff] %v4487_v18  ;;  %v4508_v18 = vpop.permute.xlu0 %1031 }
 0x15e   : > { %6677 = vst [vmem:[#allocation44_spill] sm:$0xff] %v4508_v18 }
 0x15f   : > { %1911 = vperm.xlu0 %3865, %v4151_v11  }
 0x160   : > { %1590 = vperm.xlu1 %3842, %v4177_v17   ;;  %v4493_v3 = vpop.permute.xlu1 %1181 }
 0x161   : > { %6672 = vst [vmem:[#allocation40_spill] sm:$0xff] %v4493_v3 }
 0x163   : > { %1931 = vperm.xlu0 %3865, %v4170_v16  }
 0x164   : > { %3844 = vset.pattern.permute.xlu1 %v6673_v43  ;;  %v4497_v6 = vpop.permute.xlu1 %1185 }
 0x165   : > { %6674 = vst [vmem:[#allocation41_spill] sm:$0xff] %v4497_v6  ;;  %1684 = vperm.xlu1 %3844, %v4143_v9   ;;  %v4515_v6 = vpop.permute.xlu0 %1043 }
 0x166   : > { %6679 = vst [vmem:[#allocation46_spill] sm:$0xff] %v4515_v6 }
 0x167   : > { %3870 = vset.pattern.permute.xlu0 %v6551_v4 }
 0x168   : > { %v4503_v51 = vpop.permute.xlu1 %1193  ;;  %1976 = vperm.xlu0 %3870, %v4143_v9  }
 0x169   : > { %6676 = vst [vmem:[#allocation43_spill] sm:$0xff] %v4503_v51  ;;  %3845 = vset.pattern.permute.xlu1 %v6659_v21  ;;  %v6553_v21 = vmov 21   ;;  %v4525_v18 = vpop.permute.xlu0 %1051 }
 0x16a   : > { %1550 = vperm.xlu1 %3845, %v4154_v12   ;;  %6682 = vst [vmem:[#allocation49_spill] sm:$0xff] %v4525_v18 }
 0x16c   : > { %v4510_v3 = vpop.permute.xlu1 %1201  ;;  %1984 = vperm.xlu0 %3870, %v4151_v11  }
 0x16d   : > { %6678 = vst [vmem:[#allocation45_spill] sm:$0xff] %v4510_v3 }
 0x16e   : > { %1566 = vperm.xlu1 %3845, %v4170_v16  }
 0x170   : > { %2004 = vperm.xlu0 %3870, %v4170_v16  }
 0x171   : > { %v4517_v4 = vpop.permute.xlu1 %1246 }
 0x172   : > { %6680 = vst [vmem:[#allocation47_spill] sm:$0xff] %v4517_v4  ;;  %3846 = vset.pattern.permute.xlu1 %v6673_v43  ;;  %v4533_v4 = vpop.permute.xlu0 %1079 }
 0x173   : > { %1704 = vperm.xlu1 %3846, %v4162_v14   ;;  %6684 = vst [vmem:[#allocation51_spill] sm:$0xff] %v4533_v4 }
 0x174   : > { %3875 = vset.pattern.permute.xlu0 %v6553_v21  ;;  %v6686_v21 = vmov 17  }
 0x175   : > { %v4522_v51 = vpop.permute.xlu1 %1254  ;;  %2049 = vperm.xlu0 %3875, %v4143_v9  }
 0x176   : > { %6681 = vst [vmem:[#allocation48_spill] sm:$0xff] %v4522_v51  ;;  %v4546_v51 = vpop.permute.xlu0 %1104 }
 0x177   : > { %3847 = vset.pattern.permute.xlu1 %v6665_v19  ;;  %6689 = vst [vmem:[#allocation55_spill] sm:$0xff] %v4546_v51 }
 0x178   : > { %1635 = vperm.xlu1 %3847, %v4167_v15  }
 0x179   : > { %v4529_v6 = vpop.permute.xlu1 %1258  ;;  %2057 = vperm.xlu0 %3875, %v4151_v11  }
 0x17a   : > { %6683 = vst [vmem:[#allocation50_spill] sm:$0xff] %v4529_v6 }
 0x17c   : > { %1663 = vperm.xlu1 %3847, %v4177_v17  }
 0x17d   : > { %v4535_v3 = vpop.permute.xlu1 %1266  ;;  %2077 = vperm.xlu0 %3875, %v4170_v16  }
 0x17e   : > { %6685 = vst [vmem:[#allocation52_spill] sm:$0xff] %v4535_v3  ;;  %v6557_v3 = vmov 22  }
 0x180   : > { %3848 = vset.pattern.permute.xlu1 %v6686_v21 }
 0x181   : > { %1773 = vperm.xlu1 %3848, %v4159_v13   ;;  %v4540_v18 = vpop.permute.xlu1 %1274  ;;  %3880 = vset.pattern.permute.xlu0 %v6557_v3 }
 0x182   : > { %6687 = vst [vmem:[#allocation53_spill] sm:$0xff] %v4540_v18  ;;  %2122 = vperm.xlu0 %3880, %v4143_v9  }
 0x185   : > { %3849 = vset.pattern.permute.xlu1 %v6665_v19  ;;  %v4557_v19 = vpop.permute.xlu0 %1116 }
 0x186   : > { %1623 = vperm.xlu1 %3849, %v4154_v12   ;;  %v4544_v6 = vpop.permute.xlu1 %1319  ;;  %6692 = vst [vmem:[#allocation58_spill] sm:$0xff] %v4557_v19  ;;  %2130 = vperm.xlu0 %3880, %v4151_v11  }
 0x187   : > { %6688 = vst [vmem:[#allocation54_spill] sm:$0xff] %v4544_v6 }
 0x189   : > { %v4564_v51 = vpop.permute.xlu0 %1124 }
 0x18a   : > { %3851 = vset.pattern.permute.xlu1 %v6686_v21  ;;  %v4549_v4 = vpop.permute.xlu1 %1327  ;;  %6694 = vst [vmem:[#allocation60_spill] sm:$0xff] %v4564_v51  ;;  %2150 = vperm.xlu0 %3880, %v4170_v16  }
 0x18b   : > { %6690 = vst [vmem:[#allocation56_spill] sm:$0xff] %v4549_v4  ;;  %1761 = vperm.xlu1 %3851, %v4146_v10  }
 0x18d   : > { %v4580_v51 = vpop.permute.xlu0 %1152 }
 0x18e   : > { %v4553_v8 = vpop.permute.xlu1 %1331  ;;  %6700 = vst [vmem:[#allocation65_spill] sm:$0xff] %v4580_v51  ;;  %v6707_v51 = vmov 19  }
 0x18f   : > { %6691 = vst [vmem:[#allocation57_spill] sm:$0xff] %v4553_v8  ;;  %1777 = vperm.xlu1 %3851, %v4162_v14   ;;  %v6697_v8 = vmov 18  }
 0x192   : > { %v4559_v6 = vpop.permute.xlu1 %1339 }
 0x193   : > { %6693 = vst [vmem:[#allocation59_spill] sm:$0xff] %v4559_v6  ;;  %3852 = vset.pattern.permute.xlu1 %v6673_v43 }
 0x194   : > { %1708 = vperm.xlu1 %3852, %v4167_v15  }
 0x196   : > { %v4566_v4 = vpop.permute.xlu1 %1347 }
 0x197   : > { %6695 = vst [vmem:[#allocation61_spill] sm:$0xff] %v4566_v4 }
 0x198   : > { %1736 = vperm.xlu1 %3852, %v4177_v17  }
 0x19b   : > { %v4570_v3 = vpop.permute.xlu1 %1392 }
 0x19c   : > { %6696 = vst [vmem:[#allocation62_spill] sm:$0xff] %v4570_v3  ;;  %3853 = vset.pattern.permute.xlu1 %v6697_v8  ;;  %v6559_v3 = vmov 23  }
 0x19d   : > { %1846 = vperm.xlu1 %3853, %v4159_v13   ;;  %3885 = vset.pattern.permute.xlu0 %v6559_v3 }
 0x19e   : > { %2195 = vperm.xlu0 %3885, %v4143_v9  }
 0x19f   : > { %v4574_v6 = vpop.permute.xlu1 %1400 }
 0x1a0   : > { %6698 = vst [vmem:[#allocation63_spill] sm:$0xff] %v4574_v6  ;;  %v4591_v6 = vpop.permute.xlu0 %1177 }
 0x1a1   : > { %3854 = vset.pattern.permute.xlu1 %v6673_v43  ;;  %6703 = vst [vmem:[#allocation68_spill] sm:$0xff] %v4591_v6 }
 0x1a2   : > { %1696 = vperm.xlu1 %3854, %v4154_v12   ;;  %2203 = vperm.xlu0 %3885, %v4151_v11  }
 0x1a3   : > { %v4578_v19 = vpop.permute.xlu1 %1404 }
 0x1a4   : > { %6699 = vst [vmem:[#allocation64_spill] sm:$0xff] %v4578_v19 }
 0x1a6   : > { %3856 = vset.pattern.permute.xlu1 %v6697_v8 }
 0x1a7   : > { %1834 = vperm.xlu1 %3856, %v4146_v10   ;;  %v4584_v4 = vpop.permute.xlu1 %1412 }
 0x1a8   : > { %6701 = vst [vmem:[#allocation66_spill] sm:$0xff] %v4584_v4  ;;  %v4598_v4 = vpop.permute.xlu0 %1189  ;;  %2223 = vperm.xlu0 %3885, %v4170_v16  }
 0x1a9   : > { %6705 = vst [vmem:[#allocation70_spill] sm:$0xff] %v4598_v4 }
 0x1ab   : > { %1850 = vperm.xlu1 %3856, %v4162_v14   ;;  %v4589_v43 = vpop.permute.xlu1 %1420 }
 0x1ac   : > { %6702 = vst [vmem:[#allocation67_spill] sm:$0xff] %v4589_v43  ;;  %v4607_v6 = vpop.permute.xlu0 %1197 }
 0x1ad   : > { %6709 = vst [vmem:[#allocation73_spill] sm:$0xff] %v4607_v6  ;;  %v6562_v6 = vmov 24  }
 0x1ae   : > { %3890 = vset.pattern.permute.xlu0 %v6562_v6 }
 0x1af   : > { %3857 = vset.pattern.permute.xlu1 %v6686_v21  ;;  %2268 = vperm.xlu0 %3890, %v4143_v9  }
 0x1b0   : > { %1781 = vperm.xlu1 %3857, %v4167_v15   ;;  %v4596_v19 = vpop.permute.xlu1 %1465  ;;  %v4614_v4 = vpop.permute.xlu0 %1225 }
 0x1b1   : > { %6704 = vst [vmem:[#allocation69_spill] sm:$0xff] %v4596_v19  ;;  %6711 = vst [vmem:[#allocation75_spill] sm:$0xff] %v4614_v4 }
 0x1b3   : > { %2276 = vperm.xlu0 %3890, %v4151_v11  }
 0x1b4   : > { %1809 = vperm.xlu1 %3857, %v4177_v17   ;;  %v4602_v3 = vpop.permute.xlu1 %1473 }
 0x1b5   : > { %6706 = vst [vmem:[#allocation71_spill] sm:$0xff] %v4602_v3  ;;  %v4620_v3 = vpop.permute.xlu0 %1250 }
 0x1b6   : > { %6713 = vst [vmem:[#allocation77_spill] sm:$0xff] %v4620_v3 }
 0x1b7   : > { %2296 = vperm.xlu0 %3890, %v4170_v16  }
 0x1b8   : > { %3858 = vset.pattern.permute.xlu1 %v6707_v51  ;;  %v4605_v43 = vpop.permute.xlu1 %1477 }
 0x1b9   : > { %6708 = vst [vmem:[#allocation72_spill] sm:$0xff] %v4605_v43  ;;  %1919 = vperm.xlu1 %3858, %v4159_v13  }
 0x1bc   : > { %v4610_v18 = vpop.permute.xlu1 %1485 }
 0x1bd   : > { %6710 = vst [vmem:[#allocation74_spill] sm:$0xff] %v4610_v18  ;;  %3859 = vset.pattern.permute.xlu1 %v6686_v21  ;;  %v4630_v18 = vpop.permute.xlu0 %1262 }
 0x1be   : > { %1769 = vperm.xlu1 %3859, %v4154_v12   ;;  %6716 = vst [vmem:[#allocation80_spill] sm:$0xff] %v4630_v18 }
 0x1c0   : > { %v4616_v19 = vpop.permute.xlu1 %1493 }
 0x1c1   : > { %6712 = vst [vmem:[#allocation76_spill] sm:$0xff] %v4616_v19  ;;  %v4638_v6 = vpop.permute.xlu0 %1270  ;;  %v6720_v19 = vmov 20  }
 0x1c2   : > { %3861 = vset.pattern.permute.xlu1 %v6707_v51  ;;  %6718 = vst [vmem:[#allocation82_spill] sm:$0xff] %v4638_v6  ;;  %v6566_v6 = vmov 25  }
 0x1c3   : > { %1907 = vperm.xlu1 %3861, %v4146_v10   ;;  %3895 = vset.pattern.permute.xlu0 %v6566_v6 }
 0x1c4   : > { %2341 = vperm.xlu0 %3895, %v4143_v9  }
 0x1c5   : > { %v4622_v43 = vpop.permute.xlu1 %1538  ;;  %v4646_v18 = vpop.permute.xlu0 %1298 }
 0x1c6   : > { %6714 = vst [vmem:[#allocation78_spill] sm:$0xff] %v4622_v43  ;;  %6722 = vst [vmem:[#allocation85_spill] sm:$0xff] %v4646_v18 }
 0x1c7   : > { %1923 = vperm.xlu1 %3861, %v4162_v14  }
 0x1c8   : > { %2349 = vperm.xlu0 %3895, %v4151_v11  }
 0x1c9   : > { %v4627_v21 = vpop.permute.xlu1 %1542  ;;  %v4652_v4 = vpop.permute.xlu0 %1323 }
 0x1ca   : > { %6715 = vst [vmem:[#allocation79_spill] sm:$0xff] %v4627_v21  ;;  %6724 = vst [vmem:[#allocation87_spill] sm:$0xff] %v4652_v4 }
 0x1cb   : > { %3862 = vset.pattern.permute.xlu1 %v6697_v8 }
 0x1cc   : > { %1854 = vperm.xlu1 %3862, %v4167_v15   ;;  %2369 = vperm.xlu0 %3895, %v4170_v16  }
 0x1cd   : > { %v4634_v3 = vpop.permute.xlu1 %1558 }
 0x1ce   : > { %6717 = vst [vmem:[#allocation81_spill] sm:$0xff] %v4634_v3 }
 0x1d0   : > { %1882 = vperm.xlu1 %3862, %v4177_v17  }
 0x1d2   : > { %v4640_v43 = vpop.permute.xlu1 %1627 }
 0x1d3   : > { %6719 = vst [vmem:[#allocation83_spill] sm:$0xff] %v4640_v43 }
 0x1d4   : > { %3863 = vset.pattern.permute.xlu1 %v6720_v19 }
 0x1d5   : > { %1992 = vperm.xlu1 %3863, %v4159_v13  }
 0x1d6   : > { %v4644_v21 = vpop.permute.xlu1 %1615 }
 0x1d7   : > { %6721 = vst [vmem:[#allocation84_spill] sm:$0xff] %v4644_v21  ;;  %v4659_v21 = vpop.permute.xlu0 %1335 }
 0x1d8   : > { %6726 = vst [vmem:[#allocation89_spill] sm:$0xff] %v4659_v21 }
 0x1d9   : > { %3864 = vset.pattern.permute.xlu1 %v6697_v8 }
 0x1da   : > { %1842 = vperm.xlu1 %3864, %v4154_v12  }
 0x1db   : > { %v4650_v3 = vpop.permute.xlu1 %1546  ;;  %v4668_v4 = vpop.permute.xlu0 %1343 }
 0x1dc   : > { %6723 = vst [vmem:[#allocation86_spill] sm:$0xff] %v4650_v3  ;;  %6728 = vst [vmem:[#allocation91_spill] sm:$0xff] %v4668_v4  ;;  %v6732_v3 = vmov 21  }
 0x1de   : > { %3866 = vset.pattern.permute.xlu1 %v6720_v19 }
 0x1df   : > { %1980 = vperm.xlu1 %3866, %v4146_v10   ;;  %v4656_v43 = vpop.permute.xlu1 %1590  ;;  %v4676_v21 = vpop.permute.xlu0 %1371 }
 0x1e0   : > { %6725 = vst [vmem:[#allocation88_spill] sm:$0xff] %v4656_v43  ;;  %6731 = vst [vmem:[#allocation94_spill] sm:$0xff] %v4676_v21 }
 0x1e3   : > { %1996 = vperm.xlu1 %3866, %v4162_v14   ;;  %v4682_v18 = vpop.permute.xlu0 %1396 }
 0x1e4   : > { %v4663_v8 = vpop.permute.xlu1 %1684  ;;  %6734 = vst [vmem:[#allocation96_spill] sm:$0xff] %v4682_v18  ;;  %v6570_v18 = vmov 26  }
 0x1e5   : > { %6727 = vst [vmem:[#allocation90_spill] sm:$0xff] %v4663_v8  ;;  %3900 = vset.pattern.permute.xlu0 %v6570_v18 }
 0x1e6   : > { %2414 = vperm.xlu0 %3900, %v4143_v9  }
 0x1e7   : > { %3867 = vset.pattern.permute.xlu1 %v6707_v51  ;;  %v4689_v4 = vpop.permute.xlu0 %1408 }
 0x1e8   : > { %1927 = vperm.xlu1 %3867, %v4167_v15   ;;  %6736 = vst [vmem:[#allocation98_spill] sm:$0xff] %v4689_v4 }
 0x1e9   : > { %v4670_v43 = vpop.permute.xlu1 %1550 }
 0x1ea   : > { %6729 = vst [vmem:[#allocation92_spill] sm:$0xff] %v4670_v43  ;;  %2422 = vperm.xlu0 %3900, %v4151_v11  }
 0x1ec   : > { %1955 = vperm.xlu1 %3867, %v4177_v17  }
 0x1ed   : > { %v4674_v6 = vpop.permute.xlu1 %1566 }
 0x1ee   : > { %6730 = vst [vmem:[#allocation93_spill] sm:$0xff] %v4674_v6  ;;  %2442 = vperm.xlu0 %3900, %v4170_v16  }
 0x1f0   : > { %3868 = vset.pattern.permute.xlu1 %v6732_v3 }
 0x1f1   : > { %2065 = vperm.xlu1 %3868, %v4159_v13  }
 0x1f2   : > { %v4680_v8 = vpop.permute.xlu1 %1704 }
 0x1f3   : > { %6733 = vst [vmem:[#allocation95_spill] sm:$0xff] %v4680_v8  ;;  %v4697_v8 = vpop.permute.xlu0 %1416 }
 0x1f4   : > { %6739 = vst [vmem:[#allocation101_spill] sm:$0xff] %v4697_v8  ;;  %v6743_v8 = vmov 22  }
 0x1f5   : > { %3869 = vset.pattern.permute.xlu1 %v6707_v51 }
 0x1f6   : > { %1915 = vperm.xlu1 %3869, %v4154_v12  }
 0x1f7   : > { %v4686_v43 = vpop.permute.xlu1 %1635 }
 0x1f8   : > { %6735 = vst [vmem:[#allocation97_spill] sm:$0xff] %v4686_v43  ;;  %v4706_v43 = vpop.permute.xlu0 %1444 }
 0x1f9   : > { %6741 = vst [vmem:[#allocation103_spill] sm:$0xff] %v4706_v43 }
 0x1fa   : > { %3871 = vset.pattern.permute.xlu1 %v6732_v3 }
 0x1fb   : > { %2053 = vperm.xlu1 %3871, %v4146_v10   ;;  %v4692_v21 = vpop.permute.xlu1 %1663 }
 0x1fc   : > { %6737 = vst [vmem:[#allocation99_spill] sm:$0xff] %v4692_v21  ;;  %v4713_v18 = vpop.permute.xlu0 %1469 }
 0x1fd   : > { %6744 = vst [vmem:[#allocation105_spill] sm:$0xff] %v4713_v18 }
 0x1ff   : > { %2069 = vperm.xlu1 %3871, %v4162_v14  }
 0x200   : > { %v4695_v6 = vpop.permute.xlu1 %1773 }
 0x201   : > { %6738 = vst [vmem:[#allocation100_spill] sm:$0xff] %v4695_v6 }
 0x203   : > { %3872 = vset.pattern.permute.xlu1 %v6720_v19 }
 0x204   : > { %2000 = vperm.xlu1 %3872, %v4167_v15  }
 0x205   : > { %v4703_v51 = vpop.permute.xlu1 %1623 }
 0x206   : > { %6740 = vst [vmem:[#allocation102_spill] sm:$0xff] %v4703_v51  ;;  %v4720_v51 = vpop.permute.xlu0 %1481 }
 0x207   : > { %6746 = vst [vmem:[#allocation107_spill] sm:$0xff] %v4720_v51 }
 0x208   : > { %2028 = vperm.xlu1 %3872, %v4177_v17  }
 0x20a   : > { %v4709_v6 = vpop.permute.xlu1 %1761  ;;  %v4728_v43 = vpop.permute.xlu0 %1489 }
 0x20b   : > { %6742 = vst [vmem:[#allocation104_spill] sm:$0xff] %v4709_v6  ;;  %6749 = vst [vmem:[#allocation110_spill] sm:$0xff] %v4728_v43 }
 0x20c   : > { %3873 = vset.pattern.permute.xlu1 %v6743_v8 }
 0x20d   : > { %2138 = vperm.xlu1 %3873, %v4159_v13  }
 0x20e   : > { %v4716_v4 = vpop.permute.xlu1 %1777 }
 0x20f   : > { %6745 = vst [vmem:[#allocation106_spill] sm:$0xff] %v4716_v4  ;;  %v6574_v4 = vmov 27  }
 0x210   : > { %3905 = vset.pattern.permute.xlu0 %v6574_v4  ;;  %v6755_v4 = vmov 23  }
 0x211   : > { %3874 = vset.pattern.permute.xlu1 %v6720_v19  ;;  %2487 = vperm.xlu0 %3905, %v4143_v9   ;;  %v4735_v19 = vpop.permute.xlu0 %1517 }
 0x212   : > { %1988 = vperm.xlu1 %3874, %v4154_v12   ;;  %6751 = vst [vmem:[#allocation112_spill] sm:$0xff] %v4735_v19 }
 0x213   : > { %v4722_v21 = vpop.permute.xlu1 %1708 }
 0x214   : > { %6747 = vst [vmem:[#allocation108_spill] sm:$0xff] %v4722_v21 }
 0x215   : > { %2495 = vperm.xlu0 %3905, %v4151_v11   ;;  %v4742_v43 = vpop.permute.xlu0 %1554 }
 0x216   : > { %3876 = vset.pattern.permute.xlu1 %v6743_v8  ;;  %6753 = vst [vmem:[#allocation114_spill] sm:$0xff] %v4742_v43 }
 0x217   : > { %2126 = vperm.xlu1 %3876, %v4146_v10   ;;  %v4726_v6 = vpop.permute.xlu1 %1736 }
 0x218   : > { %6748 = vst [vmem:[#allocation109_spill] sm:$0xff] %v4726_v6 }
 0x219   : > { %2515 = vperm.xlu0 %3905, %v4170_v16   ;;  %v4749_v51 = vpop.permute.xlu0 %1562 }
 0x21a   : > { %6756 = vst [vmem:[#allocation116_spill] sm:$0xff] %v4749_v51 }
 0x21b   : > { %2142 = vperm.xlu1 %3876, %v4162_v14  }
 0x21c   : > { %v4731_v18 = vpop.permute.xlu1 %1846 }
 0x21d   : > { %6750 = vst [vmem:[#allocation111_spill] sm:$0xff] %v4731_v18  ;;  %v4754_v19 = vpop.permute.xlu0 %1611 }
 0x21e   : > { %6758 = vst [vmem:[#allocation118_spill] sm:$0xff] %v4754_v19  ;;  %v6578_v19 = vmov 28  }
 0x21f   : > { %3877 = vset.pattern.permute.xlu1 %v6732_v3  ;;  %3910 = vset.pattern.permute.xlu0 %v6578_v19 }
 0x220   : > { %2073 = vperm.xlu1 %3877, %v4167_v15   ;;  %2560 = vperm.xlu0 %3910, %v4143_v9   ;;  %v6768_v9 = vmov 24  }
 0x221   : > { %v4739_v21 = vpop.permute.xlu1 %1696 }
 0x222   : > { %6752 = vst [vmem:[#allocation113_spill] sm:$0xff] %v4739_v21 }
 0x224   : > { %2101 = vperm.xlu1 %3877, %v4177_v17   ;;  %2568 = vperm.xlu0 %3910, %v4151_v11  }
 0x226   : > { %v4745_v18 = vpop.permute.xlu1 %1834 }
 0x227   : > { %6754 = vst [vmem:[#allocation115_spill] sm:$0xff] %v4745_v18  ;;  %v4761_v18 = vpop.permute.xlu0 %1631 }
 0x228   : > { %3878 = vset.pattern.permute.xlu1 %v6755_v4  ;;  %6760 = vst [vmem:[#allocation120_spill] sm:$0xff] %v4761_v18  ;;  %2588 = vperm.xlu0 %3910, %v4170_v16  }
 0x229   : > { %2211 = vperm.xlu1 %3878, %v4159_v13  }
 0x22a   : > { %v4752_v6 = vpop.permute.xlu1 %1850 }
 0x22b   : > { %6757 = vst [vmem:[#allocation117_spill] sm:$0xff] %v4752_v6  ;;  %v4769_v6 = vpop.permute.xlu0 %1619 }
 0x22c   : > { %6763 = vst [vmem:[#allocation123_spill] sm:$0xff] %v4769_v6 }
 0x22d   : > { %3879 = vset.pattern.permute.xlu1 %v6732_v3 }
 0x22e   : > { %2061 = vperm.xlu1 %3879, %v4154_v12  }
 0x22f   : > { %v4758_v21 = vpop.permute.xlu1 %1781 }
 0x230   : > { %6759 = vst [vmem:[#allocation119_spill] sm:$0xff] %v4758_v21  ;;  %v4825_v21 = vld [vmem:[%s4140_s22 + $0x10] sm:$0xff] }
 0x232   : > { %3881 = vset.pattern.permute.xlu1 %v6755_v4 }
 0x233   : > { %2199 = vperm.xlu1 %3881, %v4146_v10   ;;  %v4764_v43 = vpop.permute.xlu1 %1809  ;;  %v4778_v10 = vpop.permute.xlu0 %1639 }
 0x234   : > { %6761 = vst [vmem:[#allocation121_spill] sm:$0xff] %v4764_v43  ;;  %6765 = vst [vmem:[#allocation125_spill] sm:$0xff] %v4778_v10 }
 0x237   : > { %2215 = vperm.xlu1 %3881, %v4162_v14   ;;  %v4784_v19 = vpop.permute.xlu0 %1700 }
 0x238   : > { %v4767_v51 = vpop.permute.xlu1 %1919  ;;  %6767 = vst [vmem:[#allocation127_spill] sm:$0xff] %v4784_v19  ;;  %v4010_v19 = vld [vmem:[%s4140_s22 + $0x38] sm:$0xff] }
 0x239   : > { %6762 = vst [vmem:[#allocation122_spill] sm:$0xff] %v4767_v51 }
 0x23b   : > { %3882 = vset.pattern.permute.xlu1 %v6743_v8 }
 0x23c   : > { %2146 = vperm.xlu1 %3882, %v4167_v15  }
 0x23d   : > { %v4775_v3 = vpop.permute.xlu1 %1769 }
 0x23e   : > { %6764 = vst [vmem:[#allocation124_spill] sm:$0xff] %v4775_v3  ;;  %v4790_v3 = vpop.permute.xlu0 %1688 }
 0x23f   : > { %6770 = vst [vmem:[#allocation129_spill] sm:$0xff] %v4790_v3 }
 0x240   : > { %2174 = vperm.xlu1 %3882, %v4177_v17   ;;  %v4800_v17 = vld [vmem:[%s4140_s22 + $0x8] sm:$0xff] }
 0x242   : > { %v4781_v51 = vpop.permute.xlu1 %1907  ;;  %v4797_v16 = vpop.permute.xlu0 %1692 }
 0x243   : > { %6766 = vst [vmem:[#allocation126_spill] sm:$0xff] %v4781_v51  ;;  %6772 = vst [vmem:[#allocation131_spill] sm:$0xff] %v4797_v16  ;;  %v4812_v51 = vld [vmem:[%s4140_s22] sm:$0xff]  ;;  %v4850_v16 = vld [vmem:[%s4140_s22 + $0x18] sm:$0xff] }
 0x244   : > { %3883 = vset.pattern.permute.xlu1 %v6768_v9  ;;  %6776 = vst [vmem:[#allocation135_spill] sm:$0xff] %v4812_v51 }
 0x245   : > { %2284 = vperm.xlu1 %3883, %v4159_v13  }
 0x246   : > { %v4788_v15 = vpop.permute.xlu1 %1923 }
 0x247   : > { %6769 = vst [vmem:[#allocation128_spill] sm:$0xff] %v4788_v15 }
 0x249   : > { %3884 = vset.pattern.permute.xlu1 %v6743_v8  ;;  %v4808_v8 = vpop.permute.xlu0 %1712 }
 0x24a   : > { %2134 = vperm.xlu1 %3884, %v4154_v12   ;;  %6775 = vst [vmem:[#allocation134_spill] sm:$0xff] %v4808_v8  ;;  %v6580_v12 = vmov 29  }
 0x24b   : > { %v4794_v11 = vpop.permute.xlu1 %1854  ;;  %3915 = vset.pattern.permute.xlu0 %v6580_v12  ;;  %v4831_v12 = vld [vmem:[%s6533_s7] ss:$0 sm:$0xff] }
 0x24c   : > { %6771 = vst [vmem:[#allocation130_spill] sm:$0xff] %v4794_v11  ;;  %2633 = vperm.xlu0 %3915, %v4812_v51   ;;  %v4817_v11 = vld [vmem:[%s4140_s22 + $0x30] sm:$0xff]  ;;  %6780 = vst [vmem:[#allocation139_spill] sm:$0xff] %v4831_v12 }
 0x24d   : > { %6777 = vst [vmem:[#allocation136_spill] sm:$0xff] %v4817_v11 }
 0x24e   : > { %3886 = vset.pattern.permute.xlu1 %v6768_v9 }
 0x24f   : > { %2272 = vperm.xlu1 %3886, %v4800_v17   ;;  %v4803_v13 = vpop.permute.xlu1 %1882 }
 0x250   : > { %6773 = vst [vmem:[#allocation132_spill] sm:$0xff] %v4803_v13  ;;  %2641 = vperm.xlu0 %3915, %v4825_v21  }
 0x253   : > { %2288 = vperm.xlu1 %3886, %v4162_v14   ;;  %v4820_v14 = vpop.permute.xlu0 %1757 }
 0x254   : > { %v4806_v15 = vpop.permute.xlu1 %1992  ;;  %6778 = vst [vmem:[#allocation137_spill] sm:$0xff] %v4820_v14  ;;  %2661 = vperm.xlu0 %3915, %v4010_v19   ;;  %v6783_v14 = vmov 25  }
 0x255   : > { %6774 = vst [vmem:[#allocation133_spill] sm:$0xff] %v4806_v15 }
 0x257   : > { %3887 = vset.pattern.permute.xlu1 %v6755_v4  ;;  %v4837_v18 = vpop.permute.xlu0 %1765 }
 0x258   : > { %2219 = vperm.xlu1 %3887, %v4817_v11   ;;  %6782 = vst [vmem:[#allocation141_spill] sm:$0xff] %v4837_v18  ;;  %v3598_v18 = vld [vmem:[%s6530_s4] ss:$0 sm:$0xff]  ;;  %3920 = vset.pattern.permute.xlu0 %v6586_v62 }
 0x259   : > { %v4822_v15 = vpop.permute.xlu1 %1842  ;;  %v4874_v6 = vadd.f32 %v3598_v18, %v4243_v30  ;;  %v4877_v10 = vadd.f32 %v3598_v18, %v4229_v25  ;;  %v489_v25 = vadd.f32 %v3598_v18, %v4233_v26  ;;  %2706 = vperm.xlu0 %3920, %v4812_v51  }
 0x25a   : > { %6779 = vst [vmem:[#allocation138_spill] sm:$0xff] %v4822_v15  ;;  %v4841_v15 = vld [vmem:[%s4140_s22 + $0x20] sm:$0xff] }
 0x25b   : > { %v4846_v43 = vpop.permute.xlu0 %1785 }
 0x25c   : > { %2247 = vperm.xlu1 %3887, %v4831_v12   ;;  %6785 = vst [vmem:[#allocation143_spill] sm:$0xff] %v4846_v43 }
 0x25d   : > { %2714 = vperm.xlu0 %3920, %v4825_v21  }
 0x25e   : > { %v4834_v3 = vpop.permute.xlu1 %1980 }
 0x25f   : > { %6781 = vst [vmem:[#allocation140_spill] sm:$0xff] %v4834_v3  ;;  %v4855_v19 = vpop.permute.xlu0 %1830 }
 0x260   : > { %3888 = vset.pattern.permute.xlu1 %v6783_v14  ;;  %6787 = vst [vmem:[#allocation145_spill] sm:$0xff] %v4855_v19  ;;  %v4870_v19 = vadd.f32 %v3598_v18, %v4225_v24 }
 0x261   : > { %2357 = vperm.xlu1 %3888, %v4841_v15   ;;  %2718 = vperm.xlu0 %3920, %v4850_v16  }
 0x262   : > { %v4844_v13 = vpop.permute.xlu1 %1996 }
 0x263   : > { %6784 = vst [vmem:[#allocation142_spill] sm:$0xff] %v4844_v13  ;;  %v4881_v23 = vpop.permute.xlu0 %1838 }
 0x264   : > { %6789 = vst [vmem:[#allocation147_spill] sm:$0xff] %v4881_v23  ;;  %v3601_v23 = vld [vmem:[%s6529_s3 + $0x1] ss:$0 sm:$0xff] }
 0x265   : > { %3889 = vset.pattern.permute.xlu1 %v6755_v4  ;;  %v3599_v4 = vld [vmem:[%s6529_s3] ss:$0 sm:$0xff] }
 0x266   : > { %2207 = vperm.xlu1 %3889, %v4850_v16   ;;  %v549_v43 = vadd.f32 %v3599_v4, %v4288_v46  ;;  %v552_v8 = vadd.f32 %v3599_v4, %v4256_v34  ;;  %v4884_v46 = vld [vmem:[%s4140_s22 + $0x28] sm:$0xff]  ;;  %v545_v24 = vadd.f32 %v3599_v4, %v4275_v41  ;;  %v547_v34 = vadd.f32 %v3599_v4, %v4281_v44 }
 0x267   : > { %v4853_v3 = vpop.permute.xlu1 %1927  ;;  %6790 = vst [vmem:[#allocation148_spill] sm:$0xff] %v4884_v46  ;;  %v550_v30 = vadd.f32 %v3599_v4, %v4252_v33  ;;  %v488_v41 = vadd.f32 %v3598_v18, %v4259_v36  ;;  %v491_v44 = vadd.f32 %v3598_v18, %v4236_v28 }
 0x268   : > { %6786 = vst [vmem:[#allocation144_spill] sm:$0xff] %v4853_v3  ;;  %v551_v3 = vadd.f32 %v3599_v4, %v4297_v49  ;;  %v557_v2 = vmax.f32 %v549_v43, 0.0  ;;  %v560_v33 = vmax.f32 %v552_v8, 0.0  ;;  %v629_v43 = vadd.f32 %v3601_v23, %v4278_v42 }
 0x269   : > { %v553_v62 = vmax.f32 %v545_v24, 0.0  ;;  %v555_v36 = vmax.f32 %v547_v34, 0.0  ;;  %v626_v24 = vadd.f32 %v3601_v23, %v4268_v39 }
 0x26a   : > { %3891 = vset.pattern.permute.xlu1 %v6783_v14  ;;  %v546_v14 = vadd.f32 %v3599_v4, %v4240_v29  ;;  %v559_v29 = vmax.f32 %v551_v3, 0.0  ;;  %v630_v3 = vadd.f32 %v3601_v23, %v4328_v61  ;;  %v575_v8 = vmul.f32 %v4304_v52, %v557_v2 }
 0x26b   : > { %2345 = vperm.xlu1 %3891, %v4800_v17   ;;  %v4862_v13 = vpop.permute.xlu1 %1955  ;;  %v624_v61 = vadd.f32 %v3601_v23, %v4262_v37  ;;  %v573_v37 = vmul.f32 %v4304_v52, %v555_v36 }
 0x26c   : > { %6788 = vst [vmem:[#allocation146_spill] sm:$0xff] %v4862_v13  ;;  %v485_v13 = vadd.f32 %v3598_v18, %v4250_v32  ;;  %v548_v32 = vadd.f32 %v3599_v4, %v4246_v31  ;;  %v554_v26 = vmax.f32 %v546_v14, 0.0  ;;  %v628_v31 = vadd.f32 %v3601_v23, %v4319_v57  ;;  %v4911_v14 = vpop.permute.xlu0 %1858 }
 0x26d   : > { %v490_v4 = vadd.f32 %v3598_v18, %v4265_v38  ;;  %v577_v57 = vmul.f32 %v4304_v52, %v559_v29  ;;  %6792 = vst [vmem:[#allocation150_spill] sm:$0xff] %v4911_v14  ;;  %v578_v38 = vmul.f32 %v4304_v52, %v560_v33  ;;  %v638_v2 = vmax.f32 %v630_v3, 0.0 }
 0x26e   : > { %v556_v28 = vmax.f32 %v548_v32, 0.0  ;;  %v636_v34 = vmax.f32 %v628_v31, 0.0  ;;  %v627_v32 = vadd.f32 %v3601_v23, %v4272_v40  ;;  %v631_v29 = vadd.f32 %v3601_v23, %v4284_v45 }
 0x26f   : > { %2361 = vperm.xlu1 %3891, %v4884_v46   ;;  %v558_v46 = vmax.f32 %v550_v30, 0.0  ;;  %v637_v30 = vmax.f32 %v629_v43, 0.0  ;;  %v583_v33 = vadd.f32 %v575_v8, %v488_v41  ;;  %v632_v39 = vmax.f32 %v624_v61, 0.0 }
 0x270   : > { %v4890_v49 = vpop.permute.xlu1 %2065  ;;  %v4926_v14 = vpop.permute.xlu0 %1903  ;;  %v586_v43 = vadd.f32 %v578_v38, %v491_v44  ;;  %v634_v45 = vmax.f32 %v626_v24, 0.0  ;;  %v635_v41 = vmax.f32 %v627_v32, 0.0  ;;  %v6796_v44 = vmov 26  }
 0x271   : > { %6791 = vst [vmem:[#allocation149_spill] sm:$0xff] %v4890_v49  ;;  %v625_v49 = vadd.f32 %v3601_v23, %v4313_v55  ;;  %v572_v55 = vmul.f32 %v4304_v52, %v554_v26  ;;  %v576_v18 = vmul.f32 %v4304_v52, %v558_v46  ;;  %v574_v26 = vmul.f32 %v4304_v52, %v556_v28 }
 0x272   : > { %v585_v46 = vadd.f32 %v577_v57, %v490_v4  ;;  %6794 = vst [vmem:[#allocation152_spill] sm:$0xff] %v4926_v14  ;;  %v648_v23 = vmul.f32 %v4335_v63, %v636_v34  ;;  %v639_v4 = vmax.f32 %v631_v29, 0.0  ;;  %v647_v61 = vmul.f32 %v4335_v63, %v635_v41 }
 0x273   : > { %3892 = vset.pattern.permute.xlu1 %v6768_v9  ;;  %v633_v51 = vmax.f32 %v625_v49, 0.0  ;;  %v580_v49 = vadd.f32 %v572_v55, %v485_v13  ;;  %v584_v40 = vadd.f32 %v576_v18, %v489_v25  ;;  %v650_v13 = vmul.f32 %v4335_v63, %v638_v2  ;;  %v3603_v2 = vld [vmem:[%s6529_s3 + $0x3] ss:$0 sm:$0xff] }
 0x274   : > { %2292 = vperm.xlu1 %3892, %v4817_v11   ;;  %v582_v28 = vadd.f32 %v574_v26, %v4877_v10  ;;  %v581_v55 = vadd.f32 %v573_v37, %v4870_v19  ;;  %v646_v38 = vmul.f32 %v4335_v63, %v634_v45  ;;  %v656_v18 = vadd.f32 %v648_v23, %v583_v33  ;;  %v4952_v34 = vpop.permute.xlu0 %1911 }
 0x275   : > { %v4913_v42 = vpop.permute.xlu1 %1915  ;;  %v645_v31 = vmul.f32 %v4335_v63, %v633_v51  ;;  %v658_v24 = vadd.f32 %v650_v13, %v585_v46  ;;  %v772_v46 = vadd.f32 %v3603_v2, %v4322_v58  ;;  %v770_v41 = vadd.f32 %v3603_v2, %v4316_v56 }
 0x276   : > { %6793 = vst [vmem:[#allocation151_spill] sm:$0xff] %v4913_v42  ;;  %v571_v42 = vmul.f32 %v4304_v52, %v553_v62  ;;  %v3602_v52 = vld [vmem:[%s6529_s3 + $0x2] ss:$0 sm:$0xff]  ;;  %v649_v62 = vmul.f32 %v4335_v63, %v637_v30  ;;  %v651_v30 = vmul.f32 %v4335_v63, %v639_v4 }
 0x277   : > { %v698_v51 = vadd.f32 %v3602_v52, %v4342_v1  ;;  %v701_v25 = vadd.f32 %v3602_v52, %v4351_v5  ;;  %v703_v36 = vadd.f32 %v3602_v52, %v4358_v7  ;;  %v653_v57 = vadd.f32 %v645_v31, %v580_v49 }
 0x278   : > { %2320 = vperm.xlu1 %3892, %v4831_v12   ;;  %v579_v8 = vadd.f32 %v571_v42, %v4874_v6  ;;  %v644_v1 = vmul.f32 %v4335_v63, %v632_v39  ;;  %v700_v7 = vadd.f32 %v3602_v52, %v4300_v50  ;;  %v657_v10 = vadd.f32 %v649_v62, %v584_v40  ;;  %v4973_v23 = vpop.permute.xlu0 %1931 }
 0x279   : > { %v706_v19 = vmax.f32 %v698_v51, 0.0  ;;  %v709_v6 = vmax.f32 %v701_v25, 0.0  ;;  %v702_v42 = vadd.f32 %v3602_v52, %v4306_v53  ;;  %v699_v32 = vadd.f32 %v3602_v52, %v4294_v48 }
 0x27a   : > { %v4929_v3 = vpop.permute.xlu1 %2053  ;;  %v711_v29 = vmax.f32 %v703_v36, 0.0  ;;  %v704_v26 = vadd.f32 %v3602_v52, %v4310_v54  ;;  %v771_v50 = vadd.f32 %v3603_v2, %v4373_v22  ;;  %v697_v37 = vadd.f32 %v3602_v52, %v4290_v47 }
 0x27b   : > { %6795 = vst [vmem:[#allocation153_spill] sm:$0xff] %v4929_v3  ;;  %v774_v49 = vadd.f32 %v3603_v2, %v4382_v35  ;;  %v776_v53 = vadd.f32 %v3603_v2, %v4390_v59  ;;  %v655_v63 = vadd.f32 %v647_v61, %v582_v28  ;;  %v708_v33 = vmax.f32 %v700_v7, 0.0  ;;  %v6845_v3 = vld [vmem:[#allocation45_spill] sm:$0xff] }
 0x27c   : > { %3893 = vset.pattern.permute.xlu1 %v6796_v44  ;;  %v654_v48 = vadd.f32 %v646_v38, %v581_v55  ;;  %v652_v39 = vadd.f32 %v644_v1, %v579_v8  ;;  %v710_v54 = vmax.f32 %v702_v42, 0.0  ;;  %v718_v22 = vmul.f32 %v4366_v20, %v706_v19  ;;  %v4993_v7 = vpop.permute.xlu0 %1976  ;;  %v6801_v42 = vld [vmem:[#allocation2_spill] sm:$0xff] }
 0x27d   : > { %2430 = vperm.xlu1 %3893, %v4841_v15   ;;  %v659_v47 = vadd.f32 %v651_v30, %v586_v43  ;;  %v707_v40 = vmax.f32 %v699_v32, 0.0  ;;  %v723_v35 = vmul.f32 %v4366_v20, %v711_v29  ;;  %v712_v59 = vmax.f32 %v704_v26, 0.0  ;;  %6800 = vst [vmem:[#allocation157_spill] sm:$0xff] %v4993_v7  ;;  %v6802_v32 = vld [vmem:[#allocation3_spill] sm:$0xff] }
 0x27e   : > { %v4949_v5 = vpop.permute.xlu1 %2069  ;;  %v779_v45 = vmax.f32 %v771_v50, 0.0  ;;  %v705_v13 = vmax.f32 %v697_v37, 0.0  ;;  %v782_v52 = vmax.f32 %v774_v49, 0.0  ;;  %v784_v58 = vmax.f32 %v776_v53, 0.0 }
 0x27f   : > { %6797 = vst [vmem:[#allocation154_spill] sm:$0xff] %v4949_v5  ;;  %v773_v62 = vadd.f32 %v3603_v2, %v4326_v60  ;;  %v780_v4 = vmax.f32 %v772_v46, 0.0  ;;  %v720_v51 = vmul.f32 %v4366_v20, %v708_v33  ;;  %v719_v43 = vmul.f32 %v4366_v20, %v707_v40  ;;  %v4987_v60 = vld [vmem:[%s6529_s3 + $0x4] ss:$0 sm:$0xff]  ;;  %v6805_v33 = vld [vmem:[#allocation135_spill] sm:$0xff] }
 0x280   : > { %v726_v36 = vadd.f32 %v718_v22, %v653_v57  ;;  %v722_v55 = vmul.f32 %v4366_v20, %v710_v54  ;;  %v717_v56 = vmul.f32 %v4366_v20, %v705_v13  ;;  %v731_v8 = vadd.f32 %v723_v35, %v658_v24  ;;  %v6808_v40 = vld [vmem:[#allocation15_spill] sm:$0xff] }
 0x281   : > { %3894 = vset.pattern.permute.xlu1 %v6768_v9  ;;  %v721_v9 = vmul.f32 %v4366_v20, %v709_v6  ;;  %v724_v61 = vmul.f32 %v4366_v20, %v712_v59  ;;  %v791_v38 = vmul.f32 %v4397_v27, %v779_v45  ;;  %v777_v1 = vadd.f32 %v3603_v2, %v4338_v0  ;;  %v6803_v20 = vld [vmem:[#allocation148_spill] sm:$0xff] }
 0x282   : > { %2280 = vperm.xlu1 %3894, %v4850_v16   ;;  %v781_v57 = vmax.f32 %v773_v62, 0.0  ;;  %v796_v19 = vmul.f32 %v4397_v27, %v784_v58  ;;  %v778_v6 = vmax.f32 %v770_v41, 0.0  ;;  %v775_v30 = vadd.f32 %v3603_v2, %v6801_v42  ;;  %v6812_v62 = vld [vmem:[#allocation17_spill] sm:$0xff] }
 0x283   : > { %v4968_v31 = vpop.permute.xlu1 %2000  ;;  %v729_v28 = vadd.f32 %v721_v9, %v656_v18  ;;  %v794_v18 = vmul.f32 %v4397_v27, %v782_v52  ;;  %v843_v29 = vadd.f32 %v4987_v60, %v6802_v32  ;;  %v792_v24 = vmul.f32 %v4397_v27, %v780_v4  ;;  %v5025_v52 = vpop.permute.xlu0 %1984  ;;  %v6813_v4 = vld [vmem:[#allocation7_spill] sm:$0xff]  ;;  %v6823_v32 = vld [vmem:[#allocation22_spill] sm:$0xff] }
 0x284   : > { %6798 = vst [vmem:[#allocation155_spill] sm:$0xff] %v4968_v31  ;;  %v6591_v26 = vmov 31   ;;  %v5003_v0 = vadd.f32 %v722_v55, %v657_v10  ;;  %v728_v50 = vadd.f32 %v720_v51, %v655_v63  ;;  %v727_v37 = vadd.f32 %v719_v43, %v654_v48  ;;  %v6809_v10 = vld [vmem:[#allocation4_spill] sm:$0xff] }
 0x285   : > { %3923 = vset.pattern.permute.xlu0 %v6591_v26  ;;  %v725_v49 = vadd.f32 %v717_v56, %v652_v39  ;;  %v732_v2 = vadd.f32 %v724_v61, %v659_v47  ;;  %v5008_v46 = vadd.f32 %v791_v38, %v726_v36  ;;  %v785_v54 = vmax.f32 %v777_v1, 0.0  ;;  %v5023_v47 = vld [vmem:[%s6529_s3 + $0x5] ss:$0 sm:$0xff]  ;;  %v6814_v43 = vld [vmem:[#allocation8_spill] sm:$0xff] }
 0x286   : > { %3896 = vset.pattern.permute.xlu1 %v6796_v44  ;;  %2779 = vperm.xlu0 %3923, %v6805_v33   ;;  %v790_v22 = vmul.f32 %v4397_v27, %v778_v6  ;;  %v5011_v9 = vadd.f32 %v794_v18, %v729_v28  ;;  %v844_v35 = vadd.f32 %v4987_v60, %v6808_v40  ;;  %v783_v59 = vmax.f32 %v775_v30, 0.0  ;;  %v6815_v55 = vld [vmem:[#allocation20_spill] sm:$0xff]  ;;  %v5068_v40 = vld [vmem:[%s6529_s3 + $0x7] ss:$0 sm:$0xff] }
 0x287   : > { %2418 = vperm.xlu1 %3896, %v4800_v17   ;;  %v4981_v25 = vpop.permute.xlu1 %2028  ;;  %6806 = vst [vmem:[#allocation3_spill] sm:$0xff] %v5008_v46  ;;  %v845_v63 = vadd.f32 %v4987_v60, %v6809_v10  ;;  %v793_v48 = vmul.f32 %v4397_v27, %v781_v57  ;;  %v5018_v39 = vadd.f32 %v796_v19, %v731_v8  ;;  %v851_v45 = vmax.f32 %v843_v29, 0.0  ;;  %v6817_v8 = vld [vmem:[#allocation9_spill] sm:$0xff]  ;;  %v6821_v6 = vld [vmem:[#allocation12_spill] sm:$0xff]  ;;  %v6873_v46 = vld [vmem:[#allocation134_spill] sm:$0xff] }
 0x288   : > { %6799 = vst [vmem:[#allocation156_spill] sm:$0xff] %v4981_v25  ;;  %6807 = vst [vmem:[#allocation148_spill] sm:$0xff] %v5011_v9  ;;  %v800_v13 = vadd.f32 %v792_v24, %v727_v37  ;;  %v6811_v58 = vmov 25   ;;  %v5030_v41 = vadd.f32 %v4987_v60, %v6812_v62  ;;  %v850_v51 = vadd.f32 %v4987_v60, %v6813_v4  ;;  %v6824_v24 = vld [vmem:[#allocation13_spill] sm:$0xff]  ;;  %v5077_v62 = vpop.permute.xlu0 %2004  ;;  %v6840_v33 = vld [vmem:[#allocation36_spill] sm:$0xff] }
 0x289   : > { %6810 = vst [vmem:[#allocation135_spill] sm:$0xff] %v5018_v39  ;;  %v916_v36 = vadd.f32 %v5023_v47, %v6814_v43  ;;  %v797_v28 = vmul.f32 %v4397_v27, %v785_v54  ;;  %v5041_v56 = vadd.f32 %v4987_v60, %v6815_v55  ;;  %v918_v61 = vadd.f32 %v5023_v47, %v6817_v8  ;;  %v5225_v9 = vld [vmem:[%s6529_s3 + $0x10] ss:$0 sm:$0xff] }
 0x28a   : > { %2787 = vperm.xlu0 %3923, %v4825_v21   ;;  %v798_v38 = vadd.f32 %v790_v22, %v725_v49  ;;  %v852_v57 = vmax.f32 %v844_v35, 0.0  ;;  %v853_v18 = vmax.f32 %v845_v63, 0.0  ;;  %v5047_v19 = vadd.f32 %v793_v48, %v728_v50  ;;  %v5052_v21 = vld [vmem:[%s6529_s3 + $0x6] ss:$0 sm:$0xff]  ;;  %6826 = vst [vmem:[#allocation20_spill] sm:$0xff] %v5068_v40  ;;  %v6827_v35 = vld [vmem:[#allocation19_spill] sm:$0xff] }
 0x28b   : > { %2434 = vperm.xlu1 %3896, %v6803_v20   ;;  %6816 = vst [vmem:[#allocation15_spill] sm:$0xff] %v5041_v56  ;;  %6820 = vst [vmem:[#allocation7_spill] sm:$0xff] %v5052_v21  ;;  %v923_v42 = vadd.f32 %v5023_v47, %v6821_v6  ;;  %v5057_v30 = vmul.f32 %v4397_v27, %v783_v59  ;;  %v863_v29 = vmul.f32 %v6823_v32, %v851_v45  ;;  %v6825_v49 = vld [vmem:[#allocation14_spill] sm:$0xff]  ;;  %v6828_v59 = vld [vmem:[#allocation21_spill] sm:$0xff] }
 0x28c   : > { %v5005_v53 = vpop.permute.xlu1 %2138  ;;  %6819 = vst [vmem:[#allocation17_spill] sm:$0xff] %v5047_v19  ;;  %v989_v37 = vadd.f32 %v5052_v21, %v6824_v24  ;;  %v991_v50 = vadd.f32 %v5052_v21, %v6825_v49  ;;  %v858_v54 = vmax.f32 %v850_v51, 0.0  ;;  %v924_v22 = vmax.f32 %v916_v36, 0.0  ;;  %v6830_v36 = vld [vmem:[#allocation23_spill] sm:$0xff]  ;;  %v6833_v49 = vld [vmem:[#allocation5_spill] sm:$0xff]  ;;  %v5108_v26 = vpop.permute.xlu0 %2049 }
 0x28d   : > { %6804 = vst [vmem:[#allocation2_spill] sm:$0xff] %v5005_v53  ;;  %6822 = vst [vmem:[#allocation8_spill] sm:$0xff] %v5057_v30  ;;  %v996_v27 = vadd.f32 %v5052_v21, %v6827_v35  ;;  %v805_v10 = vadd.f32 %v797_v28, %v732_v2  ;;  %v926_v48 = vmax.f32 %v918_v61, 0.0  ;;  %v1062_v45 = vadd.f32 %v5068_v40, %v6828_v59  ;;  %v6832_v61 = vld [vmem:[#allocation28_spill] sm:$0xff]  ;;  %v6864_v19 = vld [vmem:[#allocation93_spill] sm:$0xff] }
 0x28e   : > { %2791 = vperm.xlu0 %3923, %v4850_v16   ;;  %v5080_v4 = vmul.f32 %v6823_v32, %v852_v57  ;;  %v865_v51 = vmul.f32 %v6823_v32, %v853_v18  ;;  %v931_v43 = vmax.f32 %v923_v42, 0.0  ;;  %v1064_v55 = vadd.f32 %v5068_v40, %v6830_v36  ;;  %v6834_v59 = vld [vmem:[#allocation32_spill] sm:$0xff]  ;;  %v5098_v36 = vld [vmem:[%s6529_s3 + $0x8] ss:$0 sm:$0xff]  ;;  %6839 = vst [vmem:[#allocation13_spill] sm:$0xff] %v5108_v26  ;;  %v6881_v30 = vld [vmem:[#allocation150_spill] sm:$0xff] }
 0x28f   : > { %3897 = vset.pattern.permute.xlu1 %v6811_v58  ;;  %v871_v2 = vadd.f32 %v863_v29, %v798_v38  ;;  %v997_v28 = vmax.f32 %v989_v37, 0.0  ;;  %v999_v6 = vmax.f32 %v991_v50, 0.0  ;;  %v1069_v24 = vadd.f32 %v5068_v40, %v6832_v61  ;;  %6835 = vst [vmem:[#allocation22_spill] sm:$0xff] %v5098_v36  ;;  %v6837_v29 = vld [vmem:[#allocation25_spill] sm:$0xff]  ;;  %v6862_v26 = vld [vmem:[#allocation71_spill] sm:$0xff] }
 0x290   : > { %2365 = vperm.xlu1 %3897, %v4817_v11   ;;  %6829 = vst [vmem:[#allocation9_spill] sm:$0xff] %v5080_v4  ;;  %v5091_v35 = vadd.f32 %v4987_v60, %v6833_v49  ;;  %v870_v57 = vmul.f32 %v6823_v32, %v858_v54  ;;  %v936_v18 = vmul.f32 %v6834_v59, %v924_v22  ;;  %v1004_v42 = vmax.f32 %v996_v27, 0.0  ;;  %v6838_v49 = vld [vmem:[#allocation31_spill] sm:$0xff] }
 0x291   : > { %v5045_v1 = vpop.permute.xlu1 %1988  ;;  %v6836_v38 = vmov 27   ;;  %v5103_v37 = vadd.f32 %v5023_v47, %v6837_v29  ;;  %v938_v50 = vmul.f32 %v6834_v59, %v926_v48  ;;  %v1070_v61 = vmax.f32 %v1062_v45, 0.0  ;;  %v6842_v29 = vld [vmem:[#allocation6_spill] sm:$0xff]  ;;  %6869 = vst [vmem:[#allocation25_spill] sm:$0xff] %v5225_v9  ;;  %v6874_v56 = vld [vmem:[#allocation131_spill] sm:$0xff] }
 0x292   : > { %6818 = vst [vmem:[#allocation4_spill] sm:$0xff] %v5045_v1  ;;  %v1137_v54 = vadd.f32 %v5098_v36, %v6838_v49  ;;  %v873_v22 = vadd.f32 %v865_v51, %v800_v13  ;;  %v943_v27 = vmul.f32 %v6834_v59, %v931_v43  ;;  %v1072_v63 = vmax.f32 %v1064_v55, 0.0  ;;  %v6843_v45 = vld [vmem:[#allocation42_spill] sm:$0xff]  ;;  %v5125_v13 = vld [vmem:[%s6529_s3 + $0x9] ss:$0 sm:$0xff] }
 0x293   : > { %v5118_v48 = vadd.f32 %v4987_v60, %v6842_v29  ;;  %v1009_v5 = vmul.f32 %v6843_v45, %v997_v28  ;;  %v1011_v49 = vmul.f32 %v6843_v45, %v999_v6  ;;  %6844 = vst [vmem:[#allocation19_spill] sm:$0xff] %v5125_v13  ;;  %v1077_v51 = vmax.f32 %v1069_v24, 0.0  ;;  %v6846_v60 = vld [vmem:[#allocation51_spill] sm:$0xff]  ;;  %v6848_v6 = vld [vmem:[#allocation40_spill] sm:$0xff] }
 0x294   : > { %2393 = vperm.xlu1 %3897, %v4831_v12   ;;  %v878_v43 = vadd.f32 %v870_v57, %v805_v10  ;;  %v944_v55 = vadd.f32 %v936_v18, %v871_v2  ;;  %v946_v1 = vadd.f32 %v938_v50, %v873_v22  ;;  %v1082_v29 = vmul.f32 %v6846_v60, %v1070_v61  ;;  %v5134_v28 = vld [vmem:[%s6529_s3 + $0xa] ss:$0 sm:$0xff]  ;;  %v6849_v57 = vld [vmem:[#allocation53_spill] sm:$0xff]  ;;  %v5147_v61 = vld [vmem:[%s6529_s3 + $0xb] ss:$0 sm:$0xff]  ;;  %v5151_v22 = vpop.permute.xlu0 %2057 }
 0x295   : > { %v1145_v31 = vmax.f32 %v1137_v54, 0.0  ;;  %6847 = vst [vmem:[#allocation21_spill] sm:$0xff] %v5134_v28  ;;  %v1210_v40 = vadd.f32 %v5125_v13, %v6848_v6  ;;  %v1084_v2 = vmul.f32 %v6846_v60, %v1072_v63  ;;  %v1089_v50 = vmul.f32 %v6846_v60, %v1077_v51  ;;  %v6850_v54 = vld [vmem:[#allocation48_spill] sm:$0xff]  ;;  %v6856_v60 = vld [vmem:[#allocation67_spill] sm:$0xff] }
 0x296   : > { %v5085_v8 = vpop.permute.xlu1 %2126  ;;  %v951_v10 = vadd.f32 %v943_v27, %v878_v43  ;;  %v1017_v18 = vadd.f32 %v1009_v5, %v944_v55  ;;  %v6852_v27 = vld [vmem:[#allocation30_spill] sm:$0xff]  ;;  %v6854_v55 = vld [vmem:[#allocation65_spill] sm:$0xff] }
 0x297   : > { %6831 = vst [vmem:[#allocation12_spill] sm:$0xff] %v5085_v8  ;;  %v1142_v8 = vadd.f32 %v5098_v36, %v6840_v33  ;;  %v1016_v33 = vmul.f32 %v6843_v45, %v1004_v42  ;;  %v1019_v42 = vadd.f32 %v1011_v49, %v946_v1  ;;  %v5157_v43 = vadd.f32 %v5098_v36, %v6852_v27  ;;  %v6853_v1 = vld [vmem:[#allocation61_spill] sm:$0xff]  ;;  %v5182_v36 = vld [vmem:[%s6529_s3 + $0xd] ss:$0 sm:$0xff] }
 0x298   : > { %3898 = vset.pattern.permute.xlu1 %v6836_v38  ;;  %v1361_v49 = vadd.f32 %v5147_v61, %v6853_v1  ;;  %v5161_v51 = vadd.f32 %v1082_v29, %v1017_v18  ;;  %v1157_v6 = vmul.f32 %v6854_v55, %v1145_v31  ;;  %v6857_v31 = vld [vmem:[#allocation38_spill] sm:$0xff]  ;;  %v1502_v7 = vadd.f32 %v5182_v36, %v6862_v26  ;;  %v5201_v21 = vpop.permute.xlu0 %2077  ;;  %v5211_v26 = vld [vmem:[%s6529_s3 + $0xf] ss:$0 sm:$0xff] }
 0x299   : > { %2503 = vperm.xlu1 %3898, %v4841_v15   ;;  %v1150_v24 = vmax.f32 %v1142_v8, 0.0  ;;  %v1024_v8 = vadd.f32 %v1016_v33, %v951_v10  ;;  %v1092_v10 = vadd.f32 %v1084_v2, %v1019_v42  ;;  %v6858_v2 = vld [vmem:[#allocation63_spill] sm:$0xff] }
 0x29a   : > { %v5114_v53 = vpop.permute.xlu1 %2142  ;;  %v6860_v42 = vld [vmem:[#allocation75_spill] sm:$0xff]  ;;  %v1510_v59 = vmax.f32 %v1502_v7, 0.0 }
 0x29b   : > { %6841 = vst [vmem:[#allocation14_spill] sm:$0xff] %v5114_v53  ;;  %v1215_v53 = vadd.f32 %v5125_v13, %v6845_v3  ;;  %v1288_v3 = vadd.f32 %v5134_v28, %v6849_v57  ;;  %v1218_v57 = vmax.f32 %v1210_v40, 0.0  ;;  %v1162_v27 = vmul.f32 %v6854_v55, %v1150_v24 }
 0x29c   : > { %v1097_v29 = vadd.f32 %v1089_v50, %v1024_v8  ;;  %v5177_v40 = vadd.f32 %v5125_v13, %v6857_v31  ;;  %v6861_v8 = vld [vmem:[#allocation76_spill] sm:$0xff]  ;;  %v1165_v31 = vadd.f32 %v1157_v6, %v1092_v10 }
 0x29d   : > { %3899 = vset.pattern.permute.xlu1 %v6811_v58  ;;  %v1283_v58 = vadd.f32 %v5134_v28, %v6850_v54  ;;  %v1223_v5 = vmax.f32 %v1215_v53, 0.0  ;;  %v5167_v54 = vld [vmem:[%s6529_s3 + $0xc] ss:$0 sm:$0xff]  ;;  %v1296_v53 = vmax.f32 %v1288_v3, 0.0  ;;  %v1230_v13 = vmul.f32 %v6860_v42, %v1218_v57 }
 0x29e   : > { %2353 = vperm.xlu1 %3899, %v4850_v16   ;;  %v1434_v1 = vadd.f32 %v5167_v54, %v6856_v60  ;;  %v1429_v24 = vadd.f32 %v5167_v54, %v6858_v2  ;;  %v5199_v2 = vld [vmem:[%s6529_s3 + $0xe] ss:$0 sm:$0xff]  ;;  %v1170_v60 = vadd.f32 %v1162_v27, %v1097_v29 }
 0x29f   : > { %v5153_v63 = vpop.permute.xlu1 %2073  ;;  %v1291_v18 = vmax.f32 %v1283_v58, 0.0  ;;  %v1235_v50 = vmul.f32 %v6860_v42, %v1223_v5  ;;  %v1507_v58 = vadd.f32 %v5182_v36, %v6861_v8  ;;  %v6863_v5 = vld [vmem:[#allocation85_spill] sm:$0xff]  ;;  %v1580_v6 = vadd.f32 %v5199_v2, %v6864_v19  ;;  %v6865_v8 = vld [vmem:[#allocation86_spill] sm:$0xff] }
 0x2a0   : > { %6851 = vst [vmem:[#allocation23_spill] sm:$0xff] %v5153_v63  ;;  %v6855_v63 = vld [vmem:[#allocation56_spill] sm:$0xff]  ;;  %v1442_v14 = vmax.f32 %v1434_v1, 0.0  ;;  %v1437_v10 = vmax.f32 %v1429_v24, 0.0  ;;  %v1575_v39 = vadd.f32 %v5199_v2, %v6865_v8  ;;  %v6867_v19 = vld [vmem:[#allocation125_spill] sm:$0xff]  ;;  %v6870_v8 = vld [vmem:[#allocation123_spill] sm:$0xff] }
 0x2a1   : > { %v1356_v33 = vadd.f32 %v5147_v61, %v6855_v63  ;;  %v1369_v63 = vmax.f32 %v1361_v49, 0.0  ;;  %v1308_v49 = vmul.f32 %v6863_v5, %v1296_v53  ;;  %v1243_v27 = vadd.f32 %v1235_v50, %v1170_v60  ;;  %v6866_v53 = vld [vmem:[#allocation94_spill] sm:$0xff]  ;;  %v5229_v50 = vpop.permute.xlu0 %2122 }
 0x2a2   : > { %3901 = vset.pattern.permute.xlu1 %v6836_v38  ;;  %v1515_v29 = vmax.f32 %v1507_v58, 0.0  ;;  %v1653_v57 = vadd.f32 %v5211_v26, %v6867_v19  ;;  %v1648_v60 = vadd.f32 %v5211_v26, %v6870_v8  ;;  %6871 = vst [vmem:[#allocation31_spill] sm:$0xff] %v5229_v50  ;;  %v6872_v58 = vld [vmem:[#allocation103_spill] sm:$0xff]  ;;  %v1588_v19 = vmax.f32 %v1580_v6, 0.0 }
 0x2a3   : > { %2491 = vperm.xlu1 %3901, %v4800_v17   ;;  %v5187_v3 = vpop.permute.xlu1 %2101  ;;  %v1364_v45 = vmax.f32 %v1356_v33, 0.0  ;;  %v1303_v33 = vmul.f32 %v6863_v5, %v1291_v18  ;;  %v1381_v1 = vmul.f32 %v6866_v53, %v1369_v63  ;;  %v1238_v18 = vadd.f32 %v1230_v13, %v1165_v31  ;;  %v6876_v50 = vld [vmem:[#allocation143_spill] sm:$0xff] }
 0x2a4   : > { %6859 = vst [vmem:[#allocation28_spill] sm:$0xff] %v5187_v3  ;;  %v1316_v63 = vadd.f32 %v1308_v49, %v1243_v27  ;;  %v1454_v4 = vmul.f32 %v6872_v58, %v1442_v14  ;;  %v1726_v13 = vadd.f32 %v5225_v9, %v6873_v46  ;;  %v1449_v7 = vmul.f32 %v6872_v58, %v1437_v10  ;;  %v6875_v14 = vld [vmem:[#allocation112_spill] sm:$0xff] }
 0x2a5   : > { %v1376_v24 = vmul.f32 %v6866_v53, %v1364_v45  ;;  %v1311_v31 = vadd.f32 %v1303_v33, %v1238_v18  ;;  %v1583_v45 = vmax.f32 %v1575_v39, 0.0  ;;  %v1721_v8 = vadd.f32 %v5225_v9, %v6874_v56  ;;  %v5251_v18 = vld [vmem:[%s6529_s3 + $0x12] ss:$0 sm:$0xff]  ;;  %v6878_v56 = vld [vmem:[#allocation141_spill] sm:$0xff] }
 0x2a6   : > { %v1389_v49 = vadd.f32 %v1381_v1, %v1316_v63  ;;  %v1527_v6 = vmul.f32 %v6875_v14, %v1515_v29  ;;  %v1661_v27 = vmax.f32 %v1653_v57, 0.0  ;;  %v1522_v33 = vmul.f32 %v6875_v14, %v1510_v59  ;;  %6877 = vst [vmem:[#allocation36_spill] sm:$0xff] %v5251_v18  ;;  %v6880_v29 = vld [vmem:[#allocation88_spill] sm:$0xff]  ;;  %v6883_v14 = vld [vmem:[#allocation147_spill] sm:$0xff] }
 0x2a7   : > { %2507 = vperm.xlu1 %3901, %v6803_v20   ;;  %v1384_v39 = vadd.f32 %v1376_v24, %v1311_v31  ;;  %v1656_v10 = vmax.f32 %v1648_v60, 0.0  ;;  %v1600_v9 = vmul.f32 %v6880_v29, %v1588_v19  ;;  %v1872_v24 = vadd.f32 %v5251_v18, %v6881_v30 }
 0x2a8   : > { %v5219_v38 = vpop.permute.xlu1 %2211  ;;  %v1462_v57 = vadd.f32 %v1454_v4, %v1389_v49  ;;  %v1595_v59 = vmul.f32 %v6880_v29, %v1583_v45  ;;  %v1729_v60 = vmax.f32 %v1721_v8, 0.0  ;;  %v6884_v49 = vld [vmem:[#allocation99_spill] sm:$0xff] }
 0x2a9   : > { %6868 = vst [vmem:[#allocation5_spill] sm:$0xff] %v5219_v38  ;;  %v5238_v38 = vld [vmem:[%s6529_s3 + $0x11] ss:$0 sm:$0xff]  ;;  %v1457_v31 = vadd.f32 %v1449_v7, %v1384_v39  ;;  %v1673_v19 = vmul.f32 %v6884_v49, %v1661_v27  ;;  %v1668_v45 = vmul.f32 %v6884_v49, %v1656_v10  ;;  %v5276_v39 = vld [vmem:[%s6529_s3 + $0x14] ss:$0 sm:$0xff]  ;;  %v6886_v27 = vld [vmem:[#allocation109_spill] sm:$0xff] }
 0x2aa   : > { %v1799_v46 = vadd.f32 %v5238_v38, %v6876_v50  ;;  %v1794_v1 = vadd.f32 %v5238_v38, %v6878_v56  ;;  %v1734_v50 = vmax.f32 %v1726_v13, 0.0  ;;  %v1867_v56 = vadd.f32 %v5251_v18, %v6883_v14  ;;  %6885 = vst [vmem:[#allocation40_spill] sm:$0xff] %v5276_v39 }
 0x2ab   : > { %3902 = vset.pattern.permute.xlu1 %v6796_v44  ;;  %v1535_v4 = vadd.f32 %v1527_v6, %v1462_v57  ;;  %v1530_v7 = vadd.f32 %v1522_v33, %v1457_v31  ;;  %v1880_v57 = vmax.f32 %v1872_v24, 0.0  ;;  %v1741_v10 = vmul.f32 %v6886_v27, %v1729_v60  ;;  %v5289_v31 = vld [vmem:[%s6529_s3 + $0x15] ss:$0 sm:$0xff] }
 0x2ac   : > { %2438 = vperm.xlu1 %3902, %v4817_v11   ;;  %v5264_v11 = vld [vmem:[%s6529_s3 + $0x13] ss:$0 sm:$0xff]  ;;  %v1807_v13 = vmax.f32 %v1799_v46, 0.0  ;;  %v1802_v8 = vmax.f32 %v1794_v1, 0.0  ;;  %v1746_v46 = vmul.f32 %v6886_v27, %v1734_v50  ;;  %v1875_v1 = vmax.f32 %v1867_v56, 0.0  ;;  %v6888_v50 = vld [vmem:[#allocation121_spill] sm:$0xff] }
 0x2ad   : > { %v5255_v63 = vpop.permute.xlu1 %2061  ;;  %6882 = vst [vmem:[#allocation45_spill] sm:$0xff] %v5264_v11  ;;  %v1945_v30 = vadd.f32 %v5264_v11, %v4973_v23  ;;  %v1940_v14 = vadd.f32 %v5264_v11, %v4952_v34  ;;  %v1608_v6 = vadd.f32 %v1600_v9, %v1535_v4  ;;  %v2018_v23 = vadd.f32 %v5276_v39, %v5077_v62  ;;  %v6893_v11 = vld [vmem:[#allocation54_spill] sm:$0xff] }
 0x2ae   : > { %6879 = vst [vmem:[#allocation6_spill] sm:$0xff] %v5255_v63  ;;  %v2131_v63 = vpop.permute.xlu0 %2130  ;;  %v1603_v33 = vadd.f32 %v1595_v59, %v1530_v7  ;;  %v2013_v34 = vadd.f32 %v5276_v39, %v5025_v52  ;;  %v1819_v24 = vmul.f32 %v6888_v50, %v1807_v13  ;;  %v2091_v62 = vadd.f32 %v5289_v31, %v5201_v21  ;;  %v6890_v52 = vld [vmem:[#allocation47_spill] sm:$0xff] }
 0x2af   : > { %v1681_v9 = vadd.f32 %v1673_v19, %v1608_v6  ;;  %v1953_v4 = vmax.f32 %v1945_v30, 0.0  ;;  %v1814_v60 = vmul.f32 %v6888_v50, %v1802_v8  ;;  %v1948_v56 = vmax.f32 %v1940_v14, 0.0  ;;  %v6891_v30 = vld [vmem:[#allocation132_spill] sm:$0xff] }
 0x2b0   : > { %2466 = vperm.xlu1 %3902, %v4831_v12   ;;  %v1676_v59 = vadd.f32 %v1668_v45, %v1603_v33  ;;  %v2086_v7 = vadd.f32 %v5289_v31, %v5151_v22  ;;  %v1281_v19 = vadd.f32 %v5134_v28, %v6890_v52  ;;  %v1892_v6 = vmul.f32 %v6891_v30, %v1880_v57  ;;  %v6894_v52 = vld [vmem:[#allocation146_spill] sm:$0xff] }
 0x2b1   : > { %v1754_v13 = vadd.f32 %v1746_v46, %v1681_v9  ;;  %v2026_v39 = vmax.f32 %v2018_v23, 0.0  ;;  %v1354_v45 = vadd.f32 %v5147_v61, %v6893_v11  ;;  %v1887_v14 = vmul.f32 %v6891_v30, %v1875_v1 }
 0x2b2   : > { %v5283_v12 = vpop.permute.xlu1 %2199  ;;  %v2151_v27 = vpop.permute.xlu0 %2150  ;;  %v1749_v8 = vadd.f32 %v1741_v10, %v1676_v59  ;;  %v2021_v33 = vmax.f32 %v2013_v34, 0.0  ;;  %v1965_v46 = vmul.f32 %v6894_v52, %v1953_v4  ;;  %v2099_v9 = vmax.f32 %v2091_v62, 0.0  ;;  %v6897_v59 = vld [vmem:[#allocation62_spill] sm:$0xff] }
 0x2b3   : > { %6887 = vst [vmem:[#allocation53_spill] sm:$0xff] %v5283_v12  ;;  %v6889_v12 = vmov 28   ;;  %v1827_v22 = vadd.f32 %v1819_v24, %v1754_v13  ;;  %v2094_v28 = vmax.f32 %v2086_v7, 0.0  ;;  %v6895_v10 = vmax.f32 %v5157_v43, 0.0 }
 0x2b4   : > { %3903 = vset.pattern.permute.xlu1 %v6889_v12  ;;  %v1822_v23 = vadd.f32 %v1814_v60, %v1749_v8  ;;  %v6896_v34 = vmax.f32 %v5177_v40, 0.0  ;;  %v2038_v62 = vmul.f32 %v4981_v25, %v2026_v39  ;;  %v1427_v60 = vadd.f32 %v5167_v54, %v6897_v59  ;;  %v6899_v8 = vld [vmem:[#allocation69_spill] sm:$0xff]  ;;  %v6904_v59 = vld [vmem:[#allocation118_spill] sm:$0xff] }
 0x2b5   : > { %2576 = vperm.xlu1 %3903, %v4841_v15   ;;  %v5312_v15 = vld [vmem:[%s6529_s3 + $0x16] ss:$0 sm:$0xff]  ;;  %v1155_v1 = vmul.f32 %v6854_v55, %v6895_v10  ;;  %v1900_v4 = vadd.f32 %v1892_v6, %v1827_v22  ;;  %v1362_v43 = vmax.f32 %v1354_v45, 0.0  ;;  %v2111_v40 = vmul.f32 %v5187_v3, %v2099_v9 }
 0x2b6   : > { %v5304_v21 = vpop.permute.xlu1 %2215  ;;  %v2164_v57 = vadd.f32 %v5312_v15, %v2151_v27  ;;  %v2159_v11 = vadd.f32 %v5312_v15, %v2131_v63  ;;  %v1228_v24 = vmul.f32 %v6860_v42, %v6896_v34  ;;  %v1289_v27 = vmax.f32 %v1281_v19, 0.0 }
 0x2b7   : > { %6892 = vst [vmem:[#allocation48_spill] sm:$0xff] %v5304_v21  ;;  %v1960_v21 = vmul.f32 %v6894_v52, %v1948_v56  ;;  %v1895_v63 = vadd.f32 %v1887_v14, %v1822_v23  ;;  %v1973_v7 = vadd.f32 %v1965_v46, %v1900_v4  ;;  %v1500_v6 = vadd.f32 %v5182_v36, %v6899_v8  ;;  %v6902_v4 = vld [vmem:[#allocation27_spill] sm:$0xff] }
 0x2b8   : > { %v2172_v13 = vmax.f32 %v2164_v57, 0.0  ;;  %v2167_v19 = vmax.f32 %v2159_v11, 0.0  ;;  %v6900_v22 = vmax.f32 %v5030_v41, 0.0  ;;  %v1163_v23 = vadd.f32 %v1155_v1, %v5161_v51  ;;  %v6907_v8 = vld [vmem:[#allocation15_spill] sm:$0xff] }
 0x2b9   : > { %3904 = vset.pattern.permute.xlu1 %v6796_v44  ;;  %v2033_v44 = vmul.f32 %v4981_v25, %v2021_v33  ;;  %v1968_v39 = vadd.f32 %v1960_v21, %v1895_v63  ;;  %v854_v33 = vmax.f32 %v5091_v35, 0.0  ;;  %v2046_v45 = vadd.f32 %v2038_v62, %v1973_v7 }
 0x2ba   : > { %2426 = vperm.xlu1 %3904, %v4850_v16   ;;  %v2106_v16 = vmul.f32 %v5187_v3, %v2094_v28  ;;  %v867_v14 = vmul.f32 %v6823_v32, %v6900_v22  ;;  %v925_v46 = vmax.f32 %v5103_v37, 0.0  ;;  %v1301_v9 = vmul.f32 %v6863_v5, %v1289_v27  ;;  %v6903_v27 = vld [vmem:[#allocation78_spill] sm:$0xff] }
 0x2bb   : > { %v5330_v56 = vpop.permute.xlu1 %2146  ;;  %v1435_v57 = vmax.f32 %v1427_v60, 0.0  ;;  %v2041_v21 = vadd.f32 %v2033_v44, %v1968_v39  ;;  %v856_v41 = vmax.f32 %v5118_v48, 0.0  ;;  %v1236_v11 = vadd.f32 %v1228_v24, %v1163_v23  ;;  %v6905_v24 = vld [vmem:[#allocation29_spill] sm:$0xff] }
 0x2bc   : > { %6898 = vst [vmem:[#allocation30_spill] sm:$0xff] %v5330_v56  ;;  %v2119_v10 = vadd.f32 %v2111_v40, %v2046_v45  ;;  %v1374_v51 = vmul.f32 %v6866_v53, %v1362_v43  ;;  %v1508_v1 = vmax.f32 %v1500_v6, 0.0  ;;  %v920_v62 = vadd.f32 %v5023_v47, %v6902_v4  ;;  %v6906_v40 = vld [vmem:[#allocation8_spill] sm:$0xff]  ;;  %v6931_v56 = vld [vmem:[#allocation157_spill] sm:$0xff] }
 0x2bd   : > { %v2114_v34 = vadd.f32 %v2106_v16, %v2041_v21  ;;  %v1646_v60 = vadd.f32 %v5211_v26, %v6904_v59  ;;  %v922_v63 = vadd.f32 %v5023_v47, %v6905_v24  ;;  %v1309_v44 = vadd.f32 %v1301_v9, %v1236_v11  ;;  %v6909_v16 = vld [vmem:[#allocation3_spill] sm:$0xff]  ;;  %v6912_v9 = vld [vmem:[#allocation148_spill] sm:$0xff]  ;;  %v6916_v59 = vld [vmem:[#allocation137_spill] sm:$0xff] }
 0x2be   : > { %3906 = vset.pattern.permute.xlu1 %v6889_v12  ;;  %v1447_v43 = vmul.f32 %v6872_v58, %v1435_v57  ;;  %v6908_v6 = vmax.f32 %v6907_v8, 0.0  ;;  %v866_v23 = vmul.f32 %v6823_v32, %v854_v33  ;;  %v875_v57 = vadd.f32 %v867_v14, %v6912_v9  ;;  %v6913_v11 = vld [vmem:[#allocation112_spill] sm:$0xff] }
 0x2bf   : > { %2564 = vperm.xlu1 %3906, %v4800_v17   ;;  %v5345_v28 = vpop.permute.xlu1 %2174  ;;  %v1573_v17 = vadd.f32 %v5199_v2, %v6903_v27  ;;  %v1382_v21 = vadd.f32 %v1374_v51, %v1309_v44  ;;  %v1654_v27 = vmax.f32 %v1646_v60, 0.0  ;;  %v1792_v24 = vadd.f32 %v5238_v38, %v6916_v59  ;;  %v6917_v8 = vld [vmem:[#allocation32_spill] sm:$0xff]  ;;  %v6920_v51 = vld [vmem:[#allocation17_spill] sm:$0xff] }
 0x2c0   : > { %6901 = vst [vmem:[#allocation61_spill] sm:$0xff] %v5345_v28  ;;  %v2184_v35 = vmul.f32 %v5345_v28, %v2172_v13  ;;  %v2179_v37 = vmul.f32 %v5345_v28, %v2167_v19  ;;  %v803_v13 = vadd.f32 %v6906_v40, %v5003_v0  ;;  %v869_v39 = vmul.f32 %v6823_v32, %v6908_v6  ;;  %v6910_v19 = vld [vmem:[#allocation9_spill] sm:$0xff]  ;;  %v6922_v60 = vld [vmem:[#allocation136_spill] sm:$0xff] }
 0x2c1   : > { %v872_v22 = vadd.f32 %v6910_v19, %v6909_v16  ;;  %v1581_v0 = vmax.f32 %v1573_v17, 0.0  ;;  %v928_v33 = vmax.f32 %v920_v62, 0.0  ;;  %v930_v40 = vmax.f32 %v922_v63, 0.0  ;;  %v6921_v44 = vld [vmem:[#allocation145_spill] sm:$0xff]  ;;  %v6923_v62 = vld [vmem:[#allocation10_spill] sm:$0xff]  ;;  %v6926_v59 = vld [vmem:[#allocation152_spill] sm:$0xff] }
 0x2c2   : > { %v5357_v48 = vadd.f32 %v2184_v35, %v2119_v10  ;;  %v5363_v7 = vadd.f32 %v2179_v37, %v2114_v34  ;;  %v1520_v10 = vmul.f32 %v6913_v11, %v1508_v1  ;;  %v5378_v35 = vpop.permute.xlu0 %2195  ;;  %v6914_v34 = vld [vmem:[#allocation90_spill] sm:$0xff]  ;;  %v6915_v37 = vld [vmem:[#allocation25_spill] sm:$0xff]  ;;  %v937_v6 = vmul.f32 %v6917_v8, %v925_v46  ;;  %v6924_v46 = vld [vmem:[#allocation11_spill] sm:$0xff] }
 0x2c3   : > { %2580 = vperm.xlu1 %3906, %v6803_v20   ;;  %v868_v20 = vmul.f32 %v6823_v32, %v856_v41  ;;  %v1719_v4 = vadd.f32 %v6915_v37, %v6914_v34  ;;  %v1455_v14 = vadd.f32 %v1447_v43, %v1382_v21  ;;  %v6918_v16 = vmov 27   ;;  %v6919_v32 = vld [vmem:[#allocation135_spill] sm:$0xff] }
 0x2c4   : > { %v5373_v45 = vpop.permute.xlu1 %2284  ;;  %v877_v41 = vadd.f32 %v869_v39, %v6919_v32  ;;  %v874_v1 = vadd.f32 %v866_v23, %v6920_v51  ;;  %v1593_v17 = vmul.f32 %v6880_v29, %v1581_v0  ;;  %v1865_v19 = vadd.f32 %v5251_v18, %v6921_v44  ;;  %v6927_v32 = vld [vmem:[#allocation45_spill] sm:$0xff] }
 0x2c5   : > { %6911 = vst [vmem:[#allocation65_spill] sm:$0xff] %v5373_v45  ;;  %v5392_v9 = vadd.f32 %v868_v20, %v803_v13  ;;  %v919_v63 = vadd.f32 %v5023_v47, %v6923_v62  ;;  %v921_v43 = vadd.f32 %v5023_v47, %v6924_v46  ;;  %v1528_v21 = vadd.f32 %v1520_v10, %v1455_v14  ;;  %v6929_v62 = vld [vmem:[#allocation7_spill] sm:$0xff]  ;;  %v6930_v14 = vld [vmem:[#allocation109_spill] sm:$0xff] }
 0x2c6   : > { %v1727_v39 = vmax.f32 %v1719_v4, 0.0  ;;  %v1666_v23 = vmul.f32 %v6884_v49, %v1654_v27  ;;  %v1800_v0 = vmax.f32 %v1792_v24, 0.0  ;;  %v1938_v51 = vadd.f32 %v6927_v32, %v6926_v59  ;;  %v2204_v47 = vpop.permute.xlu0 %2203  ;;  %v6932_v27 = vld [vmem:[#allocation40_spill] sm:$0xff]  ;;  %v6934_v32 = vld [vmem:[#allocation37_spill] sm:$0xff] }
 0x2c7   : > { %3907 = vset.pattern.permute.xlu1 %v6918_v16  ;;  %v940_v44 = vmul.f32 %v6917_v8, %v928_v33  ;;  %v942_v13 = vmul.f32 %v6917_v8, %v930_v40  ;;  %v5405_v20 = vadd.f32 %v937_v6, %v872_v22  ;;  %v1601_v10 = vadd.f32 %v1593_v17, %v1528_v21  ;;  %v6935_v22 = vld [vmem:[#allocation39_spill] sm:$0xff]  ;;  %v6936_v21 = vld [vmem:[#allocation13_spill] sm:$0xff] }
 0x2c8   : > { %2511 = vperm.xlu1 %3907, %v6922_v60   ;;  %v6928_v60 = vld [vmem:[#allocation34_spill] sm:$0xff]  ;;  %v1739_v46 = vmul.f32 %v6930_v14, %v1727_v39  ;;  %v1873_v4 = vmax.f32 %v1865_v19, 0.0  ;;  %v2011_v24 = vadd.f32 %v6932_v27, %v6931_v56  ;;  %v927_v59 = vmax.f32 %v919_v63, 0.0  ;;  %v6938_v63 = vld [vmem:[#allocation16_spill] sm:$0xff] }
 0x2c9   : > { %v5398_v34 = vpop.permute.xlu1 %2134  ;;  %v990_v45 = vadd.f32 %v6929_v62, %v6928_v60  ;;  %v993_v33 = vadd.f32 %v6929_v62, %v6934_v32  ;;  %v929_v40 = vmax.f32 %v921_v43, 0.0  ;;  %v995_v6 = vadd.f32 %v6929_v62, %v6935_v22  ;;  %v6939_v32 = vld [vmem:[#allocation31_spill] sm:$0xff] }
 0x2ca   : > { %6925 = vst [vmem:[#allocation56_spill] sm:$0xff] %v5398_v34  ;;  %v6933_v34 = vld [vmem:[#allocation139_spill] sm:$0xff]  ;;  %v1674_v18 = vadd.f32 %v1666_v23, %v1601_v10  ;;  %v1812_v60 = vmul.f32 %v6888_v50, %v1800_v0  ;;  %v1946_v17 = vmax.f32 %v1938_v51, 0.0  ;;  %v2084_v19 = vadd.f32 %v5289_v31, %v6936_v21 }
 0x2cb   : > { %v948_v56 = vadd.f32 %v940_v44, %v875_v57  ;;  %v992_v27 = vadd.f32 %v6929_v62, %v6938_v63  ;;  %v2157_v43 = vadd.f32 %v5312_v15, %v6939_v32  ;;  %v998_v14 = vmax.f32 %v990_v45, 0.0  ;;  %v2224_v44 = vpop.permute.xlu0 %2223  ;;  %v6942_v15 = vld [vmem:[#allocation20_spill] sm:$0xff]  ;;  %v6944_v63 = vld [vmem:[#allocation46_spill] sm:$0xff] }
 0x2cc   : > { %2539 = vperm.xlu1 %3907, %v6933_v34   ;;  %v950_v34 = vadd.f32 %v942_v13, %v877_v41  ;;  %v1747_v22 = vadd.f32 %v1739_v46, %v1674_v18  ;;  %v1885_v23 = vmul.f32 %v6891_v30, %v1873_v4  ;;  %v2019_v0 = vmax.f32 %v2011_v24, 0.0  ;;  %v5431_v41 = vld [vmem:[%s4140_s22 + $0x20] sm:$0xff]  ;;  %v6941_v13 = vld [vmem:[#allocation44_spill] sm:$0xff] }
 0x2cd   : > { %v6940_v51 = vmov 29   ;;  %v939_v10 = vmul.f32 %v6917_v8, %v927_v59  ;;  %v1001_v31 = vmax.f32 %v993_v33, 0.0  ;;  %v941_v21 = vmul.f32 %v6917_v8, %v929_v40  ;;  %v6945_v8 = vld [vmem:[#allocation49_spill] sm:$0xff] }
 0x2ce   : > { %v5420_v39 = vpop.permute.xlu1 %2272  ;;  %v1003_v57 = vmax.f32 %v995_v6, 0.0  ;;  %v1063_v45 = vadd.f32 %v6942_v15, %v6941_v13  ;;  %v1820_v18 = vadd.f32 %v1812_v60, %v1747_v22  ;;  %v1958_v46 = vmul.f32 %v6894_v52, %v1946_v17  ;;  %v5446_v6 = vld [vmem:[%s6529_s3 + $0x17] ss:$0 sm:$0xff] }
 0x2cf   : > { %6937 = vst [vmem:[#allocation67_spill] sm:$0xff] %v5420_v39  ;;  %v2092_v4 = vmax.f32 %v2084_v19, 0.0  ;;  %v1066_v59 = vadd.f32 %v6942_v15, %v6944_v63  ;;  %v1000_v33 = vmax.f32 %v992_v27, 0.0  ;;  %v1068_v40 = vadd.f32 %v6942_v15, %v6945_v8  ;;  %6946 = vst [vmem:[#allocation63_spill] sm:$0xff] %v5446_v6  ;;  %v6947_v27 = vld [vmem:[#allocation42_spill] sm:$0xff] }
 0x2d0   : > { %3908 = vset.pattern.permute.xlu1 %v6940_v51  ;;  %v2165_v32 = vmax.f32 %v2157_v43, 0.0  ;;  %v1893_v60 = vadd.f32 %v1885_v23, %v1820_v18  ;;  %v2031_v17 = vmul.f32 %v4981_v25, %v2019_v0  ;;  %v2230_v19 = vadd.f32 %v5446_v6, %v5378_v35  ;;  %v5462_v35 = vld [vmem:[%s4140_s22 + $0x18] sm:$0xff]  ;;  %v6949_v18 = vld [vmem:[#allocation18_spill] sm:$0xff] }
 0x2d1   : > { %2649 = vperm.xlu1 %3908, %v5431_v41   ;;  %v2237_v22 = vadd.f32 %v5446_v6, %v2224_v44  ;;  %v947_v13 = vadd.f32 %v939_v10, %v874_v1  ;;  %v1010_v63 = vmul.f32 %v6947_v27, %v998_v14  ;;  %v1013_v8 = vmul.f32 %v6947_v27, %v1001_v31 }
 0x2d2   : > { %v5437_v24 = vpop.permute.xlu1 %2288  ;;  %v5457_v39 = vadd.f32 %v941_v21, %v5392_v9  ;;  %v1015_v43 = vmul.f32 %v6947_v27, %v1003_v57  ;;  %v1966_v23 = vadd.f32 %v1958_v46, %v1893_v60  ;;  %v2104_v0 = vmul.f32 %v5187_v3, %v2092_v4  ;;  %v6950_v4 = vld [vmem:[#allocation58_spill] sm:$0xff] }
 0x2d3   : > { %6943 = vst [vmem:[#allocation38_spill] sm:$0xff] %v5437_v24  ;;  %v2232_v24 = vadd.f32 %v5446_v6, %v2204_v47  ;;  %v1071_v1 = vmax.f32 %v1063_v45, 0.0  ;;  %v1074_v14 = vmax.f32 %v1066_v59, 0.0  ;;  %v1012_v10 = vmul.f32 %v6947_v27, %v1000_v33  ;;  %v6951_v60 = vld [vmem:[#allocation22_spill] sm:$0xff] }
 0x2d4   : > { %v1076_v31 = vmax.f32 %v1068_v40, 0.0  ;;  %v2245_v44 = vmax.f32 %v2237_v22, 0.0  ;;  %v2039_v9 = vadd.f32 %v2031_v17, %v1966_v23  ;;  %v2177_v21 = vmul.f32 %v5345_v28, %v2165_v32  ;;  %v6952_v40 = vld [vmem:[#allocation60_spill] sm:$0xff]  ;;  %v6953_v32 = vld [vmem:[#allocation51_spill] sm:$0xff]  ;;  %v6967_v28 = vld [vmem:[#allocation77_spill] sm:$0xff] }
 0x2d5   : > { %3909 = vset.pattern.permute.xlu1 %v6918_v16  ;;  %v2238_v16 = vmax.f32 %v2230_v19, 0.0  ;;  %v1018_v57 = vadd.f32 %v1010_v63, %v5405_v20  ;;  %v994_v46 = vadd.f32 %v6929_v62, %v6949_v18  ;;  %v1139_v45 = vadd.f32 %v6951_v60, %v6950_v4  ;;  %v5483_v63 = vld [vmem:[%s4140_s22 + $0x8] sm:$0xff] }
 0x2d6   : > { %2499 = vperm.xlu1 %3909, %v5462_v35   ;;  %v2240_v59 = vmax.f32 %v2232_v24, 0.0  ;;  %v1021_v6 = vadd.f32 %v1013_v8, %v948_v56  ;;  %v1023_v33 = vadd.f32 %v1015_v43, %v950_v34  ;;  %v2112_v19 = vadd.f32 %v2104_v0, %v2039_v9  ;;  %v6955_v34 = vld [vmem:[#allocation55_spill] sm:$0xff]  ;;  %v6957_v9 = vld [vmem:[#allocation70_spill] sm:$0xff] }
 0x2d7   : > { %v5466_v47 = vpop.permute.xlu1 %2219  ;;  %v5477_v17 = vadd.f32 %v1012_v10, %v947_v13  ;;  %v1083_v22 = vmul.f32 %v6953_v32, %v1071_v1  ;;  %v1086_v20 = vmul.f32 %v6953_v32, %v1074_v14  ;;  %v1088_v62 = vmul.f32 %v6953_v32, %v1076_v31  ;;  %v6956_v1 = vld [vmem:[#allocation24_spill] sm:$0xff]  ;;  %v6958_v18 = vld [vmem:[#allocation19_spill] sm:$0xff] }
 0x2d8   : > { %6948 = vst [vmem:[#allocation75_spill] sm:$0xff] %v5466_v47  ;;  %v1141_v47 = vadd.f32 %v6951_v60, %v6952_v40  ;;  %v1136_v24 = vadd.f32 %v6951_v60, %v6955_v34  ;;  %v2185_v13 = vadd.f32 %v2177_v21, %v2112_v19  ;;  %v1002_v23 = vmax.f32 %v994_v46, 0.0  ;;  %v6959_v21 = vld [vmem:[#allocation26_spill] sm:$0xff]  ;;  %v6960_v46 = vld [vmem:[#allocation73_spill] sm:$0xff]  ;;  %v5507_v19 = vld [vmem:[%s4140_s22 + $0x28] sm:$0xff] }
 0x2d9   : > { %v1147_v0 = vmax.f32 %v1139_v45, 0.0  ;;  %v1065_v14 = vadd.f32 %v6942_v15, %v6956_v1  ;;  %v1212_v4 = vadd.f32 %v6958_v18, %v6957_v9  ;;  %v1214_v45 = vadd.f32 %v6958_v18, %v6960_v46  ;;  %v6965_v46 = vld [vmem:[#allocation80_spill] sm:$0xff] }
 0x2da   : > { %3911 = vset.pattern.permute.xlu1 %v6940_v51  ;;  %v1149_v31 = vmax.f32 %v1141_v47, 0.0  ;;  %v1144_v1 = vmax.f32 %v1136_v24, 0.0 }
 0x2db   : > { %2637 = vperm.xlu1 %3911, %v5483_v63   ;;  %v5486_v56 = vpop.permute.xlu1 %2247  ;;  %v1159_v9 = vmul.f32 %v6854_v55, %v1147_v0  ;;  %v1220_v24 = vmax.f32 %v1212_v4, 0.0  ;;  %v5537_v4 = vld [vmem:[%s4140_s22 + $0x30] sm:$0xff] }
 0x2dc   : > { %6954 = vst [vmem:[#allocation76_spill] sm:$0xff] %v5486_v56  ;;  %v2257_v8 = vmul.f32 %v5486_v56, %v2245_v44  ;;  %v2250_v43 = vmul.f32 %v5486_v56, %v2238_v16  ;;  %v2252_v10 = vmul.f32 %v5486_v56, %v2240_v59  ;;  %v1091_v44 = vadd.f32 %v1083_v22, %v1018_v57 }
 0x2dd   : > { %v1067_v16 = vadd.f32 %v6942_v15, %v6959_v21  ;;  %v1094_v59 = vadd.f32 %v1086_v20, %v1021_v6  ;;  %v1014_v15 = vmul.f32 %v6947_v27, %v1002_v23  ;;  %v6964_v21 = vld [vmem:[#allocation35_spill] sm:$0xff]  ;;  %v1096_v6 = vadd.f32 %v1088_v62, %v1023_v33  ;;  %v6968_v23 = vld [vmem:[#allocation82_spill] sm:$0xff]  ;;  %v6969_v62 = vld [vmem:[#allocation41_spill] sm:$0xff] }
 0x2de   : > { %v5498_v40 = vadd.f32 %v2257_v8, %v5357_v48  ;;  %v5500_v34 = vadd.f32 %v2250_v43, %v2185_v13  ;;  %v5511_v47 = vadd.f32 %v2252_v10, %v5363_v7  ;;  %v6961_v48 = vld [vmem:[#allocation68_spill] sm:$0xff]  ;;  %v6962_v13 = vld [vmem:[#allocation33_spill] sm:$0xff]  ;;  %v1073_v43 = vmax.f32 %v1065_v14, 0.0  ;;  %v5523_v10 = vpop.permute.xlu0 %2268 }
 0x2df   : > { %2653 = vperm.xlu1 %3911, %v5507_v19   ;;  %v1209_v8 = vadd.f32 %v6958_v18, %v6961_v48  ;;  %v1138_v57 = vadd.f32 %v6951_v60, %v6962_v13  ;;  %v1140_v7 = vadd.f32 %v6951_v60, %v6964_v21  ;;  %v1161_v20 = vmul.f32 %v6854_v55, %v1149_v31  ;;  %v6966_v48 = vld [vmem:[#allocation21_spill] sm:$0xff] }
 0x2e0   : > { %v5517_v22 = vpop.permute.xlu1 %2357  ;;  %v1285_v13 = vadd.f32 %v6966_v48, %v6965_v46  ;;  %v1075_v56 = vmax.f32 %v1067_v16, 0.0  ;;  %v1282_v27 = vadd.f32 %v6966_v48, %v6967_v28  ;;  %v1287_v0 = vadd.f32 %v6966_v48, %v6968_v23 }
 0x2e1   : > { %6963 = vst [vmem:[#allocation71_spill] sm:$0xff] %v5517_v22  ;;  %v1222_v22 = vmax.f32 %v1214_v45, 0.0  ;;  %v1156_v60 = vmul.f32 %v6854_v55, %v1144_v1  ;;  %v1217_v14 = vmax.f32 %v1209_v8, 0.0  ;;  %v1146_v33 = vmax.f32 %v1138_v57, 0.0  ;;  %v6970_v57 = vld [vmem:[#allocation89_spill] sm:$0xff] }
 0x2e2   : > { %v1211_v31 = vadd.f32 %v6958_v18, %v6969_v62  ;;  %v1022_v16 = vadd.f32 %v1014_v15, %v5457_v39  ;;  %v1085_v28 = vmul.f32 %v6953_v32, %v1073_v43  ;;  %v1167_v45 = vadd.f32 %v1159_v9, %v1094_v59  ;;  %v2277_v39 = vpop.permute.xlu0 %2276 }
 0x2e3   : > { %3912 = vset.pattern.permute.xlu1 %v6889_v12  ;;  %v1148_v21 = vmax.f32 %v1140_v7, 0.0  ;;  %v1169_v23 = vadd.f32 %v1161_v20, %v1096_v6  ;;  %v1232_v1 = vmul.f32 %v6860_v42, %v1220_v24  ;;  %v1293_v8 = vmax.f32 %v1285_v13, 0.0  ;;  %v5554_v7 = vld [vmem:[%s6533_s7] ss:$0 sm:$0xff] }
 0x2e4   : > { %2584 = vperm.xlu1 %3912, %v5537_v4   ;;  %v1358_v3 = vadd.f32 %v5147_v61, %v6970_v57  ;;  %v1087_v62 = vmul.f32 %v6953_v32, %v1075_v56  ;;  %v1234_v25 = vmul.f32 %v6860_v42, %v1222_v22  ;;  %v1290_v52 = vmax.f32 %v1282_v27, 0.0  ;;  %v6971_v22 = vld [vmem:[#allocation43_spill] sm:$0xff]  ;;  %v6974_v57 = vld [vmem:[#allocation98_spill] sm:$0xff] }
 0x2e5   : > { %v5542_v46 = vpop.permute.xlu1 %2207  ;;  %v1295_v30 = vmax.f32 %v1287_v0, 0.0  ;;  %v1164_v15 = vadd.f32 %v1156_v60, %v1091_v44  ;;  %v1229_v59 = vmul.f32 %v6860_v42, %v1217_v14  ;;  %v1158_v43 = vmul.f32 %v6854_v55, %v1146_v33  ;;  %v6972_v44 = vld [vmem:[#allocation91_spill] sm:$0xff] }
 0x2e6   : > { %v1219_v9 = vmax.f32 %v1211_v31, 0.0  ;;  %v1093_v32 = vadd.f32 %v1085_v28, %v5477_v17  ;;  %v1160_v56 = vmul.f32 %v6854_v55, %v1148_v21  ;;  %v1213_v6 = vadd.f32 %v6958_v18, %v6971_v22  ;;  %v6973_v27 = vld [vmem:[#allocation87_spill] sm:$0xff] }
 0x2e7   : > { %v1360_v20 = vadd.f32 %v5147_v61, %v6972_v44  ;;  %v1240_v24 = vadd.f32 %v1232_v1, %v1167_v45  ;;  %v1305_v13 = vmul.f32 %v6863_v5, %v1293_v8  ;;  %v1355_v0 = vadd.f32 %v5147_v61, %v6973_v27  ;;  %v6976_v44 = vld [vmem:[#allocation101_spill] sm:$0xff] }
 0x2e8   : > { %2612 = vperm.xlu1 %3912, %v5554_v7   ;;  %v1366_v60 = vmax.f32 %v1358_v3, 0.0  ;;  %v1095_v33 = vadd.f32 %v1087_v62, %v1022_v16  ;;  %v1242_v31 = vadd.f32 %v1234_v25, %v1169_v23  ;;  %v1302_v17 = vmul.f32 %v6863_v5, %v1290_v52  ;;  %v2297_v25 = vpop.permute.xlu0 %2296  ;;  %v6977_v62 = vld [vmem:[#allocation50_spill] sm:$0xff] }
 0x2e9   : > { %v1307_v55 = vmul.f32 %v6863_v5, %v1295_v30  ;;  %v1237_v28 = vadd.f32 %v1229_v59, %v1164_v15  ;;  %v1166_v18 = vadd.f32 %v1158_v43, %v1093_v32  ;;  %v1231_v21 = vmul.f32 %v6860_v42, %v1219_v9  ;;  %v6978_v32 = vld [vmem:[#allocation96_spill] sm:$0xff] }
 0x2ea   : > { %v5566_v14 = vpop.permute.xlu1 %2345  ;;  %v1431_v45 = vadd.f32 %v5167_v54, %v6974_v57  ;;  %v6975_v1 = vmov 30   ;;  %v1168_v8 = vadd.f32 %v1160_v56, %v1095_v33  ;;  %v1221_v22 = vmax.f32 %v1213_v6, 0.0  ;;  %v6979_v6 = vld [vmem:[#allocation52_spill] sm:$0xff] }
 0x2eb   : > { %v1368_v3 = vmax.f32 %v1360_v20, 0.0  ;;  %v1433_v16 = vadd.f32 %v5167_v54, %v6976_v44  ;;  %v1313_v52 = vadd.f32 %v1305_v13, %v1240_v24  ;;  %v1363_v30 = vmax.f32 %v1355_v0, 0.0  ;;  %v5589_v24 = vld [vmem:[%s6529_s3 + $0x18] ss:$0 sm:$0xff]  ;;  %v6981_v44 = vld [vmem:[#allocation107_spill] sm:$0xff] }
 0x2ec   : > { %3913 = vset.pattern.permute.xlu1 %v6975_v1  ;;  %v1378_v23 = vmul.f32 %v6866_v53, %v1366_v60  ;;  %v1284_v15 = vadd.f32 %v6966_v48, %v6977_v62  ;;  %v1310_v43 = vadd.f32 %v1302_v17, %v1237_v28  ;;  %v1315_v9 = vadd.f32 %v1307_v55, %v1242_v31 }
 0x2ed   : > { %2722 = vperm.xlu1 %3913, %v5431_v41   ;;  %v1428_v56 = vadd.f32 %v5167_v54, %v6978_v32  ;;  %v1286_v20 = vadd.f32 %v6966_v48, %v6979_v6  ;;  %v1239_v13 = vadd.f32 %v1231_v21, %v1166_v18  ;;  %v1439_v27 = vmax.f32 %v1431_v45, 0.0  ;;  %v6980_v18 = vld [vmem:[#allocation105_spill] sm:$0xff] }
 0x2ee   : > { %v5580_v59 = vpop.permute.xlu1 %2361  ;;  %v2303_v0 = vadd.f32 %v5589_v24, %v5523_v10  ;;  %v2310_v60 = vadd.f32 %v5589_v24, %v2297_v25  ;;  %v1233_v33 = vmul.f32 %v6860_v42, %v1221_v22  ;;  %v1380_v31 = vmul.f32 %v6866_v53, %v1368_v3  ;;  %v6982_v22 = vld [vmem:[#allocation110_spill] sm:$0xff] }
 0x2ef   : > { %v1441_v17 = vmax.f32 %v1433_v16, 0.0  ;;  %v2305_v55 = vadd.f32 %v5589_v24, %v2277_v39  ;;  %v1375_v48 = vmul.f32 %v6866_v53, %v1363_v30  ;;  %v1386_v28 = vadd.f32 %v1378_v23, %v1313_v52  ;;  %v6983_v16 = vld [vmem:[#allocation57_spill] sm:$0xff] }
 0x2f0   : > { %v1292_v57 = vmax.f32 %v1284_v15, 0.0  ;;  %v1501_v21 = vadd.f32 %v5182_v36, %v6980_v18  ;;  %v1436_v10 = vmax.f32 %v1428_v56, 0.0  ;;  %v1294_v45 = vmax.f32 %v1286_v20, 0.0  ;;  %v6984_v18 = vld [vmem:[#allocation59_spill] sm:$0xff] }
 0x2f1   : > { %3914 = vset.pattern.permute.xlu1 %v6889_v12  ;;  %v1504_v42 = vadd.f32 %v5182_v36, %v6981_v44  ;;  %v1506_v3 = vadd.f32 %v5182_v36, %v6982_v22  ;;  %v1451_v12 = vmul.f32 %v6872_v58, %v1439_v27  ;;  %v1357_v25 = vadd.f32 %v5147_v61, %v6983_v16 }
 0x2f2   : > { %2572 = vperm.xlu1 %3914, %v5462_v35   ;;  %v2311_v52 = vmax.f32 %v2303_v0, 0.0  ;;  %v2318_v30 = vmax.f32 %v2310_v60, 0.0  ;;  %v1241_v23 = vadd.f32 %v1233_v33, %v1168_v8  ;;  %v1388_v62 = vadd.f32 %v1380_v31, %v1315_v9 }
 0x2f3   : > { %v5606_v39 = vpop.permute.xlu1 %2292  ;;  %v1453_v15 = vmul.f32 %v6872_v58, %v1441_v17  ;;  %v2313_v32 = vmax.f32 %v2305_v55, 0.0  ;;  %v1383_v56 = vadd.f32 %v1375_v48, %v1310_v43  ;;  %v1304_v6 = vmul.f32 %v6863_v5, %v1292_v57  ;;  %v6986_v48 = vld [vmem:[#allocation66_spill] sm:$0xff] }
 0x2f4   : > { %v1509_v20 = vmax.f32 %v1501_v21, 0.0  ;;  %v1359_v44 = vadd.f32 %v5147_v61, %v6984_v18  ;;  %v1306_v27 = vmul.f32 %v6863_v5, %v1294_v45  ;;  %v1448_v22 = vmul.f32 %v6872_v58, %v1436_v10  ;;  %v6985_v61 = vld [vmem:[#allocation64_spill] sm:$0xff] }
 0x2f5   : > { %v1512_v0 = vmax.f32 %v1504_v42, 0.0  ;;  %v1514_v60 = vmax.f32 %v1506_v3, 0.0  ;;  %v1459_v9 = vadd.f32 %v1451_v12, %v1386_v28  ;;  %v1365_v43 = vmax.f32 %v1357_v25, 0.0  ;;  %v6987_v12 = vld [vmem:[#allocation74_spill] sm:$0xff]  ;;  %v6989_v18 = vld [vmem:[#allocation72_spill] sm:$0xff] }
 0x2f6   : > { %3916 = vset.pattern.permute.xlu1 %v6975_v1  ;;  %v1461_v17 = vadd.f32 %v1453_v15, %v1388_v62  ;;  %v1430_v55 = vadd.f32 %v5167_v54, %v6985_v61  ;;  %v1432_v5 = vadd.f32 %v5167_v54, %v6986_v48  ;;  %v1521_v21 = vmul.f32 %v6913_v11, %v1509_v20  ;;  %v6993_v61 = vld [vmem:[#allocation79_spill] sm:$0xff]  ;;  %v6994_v48 = vld [vmem:[#allocation81_spill] sm:$0xff] }
 0x2f7   : > { %2710 = vperm.xlu1 %3916, %v5483_v63   ;;  %v5619_v8 = vpop.permute.xlu1 %2320  ;;  %v1367_v10 = vmax.f32 %v1359_v44, 0.0  ;;  %v1524_v42 = vmul.f32 %v6913_v11, %v1512_v0  ;;  %v1526_v3 = vmul.f32 %v6913_v11, %v1514_v60  ;;  %v1505_v16 = vadd.f32 %v5182_v36, %v6987_v12  ;;  %v5650_v0 = vpop.permute.xlu0 %2341 }
 0x2f8   : > { %v2330_v33 = vmul.f32 %v5619_v8, %v2318_v30  ;;  %v2323_v31 = vmul.f32 %v5619_v8, %v2311_v52  ;;  %v2325_v57 = vmul.f32 %v5619_v8, %v2313_v32  ;;  %v1312_v25 = vadd.f32 %v1304_v6, %v1239_v13  ;;  %v6988_v30 = vld [vmem:[#allocation114_spill] sm:$0xff]  ;;  %v6990_v13 = vld [vmem:[#allocation116_spill] sm:$0xff] }
 0x2f9   : > { %v1456_v52 = vadd.f32 %v1448_v22, %v1383_v56  ;;  %v1314_v15 = vadd.f32 %v1306_v27, %v1241_v23  ;;  %v1438_v32 = vmax.f32 %v1430_v55, 0.0  ;;  %v1440_v20 = vmax.f32 %v1432_v5, 0.0  ;;  %v6991_v6 = vld [vmem:[#allocation120_spill] sm:$0xff] }
 0x2fa   : > { %v5630_v45 = vadd.f32 %v2330_v33, %v5498_v40  ;;  %v5633_v28 = vadd.f32 %v2323_v31, %v5500_v34  ;;  %v5641_v54 = vadd.f32 %v2325_v57, %v5511_v47  ;;  %v1377_v40 = vmul.f32 %v6866_v53, %v1365_v43  ;;  %v6992_v23 = vld [vmem:[#allocation92_spill] sm:$0xff] }
 0x2fb   : > { %2726 = vperm.xlu1 %3916, %v5507_v19   ;;  %v1577_v34 = vadd.f32 %v5199_v2, %v6988_v30  ;;  %v1503_v44 = vadd.f32 %v5182_v36, %v6989_v18  ;;  %v1529_v60 = vadd.f32 %v1521_v21, %v1456_v52  ;;  %v1379_v47 = vmul.f32 %v6866_v53, %v1367_v10  ;;  %v6995_v21 = vld [vmem:[#allocation127_spill] sm:$0xff] }
 0x2fc   : > { %v5646_v62 = vpop.permute.xlu1 %2430  ;;  %v1579_v56 = vadd.f32 %v5199_v2, %v6990_v13  ;;  %v1651_v22 = vadd.f32 %v5211_v26, %v6991_v6  ;;  %v1532_v43 = vadd.f32 %v1524_v42, %v1459_v9  ;;  %v1534_v33 = vadd.f32 %v1526_v3, %v1461_v17  ;;  %v6999_v13 = vld [vmem:[#allocation83_spill] sm:$0xff] }
 0x2fd   : > { %v1513_v31 = vmax.f32 %v1505_v16, 0.0  ;;  %v1576_v27 = vadd.f32 %v5199_v2, %v6992_v23  ;;  %v1385_v36 = vadd.f32 %v1377_v40, %v1312_v25  ;;  %v1574_v55 = vadd.f32 %v5199_v2, %v6993_v61  ;;  %v6996_v25 = vld [vmem:[#allocation129_spill] sm:$0xff]  ;;  %v6997_v40 = vld [vmem:[#allocation84_spill] sm:$0xff] }
 0x2fe   : > { %v1578_v53 = vadd.f32 %v5199_v2, %v6994_v48  ;;  %v1585_v5 = vmax.f32 %v1577_v34, 0.0  ;;  %v1450_v57 = vmul.f32 %v6872_v58, %v1438_v32  ;;  %v1452_v9 = vmul.f32 %v6872_v58, %v1440_v20  ;;  %v6998_v58 = vld [vmem:[#allocation97_spill] sm:$0xff]  ;;  %v5680_v20 = vpop.permute.xlu0 %2349 }
 0x2ff   : > { %3917 = vset.pattern.permute.xlu1 %v6940_v51  ;;  %v1511_v17 = vmax.f32 %v1503_v44, 0.0  ;;  %v5669_v10 = vadd.f32 %v6915_v37, %v6995_v21  ;;  %v1387_v3 = vadd.f32 %v1379_v47, %v1314_v15  ;;  %v1587_v12 = vmax.f32 %v1579_v56, 0.0  ;;  %v7000_v47 = vld [vmem:[#allocation102_spill] sm:$0xff] }
 0x300   : > { %2657 = vperm.xlu1 %3917, %v5537_v4   ;;  %v1659_v16 = vmax.f32 %v1651_v22, 0.0  ;;  %v1720_v2 = vadd.f32 %v6915_v37, %v6996_v25  ;;  %v1525_v52 = vmul.f32 %v6913_v11, %v1513_v31  ;;  %v1647_v30 = vadd.f32 %v5211_v26, %v6997_v40 }
 0x301   : > { %v5671_v42 = vpop.permute.xlu1 %2280  ;;  %v1584_v34 = vmax.f32 %v1576_v27, 0.0  ;;  %v1652_v32 = vadd.f32 %v5211_v26, %v6998_v58  ;;  %v1582_v18 = vmax.f32 %v1574_v55, 0.0  ;;  %v1586_v44 = vmax.f32 %v1578_v53, 0.0 }
 0x302   : > { %v1650_v15 = vadd.f32 %v5211_v26, %v6999_v13  ;;  %v1649_v56 = vadd.f32 %v5211_v26, %v7000_v47  ;;  %v1458_v6 = vadd.f32 %v1450_v57, %v1385_v36  ;;  %v1460_v22 = vadd.f32 %v1452_v9, %v1387_v3 }
 0x303   : > { %v1523_v31 = vmul.f32 %v6913_v11, %v1511_v17  ;;  %v1731_v23 = vmax.f32 %v5669_v10, 0.0  ;;  %v1594_v27 = vmul.f32 %v6880_v29, %v1582_v18  ;;  %v1597_v61 = vmul.f32 %v6880_v29, %v1585_v5  ;;  %v7001_v11 = vld [vmem:[#allocation95_spill] sm:$0xff] }
 0x304   : > { %2685 = vperm.xlu1 %3917, %v5554_v7   ;;  %v1598_v55 = vmul.f32 %v6880_v29, %v1586_v44  ;;  %v1728_v48 = vmax.f32 %v1720_v2, 0.0  ;;  %v1655_v21 = vmax.f32 %v1647_v30, 0.0  ;;  %v1599_v26 = vmul.f32 %v6880_v29, %v1587_v12  ;;  %v7003_v2 = vld [vmem:[#allocation108_spill] sm:$0xff]  ;;  %v7004_v30 = vld [vmem:[#allocation113_spill] sm:$0xff] }
 0x305   : > { %v1596_v25 = vmul.f32 %v6880_v29, %v1584_v34  ;;  %v1660_v36 = vmax.f32 %v1652_v32, 0.0  ;;  %v1533_v57 = vadd.f32 %v1525_v52, %v1460_v22  ;;  %v1658_v9 = vmax.f32 %v1650_v15, 0.0  ;;  %v2370_v29 = vpop.permute.xlu0 %2369 }
 0x306   : > { %v5692_v53 = vpop.permute.xlu1 %2418  ;;  %v1724_v17 = vadd.f32 %v6915_v37, %v7001_v11  ;;  %v1657_v10 = vmax.f32 %v1649_v56, 0.0  ;;  %v7002_v3 = vmov 31   ;;  %v1531_v5 = vadd.f32 %v1523_v31, %v1458_v6  ;;  %v7005_v6 = vld [vmem:[#allocation100_spill] sm:$0xff] }
 0x307   : > { %v1667_v40 = vmul.f32 %v6884_v49, %v1655_v21  ;;  %v1725_v58 = vadd.f32 %v6915_v37, %v7003_v2  ;;  %v1722_v12 = vadd.f32 %v6915_v37, %v7004_v30  ;;  %v1602_v52 = vadd.f32 %v1594_v27, %v1529_v60  ;;  %v5713_v37 = vld [vmem:[%s6529_s3 + $0x19] ss:$0 sm:$0xff]  ;;  %v7007_v21 = vld [vmem:[#allocation106_spill] sm:$0xff] }
 0x308   : > { %3918 = vset.pattern.permute.xlu1 %v7002_v3  ;;  %v1605_v34 = vadd.f32 %v1597_v61, %v1532_v43  ;;  %v1606_v32 = vadd.f32 %v1598_v55, %v1533_v57  ;;  %v1670_v18 = vmul.f32 %v6884_v49, %v1658_v9  ;;  %v1607_v13 = vadd.f32 %v1599_v26, %v1534_v33  ;;  %v7006_v33 = vld [vmem:[#allocation104_spill] sm:$0xff]  ;;  %v7009_v57 = vld [vmem:[#allocation119_spill] sm:$0xff] }
 0x309   : > { %2795 = vperm.xlu1 %3918, %v5431_v41   ;;  %v1604_v15 = vadd.f32 %v1596_v25, %v1531_v5  ;;  %v1671_v47 = vmul.f32 %v6884_v49, %v1659_v16  ;;  %v1672_v56 = vmul.f32 %v6884_v49, %v1660_v36  ;;  %v1732_v41 = vmax.f32 %v1724_v17, 0.0  ;;  %v7008_v25 = vld [vmem:[#allocation109_spill] sm:$0xff] }
 0x30a   : > { %v5706_v44 = vpop.permute.xlu1 %2434  ;;  %v1796_v60 = vadd.f32 %v5238_v38, %v7005_v6  ;;  %v1669_v43 = vmul.f32 %v6884_v49, %v1657_v10  ;;  %v2383_v22 = vadd.f32 %v5713_v37, %v2370_v29  ;;  %v1675_v31 = vadd.f32 %v1667_v40, %v1602_v52  ;;  %v7010_v10 = vld [vmem:[#allocation124_spill] sm:$0xff]  ;;  %v7011_v29 = vld [vmem:[#allocation111_spill] sm:$0xff]  ;;  %v7015_v6 = vld [vmem:[#allocation130_spill] sm:$0xff] }
 0x30b   : > { %v1793_v27 = vadd.f32 %v5238_v38, %v7006_v33  ;;  %v1733_v16 = vmax.f32 %v1725_v58, 0.0  ;;  %v1730_v61 = vmax.f32 %v1722_v12, 0.0  ;;  %v1678_v55 = vadd.f32 %v1670_v18, %v1605_v34  ;;  %v7012_v52 = vld [vmem:[#allocation36_spill] sm:$0xff]  ;;  %v7013_v18 = vld [vmem:[#allocation115_spill] sm:$0xff]  ;;  %v7016_v33 = vld [vmem:[#allocation138_spill] sm:$0xff] }
 0x30c   : > { %v1797_v26 = vadd.f32 %v5238_v38, %v7007_v21  ;;  %v1740_v36 = vmul.f32 %v7008_v25, %v1728_v48  ;;  %v1798_v9 = vadd.f32 %v5238_v38, %v7009_v57  ;;  %v1679_v49 = vadd.f32 %v1671_v47, %v1606_v32  ;;  %v7014_v47 = vld [vmem:[#allocation117_spill] sm:$0xff] }
 0x30d   : > { %3919 = vset.pattern.permute.xlu1 %v6940_v51  ;;  %v1680_v11 = vadd.f32 %v1672_v56, %v1607_v13  ;;  %v1743_v17 = vmul.f32 %v7008_v25, %v1731_v23  ;;  %v1795_v5 = vadd.f32 %v5238_v38, %v7010_v10  ;;  %v1804_v51 = vmax.f32 %v1796_v60, 0.0 }
 0x30e   : > { %2645 = vperm.xlu1 %3919, %v5462_v35   ;;  %v1677_v2 = vadd.f32 %v1669_v43, %v1604_v15  ;;  %v1744_v58 = vmul.f32 %v7008_v25, %v1732_v41  ;;  %v2391_v30 = vmax.f32 %v2383_v22, 0.0  ;;  %v1801_v48 = vmax.f32 %v1793_v27, 0.0 }
 0x30f   : > { %v5731_v40 = vpop.permute.xlu1 %2365  ;;  %v1745_v12 = vmul.f32 %v7008_v25, %v1733_v16  ;;  %v1869_v35 = vadd.f32 %v7012_v52, %v7011_v29  ;;  %v1742_v34 = vmul.f32 %v7008_v25, %v1730_v61  ;;  %v1805_v32 = vmax.f32 %v1797_v26, 0.0 }
 0x310   : > { %v1748_v23 = vadd.f32 %v1740_v36, %v1675_v31  ;;  %v1866_v38 = vadd.f32 %v7012_v52, %v7013_v18  ;;  %v1806_v13 = vmax.f32 %v1798_v9, 0.0  ;;  %v1751_v15 = vadd.f32 %v1743_v17, %v1678_v55  ;;  %v7018_v17 = vld [vmem:[#allocation45_spill] sm:$0xff] }
 0x311   : > { %v1870_v56 = vadd.f32 %v7012_v52, %v7014_v47  ;;  %v1803_v41 = vmax.f32 %v1795_v5, 0.0  ;;  %v1871_v60 = vadd.f32 %v7012_v52, %v7015_v6  ;;  %v1752_v22 = vadd.f32 %v1744_v58, %v1679_v49  ;;  %v7017_v49 = vld [vmem:[#allocation122_spill] sm:$0xff]  ;;  %v7024_v6 = vld [vmem:[#allocation133_spill] sm:$0xff] }
 0x312   : > { %3921 = vset.pattern.permute.xlu1 %v7002_v3  ;;  %v1813_v31 = vmul.f32 %v6888_v50, %v1801_v48  ;;  %v1868_v27 = vadd.f32 %v7012_v52, %v7016_v33  ;;  %v1753_v61 = vadd.f32 %v1745_v12, %v1680_v11  ;;  %v1877_v55 = vmax.f32 %v1869_v35, 0.0  ;;  %v7020_v48 = vld [vmem:[#allocation144_spill] sm:$0xff] }
 0x313   : > { %2783 = vperm.xlu1 %3921, %v5483_v63   ;;  %v5746_v43 = vpop.permute.xlu1 %2393  ;;  %v1750_v21 = vadd.f32 %v1742_v34, %v1677_v2  ;;  %v1816_v26 = vmul.f32 %v6888_v50, %v1804_v51  ;;  %v1874_v25 = vmax.f32 %v1866_v38, 0.0  ;;  %v1817_v36 = vmul.f32 %v6888_v50, %v1805_v32  ;;  %v7019_v2 = vld [vmem:[#allocation126_spill] sm:$0xff]  ;;  %v7021_v52 = vld [vmem:[#allocation128_spill] sm:$0xff] }
 0x314   : > { %v2403_v16 = vmul.f32 %v5746_v43, %v2391_v30  ;;  %v1818_v63 = vmul.f32 %v6888_v50, %v1806_v13  ;;  %v1878_v9 = vmax.f32 %v1870_v56, 0.0  ;;  %v1942_v10 = vadd.f32 %v7018_v17, %v7017_v49  ;;  %v7022_v34 = vld [vmem:[#allocation132_spill] sm:$0xff] }
 0x315   : > { %v1815_v5 = vmul.f32 %v6888_v50, %v1803_v41  ;;  %v1879_v58 = vmax.f32 %v1871_v60, 0.0  ;;  %v1821_v11 = vadd.f32 %v1813_v31, %v1748_v23  ;;  %v1939_v51 = vadd.f32 %v7018_v17, %v7019_v2  ;;  %v7023_v50 = vld [vmem:[#allocation151_spill] sm:$0xff]  ;;  %v7025_v60 = vld [vmem:[#allocation40_spill] sm:$0xff] }
 0x316   : > { %v5756_v57 = vadd.f32 %v2403_v16, %v5630_v45  ;;  %v1876_v30 = vmax.f32 %v1868_v27, 0.0  ;;  %v1944_v12 = vadd.f32 %v7018_v17, %v7020_v48  ;;  %v1824_v45 = vadd.f32 %v1816_v26, %v1751_v15  ;;  %v7026_v26 = vld [vmem:[#allocation155_spill] sm:$0xff] }
 0x317   : > { %2799 = vperm.xlu1 %3921, %v5507_v19   ;;  %v1943_v35 = vadd.f32 %v7018_v17, %v7021_v52  ;;  %v1886_v32 = vmul.f32 %v7022_v34, %v1874_v25  ;;  %v1941_v18 = vadd.f32 %v7018_v17, %v7023_v50  ;;  %v5773_v19 = vpop.permute.xlu0 %2414  ;;  %v1825_v23 = vadd.f32 %v1817_v36, %v1752_v22  ;;  %v7027_v25 = vld [vmem:[#allocation140_spill] sm:$0xff]  ;;  %v7028_v17 = vld [vmem:[#allocation142_spill] sm:$0xff] }
 0x318   : > { %v5766_v29 = vpop.permute.xlu1 %2503  ;;  %v1826_v38 = vadd.f32 %v1818_v63, %v1753_v61  ;;  %v1889_v13 = vmul.f32 %v7022_v34, %v1877_v55  ;;  %v1890_v47 = vmul.f32 %v7022_v34, %v1878_v9  ;;  %v1950_v56 = vmax.f32 %v1942_v10, 0.0  ;;  %v4021_v50 = vld [vmem:[%s6529_s3 + $0x15] ss:$0 sm:$0xff] }
 0x319   : > { %v1823_v41 = vadd.f32 %v1815_v5, %v1750_v21  ;;  %v1891_v15 = vmul.f32 %v7022_v34, %v1879_v58  ;;  %v2015_v31 = vadd.f32 %v7025_v60, %v7024_v6  ;;  %v1947_v33 = vmax.f32 %v1939_v51, 0.0  ;;  %v7029_v5 = vld [vmem:[#allocation146_spill] sm:$0xff] }
 0x31a   : > { %v1888_v27 = vmul.f32 %v7022_v34, %v1876_v30  ;;  %v1952_v16 = vmax.f32 %v1944_v12, 0.0  ;;  %v2017_v22 = vadd.f32 %v7025_v60, %v7026_v26  ;;  %v1951_v61 = vmax.f32 %v1943_v35, 0.0  ;;  %v7030_v30 = vld [vmem:[#allocation4_spill] sm:$0xff] }
 0x31b   : > { %3922 = vset.pattern.permute.xlu1 %v6975_v1  ;;  %v1894_v55 = vadd.f32 %v1886_v32, %v1821_v11  ;;  %v2012_v21 = vadd.f32 %v7025_v60, %v7027_v25  ;;  %v1949_v36 = vmax.f32 %v1941_v18, 0.0  ;;  %v1897_v9 = vadd.f32 %v1889_v13, %v1824_v45  ;;  %v4020_v1 = vld [vmem:[%s6529_s3 + $0x14] ss:$0 sm:$0xff]  ;;  %v2423_v12 = vpop.permute.xlu0 %2422  ;;  %v7031_v18 = vld [vmem:[#allocation149_spill] sm:$0xff] }
 0x31c   : > { %2730 = vperm.xlu1 %3922, %v5537_v4   ;;  %v1898_v49 = vadd.f32 %v1890_v47, %v1825_v23  ;;  %v2016_v10 = vadd.f32 %v4020_v1, %v7028_v17  ;;  %v1959_v58 = vmul.f32 %v7029_v5, %v1947_v33  ;;  %v1899_v2 = vadd.f32 %v1891_v15, %v1826_v38  ;;  %v7032_v13 = vld [vmem:[#allocation153_spill] sm:$0xff]  ;;  %v7033_v15 = vld [vmem:[#allocation154_spill] sm:$0xff]  ;;  %v7034_v60 = vld [vmem:[#allocation156_spill] sm:$0xff] }
 0x31d   : > { %v5787_v63 = vpop.permute.xlu1 %2353  ;;  %v2023_v51 = vmax.f32 %v2015_v31, 0.0  ;;  %v1962_v11 = vmul.f32 %v7029_v5, %v1950_v56  ;;  %v2014_v48 = vadd.f32 %v4020_v1, %v7030_v30  ;;  %v1896_v52 = vadd.f32 %v1888_v27, %v1823_v41 }
 0x31e   : > { %v1963_v35 = vmul.f32 %v7029_v5, %v1951_v61  ;;  %v1964_v45 = vmul.f32 %v7029_v5, %v1952_v16  ;;  %v2025_v34 = vmax.f32 %v2017_v22, 0.0  ;;  %v2020_v32 = vmax.f32 %v2012_v21, 0.0 }
 0x31f   : > { %v2088_v23 = vadd.f32 %v4021_v50, %v7031_v18  ;;  %v1961_v38 = vmul.f32 %v7029_v5, %v1949_v36  ;;  %v2085_v47 = vadd.f32 %v4021_v50, %v7032_v13  ;;  %v2024_v56 = vmax.f32 %v2016_v10, 0.0  ;;  %v2443_v5 = vpop.permute.xlu0 %2442 }
 0x320   : > { %2758 = vperm.xlu1 %3922, %v5554_v7   ;;  %v1967_v41 = vadd.f32 %v1959_v58, %v1894_v55  ;;  %v2089_v6 = vadd.f32 %v4021_v50, %v7033_v15  ;;  %v2035_v31 = vmul.f32 %v7034_v60, %v2023_v51  ;;  %v1970_v27 = vadd.f32 %v1962_v11, %v1897_v9  ;;  %v4022_v55 = vld [vmem:[%s4140_s22 + $0x38] sm:$0xff]  ;;  %v7036_v51 = vld [vmem:[#allocation23_spill] sm:$0xff]  ;;  %v7039_v15 = vld [vmem:[#allocation6_spill] sm:$0xff] }
 0x321   : > { %v2032_v16 = vmul.f32 %v7034_v60, %v2020_v32  ;;  %v2022_v26 = vmax.f32 %v2014_v48, 0.0  ;;  %v2376_v22 = vadd.f32 %v5713_v37, %v5650_v0  ;;  %v1971_v61 = vadd.f32 %v1963_v35, %v1898_v49  ;;  %v4023_v0 = vld [vmem:[%s6529_s3 + $0x16] ss:$0 sm:$0xff]  ;;  %v7035_v49 = vld [vmem:[#allocation2_spill] sm:$0xff] }
 0x322   : > { %v5807_v33 = vpop.permute.xlu1 %2491  ;;  %v1972_v25 = vadd.f32 %v1964_v45, %v1899_v2  ;;  %v2036_v21 = vmul.f32 %v7034_v60, %v2024_v56  ;;  %v2037_v36 = vmul.f32 %v7034_v60, %v2025_v34  ;;  %v2096_v1 = vmax.f32 %v2088_v23, 0.0  ;;  %v7037_v35 = vld [vmem:[#allocation12_spill] sm:$0xff] }
 0x323   : > { %v1969_v17 = vadd.f32 %v1961_v38, %v1896_v52  ;;  %v2093_v10 = vmax.f32 %v2085_v47, 0.0  ;;  %v2378_v9 = vadd.f32 %v5713_v37, %v5680_v20  ;;  %v2097_v58 = vmax.f32 %v2089_v6, 0.0  ;;  %v5833_v20 = vld [vmem:[%s6529_s3 + $0x1a] ss:$0 sm:$0xff]  ;;  %v7038_v47 = vld [vmem:[#allocation14_spill] sm:$0xff] }
 0x324   : > { %2734 = vperm.xlu1 %3922, %v4022_v55   ;;  %v5821_v2 = vadd.f32 %v4023_v0, %v7035_v49  ;;  %v2090_v11 = vadd.f32 %v4021_v50, %v7036_v51  ;;  %v2043_v48 = vadd.f32 %v2035_v31, %v1970_v27  ;;  %v2034_v52 = vmul.f32 %v7034_v60, %v2022_v26 }
 0x325   : > { %v5828_v45 = vadd.f32 %v4023_v0, %v7037_v35  ;;  %v2384_v34 = vmax.f32 %v2376_v22, 0.0  ;;  %v2040_v32 = vadd.f32 %v2032_v16, %v1967_v41  ;;  %v2449_v18 = vadd.f32 %v5833_v20, %v5773_v19  ;;  %v7040_v19 = vld [vmem:[#allocation28_spill] sm:$0xff] }
 0x326   : > { %v5824_v30 = vpop.permute.xlu1 %2507  ;;  %v2456_v23 = vadd.f32 %v5833_v20, %v2443_v5  ;;  %v2044_v38 = vadd.f32 %v2036_v21, %v1971_v61  ;;  %v2045_v13 = vadd.f32 %v2037_v36, %v1972_v25  ;;  %v5840_v56 = vadd.f32 %v4023_v0, %v7038_v47  ;;  %v7041_v25 = vld [vmem:[#allocation56_spill] sm:$0xff] }
 0x327   : > { %v2087_v6 = vadd.f32 %v4021_v50, %v7039_v15  ;;  %v2386_v60 = vmax.f32 %v2378_v9, 0.0  ;;  %v2451_v31 = vadd.f32 %v5833_v20, %v2423_v12  ;;  %v2169_v41 = vmax.f32 %v5821_v2, 0.0 }
 0x328   : > { %3924 = vset.pattern.permute.xlu1 %v7002_v3  ;;  %v2098_v27 = vmax.f32 %v2090_v11, 0.0  ;;  %v2105_v16 = vmul.f32 %v7040_v19, %v2093_v10  ;;  %v2108_v3 = vmul.f32 %v7040_v19, %v2096_v1  ;;  %v2042_v26 = vadd.f32 %v2034_v52, %v1969_v17  ;;  %v7043_v52 = vld [vmem:[#allocation30_spill] sm:$0xff] }
 0x329   : > { %2803 = vperm.xlu1 %3924, %v5537_v4   ;;  %v2166_v22 = vmax.f32 %v5828_v45, 0.0  ;;  %v2109_v61 = vmul.f32 %v7040_v19, %v2097_v58  ;;  %v2160_v21 = vadd.f32 %v4023_v0, %v7041_v25  ;;  %v2457_v36 = vmax.f32 %v2449_v18, 0.0  ;;  %v7042_v58 = vld [vmem:[#allocation63_spill] sm:$0xff] }
 0x32a   : > { %v2464_v9 = vmax.f32 %v2456_v23, 0.0  ;;  %v2396_v4 = vmul.f32 %v5746_v43, %v2384_v34  ;;  %v2170_v5 = vmax.f32 %v5840_v56, 0.0  ;;  %v2095_v49 = vmax.f32 %v2087_v6, 0.0  ;;  %v7044_v6 = vld [vmem:[#allocation5_spill] sm:$0xff] }
 0x32b   : > { %v2439_v50 = vpop.permute.xlu1 %2438  ;;  %v2459_v10 = vmax.f32 %v2451_v31, 0.0  ;;  %v2398_v1 = vmul.f32 %v5746_v43, %v2386_v60  ;;  %v2110_v17 = vmul.f32 %v7040_v19, %v2098_v27  ;;  %v2233_v2 = vadd.f32 %v7042_v58, %v5542_v46  ;;  %v2488_v60 = vpop.permute.xlu0 %2487  ;;  %v7045_v27 = vld [vmem:[#allocation53_spill] sm:$0xff] }
 0x32c   : > { %v2455_v12 = vadd.f32 %v5833_v20, %v2439_v50  ;;  %v2116_v51 = vadd.f32 %v2108_v3, %v2043_v48  ;;  %v2113_v11 = vadd.f32 %v2105_v16, %v2040_v32  ;;  %v2163_v35 = vadd.f32 %v4023_v0, %v7043_v52  ;;  %v7046_v3 = vld [vmem:[#allocation48_spill] sm:$0xff] }
 0x32d   : > { %2831 = vperm.xlu1 %3924, %v5554_v7   ;;  %v2168_v45 = vmax.f32 %v2160_v21, 0.0  ;;  %v2306_v34 = vadd.f32 %v5589_v24, %v5671_v42  ;;  %v2117_v23 = vadd.f32 %v2109_v61, %v2044_v38  ;;  %v2404_v56 = vadd.f32 %v2396_v4, %v5633_v28  ;;  %v7047_v61 = vld [vmem:[#allocation61_spill] sm:$0xff] }
 0x32e   : > { %v2463_v47 = vmax.f32 %v2455_v12, 0.0  ;;  %v2234_v46 = vadd.f32 %v7042_v58, %v7044_v6  ;;  %v2107_v48 = vmul.f32 %v7040_v19, %v2095_v49  ;;  %v2406_v0 = vadd.f32 %v2398_v1, %v5641_v54  ;;  %v7048_v12 = vld [vmem:[#allocation75_spill] sm:$0xff]  ;;  %v7049_v1 = vld [vmem:[#allocation76_spill] sm:$0xff] }
 0x32f   : > { %v5862_v18 = vpop.permute.xlu1 %2466  ;;  %v2241_v32 = vmax.f32 %v2233_v2, 0.0  ;;  %v2379_v38 = vadd.f32 %v5713_v37, %v5787_v63  ;;  %v2231_v16 = vadd.f32 %v7042_v58, %v7045_v27  ;;  %v2171_v19 = vmax.f32 %v2163_v35, 0.0 }
 0x330   : > { %v2476_v7 = vmul.f32 %v5862_v18, %v2464_v9  ;;  %v2469_v15 = vmul.f32 %v5862_v18, %v2457_v36  ;;  %v2471_v42 = vmul.f32 %v5862_v18, %v2459_v10  ;;  %v2180_v25 = vmul.f32 %v7047_v61, %v2168_v45 }
 0x331   : > { %2807 = vperm.xlu1 %3924, %v4022_v55   ;;  %v2235_v55 = vadd.f32 %v7042_v58, %v7046_v3  ;;  %v2314_v21 = vmax.f32 %v2306_v34, 0.0  ;;  %v2118_v63 = vadd.f32 %v2110_v17, %v2045_v13  ;;  %v2242_v36 = vmax.f32 %v2234_v46, 0.0  ;;  %v7050_v13 = vld [vmem:[#allocation65_spill] sm:$0xff] }
 0x332   : > { %v5875_v31 = vadd.f32 %v2476_v7, %v5756_v57  ;;  %v5877_v28 = vadd.f32 %v2469_v15, %v2404_v56  ;;  %v5883_v54 = vadd.f32 %v2471_v42, %v2406_v0  ;;  %v5889_v57 = vmul.f32 %v5862_v18, %v2463_v47  ;;  %v7051_v56 = vld [vmem:[#allocation67_spill] sm:$0xff]  ;;  %v2496_v15 = vpop.permute.xlu0 %2495 }
 0x333   : > { %v2236_v9 = vadd.f32 %v7042_v58, %v7048_v12  ;;  %v2181_v4 = vmul.f32 %v7047_v61, %v2169_v41  ;;  %v2178_v49 = vmul.f32 %v7047_v61, %v2166_v22  ;;  %v2115_v10 = vadd.f32 %v2107_v48, %v2042_v26  ;;  %v7052_v41 = vld [vmem:[#allocation38_spill] sm:$0xff] }
 0x334   : > { %v5886_v50 = vpop.permute.xlu1 %2576  ;;  %v2253_v2 = vmul.f32 %v7049_v1, %v2241_v32  ;;  %v2387_v52 = vmax.f32 %v2379_v38, 0.0  ;;  %v2182_v35 = vmul.f32 %v7047_v61, %v2170_v5  ;;  %v2239_v45 = vmax.f32 %v2231_v16, 0.0  ;;  %v5908_v5 = vld [vmem:[%s6529_s3 + $0x1b] ss:$0 sm:$0xff] }
 0x335   : > { %v2243_v34 = vmax.f32 %v2235_v55, 0.0  ;;  %v2307_v17 = vadd.f32 %v5589_v24, %v7050_v13  ;;  %v2183_v47 = vmul.f32 %v7047_v61, %v2171_v19  ;;  %v2188_v7 = vadd.f32 %v2180_v25, %v2115_v10 }
 0x336   : > { %v2304_v58 = vadd.f32 %v5589_v24, %v7051_v56  ;;  %v2308_v22 = vadd.f32 %v5589_v24, %v7052_v41  ;;  %v2326_v26 = vmul.f32 %v5619_v8, %v2314_v21  ;;  %v2244_v6 = vmax.f32 %v2236_v9, 0.0 }
 0x337   : > { %v5911_v48 = vadd.f32 %v5908_v5, %v2488_v60  ;;  %v2189_v0 = vadd.f32 %v2181_v4, %v2116_v51  ;;  %v2186_v42 = vadd.f32 %v2178_v49, %v2113_v11  ;;  %v2261_v32 = vadd.f32 %v2253_v2, %v2188_v7  ;;  %v7053_v4 = vld [vmem:[#allocation71_spill] sm:$0xff]  ;;  %v2516_v2 = vpop.permute.xlu0 %2515 }
 0x338   : > { %v2399_v38 = vmul.f32 %v5746_v43, %v2387_v52  ;;  %v2190_v16 = vadd.f32 %v2182_v35, %v2117_v23  ;;  %v2315_v3 = vmax.f32 %v2307_v17, 0.0  ;;  %v2309_v55 = vadd.f32 %v5589_v24, %v5606_v39 }
 0x339   : > { %v2427_v46 = vpop.permute.xlu1 %2426  ;;  %v5918_v19 = vadd.f32 %v5908_v5, %v2496_v15  ;;  %v2191_v61 = vadd.f32 %v2183_v47, %v2118_v63  ;;  %v2312_v25 = vmax.f32 %v2304_v58, 0.0  ;;  %v2316_v21 = vmax.f32 %v2308_v22, 0.0 }
 0x33a   : > { %v2452_v27 = vadd.f32 %v5833_v20, %v2427_v46  ;;  %v2334_v60 = vadd.f32 %v2326_v26, %v2261_v32  ;;  %v2254_v51 = vmul.f32 %v7049_v1, %v2242_v36  ;;  %v2251_v11 = vmul.f32 %v7049_v1, %v2239_v45 }
 0x33b   : > { %v2255_v9 = vmul.f32 %v7049_v1, %v2243_v34  ;;  %v2256_v23 = vmul.f32 %v7049_v1, %v2244_v6  ;;  %v2380_v49 = vadd.f32 %v5713_v37, %v7053_v4  ;;  %v2382_v24 = vadd.f32 %v5713_v37, %v5731_v40 }
 0x33c   : > { %v2460_v12 = vmax.f32 %v2452_v27, 0.0  ;;  %v2407_v39 = vadd.f32 %v2399_v38, %v2334_v60  ;;  %v2377_v36 = vadd.f32 %v5713_v37, %v5566_v14  ;;  %v2381_v52 = vadd.f32 %v5713_v37, %v5580_v59 }
 0x33d   : > { %v2317_v35 = vmax.f32 %v2309_v55, 0.0  ;;  %v2327_v1 = vmul.f32 %v5619_v8, %v2315_v3  ;;  %v2453_v45 = vadd.f32 %v5833_v20, %v5646_v62  ;;  %v2450_v40 = vadd.f32 %v5833_v20, %v5692_v53 }
 0x33e   : > { %v2472_v63 = vmul.f32 %v5862_v18, %v2460_v12  ;;  %v5929_v10 = vpop.permute.xlu1 %2564  ;;  %v2324_v13 = vmul.f32 %v5619_v8, %v2312_v25  ;;  %v2454_v17 = vadd.f32 %v5833_v20, %v5706_v44  ;;  %v2529_v14 = vadd.f32 %v5908_v5, %v2516_v2 }
 0x33f   : > { %v2262_v47 = vadd.f32 %v2254_v51, %v2189_v0  ;;  %v2259_v59 = vadd.f32 %v2251_v11, %v2186_v42  ;;  %v2390_v37 = vmax.f32 %v2382_v24, 0.0  ;;  %v2263_v56 = vadd.f32 %v2255_v9, %v2190_v16 }
 0x340   : > { %v5940_v34 = vadd.f32 %v2472_v63, %v2407_v39  ;;  %v2328_v62 = vmul.f32 %v5619_v8, %v2316_v21  ;;  %v2264_v58 = vadd.f32 %v2256_v23, %v2191_v61  ;;  %v2388_v41 = vmax.f32 %v2380_v49, 0.0 }
 0x341   : > { %v2385_v53 = vmax.f32 %v2377_v36, 0.0  ;;  %v2389_v22 = vmax.f32 %v2381_v52, 0.0  ;;  %v2329_v26 = vmul.f32 %v5619_v8, %v2317_v35  ;;  %v2461_v15 = vmax.f32 %v2453_v45, 0.0 }
 0x342   : > { %v5946_v7 = vpop.permute.xlu1 %2580  ;;  %v2458_v6 = vmax.f32 %v2450_v40, 0.0  ;;  %v2335_v46 = vadd.f32 %v2327_v1, %v2262_v47  ;;  %v2332_v44 = vadd.f32 %v2324_v13, %v2259_v59  ;;  %v2462_v20 = vmax.f32 %v2454_v17, 0.0 }
 0x343   : > { %v2400_v0 = vmul.f32 %v5746_v43, %v2388_v41  ;;  %v2397_v42 = vmul.f32 %v5746_v43, %v2385_v53  ;;  %v2401_v32 = vmul.f32 %v5746_v43, %v2389_v22  ;;  %v2526_v38 = vadd.f32 %v5908_v5, %v5766_v29 }
 0x344   : > { %v2523_v27 = vadd.f32 %v5908_v5, %v5807_v33  ;;  %v2336_v16 = vadd.f32 %v2328_v62, %v2263_v56  ;;  %v2402_v8 = vmul.f32 %v5746_v43, %v2390_v37  ;;  %v2527_v3 = vadd.f32 %v5908_v5, %v5824_v30 }
 0x345   : > { %v2473_v61 = vmul.f32 %v5862_v18, %v2461_v15  ;;  %v2470_v25 = vmul.f32 %v5862_v18, %v2458_v6  ;;  %v2474_v21 = vmul.f32 %v5862_v18, %v2462_v20  ;;  %v2530_v60 = vmax.f32 %v5911_v48, 0.0 }
 0x346   : > { %v2537_v12 = vmax.f32 %v2529_v14, 0.0  ;;  %v2337_v51 = vadd.f32 %v2329_v26, %v2264_v58  ;;  %v2532_v33 = vmax.f32 %v5918_v19, 0.0  ;;  %v2408_v11 = vadd.f32 %v2400_v0, %v2335_v46  ;;  %v5974_v58 = vpop.permute.xlu0 %2560 }
 0x347   : > { %v2512_v55 = vpop.permute.xlu1 %2511  ;;  %v2405_v43 = vadd.f32 %v2397_v42, %v2332_v44  ;;  %v2409_v9 = vadd.f32 %v2401_v32, %v2336_v16  ;;  %v2534_v23 = vmax.f32 %v2526_v38, 0.0  ;;  %v2531_v30 = vmax.f32 %v2523_v27, 0.0 }
 0x348   : > { %v2528_v29 = vadd.f32 %v5908_v5, %v2512_v55  ;;  %v2410_v49 = vadd.f32 %v2402_v8, %v2337_v51  ;;  %v2535_v24 = vmax.f32 %v2527_v3, 0.0  ;;  %v2481_v63 = vadd.f32 %v2473_v61, %v2408_v11 }
 0x349   : > { %v2478_v2 = vadd.f32 %v2470_v25, %v2405_v43  ;;  %v2482_v18 = vadd.f32 %v2474_v21, %v2409_v9 }
 0x34a   : > { %v2536_v4 = vmax.f32 %v2528_v29, 0.0  ;;  %v2483_v19 = vadd.f32 %v5889_v57, %v2410_v49  ;;  %v5977_v57 = vpop.permute.xlu0 %2568 }
 0x34b   : > { %v2540_v39 = vpop.permute.xlu1 %2539 }
 0x34c   : > { %v2549_v36 = vmul.f32 %v2540_v39, %v2537_v12  ;;  %v2546_v48 = vmul.f32 %v2540_v39, %v2534_v23  ;;  %v2542_v52 = vmul.f32 %v2540_v39, %v2530_v60  ;;  %v2543_v35 = vmul.f32 %v2540_v39, %v2531_v30  ;;  %v3629_v23 = vld [vmem:[%s6529_s3 + $0x1d] ss:$0 sm:$0xff] }
 0x34d   : > { %v2544_v1 = vmul.f32 %v2540_v39, %v2532_v33  ;;  %v2547_v45 = vmul.f32 %v2540_v39, %v2535_v24  ;;  %v2548_v40 = vmul.f32 %v2540_v39, %v2536_v4 }
 0x34e   : > { %v2557_v13 = vadd.f32 %v2549_v36, %v5875_v31  ;;  %v2554_v17 = vadd.f32 %v2546_v48, %v2481_v63  ;;  %v5969_v14 = vadd.f32 %v2542_v52, %v5877_v28  ;;  %v2551_v47 = vadd.f32 %v2543_v35, %v2478_v2  ;;  %v2589_v15 = vpop.permute.xlu0 %2588 }
 0x34f   : > { %v5972_v59 = vadd.f32 %v2544_v1, %v5883_v54  ;;  %v2555_v37 = vadd.f32 %v2547_v45, %v2482_v18  ;;  %v2556_v56 = vadd.f32 %v2548_v40, %v2483_v19  ;;  %v5985_v54 = vld [vmem:[%s6529_s3 + $0x1c] ss:$0 sm:$0xff] }
 0x350   : > { %v2650_v62 = vpop.permute.xlu1 %2649  ;;  %v2602_v46 = vadd.f32 %v5985_v54, %v2589_v15  ;;  %v2596_v44 = vadd.f32 %v5985_v54, %v5929_v10  ;;  %v2600_v20 = vadd.f32 %v5985_v54, %v5946_v7  ;;  %v6034_v15 = vld [vmem:[%s6529_s3 + $0x1e] ss:$0 sm:$0xff] }
 0x351   : > { %v2672_v4 = vadd.f32 %v3629_v23, %v2650_v62 }
 0x352   : > { %v2610_v42 = vmax.f32 %v2602_v46, 0.0  ;;  %v2604_v38 = vmax.f32 %v2596_v44, 0.0  ;;  %v2608_v16 = vmax.f32 %v2600_v20, 0.0  ;;  %v2634_v51 = vpop.permute.xlu0 %2633 }
 0x353   : > { %v2680_v2 = vmax.f32 %v2672_v4, 0.0 }
 0x355   : > { %v2500_v41 = vpop.permute.xlu1 %2499 }
 0x356   : > { %v2525_v53 = vadd.f32 %v5908_v5, %v2500_v41  ;;  %v2599_v5 = vadd.f32 %v5985_v54, %v5886_v50  ;;  %v2642_v11 = vpop.permute.xlu0 %2641 }
 0x357   : > { %v2670_v46 = vadd.f32 %v3629_v23, %v2642_v11 }
 0x358   : > { %v2533_v22 = vmax.f32 %v2525_v53, 0.0  ;;  %v2607_v32 = vmax.f32 %v2599_v5, 0.0 }
 0x35a   : > { %v2545_v31 = vmul.f32 %v2540_v39, %v2533_v22  ;;  %v2638_v26 = vpop.permute.xlu1 %2637  ;;  %v2662_v30 = vpop.permute.xlu0 %2661  ;;  %v2595_v22 = vadd.f32 %v5985_v54, %v5974_v58 }
 0x35b   : > { %v2669_v49 = vadd.f32 %v3629_v23, %v2638_v26  ;;  %v6036_v5 = vadd.f32 %v3629_v23, %v2662_v30 }
 0x35c   : > { %v5980_v28 = vadd.f32 %v2545_v31, %v5940_v34  ;;  %v2597_v31 = vadd.f32 %v5985_v54, %v5977_v57 }
 0x35d   : > { %v2677_v18 = vmax.f32 %v2669_v49, 0.0 }
 0x35e   : > { %v2654_v6 = vpop.permute.xlu1 %2653  ;;  %v2707_v63 = vpop.permute.xlu0 %2706 }
 0x35f   : > { %v2673_v24 = vadd.f32 %v3629_v23, %v2654_v6  ;;  %v2668_v6 = vadd.f32 %v3629_v23, %v2634_v51  ;;  %v2741_v57 = vadd.f32 %v6034_v15, %v2707_v63 }
 0x361   : > { %v2681_v36 = vmax.f32 %v2673_v24, 0.0  ;;  %v6080_v24 = vld [vmem:[%s6041_s15 + $0x8] sm:$0xff]  }
 0x362   : > { %v2715_v1 = vpop.permute.xlu0 %2714 }
 0x363   : > { %v2585_v34 = vpop.permute.xlu1 %2584  ;;  %v6046_v44 = vadd.f32 %v6034_v15, %v2715_v1 }
 0x364   : > { %v2601_v0 = vadd.f32 %v5985_v54, %v2585_v34  ;;  %v2603_v34 = vmax.f32 %v2595_v22, 0.0 }
 0x365   : > { %v2751_v51 = vmax.f32 %v6046_v44, 0.0 }
 0x366   : > { %v2609_v27 = vmax.f32 %v2601_v0, 0.0  ;;  %v6051_v0 = vld [vmem:[%s6529_s3 + $0x1f] ss:$0 sm:$0xff] }
 0x367   : > { %v5995_v8 = vpop.permute.xlu1 %2612 }
 0x368   : > { %v2622_v3 = vmul.f32 %v5995_v8, %v2610_v42  ;;  %v2619_v50 = vmul.f32 %v5995_v8, %v2607_v32  ;;  %v2616_v55 = vmul.f32 %v5995_v8, %v2604_v38  ;;  %v2620_v10 = vmul.f32 %v5995_v8, %v2608_v16 }
 0x369   : > { %v2621_v7 = vmul.f32 %v5995_v8, %v2609_v27  ;;  %v2605_v32 = vmax.f32 %v2597_v31, 0.0  ;;  %v2615_v49 = vmul.f32 %v5995_v8, %v2603_v34 }
 0x36a   : > { %v6002_v61 = vadd.f32 %v2622_v3, %v2557_v13  ;;  %v2627_v25 = vadd.f32 %v2619_v50, %v2554_v17  ;;  %v2624_v21 = vadd.f32 %v2616_v55, %v2551_v47  ;;  %v2628_v60 = vadd.f32 %v2620_v10, %v2555_v37  ;;  %v2719_v47 = vpop.permute.xlu0 %2718  ;;  %v6065_v3 = vld [vmem:[%s6041_s15 + $0x10] sm:$0xff]  }
 0x36b   : > { %v6004_v29 = vadd.f32 %v2621_v7, %v2556_v56  ;;  %v6054_v42 = vadd.f32 %v6034_v15, %v2719_v47  ;;  %v2676_v50 = vmax.f32 %v2668_v6, 0.0  ;;  %v2678_v55 = vmax.f32 %v2670_v46, 0.0 }
 0x36c   : > { %v2723_v12 = vpop.permute.xlu1 %2722  ;;  %v2683_v10 = vmax.f32 %v6036_v5, 0.0  ;;  %v3646_v4 = vunpack.c.l.bf16 %v6065_v3 }
 0x36d   : > { %v2745_v11 = vadd.f32 %v6034_v15, %v2723_v12  ;;  %v2752_v30 = vmax.f32 %v6054_v42, 0.0 }
 0x36e   : > { %v2780_v56 = vpop.permute.xlu0 %2779  ;;  %vm6096_vm0 = vcmp.gt.f32.partialorder %v3646_v4, 0.0 }
 0x371   : > { %v2573_v33 = vpop.permute.xlu1 %2572 }
 0x372   : > { %v2788_v53 = vpop.permute.xlu0 %2787  ;;  %v2598_v58 = vadd.f32 %v5985_v54, %v2573_v33  ;;  %v6059_v54 = vadd.f32 %v6051_v0, %v2780_v56  ;;  %v6073_v33 = vld [vmem:[%s6041_s15] sm:$0xff]   ;;  %v2753_v56 = vmax.f32 %v2745_v11, 0.0 }
 0x373   : > { %v6062_v16 = vadd.f32 %v6051_v0, %v2788_v53 }
 0x376   : > { %v6006_v43 = vpop.permute.xlu1 %2710  ;;  %v2792_v20 = vpop.permute.xlu0 %2791 }
 0x377   : > { %v6069_v7 = vadd.f32 %v6051_v0, %v2792_v20 }
 0x379   : > { %v2825_v12 = vmax.f32 %v6069_v7, 0.0 }
 0x37a   : > { %v6008_v9 = vpop.permute.xlu1 %2726 }
 0x37f   : > { %v2658_v39 = vpop.permute.xlu1 %2657 }
 0x383   : > { %v6013_v48 = vpop.permute.xlu1 %2685 }
 0x384   : > { %v2692_v52 = vmul.f32 %v6013_v48, %v2680_v2  ;;  %v2689_v35 = vmul.f32 %v6013_v48, %v2677_v18  ;;  %v2693_v45 = vmul.f32 %v6013_v48, %v2681_v36  ;;  %v2822_v2 = vmax.f32 %v6059_v54, 0.0 }
 0x385   : > { %v2742_v36 = vadd.f32 %v6034_v15, %v6006_v43  ;;  %v2623_v43 = vadd.f32 %v2615_v49, %v5969_v14  ;;  %v2688_v22 = vmul.f32 %v6013_v48, %v2676_v50  ;;  %v2690_v31 = vmul.f32 %v6013_v48, %v2678_v55 }
 0x386   : > { %v6018_v19 = vadd.f32 %v2692_v52, %v2627_v25  ;;  %v6020_v40 = vadd.f32 %v2689_v35, %v2624_v21  ;;  %v6022_v13 = vadd.f32 %v2693_v45, %v2628_v60  ;;  %v2606_v25 = vmax.f32 %v2598_v58, 0.0 }
 0x387   : > { %v2674_v21 = vadd.f32 %v3629_v23, %v2658_v39  ;;  %v2749_v60 = vmax.f32 %v2741_v57, 0.0  ;;  %v2617_v39 = vmul.f32 %v5995_v8, %v2605_v32  ;;  %v3638_v52 = vunpack.c.l.bf16 %v6073_v33 }
 0x388   : > { %v2796_v17 = vpop.permute.xlu1 %2795  ;;  %v3639_v35 = vunpack.c.h.bf16 %v6073_v33  ;;  %v2618_v1 = vmul.f32 %v5995_v8, %v2606_v25  ;;  %v2746_v45 = vadd.f32 %v6034_v15, %v6008_v9  ;;  %v2750_v58 = vmax.f32 %v2742_v36, 0.0 }
 0x389   : > { %v2682_v47 = vmax.f32 %v2674_v21, 0.0  ;;  %v2818_v8 = vadd.f32 %v6051_v0, %v2796_v17  ;;  %v2625_v46 = vadd.f32 %v2617_v39, %v5972_v59  ;;  %vm6113_vm1 = vcmp.gt.f32.partialorder %v3638_v52, 0.0 }
 0x38a   : > { %v2626_v34 = vadd.f32 %v2618_v1, %v5980_v28  ;;  %v2754_v42 = vmax.f32 %v2746_v45, 0.0  ;;  %vm6123_vm2 = vcmp.gt.f32.partialorder %v3639_v35, 0.0 }
 0x38b   : > { %v2698_v28 = vadd.f32 %v2690_v31, %v2625_v46  ;;  %v2826_v54 = vmax.f32 %v2818_v8, 0.0 }
 0x38d   : > { %v2646_v37 = vpop.permute.xlu1 %2645 }
 0x38e   : > { %v2671_v38 = vadd.f32 %v3629_v23, %v2646_v37  ;;  %v2824_v23 = vmax.f32 %v6062_v16, 0.0  ;;  %v3642_v37 = vunpack.c.l.bf16 %v6080_v24 }
 0x390   : > { %v2679_v63 = vmax.f32 %v2671_v38, 0.0  ;;  %vm2868_vm3 = vcmp.gt.f32.partialorder %v3642_v37, 0.0 }
 0x392   : > { %v2784_v62 = vpop.permute.xlu1 %2783  ;;  %v2691_v9 = vmul.f32 %v6013_v48, %v2679_v63 }
 0x393   : > { %v2815_v6 = vadd.f32 %v6051_v0, %v2784_v62  ;;  %v2694_v62 = vmul.f32 %v6013_v48, %v2682_v47 }
 0x394   : > { %v2699_v16 = vadd.f32 %v2691_v9, %v2626_v34 }
 0x395   : > { %v2823_v50 = vmax.f32 %v2815_v6, 0.0 }
 0x396   : > { %v2800_v41 = vpop.permute.xlu1 %2799 }
 0x397   : > { %v2819_v57 = vadd.f32 %v6051_v0, %v2800_v41  ;;  %v2696_v41 = vadd.f32 %v2688_v22, %v2623_v43 }
 0x399   : > { %v2827_v7 = vmax.f32 %v2819_v57, 0.0  ;;  %v2695_v57 = vmul.f32 %v6013_v48, %v2683_v10 }
 0x39b   : > { %v6029_v26 = vpop.permute.xlu1 %2730  ;;  %v2703_v10 = vadd.f32 %v2695_v57, %v6002_v61 }
 0x39c   : > { %v2747_v59 = vadd.f32 %v6034_v15, %v6029_v26 }
 0x39e   : > { %v2755_v36 = vmax.f32 %v2747_v59, 0.0 }
 0x39f   : > { %v6056_v27 = vpop.permute.xlu1 %2758 }
 0x3a0   : > { %v2765_v20 = vmul.f32 %v6056_v27, %v2753_v56  ;;  %v2761_v14 = vmul.f32 %v6056_v27, %v2749_v60  ;;  %v2762_v32 = vmul.f32 %v6056_v27, %v2750_v58  ;;  %v2763_v55 = vmul.f32 %v6056_v27, %v2751_v51  ;;  %v6152_v58 = vld [vmem:[%s6041_s15 + $0x18] sm:$0xff]  }
 0x3a1   : > { %v2766_v45 = vmul.f32 %v6056_v27, %v2754_v42  ;;  %v2764_v47 = vmul.f32 %v6056_v27, %v2752_v30  ;;  %v2767_v46 = vmul.f32 %v6056_v27, %v2755_v36  ;;  %v3651_v38 = vunpack.c.h.bf16 %v6152_v58 }
 0x3a2   : > { %v2773_v26 = vadd.f32 %v2765_v20, %v6018_v19  ;;  %v2769_v60 = vadd.f32 %v2761_v14, %v2696_v41  ;;  %v2770_v1 = vadd.f32 %v2762_v32, %v6020_v40  ;;  %v2771_v22 = vadd.f32 %v2763_v55, %v2698_v28  ;;  %v2996_v55 = vld [vmem:[%s6531_s5 + $0x10] sm:$0xff] }
 0x3a3   : > { %v2735_v18 = vpop.permute.xlu1 %2734  ;;  %v2772_v6 = vadd.f32 %v2764_v47, %v2699_v16  ;;  %v2702_v20 = vadd.f32 %v2694_v62, %v6004_v29  ;;  %v3650_v29 = vunpack.c.l.bf16 %v6152_v58  ;;  %vm2873_vm7 = vcmp.gt.f32.partialorder %v3651_v38, 0.0  ;;  %v2994_v16 = vld [vmem:[%s6531_s5] sm:$0xff]  ;;  %v3004_v58 = vld [vmem:[%s6531_s5 + $0x50] sm:$0xff] }
 0x3a4   : > { %v2748_v51 = vadd.f32 %v6034_v15, %v2735_v18  ;;  %v2774_v18 = vadd.f32 %v2766_v45, %v6022_v13 }
 0x3a5   : > { %v2775_v5 = vadd.f32 %v2767_v46, %v2702_v20  ;;  %vm2872_vm6 = vcmp.gt.f32.partialorder %v3650_v29, 0.0 }
 0x3a6   : > { %v2756_v53 = vmax.f32 %v2748_v51, 0.0 }
 0x3a8   : > { %v2804_v44 = vpop.permute.xlu1 %2803  ;;  %v2768_v48 = vmul.f32 %v6056_v27, %v2756_v53 }
 0x3a9   : > { %v2820_v25 = vadd.f32 %v6051_v0, %v2804_v44 }
 0x3aa   : > { %v2776_v28 = vadd.f32 %v2768_v48, %v2703_v10 }
 0x3ab   : > { %v2828_v31 = vmax.f32 %v2820_v25, 0.0  ;;  %v2997_v25 = vld [vmem:[%s6531_s5 + $0x18] sm:$0xff] }
 0x3ac   : > { %v2832_v21 = vpop.permute.xlu1 %2831 }
 0x3ad   : > { %v2838_v11 = vmul.f32 %v2832_v21, %v2826_v54  ;;  %v2834_v49 = vmul.f32 %v2832_v21, %v2822_v2  ;;  %v2835_v63 = vmul.f32 %v2832_v21, %v2823_v50  ;;  %v2836_v39 = vmul.f32 %v2832_v21, %v2824_v23  ;;  %v2995_v50 = vld [vmem:[%s6531_s5 + $0x8] sm:$0xff] }
 0x3ae   : > { %v2839_v9 = vmul.f32 %v2832_v21, %v2827_v7  ;;  %v2837_v2 = vmul.f32 %v2832_v21, %v2825_v12  ;;  %v3643_v12 = vunpack.c.h.bf16 %v6080_v24  ;;  %v2840_v14 = vmul.f32 %v2832_v21, %v2828_v31  ;;  %v3003_v24 = vld [vmem:[%s6531_s5 + $0x48] sm:$0xff] }
 0x3af   : > { %v2846_v56 = vadd.f32 %v2838_v11, %v2773_v26  ;;  %v2842_v43 = vadd.f32 %v2834_v49, %v2769_v60  ;;  %v2843_v19 = vadd.f32 %v2835_v63, %v2770_v1  ;;  %v2844_v15 = vadd.f32 %v2836_v39, %v2771_v22  ;;  %v2998_v26 = vld [vmem:[%s6531_s5 + $0x20] sm:$0xff]  ;;  %v2999_v60 = vld [vmem:[%s6531_s5 + $0x28] sm:$0xff]  ;;  %v3000_v49 = vld [vmem:[%s6531_s5 + $0x30] sm:$0xff] }
 0x3b0   : > { %v2808_v8 = vpop.permute.xlu1 %2807  ;;  %v2847_v44 = vadd.f32 %v2839_v9, %v2774_v18  ;;  %v2845_v17 = vadd.f32 %v2837_v2, %v2772_v6  ;;  %vm2869_vm5 = vcmp.gt.f32.partialorder %v3643_v12, 0.0  ;;  %v2848_v32 = vadd.f32 %v2840_v14, %v2775_v5  ;;  %v3001_v63 = vld [vmem:[%s6531_s5 + $0x38] sm:$0xff] }
 0x3b1   : > { %v2821_v23 = vadd.f32 %v6051_v0, %v2808_v8  ;;  %v6137_v40 = vsel %vm6096_vm0, %v2846_v56, -1e+30  ;;  %v6141_v30 = vsel %vm6113_vm1, %v2842_v43, -1e+30  ;;  %v3647_v0 = vunpack.c.h.bf16 %v6065_v3 }
 0x3b2   : > { %2890 = vmax.xlane.f32.xlu1 %v6137_v40  ;;  %2882 = vmax.xlane.f32.xlu0 %v6141_v30  ;;  %v6160_v13 = vsel %vm6123_vm2, %v2843_v19, -1e+30  ;;  %v6162_v42 = vsel %vm2868_vm3, %v2844_v15, -1e+30  ;;  %v6175_v41 = vsel %vm2869_vm5, %v2845_v17, -1e+30  ;;  %v3723_v7 = vpack.c.bf16 %v2995_v50, %v2994_v16 }
 0x3b3   : > { %v2829_v34 = vmax.f32 %v2821_v23, 0.0  ;;  %vm2871_vm4 = vcmp.gt.f32.partialorder %v3647_v0, 0.0  ;;  %v6182_v27 = vsel %vm2872_vm6, %v2848_v32, -1e+30  ;;  %v3731_v11 = vpack.c.bf16 %v2999_v60, %v2998_v26  ;;  %v3009_v26 = vld [vmem:[%s6531_s5 + $0x78] sm:$0xff] }
 0x3b4   : > { %v6173_v59 = vsel %vm2871_vm4, %v2847_v44, -1e+30  ;;  %3724 = vmatprep.subr.bf16.mxu0 %v3723_v7  ;;  %3755 = vmatprep.subr.bf16.mxu1 %v3723_v7  ;;  %v3735_v39 = vpack.c.bf16 %v3001_v63, %v3000_v49 }
 0x3b5   : > { %v2841_v62 = vmul.f32 %v2832_v21, %v2829_v34  ;;  %v3727_v21 = vpack.c.bf16 %v2997_v25, %v2996_v55  ;;  %3726 = vmatpush3.bf16.msra.mxu0 %v3723_v7  ;;  %3763 = vmatpush3.bf16.msra.mxu1 %v3723_v7  ;;  %v3006_v55 = vld [vmem:[%s6531_s5 + $0x60] sm:$0xff]  ;;  %v3007_v7 = vld [vmem:[%s6531_s5 + $0x68] sm:$0xff] }
 0x3b6   : > { %2884 = vmax.xlane.f32.xlu0 %v6160_v13  ;;  %2886 = vmax.xlane.f32.xlu1 %v6162_v42  ;;  %v3747_v25 = vpack.c.bf16 %v3007_v7, %v3006_v55 }
 0x3b7   : > { %v2849_v54 = vadd.f32 %v2841_v62, %v2776_v28  ;;  %3728 = vmatprep.subr.bf16.mxu0 %v3727_v21  ;;  %3756 = vmatprep.subr.bf16.mxu1 %v3727_v21 }
 0x3b9   : > { %v6187_v61 = vsel %vm2873_vm7, %v2849_v54, -1e+30  ;;  %3730 = vmatpush3.bf16.msra.mxu0 %v3727_v21  ;;  %3764 = vmatpush3.bf16.msra.mxu1 %v3727_v21  ;;  %v3008_v21 = vld [vmem:[%s6531_s5 + $0x70] sm:$0xff] }
 0x3ba   : > { %2892 = vmax.xlane.f32.xlu0 %v6173_v59  ;;  %2888 = vmax.xlane.f32.xlu1 %v6175_v41  ;;  %v3751_v60 = vpack.c.bf16 %v3009_v26, %v3008_v21 }
 0x3bb   : > { %3732 = vmatprep.subr.bf16.mxu0 %v3731_v11  ;;  %3757 = vmatprep.subr.bf16.mxu1 %v3731_v11 }
 0x3bd   : > { %3734 = vmatpush3.bf16.msra.mxu0 %v3731_v11  ;;  %3765 = vmatpush3.bf16.msra.mxu1 %v3731_v11 }
 0x3be   : > { %2894 = vmax.xlane.f32.xlu0 %v6182_v27  ;;  %3736 = vmatprep.subr.bf16.mxu0 %v3735_v39 }
 0x3bf   : > { %3758 = vmatprep.subr.bf16.mxu1 %v3735_v39 }
 0x3c1   : > { %3738 = vmatpush3.bf16.msra.mxu0 %v3735_v39  ;;  %3766 = vmatpush3.bf16.msra.mxu1 %v3735_v39 }
 0x3c2   : > { %2896 = vmax.xlane.f32.xlu0 %v6187_v61 }
 0x43f   : > { %v2891_v36 = vpop.xlane.xlu1 %2890  ;;  %v2883_v1 = vpop.xlane.xlu0 %2882 }
 0x440   : > { %vm2902_vm8 = vcmp.le.f32.partialorder %v2891_v36, -5e+29  ;;  %vm2898_vm9 = vcmp.le.f32.partialorder %v2883_v1, -5e+29 }
 0x441   : > { %v2910_v45 = vsel %vm2902_vm8, 0.0, %v2891_v36  ;;  %v2906_v47 = vsel %vm2898_vm9, 0.0, %v2883_v1 }
 0x442   : > { %v2918_v51 = vsub.f32 %v6137_v40, %v2910_v45  ;;  %v2914_v56 = vsub.f32 %v6141_v30, %v2906_v47 }
 0x443   : > { %v2887_v43 = vpop.xlane.xlu1 %2886  ;;  %v2885_v22 = vpop.xlane.xlu0 %2884 }
 0x444   : > { %v2930_v31 = vmul.f32 1.442695, %v2918_v51  ;;  %v2922_v8 = vmul.f32 1.442695, %v2914_v56  ;;  %vm2900_vm10 = vcmp.le.f32.partialorder %v2887_v43, -5e+29 }
 0x445   : > { %v2908_v19 = vsel %vm2900_vm10, 0.0, %v2887_v43  ;;  %vm2899_vm11 = vcmp.le.f32.partialorder %v2885_v22, -5e+29 }
 0x446   : > { %3925 = vpow2.f32 %v2930_v31  ;;  %v2916_v9 = vsub.f32 %v6162_v42, %v2908_v19  ;;  %v2907_v2 = vsel %vm2899_vm11, 0.0, %v2885_v22  ;;  %vm3347_vm11 = vcmask 261120  }
 0x447   : > { %3927 = vpow2.f32 %v2922_v8  ;;  %v2915_v23 = vsub.f32 %v6160_v13, %v2907_v2  ;;  %v2889_v15 = vpop.xlane.xlu1 %2888  ;;  %v2893_v18 = vpop.xlane.xlu0 %2892 }
 0x448   : > { %vm2901_vm12 = vcmp.le.f32.partialorder %v2889_v15, -5e+29  ;;  %vm2903_vm13 = vcmp.le.f32.partialorder %v2893_v18, -5e+29  ;;  %v2926_v40 = vmul.f32 1.442695, %v2916_v9 }
 0x449   : > { %v2924_v30 = vmul.f32 1.442695, %v2915_v23  ;;  %v2909_v53 = vsel %vm2901_vm12, 0.0, %v2889_v15  ;;  %v2911_v6 = vsel %vm2903_vm13, 0.0, %v2893_v18 }
 0x44a   : > { %v2917_v46 = vsub.f32 %v6175_v41, %v2909_v53  ;;  %v2919_v57 = vsub.f32 %v6173_v59, %v2911_v6 }
 0x44b   : > { %3929 = vpow2.f32 %v2924_v30  ;;  %v2895_v44 = vpop.xlane.xlu0 %2894 }
 0x44c   : > { %v2932_v20 = vmul.f32 1.442695, %v2919_v57  ;;  %vm2904_vm14 = vcmp.le.f32.partialorder %v2895_v44, -5e+29  ;;  %3931 = vpow2.f32 %v2926_v40  ;;  %v2928_v14 = vmul.f32 1.442695, %v2917_v46 }
 0x44d   : > { %v2912_v34 = vsel %vm2904_vm14, 0.0, %v2895_v44 }
 0x44e   : > { %v2920_v13 = vsub.f32 %v6182_v27, %v2912_v34  ;;  %3933 = vpow2.f32 %v2932_v20 }
 0x44f   : > { %v2897_v42 = vpop.xlane.xlu0 %2896  ;;  %3935 = vpow2.f32 %v2928_v14 }
 0x450   : > { %v3926_v17 = vpop.eup %3925  ;;  %v2934_v48 = vmul.f32 1.442695, %v2920_v13  ;;  %vm2905_vm15 = vcmp.le.f32.partialorder %v2897_v42, -5e+29 }
 0x451   : > { %v3928_v5 = vpop.eup %3927  ;;  %v2913_v10 = vsel %vm2905_vm15, 0.0, %v2897_v42  ;;  %v6223_v62 = vmul.f32 %v3926_v17, %v3646_v4 }
 0x452   : > { %3937 = vpow2.f32 %v2934_v48  ;;  %v2921_v59 = vsub.f32 %v6187_v61, %v2913_v10  ;;  %v6228_v41 = vmul.f32 %v3928_v5, %v3638_v52 }
 0x453   : > { %2954 = vadd.xlane.f32.xlu0 %v6223_v62 }
 0x454   : > { %v2936_v32 = vmul.f32 1.442695, %v2921_v59  ;;  %2946 = vadd.xlane.f32.xlu1 %v6228_v41 }
 0x455   : > { %v3930_v28 = vpop.eup %3929 }
 0x456   : > { %3939 = vpow2.f32 %v2936_v32  ;;  %v6234_v27 = vmul.f32 %v3930_v28, %v3639_v35  ;;  %v3932_v4 = vpop.eup %3931 }
 0x457   : > { %v6239_v61 = vmul.f32 %v3932_v4, %v3642_v37 }
 0x458   : > { %2948 = vadd.xlane.f32.xlu1 %v6234_v27  ;;  %v3934_v54 = vpop.eup %3933 }
 0x459   : > { %v6243_v52 = vmul.f32 %v3934_v54, %v3647_v0  ;;  %v3936_v16 = vpop.eup %3935  ;;  %v3002_v0 = vld [vmem:[%s6531_s5 + $0x40] sm:$0xff] }
 0x45a   : > { %v6253_v35 = vmul.f32 %v3936_v16, %v3643_v12  ;;  %v3739_v12 = vpack.c.bf16 %v3003_v24, %v3002_v0 }
 0x45b   : > { %2956 = vadd.xlane.f32.xlu0 %v6243_v52 }
 0x45c   : > { %v3938_v50 = vpop.eup %3937  ;;  %2950 = vadd.xlane.f32.xlu1 %v6239_v61  ;;  %3740 = vmatprep.subr.bf16.mxu0 %v3739_v12 }
 0x45d   : > { %v6249_v33 = vmul.f32 %v3938_v50, %v3650_v29  ;;  %3759 = vmatprep.subr.bf16.mxu1 %v3739_v12  ;;  %3742 = vmatpush3.bf16.msra.mxu0 %v3739_v12  ;;  %v3005_v29 = vld [vmem:[%s6531_s5 + $0x58] sm:$0xff] }
 0x45e   : > { %3767 = vmatpush3.bf16.msra.mxu1 %v3739_v12 }
 0x45f   : > { %2958 = vadd.xlane.f32.xlu0 %v6249_v33 }
 0x460   : > { %v3940_v37 = vpop.eup %3939  ;;  %2952 = vadd.xlane.f32.xlu1 %v6253_v35 }
 0x461   : > { %v6259_v3 = vmul.f32 %v3940_v37, %v3651_v38  ;;  %v3743_v38 = vpack.c.bf16 %v3005_v29, %v3004_v58 }
 0x463   : > { %2960 = vadd.xlane.f32.xlu0 %v6259_v3  ;;  %3744 = vmatprep.subr.bf16.mxu0 %v3743_v38 }
 0x464   : > { %3760 = vmatprep.subr.bf16.mxu1 %v3743_v38  ;;  %3746 = vmatpush3.bf16.msra.mxu0 %v3743_v38 }
 0x465   : > { %3768 = vmatpush3.bf16.msra.mxu1 %v3743_v38  ;;  %3748 = vmatprep.subr.bf16.mxu0 %v3747_v25 }
 0x466   : > { %3761 = vmatprep.subr.bf16.mxu1 %v3747_v25 }
 0x468   : > { %3750 = vmatpush3.bf16.msra.mxu0 %v3747_v25 }
 0x469   : > { %3769 = vmatpush3.bf16.msra.mxu1 %v3747_v25  ;;  %3752 = vmatprep.subr.bf16.mxu0 %v3751_v60 }
 0x46a   : > { %3762 = vmatprep.subr.bf16.mxu1 %v3751_v60 }
 0x46c   : > { %3754 = vmatpush3.bf16.msra.mxu0 %v3751_v60 }
 0x46d   : > { %3770 = vmatpush3.bf16.msra.mxu1 %v3751_v60 }
 0x4e0   : > { %v2955_v11 = vpop.xlane.xlu0 %2954 }
 0x4e1   : > { %v2947_v49 = vpop.xlane.xlu1 %2946  ;;  %vm2966_vm0 = vcmp.gt.f32.partialorder %v2955_v11, 0.0 }
 0x4e2   : > { %vm2962_vm1 = vcmp.gt.f32.partialorder %v2947_v49, 0.0  ;;  %v2974_v63 = vsel %vm2966_vm0, %v2955_v11, 1.0 }
 0x4e3   : > { %v2970_v39 = vsel %vm2962_vm1, %v2947_v49, 1.0  ;;  %3941 = vrcp.f32 %v2974_v63 }
 0x4e4   : > { %3943 = vrcp.f32 %v2970_v39 }
 0x4e5   : > { %v2949_v36 = vpop.xlane.xlu1 %2948 }
 0x4e6   : > { %vm2963_vm2 = vcmp.gt.f32.partialorder %v2949_v36, 0.0 }
 0x4e7   : > { %v2971_v1 = vsel %vm2963_vm2, %v2949_v36, 1.0 }
 0x4e8   : > { %3945 = vrcp.f32 %v2971_v1  ;;  %v2957_v47 = vpop.xlane.xlu0 %2956 }
 0x4e9   : > { %v2951_v45 = vpop.xlane.xlu1 %2950  ;;  %vm2967_vm4 = vcmp.gt.f32.partialorder %v2957_v47, 0.0 }
 0x4ea   : > { %vm2964_vm3 = vcmp.gt.f32.partialorder %v2951_v45, 0.0  ;;  %v2975_v56 = vsel %vm2967_vm4, %v2957_v47, 1.0 }
 0x4eb   : > { %v2972_v51 = vsel %vm2964_vm3, %v2951_v45, 1.0 }
 0x4ec   : > { %3947 = vrcp.f32 %v2972_v51  ;;  %v2959_v31 = vpop.xlane.xlu0 %2958 }
 0x4ed   : > { %v3942_v43 = vpop.eup %3941  ;;  %3949 = vrcp.f32 %v2975_v56  ;;  %v2953_v22 = vpop.xlane.xlu1 %2952  ;;  %vm2968_vm6 = vcmp.gt.f32.partialorder %v2959_v31, 0.0 }
 0x4ee   : > { %v3944_v8 = vpop.eup %3943  ;;  %vm2965_vm5 = vcmp.gt.f32.partialorder %v2953_v22, 0.0  ;;  %v2990_v19 = vmul.f32 %v3942_v43, %v6223_v62  ;;  %v2976_v2 = vsel %vm2968_vm6, %v2959_v31, 1.0 }
 0x4ef   : > { %v2973_v9 = vsel %vm2965_vm5, %v2953_v22, 1.0  ;;  %v2986_v23 = vmul.f32 %v3944_v8, %v6228_v41 }
 0x4f0   : > { %3951 = vrcp.f32 %v2973_v9  ;;  %3717 = vmatprep.mubr.f32.mxu1 %v2990_v19  ;;  %v2961_v15 = vpop.xlane.xlu0 %2960 }
 0x4f1   : > { %3953 = vrcp.f32 %v2976_v2  ;;  %3711 = vmatprep.mubr.f32.mxu0 %v2986_v23  ;;  %vm2969_vm7 = vcmp.gt.f32.partialorder %v2961_v15, 0.0 }
 0x4f2   : > { %v3946_v18 = vpop.eup %3945  ;;  %v2977_v40 = vsel %vm2969_vm7, %v2961_v15, 1.0 }
 0x4f3   : > { %v2987_v30 = vmul.f32 %v3946_v18, %v6234_v27  ;;  %3955 = vrcp.f32 %v2977_v40 }
 0x4f5   : > { %3712 = vmatmul.mubr.f32.vlgmr.msra.gmra.mrb[0].mxu0 %v2987_v30 }
 0x4f6   : > { %v3948_v53 = vpop.eup %3947 }
 0x4f7   : > { %v3950_v6 = vpop.eup %3949  ;;  %v2988_v46 = vmul.f32 %v3948_v53, %v6239_v61 }
 0x4f8   : > { %v2991_v57 = vmul.f32 %v3950_v6, %v6243_v52 }
 0x4f9   : > { %3714 = vmatprep.mubr.f32.mxu0 %v2988_v46 }
 0x4fa   : > { %v3952_v44 = vpop.eup %3951  ;;  %3718 = vmatmul.mubr.f32.vlgmr.msra.gmra.mrb[0].mxu1 %v2991_v57 }
 0x4fb   : > { %v3954_v20 = vpop.eup %3953  ;;  %v2989_v14 = vmul.f32 %v3952_v44, %v6253_v35 }
 0x4fc   : > { %v2992_v34 = vmul.f32 %v3954_v20, %v6249_v33 }
 0x4fd   : > { %3715 = vmatmul.mubr.f32.gmra.mrb[2].mxu0 %v2989_v14  ;;  %v3956_v13 = vpop.eup %3955 }
 0x4fe   : > { %3720 = vmatprep.mubr.f32.mxu1 %v2992_v34  ;;  %v2993_v42 = vmul.f32 %v3956_v13, %v6259_v3 }
 0x500   : > { %3721 = vmatmul.mubr.f32.gmra.mrb[2].mxu1 %v2993_v42 }
 0x5c8   : > { %v3713_v17 = vpop.f32.mrb[0].mxu0 }
 0x5c9   : > { %v6294_v48 = vmul.f32 0.70710677, %v3713_v17  ;;  %v3076_v5 = vpop.f32.mrb[1].mxu0  ;;  %v6319_v60 = vmul.f32 0.5, %v3713_v17 }
 0x5ca   : > { %v6296_v10 = vmul.f32 0.70710677, %v3076_v5  ;;  %v6321_v11 = vmul.f32 0.5, %v3076_v5 }
 0x5cb   : > { %v3140_v62 = vand.u32 2147483647, %v6294_v48  ;;  %vm3300_vm8 = vcmp.lt.f32.partialorder %v6294_v48, 0.0 }
 0x5cc   : > { %v3139_v59 = vand.u32 2147483647, %v6296_v10  ;;  %vm3299_vm9 = vcmp.lt.f32.partialorder %v6296_v10, 0.0 }
 0x5cd   : > { %v3148_v41 = vmul.f32 0.3275911, %v3140_v62  ;;  %v3719_v32 = vpop.f32.mrb[0].mxu1  ;;  %v3252_v37 = vsub.f32 0.0, %v3140_v62 }
 0x5ce   : > { %v3147_v28 = vmul.f32 0.3275911, %v3139_v59  ;;  %v6300_v27 = vmul.f32 0.70710677, %v3719_v32  ;;  %v3096_v54 = vpop.f32.mrb[1].mxu1  ;;  %v3251_v58 = vsub.f32 0.0, %v3139_v59 }
 0x5cf   : > { %v3156_v4 = vadd.f32 1.0, %v3148_v41  ;;  %v6303_v50 = vmul.f32 0.70710677, %v3096_v54  ;;  %v3260_v25 = vmul.f32 %v3252_v37, %v3140_v62  ;;  %v6323_v39 = vmul.f32 0.5, %v3719_v32 }
 0x5d0   : > { %v3155_v61 = vadd.f32 1.0, %v3147_v28  ;;  %v3144_v52 = vand.u32 2147483647, %v6300_v27  ;;  %v3716_v16 = vpop.f32.mrb[2].mxu0  ;;  %v3259_v63 = vmul.f32 %v3251_v58, %v3139_v59  ;;  %v6330_v22 = vmul.f32 0.5, %v3096_v54 }
 0x5d1   : > { %3957 = vrcp.f32 %v3156_v4  ;;  %v6305_v33 = vpop.f32.mrb[3].mxu0  ;;  %v3143_v3 = vand.u32 2147483647, %v6303_v50  ;;  %v6308_v24 = vmul.f32 0.70710677, %v3716_v16  ;;  %v6340_v44 = vmul.f32 0.5, %v3716_v16 }
 0x5d2   : > { %3959 = vrcp.f32 %v3155_v61  ;;  %v3152_v35 = vmul.f32 0.3275911, %v3144_v52  ;;  %v6313_v38 = vmul.f32 0.70710677, %v6305_v33  ;;  %v3256_v1 = vsub.f32 0.0, %v3144_v52 }
 0x5d3   : > { %v6310_v12 = vpop.f32.mrb[2].mxu1  ;;  %v3151_v29 = vmul.f32 0.3275911, %v3143_v3  ;;  %v3142_v55 = vand.u32 2147483647, %v6308_v24  ;;  %v3255_v45 = vsub.f32 0.0, %v3143_v3 }
 0x5d4   : > { %v3160_v0 = vadd.f32 1.0, %v3152_v35  ;;  %v6316_v7 = vpop.f32.mrb[3].mxu1  ;;  %v3141_v26 = vand.u32 2147483647, %v6313_v38  ;;  %v6326_v51 = vmul.f32 0.70710677, %v6310_v12  ;;  %v3264_v53 = vmul.f32 %v3256_v1, %v3144_v52 }
 0x5d5   : > { %v3159_v21 = vadd.f32 1.0, %v3151_v29  ;;  %v3150_v49 = vmul.f32 0.3275911, %v3142_v55  ;;  %v3269_v43 = vmul.f32 1.442695, %v3260_v25  ;;  %v3254_v2 = vsub.f32 0.0, %v3142_v55 }
 0x5d6   : > { %3961 = vrcp.f32 %v3160_v0  ;;  %v3149_v36 = vmul.f32 0.3275911, %v3141_v26  ;;  %v6333_v8 = vmul.f32 0.70710677, %v6316_v7  ;;  %v3146_v23 = vand.u32 2147483647, %v6326_v51 }
 0x5d7   : > { %3963 = vrcp.f32 %v3159_v21  ;;  %v3158_v47 = vadd.f32 1.0, %v3150_v49  ;;  %v3267_v18 = vmul.f32 1.442695, %v3259_v63  ;;  %v3253_v40 = vsub.f32 0.0, %v3141_v26 }
 0x5d8   : > { %v3157_v31 = vadd.f32 1.0, %v3149_v36  ;;  %v3263_v6 = vmul.f32 %v3255_v45, %v3143_v3  ;;  %v3154_v46 = vmul.f32 0.3275911, %v3146_v23  ;;  %v3145_v20 = vand.u32 2147483647, %v6333_v8 }
 0x5d9   : > { %3965 = vrcp.f32 %v3158_v47  ;;  %v3262_v13 = vmul.f32 %v3254_v2, %v3142_v55  ;;  %v3258_v17 = vsub.f32 0.0, %v3146_v23  ;;  %v3261_v59 = vmul.f32 %v3253_v40, %v3141_v26 }
 0x5da   : > { %3967 = vrcp.f32 %v3157_v31  ;;  %v3162_v42 = vadd.f32 1.0, %v3154_v46  ;;  %v3153_v41 = vmul.f32 0.3275911, %v3145_v20  ;;  %v3277_v28 = vmul.f32 1.442695, %v3264_v53 }
 0x5db   : > { %v6328_v56 = vpop.eup %3957  ;;  %3969 = vpow2.f32 %v3269_v43  ;;  %v3275_v4 = vmul.f32 1.442695, %v3263_v6  ;;  %v3273_v3 = vmul.f32 1.442695, %v3262_v13  ;;  %v3266_v0 = vmul.f32 %v3258_v17, %v3146_v23 }
 0x5dc   : > { %v6335_v19 = vpop.eup %3959  ;;  %v3180_v9 = vmul.f32 1.0614054, %v6328_v56  ;;  %3971 = vrcp.f32 %v3162_v42  ;;  %v3161_v16 = vadd.f32 1.0, %v3153_v41  ;;  %v3271_v55 = vmul.f32 1.442695, %v3261_v59 }
 0x5dd   : > { %v3179_v15 = vmul.f32 1.0614054, %v6335_v19  ;;  %3973 = vpow2.f32 %v3267_v18  ;;  %v3257_v49 = vsub.f32 0.0, %v3145_v20  ;;  %vm3304_vm10 = vcmp.lt.f32.partialorder %v6300_v27, 0.0 }
 0x5de   : > { %v3188_v30 = vadd.f32 -1.4531521, %v3180_v9  ;;  %3975 = vrcp.f32 %v3161_v16  ;;  %v3281_v9 = vmul.f32 1.442695, %v3266_v0  ;;  %vm3303_vm12 = vcmp.lt.f32.partialorder %v6303_v50, 0.0 }
 0x5df   : > { %v3187_v57 = vadd.f32 -1.4531521, %v3179_v15  ;;  %3977 = vpow2.f32 %v3277_v28  ;;  %v3265_v6 = vmul.f32 %v3257_v49, %v3145_v20  ;;  %vm3302_vm13 = vcmp.lt.f32.partialorder %v6308_v24, 0.0 }
 0x5e0   : > { %v6343_v14 = vpop.eup %3961  ;;  %v3196_v34 = vmul.f32 %v6328_v56, %v3188_v30  ;;  %3979 = vpow2.f32 %v3275_v4  ;;  %vm3301_vm14 = vcmp.lt.f32.partialorder %v6313_v38, 0.0  ;;  %vm3306_vm15 = vcmp.lt.f32.partialorder %v6326_v51, 0.0 }
 0x5e1   : > { %v3195_v5 = vmul.f32 %v6335_v19, %v3187_v57  ;;  %v3184_v62 = vmul.f32 1.0614054, %v6343_v14  ;;  %v6348_v54 = vpop.eup %3963  ;;  %3981 = vpow2.f32 %v3273_v3  ;;  %vm3305_vm0 = vcmp.lt.f32.partialorder %v6333_v8, 0.0 }
 0x5e2   : > { %v3204_v32 = vadd.f32 1.4214138, %v3196_v34  ;;  %v3183_v37 = vmul.f32 1.0614054, %v6348_v54  ;;  %3983 = vpow2.f32 %v3271_v55 }
 0x5e3   : > { %v3203_v61 = vadd.f32 1.4214138, %v3195_v5  ;;  %v3192_v52 = vadd.f32 -1.4531521, %v3184_v62  ;;  %v6354_v25 = vpop.eup %3965  ;;  %3985 = vpow2.f32 %v3281_v9 }
 0x5e4   : > { %v3212_v35 = vmul.f32 %v6328_v56, %v3204_v32  ;;  %v3191_v26 = vadd.f32 -1.4531521, %v3183_v37  ;;  %v6356_v63 = vpop.eup %3967  ;;  %v3182_v45 = vmul.f32 1.0614054, %v6354_v25 }
 0x5e5   : > { %v3211_v58 = vmul.f32 %v6335_v19, %v3203_v61  ;;  %v3200_v29 = vmul.f32 %v6343_v14, %v3192_v52  ;;  %v3181_v31 = vmul.f32 1.0614054, %v6356_v63  ;;  %v3970_v2 = vpop.eup %3969  ;;  %v3279_v52 = vmul.f32 1.442695, %v3265_v6 }
 0x5e6   : > { %v3220_v21 = vadd.f32 -0.28449672, %v3212_v35  ;;  %v3199_v43 = vmul.f32 %v6348_v54, %v3191_v26  ;;  %v3190_v18 = vadd.f32 -1.4531521, %v3182_v45  ;;  %v6366_v13 = vpop.eup %3971 }
 0x5e7   : > { %v3219_v36 = vadd.f32 -0.28449672, %v3211_v58  ;;  %v3208_v1 = vadd.f32 1.4214138, %v3200_v29  ;;  %v3189_v53 = vadd.f32 -1.4531521, %v3181_v31  ;;  %v3974_v62 = vpop.eup %3973  ;;  %3987 = vpow2.f32 %v3279_v52 }
 0x5e8   : > { %v3228_v47 = vmul.f32 %v6328_v56, %v3220_v21  ;;  %v3207_v30 = vadd.f32 1.4214138, %v3199_v43  ;;  %v3198_v34 = vmul.f32 %v6354_v25, %v3190_v18  ;;  %v3186_v32 = vmul.f32 1.0614054, %v6366_v13  ;;  %v3115_v52 = vld [vmem:[%s6390_s20] sm:$0xff] }
 0x5e9   : > { %v3227_v23 = vmul.f32 %v6335_v19, %v3219_v36  ;;  %v3216_v15 = vmul.f32 %v6343_v14, %v3208_v1  ;;  %v3197_v5 = vmul.f32 %v6356_v63, %v3189_v53 }
 0x5ea   : > { %v3236_v40 = vadd.f32 0.2548296, %v3228_v47  ;;  %v3215_v17 = vmul.f32 %v6348_v54, %v3207_v30  ;;  %v3206_v41 = vadd.f32 1.4214138, %v3198_v34  ;;  %v3194_v3 = vadd.f32 -1.4531521, %v3186_v32 }
 0x5eb   : > { %v3235_v46 = vadd.f32 0.2548296, %v3227_v23  ;;  %v3224_v57 = vadd.f32 -0.28449672, %v3216_v15  ;;  %v3205_v61 = vadd.f32 1.4214138, %v3197_v5 }
 0x5ec   : > { %v3244_v42 = vmul.f32 %v6328_v56, %v3236_v40  ;;  %v3223_v4 = vadd.f32 -0.28449672, %v3215_v17  ;;  %v6375_v56 = vpop.eup %3975  ;;  %v3214_v37 = vmul.f32 %v6354_v25, %v3206_v41  ;;  %v3202_v1 = vmul.f32 %v6366_v13, %v3194_v3 }
 0x5ed   : > { %v3243_v20 = vmul.f32 %v6335_v19, %v3235_v46  ;;  %v3232_v59 = vmul.f32 %v6343_v14, %v3224_v57  ;;  %v3978_v0 = vpop.eup %3977  ;;  %v3213_v29 = vmul.f32 %v6356_v63, %v3205_v61  ;;  %v3185_v55 = vmul.f32 1.0614054, %v6375_v56 }
 0x5ee   : > { %v3284_v28 = vmul.f32 %v3970_v2, %v3244_v42  ;;  %v3231_v19 = vmul.f32 %v6348_v54, %v3223_v4  ;;  %v3980_v21 = vpop.eup %3979  ;;  %v3222_v36 = vadd.f32 -0.28449672, %v3214_v37  ;;  %v3210_v15 = vadd.f32 1.4214138, %v3202_v1 }
 0x5ef   : > { %v3283_v16 = vmul.f32 %v3974_v62, %v3243_v20  ;;  %v3240_v35 = vadd.f32 0.2548296, %v3232_v59  ;;  %v3221_v43 = vadd.f32 -0.28449672, %v3213_v29  ;;  %v3982_v31 = vpop.eup %3981  ;;  %v3193_v30 = vadd.f32 -1.4531521, %v3185_v55 }
 0x5f0   : > { %v3292_v58 = vsub.f32 1.0, %v3284_v28  ;;  %v3239_v47 = vadd.f32 0.2548296, %v3231_v19  ;;  %v3230_v23 = vmul.f32 %v6354_v25, %v3222_v36  ;;  %v3984_v53 = vpop.eup %3983  ;;  %v3218_v48 = vmul.f32 %v6366_v13, %v3210_v15  ;;  %v3116_v20 = vld [vmem:[%s6390_s20 + $0x8] sm:$0xff] }
 0x5f1   : > { %v3291_v26 = vsub.f32 1.0, %v3283_v16  ;;  %v3248_v49 = vmul.f32 %v6343_v14, %v3240_v35  ;;  %v3229_v40 = vmul.f32 %v6356_v63, %v3221_v43  ;;  %v3986_v42 = vpop.eup %3985  ;;  %v3201_v32 = vmul.f32 %v6375_v56, %v3193_v30  ;;  %v3120_v55 = vld [vmem:[%s6390_s20 + $0x28] sm:$0xff] }
 0x5f2   : > { %v3308_v45 = vsub.f32 0.0, %v3292_v58  ;;  %v3247_v18 = vmul.f32 %v6348_v54, %v3239_v47  ;;  %v3238_v34 = vadd.f32 0.2548296, %v3230_v23  ;;  %v3226_v61 = vadd.f32 -0.28449672, %v3218_v48  ;;  %v3988_v27 = vpop.eup %3987 }
 0x5f3   : > { %v3307_v9 = vsub.f32 0.0, %v3291_v26  ;;  %v3288_v2 = vmul.f32 %v3978_v0, %v3248_v49  ;;  %v3237_v62 = vadd.f32 0.2548296, %v3229_v40  ;;  %v3209_v37 = vadd.f32 1.4214138, %v3201_v32  ;;  %v3122_v32 = vld [vmem:[%s6390_s20 + $0x38] sm:$0xff] }
 0x5f4   : > { %v3316_v14 = vsel %vm3300_vm8, %v3308_v45, %v3292_v58  ;;  %v3287_v5 = vmul.f32 %v3980_v21, %v3247_v18  ;;  %v3246_v41 = vmul.f32 %v6354_v25, %v3238_v34  ;;  %v3234_v58 = vmul.f32 %v6366_v13, %v3226_v61  ;;  %v3117_v34 = vld [vmem:[%s6390_s20 + $0x10] sm:$0xff] }
 0x5f5   : > { %v3324_v6 = vadd.f32 1.0, %v3316_v14  ;;  %v3315_v46 = vsel %vm3299_vm9, %v3307_v9, %v3291_v26  ;;  %v3296_v57 = vsub.f32 1.0, %v3288_v2  ;;  %v3245_v4 = vmul.f32 %v6356_v63, %v3237_v62  ;;  %v3119_v2 = vld [vmem:[%s6390_s20 + $0x20] sm:$0xff] }
 0x5f6   : > { %v3323_v17 = vadd.f32 1.0, %v3315_v46  ;;  %v3295_v28 = vsub.f32 1.0, %v3287_v5  ;;  %v3286_v35 = vmul.f32 %v3982_v31, %v3246_v41  ;;  %v3242_v36 = vadd.f32 0.2548296, %v3234_v58  ;;  %v3118_v46 = vld [vmem:[%s6390_s20 + $0x18] sm:$0xff] }
 0x5f7   : > { %v3332_v54 = vmul.f32 %v3324_v6, %v6319_v60  ;;  %v3312_v59 = vsub.f32 0.0, %v3296_v57  ;;  %v3285_v25 = vmul.f32 %v3984_v53, %v3245_v4  ;;  %v3125_v30 = vmul.f32 0.5, %v6305_v33 }
 0x5f8   : > { %v3331_v10 = vmul.f32 %v3323_v17, %v6321_v11  ;;  %v3311_v0 = vsub.f32 0.0, %v3295_v28  ;;  %v3294_v19 = vsub.f32 1.0, %v3286_v35  ;;  %v3217_v11 = vmul.f32 %v6375_v56, %v3209_v37  ;;  %v3121_v35 = vld [vmem:[%s6390_s20 + $0x30] sm:$0xff] }
 0x5f9   : > { %v3320_v16 = vsel %vm3304_vm10, %v3312_v59, %v3296_v57  ;;  %v6408_v3 = vadd.f32 %v3332_v54, %v3116_v20  ;;  %v3293_v49 = vsub.f32 1.0, %v3285_v25  ;;  %v3250_v9 = vmul.f32 %v6366_v13, %v3242_v36 }
 0x5fa   : > { %v3328_v60 = vadd.f32 1.0, %v3320_v16  ;;  %v6414_v29 = vadd.f32 %v3331_v10, %v3115_v52  ;;  %v3319_v26 = vsel %vm3303_vm12, %v3311_v0, %v3295_v28  ;;  %v3310_v45 = vsub.f32 0.0, %v3294_v19 }
 0x5fb   : > { %v3351_v63 = vsel %vm3347_vm11, %v6408_v3, 0.0  ;;  %v3327_v1 = vadd.f32 1.0, %v3319_v26  ;;  %v3225_v47 = vadd.f32 -0.28449672, %v3217_v11  ;;  %v3309_v31 = vsub.f32 0.0, %v3293_v49 }
 0x5fc   : > { %v3336_v21 = vmul.f32 %v3328_v60, %v6323_v39  ;;  %3352 = vadd.xlane.f32.xlu0 %v3351_v63  ;;  %v3348_v43 = vsel %vm3347_vm11, %v6414_v29, 0.0  ;;  %v3318_v23 = vsel %vm3302_vm13, %v3310_v45, %v3294_v19  ;;  %v3290_v40 = vmul.f32 %v3986_v42, %v3250_v9 }
 0x5fd   : > { %3349 = vadd.xlane.f32.xlu1 %v3348_v43  ;;  %v3335_v50 = vmul.f32 %v3327_v1, %v6330_v22  ;;  %v3233_v15 = vmul.f32 %v6375_v56, %v3225_v47  ;;  %v3326_v14 = vadd.f32 1.0, %v3318_v23  ;;  %v3317_v18 = vsel %vm3301_vm14, %v3309_v31, %v3293_v49 }
 0x5fe   : > { %v3344_v39 = vadd.f32 %v3336_v21, %v3120_v55  ;;  %v3325_v13 = vadd.f32 1.0, %v3317_v18  ;;  %v3298_v57 = vsub.f32 1.0, %v3290_v40  ;;  %v3129_v61 = vmul.f32 0.5, %v6316_v7 }
 0x5ff   : > { %v3241_v53 = vadd.f32 0.2548296, %v3233_v15  ;;  %v3343_v6 = vadd.f32 %v3335_v50, %v3119_v2  ;;  %v3334_v22 = vmul.f32 %v3326_v14, %v6340_v44  ;;  %v3130_v44 = vmul.f32 0.5, %v6310_v12 }
 0x600   : > { %v3363_v24 = vsel %vm3347_vm11, %v3344_v39, 0.0  ;;  %v3333_v17 = vmul.f32 %v3325_v13, %v3125_v30  ;;  %v3314_v42 = vsub.f32 0.0, %v3298_v57 }
 0x601   : > { %3364 = vadd.xlane.f32.xlu0 %v3363_v24  ;;  %v3249_v38 = vmul.f32 %v6375_v56, %v3241_v53  ;;  %v3360_v5 = vsel %vm3347_vm11, %v3343_v6, 0.0  ;;  %v3342_v62 = vadd.f32 %v3334_v22, %v3118_v46 }
 0x602   : > { %3361 = vadd.xlane.f32.xlu1 %v3360_v5  ;;  %v3341_v48 = vadd.f32 %v3333_v17, %v3117_v34  ;;  %v3322_v20 = vsel %vm3306_vm15, %v3314_v42, %v3298_v57 }
 0x603   : > { %v3289_v33 = vmul.f32 %v3988_v27, %v3249_v38  ;;  %v3357_v54 = vsel %vm3347_vm11, %v3342_v62, 0.0  ;;  %v3330_v59 = vadd.f32 1.0, %v3322_v20 }
 0x604   : > { %v3354_v56 = vsel %vm3347_vm11, %v3341_v48, 0.0 }
 0x605   : > { %v3297_v41 = vsub.f32 1.0, %v3289_v33  ;;  %3358 = vadd.xlane.f32.xlu0 %v3357_v54  ;;  %v3338_v10 = vmul.f32 %v3330_v59, %v3130_v44 }
 0x606   : > { %3355 = vadd.xlane.f32.xlu1 %v3354_v56 }
 0x607   : > { %v3313_v28 = vsub.f32 0.0, %v3297_v41  ;;  %v3346_v4 = vadd.f32 %v3338_v10, %v3122_v32 }
 0x609   : > { %v3321_v51 = vsel %vm3305_vm0, %v3313_v28, %v3297_v41  ;;  %v3369_v16 = vsel %vm3347_vm11, %v3346_v4, 0.0 }
 0x60a   : > { %v3329_v52 = vadd.f32 1.0, %v3321_v51  ;;  %3370 = vadd.xlane.f32.xlu0 %v3369_v16 }
 0x60c   : > { %v3337_v12 = vmul.f32 %v3329_v52, %v3129_v61  ;;  %v3632_v52 = vld [vmem:[%s6534_s8] ss:$0 sm:$0xff] }
 0x60e   : > { %v3345_v37 = vadd.f32 %v3337_v12, %v3121_v35 }
 0x610   : > { %v3366_v60 = vsel %vm3347_vm11, %v3345_v37, 0.0 }
 0x611   : > { %3367 = vadd.xlane.f32.xlu1 %v3366_v60 }
 0x689   : > { %v3353_v0 = vpop.xlane.xlu0 %3352 }
 0x68a   : > { %v3374_v25 = vmul.f32 0.03125, %v3353_v0  ;;  %v3350_v58 = vpop.xlane.xlu1 %3349 }
 0x68b   : > { %v3373_v8 = vmul.f32 0.03125, %v3350_v58 }
 0x68c   : > { %v6446_v19 = vsub.f32 %v6408_v3, %v3374_v25 }
 0x68d   : > { %v6449_v11 = vsub.f32 %v6414_v29, %v3373_v8 }
 0x68e   : > { %v3365_v7 = vpop.xlane.xlu0 %3364  ;;  %v3390_v63 = vmul.f32 %v6446_v19, %v6446_v19 }
 0x68f   : > { %v3378_v55 = vmul.f32 0.03125, %v3365_v7  ;;  %v3389_v21 = vmul.f32 %v6449_v11, %v6449_v11  ;;  %v3362_v49 = vpop.xlane.xlu1 %3361 }
 0x690   : > { %v3400_v27 = vsel %vm3347_vm11, %v3390_v63, 0.0  ;;  %v3377_v3 = vmul.f32 0.03125, %v3362_v49 }
 0x691   : > { %v6456_v26 = vsub.f32 %v3344_v39, %v3378_v55  ;;  %3401 = vadd.xlane.f32.xlu0 %v3400_v27  ;;  %v3397_v36 = vsel %vm3347_vm11, %v3389_v21, 0.0 }
 0x692   : > { %3398 = vadd.xlane.f32.xlu1 %v3397_v36  ;;  %v6461_v1 = vsub.f32 %v3343_v6, %v3377_v3  ;;  %v3359_v45 = vpop.xlane.xlu0 %3358 }
 0x693   : > { %v3394_v29 = vmul.f32 %v6456_v26, %v6456_v26  ;;  %v3376_v47 = vmul.f32 0.03125, %v3359_v45  ;;  %v3356_v43 = vpop.xlane.xlu1 %3355 }
 0x694   : > { %v3375_v9 = vmul.f32 0.03125, %v3356_v43  ;;  %v3393_v39 = vmul.f32 %v6461_v1, %v6461_v1 }
 0x695   : > { %v3412_v31 = vsel %vm3347_vm11, %v3394_v29, 0.0  ;;  %v6466_v2 = vsub.f32 %v3342_v62, %v3376_v47 }
 0x696   : > { %3413 = vadd.xlane.f32.xlu0 %v3412_v31  ;;  %v6468_v50 = vsub.f32 %v3341_v48, %v3375_v9  ;;  %v3409_v23 = vsel %vm3347_vm11, %v3393_v39, 0.0 }
 0x697   : > { %3410 = vadd.xlane.f32.xlu1 %v3409_v23  ;;  %v3392_v15 = vmul.f32 %v6466_v2, %v6466_v2  ;;  %v3371_v18 = vpop.xlane.xlu0 %3370 }
 0x698   : > { %v3391_v14 = vmul.f32 %v6468_v50, %v6468_v50  ;;  %v3380_v24 = vmul.f32 0.03125, %v3371_v18 }
 0x699   : > { %v3406_v40 = vsel %vm3347_vm11, %v3392_v15, 0.0 }
 0x69a   : > { %3407 = vadd.xlane.f32.xlu0 %v3406_v40  ;;  %v3403_v30 = vsel %vm3347_vm11, %v3391_v14, 0.0  ;;  %v6477_v13 = vsub.f32 %v3346_v4, %v3380_v24 }
 0x69b   : > { %3404 = vadd.xlane.f32.xlu1 %v3403_v30 }
 0x69c   : > { %v3396_v6 = vmul.f32 %v6477_v13, %v6477_v13 }
 0x69e   : > { %v3368_v53 = vpop.xlane.xlu1 %3367  ;;  %v3418_v22 = vsel %vm3347_vm11, %v3396_v6, 0.0 }
 0x69f   : > { %v3379_v46 = vmul.f32 0.03125, %v3368_v53  ;;  %3419 = vadd.xlane.f32.xlu0 %v3418_v22 }
 0x6a1   : > { %v6482_v57 = vsub.f32 %v3345_v37, %v3379_v46  ;;  %v3633_v37 = vld [vmem:[%s6535_s9] ss:$0 sm:$0xff] }
 0x6a3   : > { %v3395_v34 = vmul.f32 %v6482_v57, %v6482_v57 }
 0x6a5   : > { %v3415_v17 = vsel %vm3347_vm11, %v3395_v34, 0.0 }
 0x6a6   : > { %3416 = vadd.xlane.f32.xlu1 %v3415_v17 }
 0x71e   : > { %v3402_v38 = vpop.xlane.xlu0 %3401 }
 0x71f   : > { %v3422_v5 = vmul.f32 0.03125, %v3402_v38  ;;  %v3399_v42 = vpop.xlane.xlu1 %3398 }
 0x720   : > { %v3421_v33 = vmul.f32 0.03125, %v3399_v42 }
 0x721   : > { %v3430_v62 = vadd.f32 1e-05, %v3422_v5 }
 0x722   : > { %v3429_v48 = vadd.f32 1e-05, %v3421_v33 }
 0x723   : > { %3989 = vrsqrt.f32 %v3430_v62  ;;  %v3414_v20 = vpop.xlane.xlu0 %3413 }
 0x724   : > { %v3426_v54 = vmul.f32 0.03125, %v3414_v20  ;;  %3991 = vrsqrt.f32 %v3429_v48  ;;  %v3411_v59 = vpop.xlane.xlu1 %3410 }
 0x725   : > { %v3425_v41 = vmul.f32 0.03125, %v3411_v59 }
 0x726   : > { %v3434_v44 = vadd.f32 1e-05, %v3426_v54 }
 0x727   : > { %v3433_v56 = vadd.f32 1e-05, %v3425_v41  ;;  %v3408_v32 = vpop.xlane.xlu0 %3407 }
 0x728   : > { %3993 = vrsqrt.f32 %v3434_v44  ;;  %v3424_v10 = vmul.f32 0.03125, %v3408_v32  ;;  %v3405_v28 = vpop.xlane.xlu1 %3404 }
 0x729   : > { %3995 = vrsqrt.f32 %v3433_v56  ;;  %v3423_v51 = vmul.f32 0.03125, %v3405_v28 }
 0x72a   : > { %v3432_v4 = vadd.f32 1e-05, %v3424_v10 }
 0x72b   : > { %v3431_v16 = vadd.f32 1e-05, %v3423_v51 }
 0x72c   : > { %3997 = vrsqrt.f32 %v3432_v4  ;;  %v3420_v25 = vpop.xlane.xlu0 %3419 }
 0x72d   : > { %v3990_v61 = vpop.eup %3989  ;;  %3999 = vrsqrt.f32 %v3431_v16  ;;  %v3428_v58 = vmul.f32 0.03125, %v3420_v25 }
 0x72e   : > { %v3446_v35 = vmul.f32 %v3990_v61, %v6446_v19  ;;  %v3992_v12 = vpop.eup %3991 }
 0x72f   : > { %v3445_v0 = vmul.f32 %v3992_v12, %v6449_v11  ;;  %v3436_v55 = vadd.f32 1e-05, %v3428_v58 }
 0x730   : > { %v3461_v60 = vmul.f32 %v3632_v52, %v3446_v35 }
 0x731   : > { %v3460_v7 = vmul.f32 %v3632_v52, %v3445_v0  ;;  %4001 = vrsqrt.f32 %v3436_v55 }
 0x732   : > { %v3994_v19 = vpop.eup %3993  ;;  %v3476_v8 = vadd.f32 %v3633_v37, %v3461_v60 }
 0x733   : > { %v3450_v63 = vmul.f32 %v3994_v19, %v6456_v26  ;;  %v3475_v27 = vadd.f32 %v3633_v37, %v3460_v7  ;;  %v3996_v11 = vpop.eup %3995  ;;  %v3417_v49 = vpop.xlane.xlu1 %3416 }
 0x734   : > { %3484 = vst.msk [vmem:[%s6499_s27 + $0x8] sm:$0xff] %vm3347_vm11, %v3476_v8  ;;  %v3449_v3 = vmul.f32 %v3996_v11, %v6461_v1  ;;  %v3427_v36 = vmul.f32 0.03125, %v3417_v49 }
 0x735   : > { %v3465_v21 = vmul.f32 %v3632_v52, %v3450_v63  ;;  %3483 = vst.msk [vmem:[%s6499_s27] sm:$0xff] %vm3347_vm11, %v3475_v27 }
 0x736   : > { %v3998_v45 = vpop.eup %3997  ;;  %v3464_v26 = vmul.f32 %v3632_v52, %v3449_v3  ;;  %v3435_v47 = vadd.f32 1e-05, %v3427_v36 }
 0x737   : > { %v3480_v29 = vadd.f32 %v3633_v37, %v3465_v21  ;;  %v4000_v43 = vpop.eup %3999  ;;  %v3448_v31 = vmul.f32 %v3998_v45, %v6466_v2 }
 0x738   : > { %v3479_v9 = vadd.f32 %v3633_v37, %v3464_v26  ;;  %v3447_v39 = vmul.f32 %v4000_v43, %v6468_v50  ;;  %4003 = vrsqrt.f32 %v3435_v47 }
 0x739   : > { %3488 = vst.msk [vmem:[%s6499_s27 + $0x28] sm:$0xff] %vm3347_vm11, %v3480_v29  ;;  %v3463_v23 = vmul.f32 %v3632_v52, %v3448_v31 }
 0x73a   : > { %3487 = vst.msk [vmem:[%s6499_s27 + $0x20] sm:$0xff] %vm3347_vm11, %v3479_v9  ;;  %v3462_v1 = vmul.f32 %v3632_v52, %v3447_v39 }
 0x73b   : > { %v3478_v15 = vadd.f32 %v3633_v37, %v3463_v23  ;;  %v4002_v18 = vpop.eup %4001 }
 0x73c   : > { %v3477_v14 = vadd.f32 %v3633_v37, %v3462_v1  ;;  %v3452_v40 = vmul.f32 %v4002_v18, %v6477_v13 }
 0x73d   : > { %3486 = vst.msk [vmem:[%s6499_s27 + $0x18] sm:$0xff] %vm3347_vm11, %v3478_v15 }
 0x73e   : > { %3485 = vst.msk [vmem:[%s6499_s27 + $0x10] sm:$0xff] %vm3347_vm11, %v3477_v14  ;;  %v3467_v2 = vmul.f32 %v3632_v52, %v3452_v40 }
 0x740   : > { %v3482_v30 = vadd.f32 %v3633_v37, %v3467_v2 }
 0x742   : > { %v4004_v24 = vpop.eup %4003  ;;  %3490 = vst.msk [vmem:[%s6499_s27 + $0x38] sm:$0xff] %vm3347_vm11, %v3482_v30 }
 0x743   : > { %v3451_v50 = vmul.f32 %v4004_v24, %v6482_v57 }
 0x745   : > { %v3466_v53 = vmul.f32 %v3632_v52, %v3451_v50 }
 0x747   : > { %v3481_v6 = vadd.f32 %v3633_v37, %v3466_v53 }
 0x749   : > { %3489 = vst.msk [vmem:[%s6499_s27 + $0x30] sm:$0xff] %vm3347_vm11, %v3481_v6 }
 0x74a PF: > { %s20_s13 = sadd.s32 1, %s4030_s13  }
 0x74b   : > { %p17_p4 = scmp.ge.s32.totalorder %s20_s13, 4  }
 0x74d   :  { %19 = sbr.rel (!%p17_p4) target bundleno = 1 (0x1), region = 99 }

// kernel: math_model_forward.53
= control target key start
LH: loop header
LB: loop body
LE: loop exit
PB: predicated region body
PF: predicated region fallthrough
CT: control target
= control target key end

     0   :  { %v438_v3 = vmov 0.0|0.0   ;;  %vm439_vm0 = vmmov 0   ;;  %v440_v6 = vmov 0.0   ;;  %s535_s0 = inlined_call_operand.vmem [shape: f32[2,32], index: 0, kind: input, shape index: {}]   ;;  %s536_s1 = inlined_call_operand.vmem [shape: f32[32,16], index: 1, kind: input, shape index: {}]   ;;  %s537_s2 = inlined_call_operand.vmem [shape: f32[1,16], index: 2, kind: input, shape index: {}]   ;;  %s538_s3 = inlined_call_operand.vmem [shape: f32[16,16], index: 3, kind: input, shape index: {}]   ;;  %s539_s4 = inlined_call_operand.vmem [shape: f32[1,16], index: 4, kind: input, shape index: {}]   ;;  %s540_s5 = inlined_call_operand.vmem [shape: f32[16,4], index: 5, kind: input, shape index: {}]   ;;  %s541_s6 = inlined_call_operand.vmem [shape: f32[1,4], index: 6, kind: input, shape index: {}]   ;;  %s542_s7 = inlined_call_operand.hbm [shape: f32[2,4], index: 7, kind: output, shape index: {}]  }
   0x1   :  { %v28_v0 = vld [vmem:[%s536_s1] sm:$0xff]  ;;  %v29_v1 = vld [vmem:[%s536_s1 + $0x8] sm:$0xff]  ;;  %v30_v2 = vld [vmem:[%s536_s1 + $0x10] sm:$0xff]  ;;  %390 = vmatprep.subr.bf16.mxu0 %v438_v3  ;;  %373 = vmatprep.mubr.msk.f32.mxu0 %vm439_vm0, %v440_v6 }
   0x2   :  { %v391_v4 = vpack.c.bf16 %v29_v1, %v28_v0  ;;  %v31_v5 = vld [vmem:[%s536_s1 + $0x18] sm:$0xff]  ;;  %396 = vmatprep.subr.bf16.mxu1 %v438_v3  ;;  %380 = vmatprep.mubr.msk.f32.mxu1 %vm439_vm0, %v440_v6 }
   0x3   :  { %12 = vsyncpa [#allocation3], 0  ;;  %v394_v7 = vpack.c.bf16 %v31_v5, %v30_v2  ;;  %v27_v8 = vld [vmem:[%s535_s0] sm:$0x3]  ;;  %vm39_vm1 = vcmask 261120   ;;  %v141_v10 = vld [vmem:[%s538_s3 + $0x8] sm:$0xff] }
   0x4   :  { %392 = vmatpush3.bf16.msra.mxu0 %v391_v4  ;;  %v140_v9 = vld [vmem:[%s538_s3] sm:$0xff]  ;;  %vm149_vm3 = vcmask 130048   ;;  %v251_v42 = vld [vmem:[%s540_s5 + $0x8] sm:$0xff]  ;;  %s441_s19 = smov [#allocation2]   ;;  %vm332_vm5 = vcmask 25600  }
   0x5   :  { %393 = vmatprep.subr.bf16.mxu0 %v438_v3  ;;  %v397_v11 = vpack.c.bf16 %v141_v10, %v140_v9  ;;  %v348_v12 = vld [vmem:[%s537_s2] ss:$0 sm:$0xff]  ;;  %s340_s20 = sshll.u32 %s441_s19, 4  ;;  %s341_s20 = int_to_ptr.vmem [resolvable:$true] %s340_s20 }
   0x6   :  { %v250_v41 = vld [vmem:[%s540_s5] sm:$0xff]  ;;  %s414_s21 = scalar_lea.vmem %s341_s20, 32  ;;  %p419_p1 = scmp.lt.s32.totalorder %s341_s20, %s341_s20 }
   0x7   :  { %398 = vmatpush3.bf16.msra.mxu1 %v397_v11  ;;  %v400_v43 = vpack.c.bf16 %v251_v42, %v250_v41  ;;  %v350_v44 = vld [vmem:[%s539_s4] ss:$0 sm:$0xff]  ;;  %p415_p0 = scmp.ne.s32.totalorder %s341_s20, %s414_s21  ;;  %p420_p2 = scmp.lt.s32.totalorder %s414_s21, %s414_s21 }
   0x8   :  { %395 = vmatpush3.bf16.msra.mxu0 %v394_v7  ;;  %399 = vmatprep.subr.bf16.mxu1 %v438_v3  ;;  %v352_v9 = vld [vmem:[%s541_s6] ss:$0 sm:$0xff] }
   0x9   :  { %p421_p3 = por %p420_p2, %p419_p1 }
   0xb   :  { %374 = vmatmul.mubr.msk.f32.vlgmr.msra.gmra.mrb[0].mxu0 %vm39_vm1, %v27_v8  ;;  %p422_p4 = pnand %p421_p3, %p415_p0 }
  0xde   :  { %v109_v13 = vpop.f32.mrb[0].mxu0 }
  0xdf   :  { %v110_v14 = vadd.f32 %v348_v12, %v109_v13  ;;  %v375_v15 = vpop.f32.mrb[1].mxu0 }
  0xe1   :  { %v114_v16 = vmul.f32 0.70710677, %v110_v14  ;;  %v113_v38 = vmul.f32 0.5, %v110_v14 }
  0xe3   :  { %v115_v17 = vand.u32 2147483647, %v114_v16  ;;  %vm135_vm2 = vcmp.lt.f32.partialorder %v114_v16, 0.0 }
  0xe5   :  { %v116_v18 = vmul.f32 0.3275911, %v115_v17  ;;  %v129_v20 = vsub.f32 0.0, %v115_v17 }
  0xe7   :  { %v117_v19 = vadd.f32 1.0, %v116_v18  ;;  %v130_v22 = vmul.f32 %v129_v20, %v115_v17 }
  0xe9   :  { %406 = vrcp.f32 %v117_v19  ;;  %v131_v25 = vmul.f32 1.442695, %v130_v22 }
  0xeb   :  { %408 = vpow2.f32 %v131_v25 }
  0xf3   :  { %v407_v21 = vpop.eup %406 }
  0xf4   :  { %v120_v23 = vmul.f32 1.0614054, %v407_v21 }
  0xf5   :  { %v409_v33 = vpop.eup %408 }
  0xf6   :  { %v121_v24 = vadd.f32 -1.4531521, %v120_v23 }
  0xf8   :  { %v122_v26 = vmul.f32 %v407_v21, %v121_v24 }
  0xfa   :  { %v123_v27 = vadd.f32 1.4214138, %v122_v26 }
  0xfc   :  { %v124_v28 = vmul.f32 %v407_v21, %v123_v27 }
  0xfe   :  { %v125_v29 = vadd.f32 -0.28449672, %v124_v28 }
 0x100   :  { %v126_v30 = vmul.f32 %v407_v21, %v125_v29 }
 0x102   :  { %v127_v31 = vadd.f32 0.2548296, %v126_v30 }
 0x104   :  { %v128_v32 = vmul.f32 %v407_v21, %v127_v31 }
 0x106   :  { %v133_v34 = vmul.f32 %v409_v33, %v128_v32 }
 0x108   :  { %v134_v35 = vsub.f32 1.0, %v133_v34 }
 0x10a   :  { %v136_v36 = vsub.f32 0.0, %v134_v35 }
 0x10c   :  { %v137_v37 = vsel %vm135_vm2, %v136_v36, %v134_v35 }
 0x10d   :  { %v138_v39 = vadd.f32 1.0, %v137_v37 }
 0x10f   :  { %v139_v40 = vmul.f32 %v138_v39, %v113_v38 }
 0x111   :  { %381 = vmatmul.mubr.msk.f32.vlgmr.msra.gmra.mrb[0].mxu1 %vm149_vm3, %v139_v40 }
 0x112   :  { %387 = vmatprep.mubr.msk.f32.mxu1 %vm439_vm0, %v440_v6  ;;  %401 = vmatpush3.bf16.msra.mxu1 %v400_v43 }
 0x1e4   :  { %v219_v45 = vpop.f32.mrb[0].mxu1 }
 0x1e5   :  { %v220_v46 = vadd.f32 %v350_v44, %v219_v45  ;;  %v382_v47 = vpop.f32.mrb[1].mxu1 }
 0x1e7   :  { %v224_v48 = vmul.f32 0.70710677, %v220_v46  ;;  %v223_v6 = vmul.f32 0.5, %v220_v46 }
 0x1e9   :  { %v225_v49 = vand.u32 2147483647, %v224_v48  ;;  %vm245_vm4 = vcmp.lt.f32.partialorder %v224_v48, 0.0 }
 0x1eb   :  { %v226_v50 = vmul.f32 0.3275911, %v225_v49  ;;  %v239_v52 = vsub.f32 0.0, %v225_v49 }
 0x1ed   :  { %v227_v51 = vadd.f32 1.0, %v226_v50  ;;  %v240_v54 = vmul.f32 %v239_v52, %v225_v49 }
 0x1ef   :  { %410 = vrcp.f32 %v227_v51  ;;  %v241_v57 = vmul.f32 1.442695, %v240_v54 }
 0x1f1   :  { %412 = vpow2.f32 %v241_v57 }
 0x1f9   :  { %v411_v53 = vpop.eup %410 }
 0x1fa   :  { %v230_v55 = vmul.f32 1.0614054, %v411_v53 }
 0x1fb   :  { %v413_v1 = vpop.eup %412 }
 0x1fc   :  { %v231_v56 = vadd.f32 -1.4531521, %v230_v55 }
 0x1fe   :  { %v232_v58 = vmul.f32 %v411_v53, %v231_v56 }
 0x200   :  { %v233_v59 = vadd.f32 1.4214138, %v232_v58 }
 0x202   :  { %v234_v60 = vmul.f32 %v411_v53, %v233_v59 }
 0x204   :  { %v235_v61 = vadd.f32 -0.28449672, %v234_v60 }
 0x206   :  { %v236_v62 = vmul.f32 %v411_v53, %v235_v61 }
 0x208   :  { %v237_v63 = vadd.f32 0.2548296, %v236_v62 }
 0x20a   :  { %v238_v0 = vmul.f32 %v411_v53, %v237_v63 }
 0x20c   :  { %v243_v2 = vmul.f32 %v413_v1, %v238_v0 }
 0x20e   :  { %v244_v3 = vsub.f32 1.0, %v243_v2 }
 0x210   :  { %v246_v4 = vsub.f32 0.0, %v244_v3 }
 0x212   :  { %v247_v5 = vsel %vm245_vm4, %v246_v4, %v244_v3 }
 0x213   :  { %v248_v7 = vadd.f32 1.0, %v247_v5 }
 0x215   :  { %v249_v8 = vmul.f32 %v248_v7, %v223_v6 }
 0x217   :  { %388 = vmatmul.mubr.msk.f32.vlgmr.msra.gmra.mrb[2].mxu1 %vm149_vm3, %v249_v8 }
 0x2ea   :  { %v328_v10 = vpop.f32.mrb[2].mxu1 }
 0x2eb   :  { %v329_v11 = vadd.f32 %v352_v9, %v328_v10  ;;  %v389_v12 = vpop.f32.mrb[3].mxu1 }
 0x2ed   :  { %333 = vst.msk [vmem:[#allocation2] sm:$0x3] %vm332_vm5, %v329_v11 }
 0x2ee   :  { %425 = shalt.err (!%p422_p4)
}
 0x2ef   :  { %s426_s24 = scalar_lea.hbm %s542_s7, 32 }
 0x2f0   :  { %p427_p5 = scmp.ne.s32.totalorder %s542_s7, %s426_s24  ;;  %p430_p6 = scmp.lt.u32.totalorder %s426_s24, %s542_s7 }
 0x2f2   :  { %p432_p7 = pnand %p430_p6, %p427_p5 }
 0x2f4   :  { %435 = shalt.err (!%p432_p7)
}
 0x2f5   :  { %343 = dma.vmem_to_hbm [thread:$0]  %s341_s20, 32, %s542_s7, [#allocation3]  }
 0x2f6   :  { %436 = dma.done.wait [#allocation3], 32  }
 0x2f7   :  { %437 = vsyncadd [#allocation3], 4294967264 }
 0x2f8   :  { %347 = vsyncpa [#allocation3], 1 }

</bundles_post_ra>
